<compile_context>
chip_gen: v6e
topology: v6e:2x2x1
jax: 0.10.0
libtpu: 0.0.40
codegen_flags: <defaults>
</compile_context>

<pallas_src>
import jax
import jax.numpy as jnp
import numpy as np
from jax.experimental import pallas as pl
from jax.experimental.pallas import tpu as pltpu


# Default matmul operand dtype.  float32 keeps bit-level parity with the torch module;
# jnp.bfloat16 shortens the serial MXU chain ~3x at ~1e-3 relative error.
MATMUL_DTYPE = jnp.float32


def _round_up(n, m):
    return ((n + m - 1) // m) * m


# ----------------------------------------------------------------------------
# Pallas kernel: fused Encoder forward (rnn1 -> rnn2, return final h2)
# ----------------------------------------------------------------------------
def encoder_kernel(x_ref,                        # (T, F)         input sequence
                   wih1_ref, whh1_ref, b1_ref,   # (F,4H1) (H1,4H1) (1,4H1)  [H1 lane-padded]
                   wih2_ref, whh2_ref, b2_ref,   # (H1,4H2) (H2,4H2) (1,4H2) [H2 lane-padded]
                   out_ref):                     # (F, E)         final hidden of rnn2
    T, F = x_ref.shape
    H1 = whh1_ref.shape[0]            # rnn1 hidden, padded to a multiple of 128 lanes
    H2 = whh2_ref.shape[0]            # rnn2 hidden, padded to a multiple of 128 lanes
    E = out_ref.shape[1]              # true embedding dim (<= H2)
    mm_dt = whh1_ref.dtype            # matmul operand dtype (f32 or bf16)

    # --- hoist rnn1's input projection out of the serial recurrence ---------
    # One batched op covering all T steps.  F == 1 in this module, so this is a
    # lane broadcast-multiply on the VPU (no MXU work, off the critical chain).
    if F == 1:
        xw1 = x_ref[...] * wih1_ref[...] + b1_ref[...]                 # (T, 4*H1)
    else:
        xw1 = (jnp.dot(x_ref[...], wih1_ref[...],
                       preferred_element_type=jnp.float32) + b1_ref[...])

    b2 = b2_ref[...]                                                   # (1, 4*H2), small

    def mm(a, w_ref):
        # Weight read stays at the dot site (no whole-matrix hoist under the unroll);
        # Mosaic streams weight tiles from VMEM per vmatmul.
        return jnp.dot(a.astype(mm_dt), w_ref[...],
                       preferred_element_type=jnp.float32)

    def sig(v):
        # sigmoid(x) == 0.5*tanh(0.5*x) + 0.5 : exactly one EUP op per gate
        # (avoids a possible exp + divide lowering of jax.nn.sigmoid).
        return 0.5 * jnp.tanh(0.5 * v) + 0.5

    def gates_to_hc(gates, c, hid):
        # `hid` is a multiple of 128 -> every slice below is vreg-aligned.
        i = sig(gates[:, 0 * hid:1 * hid])
        f = sig(gates[:, 1 * hid:2 * hid])
        g = jnp.tanh(gates[:, 2 * hid:3 * hid])
        o = sig(gates[:, 3 * hid:4 * hid])
        # c is None at t == 0 (state is exactly zero) -> skip the f*c term.
        c_new = i * g if c is None else f * c + i * g
        h_new = o * jnp.tanh(c_new)
        # Padded lanes: gates_pad == 0 -> g_pad == 0 and c_pad stays 0 -> h_pad == 0.
        return h_new, c_new

    # --- t = 0: h/c are exactly zero -> both recurrent dots are skipped -----
    h1, c1 = gates_to_hc(xw1[0:1, :], None, H1)
    gates2 = mm(h1, wih2_ref) + b2
    h2, c2 = gates_to_hc(gates2, None, H2)

    # --- t = 1 .. T-1: statically unrolled serial recurrence ----------------
    # T is a compile-time constant: static unroll gives the scheduler cross-step
    # visibility over the latency-bound recurrence (and makes xw1 slices static).
    for t in range(1, T):
        # rnn1: only the recurrent matmul remains on the serial chain.
        gates1 = xw1[t:t + 1, :] + mm(h1, whh1_ref)
        h1, c1 = gates_to_hc(gates1, c1, H1)
        # rnn2: two separate K=128 dots; the h2_{t-1} term only depends on the
        # previous step and can issue while rnn1 step t is still in flight.
        gates2 = mm(h1, wih2_ref) + (mm(h2, whh2_ref) + b2)
        h2, c2 = gates_to_hc(gates2, c2, H2)

    # Single store of the final hidden state (== torch `hidden_n`).
    out_ref[...] = h2[:, :E]


# ----------------------------------------------------------------------------
# Weight packing (transpose/pad done ONCE, at build time, outside the kernel)
# ----------------------------------------------------------------------------
def pack_for_kernel(params, *, lane=128, matmul_dtype=MATMUL_DTYPE):
    # NOTE (correctness invariant): gate-block zero-padding to `lane` multiples is
    # only valid because the LSTM initial h/c state is exactly zero (padded gate
    # lanes are 0 -> tanh(0)=0 -> padded c/h lanes stay 0 forever).  If a nonzero
    # initial state is ever introduced, this packing must be revisited.
    wih1, whh1, b1, wih2, whh2, b2 = params
    F = wih1.shape[0]
    H1 = whh1.shape[0]
    E = whh2.shape[0]
    assert wih2.shape[0] == H1 and wih1.shape[1] == 4 * H1 and whh2.shape[1] == 4 * E
    H1p = _round_up(H1, lane)
    H2p = _round_up(E, lane)

    def pad_gate_cols(w, hid, hid_p):
        # (..., 4*hid) -> (..., 4*hid_p): each gate block zero-padded to hid_p lanes.
        parts = []
        for k in range(4):
            blk = w[..., k * hid:(k + 1) * hid]
            pad = [(0, 0)] * (w.ndim - 1) + [(0, hid_p - hid)]
            parts.append(jnp.pad(blk, pad))
        return jnp.concatenate(parts, axis=-1)

    def pad_rows(w, rows_p):
        return jnp.pad(w, [(0, rows_p - w.shape[0]), (0, 0)])

    f32 = jnp.float32
    wih1_k = pad_gate_cols(wih1, H1, H1p).astype(f32)                       # (F, 4*H1p)
    whh1_k = pad_rows(pad_gate_cols(whh1, H1, H1p), H1p).astype(matmul_dtype)  # (H1p, 4*H1p)
    b1_k = pad_gate_cols(b1, H1, H1p).astype(f32)                           # (1, 4*H1p)
    wih2_k = pad_rows(pad_gate_cols(wih2, E, H2p), H1p).astype(matmul_dtype)   # (H1p, 4*H2p)
    whh2_k = pad_rows(pad_gate_cols(whh2, E, H2p), H2p).astype(matmul_dtype)   # (H2p, 4*H2p)
    b2_k = pad_gate_cols(b2, E, H2p).astype(f32)                            # (1, 4*H2p)
    return wih1_k, whh1_k, b1_k, wih2_k, whh2_k, b2_k


# ----------------------------------------------------------------------------
# Builder: packs weights once and returns a jitted forward(x) closure
# ----------------------------------------------------------------------------
def build_encoder(params, *, seq_len, n_features, embedding_dim,
                  matmul_dtype=MATMUL_DTYPE):
    # torch: hidden_n.reshape((n_features, embedding_dim)) requires n_features == 1.
    assert n_features == 1, "Encoder's final reshape only works for n_features == 1"

    # Pack/pad once; the packed tensors are closed over (jit constants) so repeated
    # forward calls pay no per-call pad/concat cost.
    kparams = pack_for_kernel(params, matmul_dtype=matmul_dtype)

    # Everything (weights + activations) is well under 1 MiB: single invocation,
    # full-array VMEM residency, no grid / BlockSpec tiling (would only add overhead).
    vmem = pl.BlockSpec(memory_space=pltpu.MemorySpace.VMEM)
    call = pl.pallas_call(
        encoder_kernel,
        out_shape=jax.ShapeDtypeStruct((n_features, embedding_dim), jnp.float32),
        in_specs=[vmem] * 7,
        out_specs=vmem,
    )

    @jax.jit
    def forward(x):
        # torch: x.reshape((1, seq_len, n_features)) — batch dim of 1 is implicit here.
        x_seq = x.reshape(seq_len, n_features).astype(jnp.float32)
        return call(x_seq, *kparams)                       # (n_features, E)

    return forward


# ----------------------------------------------------------------------------
# Pure-JAX reference (same math, unpadded / unfused) for verification
# ----------------------------------------------------------------------------
def encoder_reference(x_seq, params):
    wih1, whh1, b1, wih2, whh2, b2 = params
    H1 = whh1.shape[0]
    E = whh2.shape[0]

    def cell(x_t, h, c, wih, whh, b, hid):
        gates = x_t @ wih + h @ whh + b
        i = jax.nn.sigmoid(gates[:, :hid])
        f = jax.nn.sigmoid(gates[:, hid:2 * hid])
        g = jnp.tanh(gates[:, 2 * hid:3 * hid])
        o = jax.nn.sigmoid(gates[:, 3 * hid:])
        c = f * c + i * g
        h = o * jnp.tanh(c)
        return h, c

    h1 = jnp.zeros((1, H1), jnp.float32)
    c1 = jnp.zeros((1, H1), jnp.float32)
    h2 = jnp.zeros((1, E), jnp.float32)
    c2 = jnp.zeros((1, E), jnp.float32)
    for t in range(x_seq.shape[0]):
        h1, c1 = cell(x_seq[t:t + 1], h1, c1, wih1, whh1, b1, H1)
        h2, c2 = cell(h1, h2, c2, wih2, whh2, b2, E)
    return h2      # == hidden_n.reshape((n_features, embedding_dim)) for F == 1


# ----------------------------------------------------------------------------
# Deterministic parameter construction (shapes from Encoder.__init__)
# ----------------------------------------------------------------------------
def make_params(key, n_features, embedding_dim):
    F = n_features
    E = embedding_dim
    H1 = 2 * E                       # Encoder.hidden_dim
    ks = jax.random.split(key, 8)

    def u(k, shape, fan):
        bound = 1.0 / np.sqrt(fan)
        return jax.random.uniform(k, shape, jnp.float32, -bound, bound)

    # rnn1: input F -> hidden H1   (PyTorch weight (4H1, in); stored transposed)
    wih1 = u(ks[0], (F, 4 * H1), H1)
    whh1 = u(ks[1], (H1, 4 * H1), H1)
    b1 = u(ks[2], (1, 4 * H1), H1) + u(ks[3], (1, 4 * H1), H1)   # b_ih + b_hh
    # rnn2: input H1 -> hidden E
    wih2 = u(ks[4], (H1, 4 * E), E)
    whh2 = u(ks[5], (E, 4 * E), E)
    b2 = u(ks[6], (1, 4 * E), E) + u(ks[7], (1, 4 * E), E)
    return wih1, whh1, b1, wih2, whh2, b2


if __name__ == "__main__":
    seq_len, n_features, embedding_dim = 8, 1, 64   # module-default embedding_dim

    key = jax.random.PRNGKey(0)
    k_x, k_p = jax.random.split(key)
    x = jax.random.normal(k_x, (seq_len, n_features), jnp.float32)
    params = make_params(k_p, n_features, embedding_dim)

    encoder = build_encoder(params, seq_len=seq_len, n_features=n_features,
                            embedding_dim=embedding_dim)
    out = jax.block_until_ready(encoder(x))

    # verify against pure-JAX reference (f32 matmul operands -> tight tolerance holds)
    ref = encoder_reference(x.reshape(seq_len, n_features), params)
    np.testing.assert_allclose(np.asarray(out), np.asarray(ref),
                               rtol=1e-5, atol=1e-5)

    assert out.shape == (n_features, embedding_dim)
    print("KERNEL_OK")
</pallas_src>

<mosaic_0001>
module attributes {stable_mosaic.version = 11 : i64} {
  func.func @encoder_kernel(%arg0: memref<8x1xf32, #tpu.memory_space<vmem>>, %arg1: memref<1x512xf32, #tpu.memory_space<vmem>>, %arg2: memref<128x512xf32, #tpu.memory_space<vmem>>, %arg3: memref<1x512xf32, #tpu.memory_space<vmem>>, %arg4: memref<128x512xf32, #tpu.memory_space<vmem>>, %arg5: memref<128x512xf32, #tpu.memory_space<vmem>>, %arg6: memref<1x512xf32, #tpu.memory_space<vmem>>, %arg7: memref<1x64xf32, #tpu.memory_space<vmem>>) attributes {dimension_semantics = [], scalar_prefetch = 0 : i64, scratch_operands = 0 : i64, tpu.core_type = #tpu.core_type<tc>} {
    %c0 = arith.constant 0 : index
    %c0_0 = arith.constant 0 : index
    %0 = vector.load %arg0[%c0, %c0_0] : memref<8x1xf32, #tpu.memory_space<vmem>>, vector<8x1xf32>
    %c0_1 = arith.constant 0 : index
    %c0_2 = arith.constant 0 : index
    %1 = vector.load %arg1[%c0_1, %c0_2] : memref<1x512xf32, #tpu.memory_space<vmem>>, vector<1x512xf32>
    %2 = vector.broadcast %0 : vector<8x1xf32> to vector<8x512xf32>
    %3 = vector.broadcast %1 : vector<1x512xf32> to vector<8x512xf32>
    %4 = arith.mulf %2, %3 : vector<8x512xf32>
    %c0_3 = arith.constant 0 : index
    %c0_4 = arith.constant 0 : index
    %5 = vector.load %arg3[%c0_3, %c0_4] : memref<1x512xf32, #tpu.memory_space<vmem>>, vector<1x512xf32>
    %6 = vector.broadcast %5 : vector<1x512xf32> to vector<8x512xf32>
    %7 = arith.addf %4, %6 : vector<8x512xf32>
    %c0_5 = arith.constant 0 : index
    %c0_6 = arith.constant 0 : index
    %8 = vector.load %arg6[%c0_5, %c0_6] : memref<1x512xf32, #tpu.memory_space<vmem>>, vector<1x512xf32>
    %9 = vector.extract_strided_slice %7 {offsets = [0, 0], sizes = [1, 512], strides = [1, 1]} : vector<8x512xf32> to vector<1x512xf32>
    %10 = vector.extract_strided_slice %9 {offsets = [0, 0], sizes = [1, 128], strides = [1, 1]} : vector<1x512xf32> to vector<1x128xf32>
    %cst = arith.constant 5.000000e-01 : f32
    %11 = vector.broadcast %cst : f32 to vector<1x128xf32>
    %12 = arith.mulf %11, %10 : vector<1x128xf32>
    %13 = math.tanh %12 : vector<1x128xf32>
    %cst_7 = arith.constant 5.000000e-01 : f32
    %14 = vector.broadcast %cst_7 : f32 to vector<1x128xf32>
    %15 = arith.mulf %14, %13 : vector<1x128xf32>
    %cst_8 = arith.constant 5.000000e-01 : f32
    %16 = vector.broadcast %cst_8 : f32 to vector<1x128xf32>
    %17 = arith.addf %15, %16 : vector<1x128xf32>
    %18 = vector.extract_strided_slice %9 {offsets = [0, 256], sizes = [1, 128], strides = [1, 1]} : vector<1x512xf32> to vector<1x128xf32>
    %19 = math.tanh %18 : vector<1x128xf32>
    %20 = vector.extract_strided_slice %9 {offsets = [0, 384], sizes = [1, 128], strides = [1, 1]} : vector<1x512xf32> to vector<1x128xf32>
    %cst_9 = arith.constant 5.000000e-01 : f32
    %21 = vector.broadcast %cst_9 : f32 to vector<1x128xf32>
    %22 = arith.mulf %21, %20 : vector<1x128xf32>
    %23 = math.tanh %22 : vector<1x128xf32>
    %cst_10 = arith.constant 5.000000e-01 : f32
    %24 = vector.broadcast %cst_10 : f32 to vector<1x128xf32>
    %25 = arith.mulf %24, %23 : vector<1x128xf32>
    %cst_11 = arith.constant 5.000000e-01 : f32
    %26 = vector.broadcast %cst_11 : f32 to vector<1x128xf32>
    %27 = arith.addf %25, %26 : vector<1x128xf32>
    %28 = arith.mulf %17, %19 : vector<1x128xf32>
    %29 = math.tanh %28 : vector<1x128xf32>
    %30 = arith.mulf %27, %29 : vector<1x128xf32>
    %c0_12 = arith.constant 0 : index
    %c0_13 = arith.constant 0 : index
    %31 = vector.load %arg4[%c0_12, %c0_13] : memref<128x512xf32, #tpu.memory_space<vmem>>, vector<128x512xf32>
    %cst_14 = arith.constant dense<0.000000e+00> : vector<1x512xf32>
    %32 = tpu.matmul %30, %31, %cst_14 {dimension_numbers = #tpu.dot_dimension_numbers<[1], [0], [0], [1], [0, 0, 1, 1], [], []>} : vector<1x128xf32>, vector<128x512xf32>, vector<1x512xf32> -> vector<1x512xf32>
    %33 = arith.addf %32, %8 : vector<1x512xf32>
    %34 = vector.extract_strided_slice %33 {offsets = [0, 0], sizes = [1, 128], strides = [1, 1]} : vector<1x512xf32> to vector<1x128xf32>
    %cst_15 = arith.constant 5.000000e-01 : f32
    %35 = vector.broadcast %cst_15 : f32 to vector<1x128xf32>
    %36 = arith.mulf %35, %34 : vector<1x128xf32>
    %37 = math.tanh %36 : vector<1x128xf32>
    %cst_16 = arith.constant 5.000000e-01 : f32
    %38 = vector.broadcast %cst_16 : f32 to vector<1x128xf32>
    %39 = arith.mulf %38, %37 : vector<1x128xf32>
    %cst_17 = arith.constant 5.000000e-01 : f32
    %40 = vector.broadcast %cst_17 : f32 to vector<1x128xf32>
    %41 = arith.addf %39, %40 : vector<1x128xf32>
    %42 = vector.extract_strided_slice %33 {offsets = [0, 256], sizes = [1, 128], strides = [1, 1]} : vector<1x512xf32> to vector<1x128xf32>
    %43 = math.tanh %42 : vector<1x128xf32>
    %44 = vector.extract_strided_slice %33 {offsets = [0, 384], sizes = [1, 128], strides = [1, 1]} : vector<1x512xf32> to vector<1x128xf32>
    %cst_18 = arith.constant 5.000000e-01 : f32
    %45 = vector.broadcast %cst_18 : f32 to vector<1x128xf32>
    %46 = arith.mulf %45, %44 : vector<1x128xf32>
    %47 = math.tanh %46 : vector<1x128xf32>
    %cst_19 = arith.constant 5.000000e-01 : f32
    %48 = vector.broadcast %cst_19 : f32 to vector<1x128xf32>
    %49 = arith.mulf %48, %47 : vector<1x128xf32>
    %cst_20 = arith.constant 5.000000e-01 : f32
    %50 = vector.broadcast %cst_20 : f32 to vector<1x128xf32>
    %51 = arith.addf %49, %50 : vector<1x128xf32>
    %52 = arith.mulf %41, %43 : vector<1x128xf32>
    %53 = math.tanh %52 : vector<1x128xf32>
    %54 = arith.mulf %51, %53 : vector<1x128xf32>
    %55 = vector.extract_strided_slice %7 {offsets = [1, 0], sizes = [1, 512], strides = [1, 1]} : vector<8x512xf32> to vector<1x512xf32>
    %c0_21 = arith.constant 0 : index
    %c0_22 = arith.constant 0 : index
    %56 = vector.load %arg2[%c0_21, %c0_22] : memref<128x512xf32, #tpu.memory_space<vmem>>, vector<128x512xf32>
    %cst_23 = arith.constant dense<0.000000e+00> : vector<1x512xf32>
    %57 = tpu.matmul %30, %56, %cst_23 {dimension_numbers = #tpu.dot_dimension_numbers<[1], [0], [0], [1], [0, 0, 1, 1], [], []>} : vector<1x128xf32>, vector<128x512xf32>, vector<1x512xf32> -> vector<1x512xf32>
    %58 = arith.addf %55, %57 : vector<1x512xf32>
    %59 = vector.extract_strided_slice %58 {offsets = [0, 0], sizes = [1, 128], strides = [1, 1]} : vector<1x512xf32> to vector<1x128xf32>
    %cst_24 = arith.constant 5.000000e-01 : f32
    %60 = vector.broadcast %cst_24 : f32 to vector<1x128xf32>
    %61 = arith.mulf %60, %59 : vector<1x128xf32>
    %62 = math.tanh %61 : vector<1x128xf32>
    %cst_25 = arith.constant 5.000000e-01 : f32
    %63 = vector.broadcast %cst_25 : f32 to vector<1x128xf32>
    %64 = arith.mulf %63, %62 : vector<1x128xf32>
    %cst_26 = arith.constant 5.000000e-01 : f32
    %65 = vector.broadcast %cst_26 : f32 to vector<1x128xf32>
    %66 = arith.addf %64, %65 : vector<1x128xf32>
    %67 = vector.extract_strided_slice %58 {offsets = [0, 128], sizes = [1, 128], strides = [1, 1]} : vector<1x512xf32> to vector<1x128xf32>
    %cst_27 = arith.constant 5.000000e-01 : f32
    %68 = vector.broadcast %cst_27 : f32 to vector<1x128xf32>
    %69 = arith.mulf %68, %67 : vector<1x128xf32>
    %70 = math.tanh %69 : vector<1x128xf32>
    %cst_28 = arith.constant 5.000000e-01 : f32
    %71 = vector.broadcast %cst_28 : f32 to vector<1x128xf32>
    %72 = arith.mulf %71, %70 : vector<1x128xf32>
    %cst_29 = arith.constant 5.000000e-01 : f32
    %73 = vector.broadcast %cst_29 : f32 to vector<1x128xf32>
    %74 = arith.addf %72, %73 : vector<1x128xf32>
    %75 = vector.extract_strided_slice %58 {offsets = [0, 256], sizes = [1, 128], strides = [1, 1]} : vector<1x512xf32> to vector<1x128xf32>
    %76 = math.tanh %75 : vector<1x128xf32>
    %77 = vector.extract_strided_slice %58 {offsets = [0, 384], sizes = [1, 128], strides = [1, 1]} : vector<1x512xf32> to vector<1x128xf32>
    %cst_30 = arith.constant 5.000000e-01 : f32
    %78 = vector.broadcast %cst_30 : f32 to vector<1x128xf32>
    %79 = arith.mulf %78, %77 : vector<1x128xf32>
    %80 = math.tanh %79 : vector<1x128xf32>
    %cst_31 = arith.constant 5.000000e-01 : f32
    %81 = vector.broadcast %cst_31 : f32 to vector<1x128xf32>
    %82 = arith.mulf %81, %80 : vector<1x128xf32>
    %cst_32 = arith.constant 5.000000e-01 : f32
    %83 = vector.broadcast %cst_32 : f32 to vector<1x128xf32>
    %84 = arith.addf %82, %83 : vector<1x128xf32>
    %85 = arith.mulf %74, %28 : vector<1x128xf32>
    %86 = arith.mulf %66, %76 : vector<1x128xf32>
    %87 = arith.addf %85, %86 : vector<1x128xf32>
    %88 = math.tanh %87 : vector<1x128xf32>
    %89 = arith.mulf %84, %88 : vector<1x128xf32>
    %c0_33 = arith.constant 0 : index
    %c0_34 = arith.constant 0 : index
    %90 = vector.load %arg4[%c0_33, %c0_34] : memref<128x512xf32, #tpu.memory_space<vmem>>, vector<128x512xf32>
    %cst_35 = arith.constant dense<0.000000e+00> : vector<1x512xf32>
    %91 = tpu.matmul %89, %90, %cst_35 {dimension_numbers = #tpu.dot_dimension_numbers<[1], [0], [0], [1], [0, 0, 1, 1], [], []>} : vector<1x128xf32>, vector<128x512xf32>, vector<1x512xf32> -> vector<1x512xf32>
    %c0_36 = arith.constant 0 : index
    %c0_37 = arith.constant 0 : index
    %92 = vector.load %arg5[%c0_36, %c0_37] : memref<128x512xf32, #tpu.memory_space<vmem>>, vector<128x512xf32>
    %cst_38 = arith.constant dense<0.000000e+00> : vector<1x512xf32>
    %93 = tpu.matmul %54, %92, %cst_38 {dimension_numbers = #tpu.dot_dimension_numbers<[1], [0], [0], [1], [0, 0, 1, 1], [], []>} : vector<1x128xf32>, vector<128x512xf32>, vector<1x512xf32> -> vector<1x512xf32>
    %94 = arith.addf %93, %8 : vector<1x512xf32>
    %95 = arith.addf %91, %94 : vector<1x512xf32>
    %96 = vector.extract_strided_slice %95 {offsets = [0, 0], sizes = [1, 128], strides = [1, 1]} : vector<1x512xf32> to vector<1x128xf32>
    %cst_39 = arith.constant 5.000000e-01 : f32
    %97 = vector.broadcast %cst_39 : f32 to vector<1x128xf32>
    %98 = arith.mulf %97, %96 : vector<1x128xf32>
    %99 = math.tanh %98 : vector<1x128xf32>
    %cst_40 = arith.constant 5.000000e-01 : f32
    %100 = vector.broadcast %cst_40 : f32 to vector<1x128xf32>
    %101 = arith.mulf %100, %99 : vector<1x128xf32>
    %cst_41 = arith.constant 5.000000e-01 : f32
    %102 = vector.broadcast %cst_41 : f32 to vector<1x128xf32>
    %103 = arith.addf %101, %102 : vector<1x128xf32>
    %104 = vector.extract_strided_slice %95 {offsets = [0, 128], sizes = [1, 128], strides = [1, 1]} : vector<1x512xf32> to vector<1x128xf32>
    %cst_42 = arith.constant 5.000000e-01 : f32
    %105 = vector.broadcast %cst_42 : f32 to vector<1x128xf32>
    %106 = arith.mulf %105, %104 : vector<1x128xf32>
    %107 = math.tanh %106 : vector<1x128xf32>
    %cst_43 = arith.constant 5.000000e-01 : f32
    %108 = vector.broadcast %cst_43 : f32 to vector<1x128xf32>
    %109 = arith.mulf %108, %107 : vector<1x128xf32>
    %cst_44 = arith.constant 5.000000e-01 : f32
    %110 = vector.broadcast %cst_44 : f32 to vector<1x128xf32>
    %111 = arith.addf %109, %110 : vector<1x128xf32>
    %112 = vector.extract_strided_slice %95 {offsets = [0, 256], sizes = [1, 128], strides = [1, 1]} : vector<1x512xf32> to vector<1x128xf32>
    %113 = math.tanh %112 : vector<1x128xf32>
    %114 = vector.extract_strided_slice %95 {offsets = [0, 384], sizes = [1, 128], strides = [1, 1]} : vector<1x512xf32> to vector<1x128xf32>
    %cst_45 = arith.constant 5.000000e-01 : f32
    %115 = vector.broadcast %cst_45 : f32 to vector<1x128xf32>
    %116 = arith.mulf %115, %114 : vector<1x128xf32>
    %117 = math.tanh %116 : vector<1x128xf32>
    %cst_46 = arith.constant 5.000000e-01 : f32
    %118 = vector.broadcast %cst_46 : f32 to vector<1x128xf32>
    %119 = arith.mulf %118, %117 : vector<1x128xf32>
    %cst_47 = arith.constant 5.000000e-01 : f32
    %120 = vector.broadcast %cst_47 : f32 to vector<1x128xf32>
    %121 = arith.addf %119, %120 : vector<1x128xf32>
    %122 = arith.mulf %111, %52 : vector<1x128xf32>
    %123 = arith.mulf %103, %113 : vector<1x128xf32>
    %124 = arith.addf %122, %123 : vector<1x128xf32>
    %125 = math.tanh %124 : vector<1x128xf32>
    %126 = arith.mulf %121, %125 : vector<1x128xf32>
    %127 = vector.extract_strided_slice %7 {offsets = [2, 0], sizes = [1, 512], strides = [1, 1]} : vector<8x512xf32> to vector<1x512xf32>
    %c0_48 = arith.constant 0 : index
    %c0_49 = arith.constant 0 : index
    %128 = vector.load %arg2[%c0_48, %c0_49] : memref<128x512xf32, #tpu.memory_space<vmem>>, vector<128x512xf32>
    %cst_50 = arith.constant dense<0.000000e+00> : vector<1x512xf32>
    %129 = tpu.matmul %89, %128, %cst_50 {dimension_numbers = #tpu.dot_dimension_numbers<[1], [0], [0], [1], [0, 0, 1, 1], [], []>} : vector<1x128xf32>, vector<128x512xf32>, vector<1x512xf32> -> vector<1x512xf32>
    %130 = arith.addf %127, %129 : vector<1x512xf32>
    %131 = vector.extract_strided_slice %130 {offsets = [0, 0], sizes = [1, 128], strides = [1, 1]} : vector<1x512xf32> to vector<1x128xf32>
    %cst_51 = arith.constant 5.000000e-01 : f32
    %132 = vector.broadcast %cst_51 : f32 to vector<1x128xf32>
    %133 = arith.mulf %132, %131 : vector<1x128xf32>
    %134 = math.tanh %133 : vector<1x128xf32>
    %cst_52 = arith.constant 5.000000e-01 : f32
    %135 = vector.broadcast %cst_52 : f32 to vector<1x128xf32>
    %136 = arith.mulf %135, %134 : vector<1x128xf32>
    %cst_53 = arith.constant 5.000000e-01 : f32
    %137 = vector.broadcast %cst_53 : f32 to vector<1x128xf32>
    %138 = arith.addf %136, %137 : vector<1x128xf32>
    %139 = vector.extract_strided_slice %130 {offsets = [0, 128], sizes = [1, 128], strides = [1, 1]} : vector<1x512xf32> to vector<1x128xf32>
    %cst_54 = arith.constant 5.000000e-01 : f32
    %140 = vector.broadcast %cst_54 : f32 to vector<1x128xf32>
    %141 = arith.mulf %140, %139 : vector<1x128xf32>
    %142 = math.tanh %141 : vector<1x128xf32>
    %cst_55 = arith.constant 5.000000e-01 : f32
    %143 = vector.broadcast %cst_55 : f32 to vector<1x128xf32>
    %144 = arith.mulf %143, %142 : vector<1x128xf32>
    %cst_56 = arith.constant 5.000000e-01 : f32
    %145 = vector.broadcast %cst_56 : f32 to vector<1x128xf32>
    %146 = arith.addf %144, %145 : vector<1x128xf32>
    %147 = vector.extract_strided_slice %130 {offsets = [0, 256], sizes = [1, 128], strides = [1, 1]} : vector<1x512xf32> to vector<1x128xf32>
    %148 = math.tanh %147 : vector<1x128xf32>
    %149 = vector.extract_strided_slice %130 {offsets = [0, 384], sizes = [1, 128], strides = [1, 1]} : vector<1x512xf32> to vector<1x128xf32>
    %cst_57 = arith.constant 5.000000e-01 : f32
    %150 = vector.broadcast %cst_57 : f32 to vector<1x128xf32>
    %151 = arith.mulf %150, %149 : vector<1x128xf32>
    %152 = math.tanh %151 : vector<1x128xf32>
    %cst_58 = arith.constant 5.000000e-01 : f32
    %153 = vector.broadcast %cst_58 : f32 to vector<1x128xf32>
    %154 = arith.mulf %153, %152 : vector<1x128xf32>
    %cst_59 = arith.constant 5.000000e-01 : f32
    %155 = vector.broadcast %cst_59 : f32 to vector<1x128xf32>
    %156 = arith.addf %154, %155 : vector<1x128xf32>
    %157 = arith.mulf %146, %87 : vector<1x128xf32>
    %158 = arith.mulf %138, %148 : vector<1x128xf32>
    %159 = arith.addf %157, %158 : vector<1x128xf32>
    %160 = math.tanh %159 : vector<1x128xf32>
    %161 = arith.mulf %156, %160 : vector<1x128xf32>
    %c0_60 = arith.constant 0 : index
    %c0_61 = arith.constant 0 : index
    %162 = vector.load %arg4[%c0_60, %c0_61] : memref<128x512xf32, #tpu.memory_space<vmem>>, vector<128x512xf32>
    %cst_62 = arith.constant dense<0.000000e+00> : vector<1x512xf32>
    %163 = tpu.matmul %161, %162, %cst_62 {dimension_numbers = #tpu.dot_dimension_numbers<[1], [0], [0], [1], [0, 0, 1, 1], [], []>} : vector<1x128xf32>, vector<128x512xf32>, vector<1x512xf32> -> vector<1x512xf32>
    %c0_63 = arith.constant 0 : index
    %c0_64 = arith.constant 0 : index
    %164 = vector.load %arg5[%c0_63, %c0_64] : memref<128x512xf32, #tpu.memory_space<vmem>>, vector<128x512xf32>
    %cst_65 = arith.constant dense<0.000000e+00> : vector<1x512xf32>
    %165 = tpu.matmul %126, %164, %cst_65 {dimension_numbers = #tpu.dot_dimension_numbers<[1], [0], [0], [1], [0, 0, 1, 1], [], []>} : vector<1x128xf32>, vector<128x512xf32>, vector<1x512xf32> -> vector<1x512xf32>
    %166 = arith.addf %165, %8 : vector<1x512xf32>
    %167 = arith.addf %163, %166 : vector<1x512xf32>
    %168 = vector.extract_strided_slice %167 {offsets = [0, 0], sizes = [1, 128], strides = [1, 1]} : vector<1x512xf32> to vector<1x128xf32>
    %cst_66 = arith.constant 5.000000e-01 : f32
    %169 = vector.broadcast %cst_66 : f32 to vector<1x128xf32>
    %170 = arith.mulf %169, %168 : vector<1x128xf32>
    %171 = math.tanh %170 : vector<1x128xf32>
    %cst_67 = arith.constant 5.000000e-01 : f32
    %172 = vector.broadcast %cst_67 : f32 to vector<1x128xf32>
    %173 = arith.mulf %172, %171 : vector<1x128xf32>
    %cst_68 = arith.constant 5.000000e-01 : f32
    %174 = vector.broadcast %cst_68 : f32 to vector<1x128xf32>
    %175 = arith.addf %173, %174 : vector<1x128xf32>
    %176 = vector.extract_strided_slice %167 {offsets = [0, 128], sizes = [1, 128], strides = [1, 1]} : vector<1x512xf32> to vector<1x128xf32>
    %cst_69 = arith.constant 5.000000e-01 : f32
    %177 = vector.broadcast %cst_69 : f32 to vector<1x128xf32>
    %178 = arith.mulf %177, %176 : vector<1x128xf32>
    %179 = math.tanh %178 : vector<1x128xf32>
    %cst_70 = arith.constant 5.000000e-01 : f32
    %180 = vector.broadcast %cst_70 : f32 to vector<1x128xf32>
    %181 = arith.mulf %180, %179 : vector<1x128xf32>
    %cst_71 = arith.constant 5.000000e-01 : f32
    %182 = vector.broadcast %cst_71 : f32 to vector<1x128xf32>
    %183 = arith.addf %181, %182 : vector<1x128xf32>
    %184 = vector.extract_strided_slice %167 {offsets = [0, 256], sizes = [1, 128], strides = [1, 1]} : vector<1x512xf32> to vector<1x128xf32>
    %185 = math.tanh %184 : vector<1x128xf32>
    %186 = vector.extract_strided_slice %167 {offsets = [0, 384], sizes = [1, 128], strides = [1, 1]} : vector<1x512xf32> to vector<1x128xf32>
    %cst_72 = arith.constant 5.000000e-01 : f32
    %187 = vector.broadcast %cst_72 : f32 to vector<1x128xf32>
    %188 = arith.mulf %187, %186 : vector<1x128xf32>
    %189 = math.tanh %188 : vector<1x128xf32>
    %cst_73 = arith.constant 5.000000e-01 : f32
    %190 = vector.broadcast %cst_73 : f32 to vector<1x128xf32>
    %191 = arith.mulf %190, %189 : vector<1x128xf32>
    %cst_74 = arith.constant 5.000000e-01 : f32
    %192 = vector.broadcast %cst_74 : f32 to vector<1x128xf32>
    %193 = arith.addf %191, %192 : vector<1x128xf32>
    %194 = arith.mulf %183, %124 : vector<1x128xf32>
    %195 = arith.mulf %175, %185 : vector<1x128xf32>
    %196 = arith.addf %194, %195 : vector<1x128xf32>
    %197 = math.tanh %196 : vector<1x128xf32>
    %198 = arith.mulf %193, %197 : vector<1x128xf32>
    %199 = vector.extract_strided_slice %7 {offsets = [3, 0], sizes = [1, 512], strides = [1, 1]} : vector<8x512xf32> to vector<1x512xf32>
    %c0_75 = arith.constant 0 : index
    %c0_76 = arith.constant 0 : index
    %200 = vector.load %arg2[%c0_75, %c0_76] : memref<128x512xf32, #tpu.memory_space<vmem>>, vector<128x512xf32>
    %cst_77 = arith.constant dense<0.000000e+00> : vector<1x512xf32>
    %201 = tpu.matmul %161, %200, %cst_77 {dimension_numbers = #tpu.dot_dimension_numbers<[1], [0], [0], [1], [0, 0, 1, 1], [], []>} : vector<1x128xf32>, vector<128x512xf32>, vector<1x512xf32> -> vector<1x512xf32>
    %202 = arith.addf %199, %201 : vector<1x512xf32>
    %203 = vector.extract_strided_slice %202 {offsets = [0, 0], sizes = [1, 128], strides = [1, 1]} : vector<1x512xf32> to vector<1x128xf32>
    %cst_78 = arith.constant 5.000000e-01 : f32
    %204 = vector.broadcast %cst_78 : f32 to vector<1x128xf32>
    %205 = arith.mulf %204, %203 : vector<1x128xf32>
    %206 = math.tanh %205 : vector<1x128xf32>
    %cst_79 = arith.constant 5.000000e-01 : f32
    %207 = vector.broadcast %cst_79 : f32 to vector<1x128xf32>
    %208 = arith.mulf %207, %206 : vector<1x128xf32>
    %cst_80 = arith.constant 5.000000e-01 : f32
    %209 = vector.broadcast %cst_80 : f32 to vector<1x128xf32>
    %210 = arith.addf %208, %209 : vector<1x128xf32>
    %211 = vector.extract_strided_slice %202 {offsets = [0, 128], sizes = [1, 128], strides = [1, 1]} : vector<1x512xf32> to vector<1x128xf32>
    %cst_81 = arith.constant 5.000000e-01 : f32
    %212 = vector.broadcast %cst_81 : f32 to vector<1x128xf32>
    %213 = arith.mulf %212, %211 : vector<1x128xf32>
    %214 = math.tanh %213 : vector<1x128xf32>
    %cst_82 = arith.constant 5.000000e-01 : f32
    %215 = vector.broadcast %cst_82 : f32 to vector<1x128xf32>
    %216 = arith.mulf %215, %214 : vector<1x128xf32>
    %cst_83 = arith.constant 5.000000e-01 : f32
    %217 = vector.broadcast %cst_83 : f32 to vector<1x128xf32>
    %218 = arith.addf %216, %217 : vector<1x128xf32>
    %219 = vector.extract_strided_slice %202 {offsets = [0, 256], sizes = [1, 128], strides = [1, 1]} : vector<1x512xf32> to vector<1x128xf32>
    %220 = math.tanh %219 : vector<1x128xf32>
    %221 = vector.extract_strided_slice %202 {offsets = [0, 384], sizes = [1, 128], strides = [1, 1]} : vector<1x512xf32> to vector<1x128xf32>
    %cst_84 = arith.constant 5.000000e-01 : f32
    %222 = vector.broadcast %cst_84 : f32 to vector<1x128xf32>
    %223 = arith.mulf %222, %221 : vector<1x128xf32>
    %224 = math.tanh %223 : vector<1x128xf32>
    %cst_85 = arith.constant 5.000000e-01 : f32
    %225 = vector.broadcast %cst_85 : f32 to vector<1x128xf32>
    %226 = arith.mulf %225, %224 : vector<1x128xf32>
    %cst_86 = arith.constant 5.000000e-01 : f32
    %227 = vector.broadcast %cst_86 : f32 to vector<1x128xf32>
    %228 = arith.addf %226, %227 : vector<1x128xf32>
    %229 = arith.mulf %218, %159 : vector<1x128xf32>
    %230 = arith.mulf %210, %220 : vector<1x128xf32>
    %231 = arith.addf %229, %230 : vector<1x128xf32>
    %232 = math.tanh %231 : vector<1x128xf32>
    %233 = arith.mulf %228, %232 : vector<1x128xf32>
    %c0_87 = arith.constant 0 : index
    %c0_88 = arith.constant 0 : index
    %234 = vector.load %arg4[%c0_87, %c0_88] : memref<128x512xf32, #tpu.memory_space<vmem>>, vector<128x512xf32>
    %cst_89 = arith.constant dense<0.000000e+00> : vector<1x512xf32>
    %235 = tpu.matmul %233, %234, %cst_89 {dimension_numbers = #tpu.dot_dimension_numbers<[1], [0], [0], [1], [0, 0, 1, 1], [], []>} : vector<1x128xf32>, vector<128x512xf32>, vector<1x512xf32> -> vector<1x512xf32>
    %c0_90 = arith.constant 0 : index
    %c0_91 = arith.constant 0 : index
    %236 = vector.load %arg5[%c0_90, %c0_91] : memref<128x512xf32, #tpu.memory_space<vmem>>, vector<128x512xf32>
    %cst_92 = arith.constant dense<0.000000e+00> : vector<1x512xf32>
    %237 = tpu.matmul %198, %236, %cst_92 {dimension_numbers = #tpu.dot_dimension_numbers<[1], [0], [0], [1], [0, 0, 1, 1], [], []>} : vector<1x128xf32>, vector<128x512xf32>, vector<1x512xf32> -> vector<1x512xf32>
    %238 = arith.addf %237, %8 : vector<1x512xf32>
    %239 = arith.addf %235, %238 : vector<1x512xf32>
    %240 = vector.extract_strided_slice %239 {offsets = [0, 0], sizes = [1, 128], strides = [1, 1]} : vector<1x512xf32> to vector<1x128xf32>
    %cst_93 = arith.constant 5.000000e-01 : f32
    %241 = vector.broadcast %cst_93 : f32 to vector<1x128xf32>
    %242 = arith.mulf %241, %240 : vector<1x128xf32>
    %243 = math.tanh %242 : vector<1x128xf32>
    %cst_94 = arith.constant 5.000000e-01 : f32
    %244 = vector.broadcast %cst_94 : f32 to vector<1x128xf32>
    %245 = arith.mulf %244, %243 : vector<1x128xf32>
    %cst_95 = arith.constant 5.000000e-01 : f32
    %246 = vector.broadcast %cst_95 : f32 to vector<1x128xf32>
    %247 = arith.addf %245, %246 : vector<1x128xf32>
    %248 = vector.extract_strided_slice %239 {offsets = [0, 128], sizes = [1, 128], strides = [1, 1]} : vector<1x512xf32> to vector<1x128xf32>
    %cst_96 = arith.constant 5.000000e-01 : f32
    %249 = vector.broadcast %cst_96 : f32 to vector<1x128xf32>
    %250 = arith.mulf %249, %248 : vector<1x128xf32>
    %251 = math.tanh %250 : vector<1x128xf32>
    %cst_97 = arith.constant 5.000000e-01 : f32
    %252 = vector.broadcast %cst_97 : f32 to vector<1x128xf32>
    %253 = arith.mulf %252, %251 : vector<1x128xf32>
    %cst_98 = arith.constant 5.000000e-01 : f32
    %254 = vector.broadcast %cst_98 : f32 to vector<1x128xf32>
    %255 = arith.addf %253, %254 : vector<1x128xf32>
    %256 = vector.extract_strided_slice %239 {offsets = [0, 256], sizes = [1, 128], strides = [1, 1]} : vector<1x512xf32> to vector<1x128xf32>
    %257 = math.tanh %256 : vector<1x128xf32>
    %258 = vector.extract_strided_slice %239 {offsets = [0, 384], sizes = [1, 128], strides = [1, 1]} : vector<1x512xf32> to vector<1x128xf32>
    %cst_99 = arith.constant 5.000000e-01 : f32
    %259 = vector.broadcast %cst_99 : f32 to vector<1x128xf32>
    %260 = arith.mulf %259, %258 : vector<1x128xf32>
    %261 = math.tanh %260 : vector<1x128xf32>
    %cst_100 = arith.constant 5.000000e-01 : f32
    %262 = vector.broadcast %cst_100 : f32 to vector<1x128xf32>
    %263 = arith.mulf %262, %261 : vector<1x128xf32>
    %cst_101 = arith.constant 5.000000e-01 : f32
    %264 = vector.broadcast %cst_101 : f32 to vector<1x128xf32>
    %265 = arith.addf %263, %264 : vector<1x128xf32>
    %266 = arith.mulf %255, %196 : vector<1x128xf32>
    %267 = arith.mulf %247, %257 : vector<1x128xf32>
    %268 = arith.addf %266, %267 : vector<1x128xf32>
    %269 = math.tanh %268 : vector<1x128xf32>
    %270 = arith.mulf %265, %269 : vector<1x128xf32>
    %271 = vector.extract_strided_slice %7 {offsets = [4, 0], sizes = [1, 512], strides = [1, 1]} : vector<8x512xf32> to vector<1x512xf32>
    %c0_102 = arith.constant 0 : index
    %c0_103 = arith.constant 0 : index
    %272 = vector.load %arg2[%c0_102, %c0_103] : memref<128x512xf32, #tpu.memory_space<vmem>>, vector<128x512xf32>
    %cst_104 = arith.constant dense<0.000000e+00> : vector<1x512xf32>
    %273 = tpu.matmul %233, %272, %cst_104 {dimension_numbers = #tpu.dot_dimension_numbers<[1], [0], [0], [1], [0, 0, 1, 1], [], []>} : vector<1x128xf32>, vector<128x512xf32>, vector<1x512xf32> -> vector<1x512xf32>
    %274 = arith.addf %271, %273 : vector<1x512xf32>
    %275 = vector.extract_strided_slice %274 {offsets = [0, 0], sizes = [1, 128], strides = [1, 1]} : vector<1x512xf32> to vector<1x128xf32>
    %cst_105 = arith.constant 5.000000e-01 : f32
    %276 = vector.broadcast %cst_105 : f32 to vector<1x128xf32>
    %277 = arith.mulf %276, %275 : vector<1x128xf32>
    %278 = math.tanh %277 : vector<1x128xf32>
    %cst_106 = arith.constant 5.000000e-01 : f32
    %279 = vector.broadcast %cst_106 : f32 to vector<1x128xf32>
    %280 = arith.mulf %279, %278 : vector<1x128xf32>
    %cst_107 = arith.constant 5.000000e-01 : f32
    %281 = vector.broadcast %cst_107 : f32 to vector<1x128xf32>
    %282 = arith.addf %280, %281 : vector<1x128xf32>
    %283 = vector.extract_strided_slice %274 {offsets = [0, 128], sizes = [1, 128], strides = [1, 1]} : vector<1x512xf32> to vector<1x128xf32>
    %cst_108 = arith.constant 5.000000e-01 : f32
    %284 = vector.broadcast %cst_108 : f32 to vector<1x128xf32>
    %285 = arith.mulf %284, %283 : vector<1x128xf32>
    %286 = math.tanh %285 : vector<1x128xf32>
    %cst_109 = arith.constant 5.000000e-01 : f32
    %287 = vector.broadcast %cst_109 : f32 to vector<1x128xf32>
    %288 = arith.mulf %287, %286 : vector<1x128xf32>
    %cst_110 = arith.constant 5.000000e-01 : f32
    %289 = vector.broadcast %cst_110 : f32 to vector<1x128xf32>
    %290 = arith.addf %288, %289 : vector<1x128xf32>
    %291 = vector.extract_strided_slice %274 {offsets = [0, 256], sizes = [1, 128], strides = [1, 1]} : vector<1x512xf32> to vector<1x128xf32>
    %292 = math.tanh %291 : vector<1x128xf32>
    %293 = vector.extract_strided_slice %274 {offsets = [0, 384], sizes = [1, 128], strides = [1, 1]} : vector<1x512xf32> to vector<1x128xf32>
    %cst_111 = arith.constant 5.000000e-01 : f32
    %294 = vector.broadcast %cst_111 : f32 to vector<1x128xf32>
    %295 = arith.mulf %294, %293 : vector<1x128xf32>
    %296 = math.tanh %295 : vector<1x128xf32>
    %cst_112 = arith.constant 5.000000e-01 : f32
    %297 = vector.broadcast %cst_112 : f32 to vector<1x128xf32>
    %298 = arith.mulf %297, %296 : vector<1x128xf32>
    %cst_113 = arith.constant 5.000000e-01 : f32
    %299 = vector.broadcast %cst_113 : f32 to vector<1x128xf32>
    %300 = arith.addf %298, %299 : vector<1x128xf32>
    %301 = arith.mulf %290, %231 : vector<1x128xf32>
    %302 = arith.mulf %282, %292 : vector<1x128xf32>
    %303 = arith.addf %301, %302 : vector<1x128xf32>
    %304 = math.tanh %303 : vector<1x128xf32>
    %305 = arith.mulf %300, %304 : vector<1x128xf32>
    %c0_114 = arith.constant 0 : index
    %c0_115 = arith.constant 0 : index
    %306 = vector.load %arg4[%c0_114, %c0_115] : memref<128x512xf32, #tpu.memory_space<vmem>>, vector<128x512xf32>
    %cst_116 = arith.constant dense<0.000000e+00> : vector<1x512xf32>
    %307 = tpu.matmul %305, %306, %cst_116 {dimension_numbers = #tpu.dot_dimension_numbers<[1], [0], [0], [1], [0, 0, 1, 1], [], []>} : vector<1x128xf32>, vector<128x512xf32>, vector<1x512xf32> -> vector<1x512xf32>
    %c0_117 = arith.constant 0 : index
    %c0_118 = arith.constant 0 : index
    %308 = vector.load %arg5[%c0_117, %c0_118] : memref<128x512xf32, #tpu.memory_space<vmem>>, vector<128x512xf32>
    %cst_119 = arith.constant dense<0.000000e+00> : vector<1x512xf32>
    %309 = tpu.matmul %270, %308, %cst_119 {dimension_numbers = #tpu.dot_dimension_numbers<[1], [0], [0], [1], [0, 0, 1, 1], [], []>} : vector<1x128xf32>, vector<128x512xf32>, vector<1x512xf32> -> vector<1x512xf32>
    %310 = arith.addf %309, %8 : vector<1x512xf32>
    %311 = arith.addf %307, %310 : vector<1x512xf32>
    %312 = vector.extract_strided_slice %311 {offsets = [0, 0], sizes = [1, 128], strides = [1, 1]} : vector<1x512xf32> to vector<1x128xf32>
    %cst_120 = arith.constant 5.000000e-01 : f32
    %313 = vector.broadcast %cst_120 : f32 to vector<1x128xf32>
    %314 = arith.mulf %313, %312 : vector<1x128xf32>
    %315 = math.tanh %314 : vector<1x128xf32>
    %cst_121 = arith.constant 5.000000e-01 : f32
    %316 = vector.broadcast %cst_121 : f32 to vector<1x128xf32>
    %317 = arith.mulf %316, %315 : vector<1x128xf32>
    %cst_122 = arith.constant 5.000000e-01 : f32
    %318 = vector.broadcast %cst_122 : f32 to vector<1x128xf32>
    %319 = arith.addf %317, %318 : vector<1x128xf32>
    %320 = vector.extract_strided_slice %311 {offsets = [0, 128], sizes = [1, 128], strides = [1, 1]} : vector<1x512xf32> to vector<1x128xf32>
    %cst_123 = arith.constant 5.000000e-01 : f32
    %321 = vector.broadcast %cst_123 : f32 to vector<1x128xf32>
    %322 = arith.mulf %321, %320 : vector<1x128xf32>
    %323 = math.tanh %322 : vector<1x128xf32>
    %cst_124 = arith.constant 5.000000e-01 : f32
    %324 = vector.broadcast %cst_124 : f32 to vector<1x128xf32>
    %325 = arith.mulf %324, %323 : vector<1x128xf32>
    %cst_125 = arith.constant 5.000000e-01 : f32
    %326 = vector.broadcast %cst_125 : f32 to vector<1x128xf32>
    %327 = arith.addf %325, %326 : vector<1x128xf32>
    %328 = vector.extract_strided_slice %311 {offsets = [0, 256], sizes = [1, 128], strides = [1, 1]} : vector<1x512xf32> to vector<1x128xf32>
    %329 = math.tanh %328 : vector<1x128xf32>
    %330 = vector.extract_strided_slice %311 {offsets = [0, 384], sizes = [1, 128], strides = [1, 1]} : vector<1x512xf32> to vector<1x128xf32>
    %cst_126 = arith.constant 5.000000e-01 : f32
    %331 = vector.broadcast %cst_126 : f32 to vector<1x128xf32>
    %332 = arith.mulf %331, %330 : vector<1x128xf32>
    %333 = math.tanh %332 : vector<1x128xf32>
    %cst_127 = arith.constant 5.000000e-01 : f32
    %334 = vector.broadcast %cst_127 : f32 to vector<1x128xf32>
    %335 = arith.mulf %334, %333 : vector<1x128xf32>
    %cst_128 = arith.constant 5.000000e-01 : f32
    %336 = vector.broadcast %cst_128 : f32 to vector<1x128xf32>
    %337 = arith.addf %335, %336 : vector<1x128xf32>
    %338 = arith.mulf %327, %268 : vector<1x128xf32>
    %339 = arith.mulf %319, %329 : vector<1x128xf32>
    %340 = arith.addf %338, %339 : vector<1x128xf32>
    %341 = math.tanh %340 : vector<1x128xf32>
    %342 = arith.mulf %337, %341 : vector<1x128xf32>
    %343 = vector.extract_strided_slice %7 {offsets = [5, 0], sizes = [1, 512], strides = [1, 1]} : vector<8x512xf32> to vector<1x512xf32>
    %c0_129 = arith.constant 0 : index
    %c0_130 = arith.constant 0 : index
    %344 = vector.load %arg2[%c0_129, %c0_130] : memref<128x512xf32, #tpu.memory_space<vmem>>, vector<128x512xf32>
    %cst_131 = arith.constant dense<0.000000e+00> : vector<1x512xf32>
    %345 = tpu.matmul %305, %344, %cst_131 {dimension_numbers = #tpu.dot_dimension_numbers<[1], [0], [0], [1], [0, 0, 1, 1], [], []>} : vector<1x128xf32>, vector<128x512xf32>, vector<1x512xf32> -> vector<1x512xf32>
    %346 = arith.addf %343, %345 : vector<1x512xf32>
    %347 = vector.extract_strided_slice %346 {offsets = [0, 0], sizes = [1, 128], strides = [1, 1]} : vector<1x512xf32> to vector<1x128xf32>
    %cst_132 = arith.constant 5.000000e-01 : f32
    %348 = vector.broadcast %cst_132 : f32 to vector<1x128xf32>
    %349 = arith.mulf %348, %347 : vector<1x128xf32>
    %350 = math.tanh %349 : vector<1x128xf32>
    %cst_133 = arith.constant 5.000000e-01 : f32
    %351 = vector.broadcast %cst_133 : f32 to vector<1x128xf32>
    %352 = arith.mulf %351, %350 : vector<1x128xf32>
    %cst_134 = arith.constant 5.000000e-01 : f32
    %353 = vector.broadcast %cst_134 : f32 to vector<1x128xf32>
    %354 = arith.addf %352, %353 : vector<1x128xf32>
    %355 = vector.extract_strided_slice %346 {offsets = [0, 128], sizes = [1, 128], strides = [1, 1]} : vector<1x512xf32> to vector<1x128xf32>
    %cst_135 = arith.constant 5.000000e-01 : f32
    %356 = vector.broadcast %cst_135 : f32 to vector<1x128xf32>
    %357 = arith.mulf %356, %355 : vector<1x128xf32>
    %358 = math.tanh %357 : vector<1x128xf32>
    %cst_136 = arith.constant 5.000000e-01 : f32
    %359 = vector.broadcast %cst_136 : f32 to vector<1x128xf32>
    %360 = arith.mulf %359, %358 : vector<1x128xf32>
    %cst_137 = arith.constant 5.000000e-01 : f32
    %361 = vector.broadcast %cst_137 : f32 to vector<1x128xf32>
    %362 = arith.addf %360, %361 : vector<1x128xf32>
    %363 = vector.extract_strided_slice %346 {offsets = [0, 256], sizes = [1, 128], strides = [1, 1]} : vector<1x512xf32> to vector<1x128xf32>
    %364 = math.tanh %363 : vector<1x128xf32>
    %365 = vector.extract_strided_slice %346 {offsets = [0, 384], sizes = [1, 128], strides = [1, 1]} : vector<1x512xf32> to vector<1x128xf32>
    %cst_138 = arith.constant 5.000000e-01 : f32
    %366 = vector.broadcast %cst_138 : f32 to vector<1x128xf32>
    %367 = arith.mulf %366, %365 : vector<1x128xf32>
    %368 = math.tanh %367 : vector<1x128xf32>
    %cst_139 = arith.constant 5.000000e-01 : f32
    %369 = vector.broadcast %cst_139 : f32 to vector<1x128xf32>
    %370 = arith.mulf %369, %368 : vector<1x128xf32>
    %cst_140 = arith.constant 5.000000e-01 : f32
    %371 = vector.broadcast %cst_140 : f32 to vector<1x128xf32>
    %372 = arith.addf %370, %371 : vector<1x128xf32>
    %373 = arith.mulf %362, %303 : vector<1x128xf32>
    %374 = arith.mulf %354, %364 : vector<1x128xf32>
    %375 = arith.addf %373, %374 : vector<1x128xf32>
    %376 = math.tanh %375 : vector<1x128xf32>
    %377 = arith.mulf %372, %376 : vector<1x128xf32>
    %c0_141 = arith.constant 0 : index
    %c0_142 = arith.constant 0 : index
    %378 = vector.load %arg4[%c0_141, %c0_142] : memref<128x512xf32, #tpu.memory_space<vmem>>, vector<128x512xf32>
    %cst_143 = arith.constant dense<0.000000e+00> : vector<1x512xf32>
    %379 = tpu.matmul %377, %378, %cst_143 {dimension_numbers = #tpu.dot_dimension_numbers<[1], [0], [0], [1], [0, 0, 1, 1], [], []>} : vector<1x128xf32>, vector<128x512xf32>, vector<1x512xf32> -> vector<1x512xf32>
    %c0_144 = arith.constant 0 : index
    %c0_145 = arith.constant 0 : index
    %380 = vector.load %arg5[%c0_144, %c0_145] : memref<128x512xf32, #tpu.memory_space<vmem>>, vector<128x512xf32>
    %cst_146 = arith.constant dense<0.000000e+00> : vector<1x512xf32>
    %381 = tpu.matmul %342, %380, %cst_146 {dimension_numbers = #tpu.dot_dimension_numbers<[1], [0], [0], [1], [0, 0, 1, 1], [], []>} : vector<1x128xf32>, vector<128x512xf32>, vector<1x512xf32> -> vector<1x512xf32>
    %382 = arith.addf %381, %8 : vector<1x512xf32>
    %383 = arith.addf %379, %382 : vector<1x512xf32>
    %384 = vector.extract_strided_slice %383 {offsets = [0, 0], sizes = [1, 128], strides = [1, 1]} : vector<1x512xf32> to vector<1x128xf32>
    %cst_147 = arith.constant 5.000000e-01 : f32
    %385 = vector.broadcast %cst_147 : f32 to vector<1x128xf32>
    %386 = arith.mulf %385, %384 : vector<1x128xf32>
    %387 = math.tanh %386 : vector<1x128xf32>
    %cst_148 = arith.constant 5.000000e-01 : f32
    %388 = vector.broadcast %cst_148 : f32 to vector<1x128xf32>
    %389 = arith.mulf %388, %387 : vector<1x128xf32>
    %cst_149 = arith.constant 5.000000e-01 : f32
    %390 = vector.broadcast %cst_149 : f32 to vector<1x128xf32>
    %391 = arith.addf %389, %390 : vector<1x128xf32>
    %392 = vector.extract_strided_slice %383 {offsets = [0, 128], sizes = [1, 128], strides = [1, 1]} : vector<1x512xf32> to vector<1x128xf32>
    %cst_150 = arith.constant 5.000000e-01 : f32
    %393 = vector.broadcast %cst_150 : f32 to vector<1x128xf32>
    %394 = arith.mulf %393, %392 : vector<1x128xf32>
    %395 = math.tanh %394 : vector<1x128xf32>
    %cst_151 = arith.constant 5.000000e-01 : f32
    %396 = vector.broadcast %cst_151 : f32 to vector<1x128xf32>
    %397 = arith.mulf %396, %395 : vector<1x128xf32>
    %cst_152 = arith.constant 5.000000e-01 : f32
    %398 = vector.broadcast %cst_152 : f32 to vector<1x128xf32>
    %399 = arith.addf %397, %398 : vector<1x128xf32>
    %400 = vector.extract_strided_slice %383 {offsets = [0, 256], sizes = [1, 128], strides = [1, 1]} : vector<1x512xf32> to vector<1x128xf32>
    %401 = math.tanh %400 : vector<1x128xf32>
    %402 = vector.extract_strided_slice %383 {offsets = [0, 384], sizes = [1, 128], strides = [1, 1]} : vector<1x512xf32> to vector<1x128xf32>
    %cst_153 = arith.constant 5.000000e-01 : f32
    %403 = vector.broadcast %cst_153 : f32 to vector<1x128xf32>
    %404 = arith.mulf %403, %402 : vector<1x128xf32>
    %405 = math.tanh %404 : vector<1x128xf32>
    %cst_154 = arith.constant 5.000000e-01 : f32
    %406 = vector.broadcast %cst_154 : f32 to vector<1x128xf32>
    %407 = arith.mulf %406, %405 : vector<1x128xf32>
    %cst_155 = arith.constant 5.000000e-01 : f32
    %408 = vector.broadcast %cst_155 : f32 to vector<1x128xf32>
    %409 = arith.addf %407, %408 : vector<1x128xf32>
    %410 = arith.mulf %399, %340 : vector<1x128xf32>
    %411 = arith.mulf %391, %401 : vector<1x128xf32>
    %412 = arith.addf %410, %411 : vector<1x128xf32>
    %413 = math.tanh %412 : vector<1x128xf32>
    %414 = arith.mulf %409, %413 : vector<1x128xf32>
    %415 = vector.extract_strided_slice %7 {offsets = [6, 0], sizes = [1, 512], strides = [1, 1]} : vector<8x512xf32> to vector<1x512xf32>
    %c0_156 = arith.constant 0 : index
    %c0_157 = arith.constant 0 : index
    %416 = vector.load %arg2[%c0_156, %c0_157] : memref<128x512xf32, #tpu.memory_space<vmem>>, vector<128x512xf32>
    %cst_158 = arith.constant dense<0.000000e+00> : vector<1x512xf32>
    %417 = tpu.matmul %377, %416, %cst_158 {dimension_numbers = #tpu.dot_dimension_numbers<[1], [0], [0], [1], [0, 0, 1, 1], [], []>} : vector<1x128xf32>, vector<128x512xf32>, vector<1x512xf32> -> vector<1x512xf32>
    %418 = arith.addf %415, %417 : vector<1x512xf32>
    %419 = vector.extract_strided_slice %418 {offsets = [0, 0], sizes = [1, 128], strides = [1, 1]} : vector<1x512xf32> to vector<1x128xf32>
    %cst_159 = arith.constant 5.000000e-01 : f32
    %420 = vector.broadcast %cst_159 : f32 to vector<1x128xf32>
    %421 = arith.mulf %420, %419 : vector<1x128xf32>
    %422 = math.tanh %421 : vector<1x128xf32>
    %cst_160 = arith.constant 5.000000e-01 : f32
    %423 = vector.broadcast %cst_160 : f32 to vector<1x128xf32>
    %424 = arith.mulf %423, %422 : vector<1x128xf32>
    %cst_161 = arith.constant 5.000000e-01 : f32
    %425 = vector.broadcast %cst_161 : f32 to vector<1x128xf32>
    %426 = arith.addf %424, %425 : vector<1x128xf32>
    %427 = vector.extract_strided_slice %418 {offsets = [0, 128], sizes = [1, 128], strides = [1, 1]} : vector<1x512xf32> to vector<1x128xf32>
    %cst_162 = arith.constant 5.000000e-01 : f32
    %428 = vector.broadcast %cst_162 : f32 to vector<1x128xf32>
    %429 = arith.mulf %428, %427 : vector<1x128xf32>
    %430 = math.tanh %429 : vector<1x128xf32>
    %cst_163 = arith.constant 5.000000e-01 : f32
    %431 = vector.broadcast %cst_163 : f32 to vector<1x128xf32>
    %432 = arith.mulf %431, %430 : vector<1x128xf32>
    %cst_164 = arith.constant 5.000000e-01 : f32
    %433 = vector.broadcast %cst_164 : f32 to vector<1x128xf32>
    %434 = arith.addf %432, %433 : vector<1x128xf32>
    %435 = vector.extract_strided_slice %418 {offsets = [0, 256], sizes = [1, 128], strides = [1, 1]} : vector<1x512xf32> to vector<1x128xf32>
    %436 = math.tanh %435 : vector<1x128xf32>
    %437 = vector.extract_strided_slice %418 {offsets = [0, 384], sizes = [1, 128], strides = [1, 1]} : vector<1x512xf32> to vector<1x128xf32>
    %cst_165 = arith.constant 5.000000e-01 : f32
    %438 = vector.broadcast %cst_165 : f32 to vector<1x128xf32>
    %439 = arith.mulf %438, %437 : vector<1x128xf32>
    %440 = math.tanh %439 : vector<1x128xf32>
    %cst_166 = arith.constant 5.000000e-01 : f32
    %441 = vector.broadcast %cst_166 : f32 to vector<1x128xf32>
    %442 = arith.mulf %441, %440 : vector<1x128xf32>
    %cst_167 = arith.constant 5.000000e-01 : f32
    %443 = vector.broadcast %cst_167 : f32 to vector<1x128xf32>
    %444 = arith.addf %442, %443 : vector<1x128xf32>
    %445 = arith.mulf %434, %375 : vector<1x128xf32>
    %446 = arith.mulf %426, %436 : vector<1x128xf32>
    %447 = arith.addf %445, %446 : vector<1x128xf32>
    %448 = math.tanh %447 : vector<1x128xf32>
    %449 = arith.mulf %444, %448 : vector<1x128xf32>
    %c0_168 = arith.constant 0 : index
    %c0_169 = arith.constant 0 : index
    %450 = vector.load %arg4[%c0_168, %c0_169] : memref<128x512xf32, #tpu.memory_space<vmem>>, vector<128x512xf32>
    %cst_170 = arith.constant dense<0.000000e+00> : vector<1x512xf32>
    %451 = tpu.matmul %449, %450, %cst_170 {dimension_numbers = #tpu.dot_dimension_numbers<[1], [0], [0], [1], [0, 0, 1, 1], [], []>} : vector<1x128xf32>, vector<128x512xf32>, vector<1x512xf32> -> vector<1x512xf32>
    %c0_171 = arith.constant 0 : index
    %c0_172 = arith.constant 0 : index
    %452 = vector.load %arg5[%c0_171, %c0_172] : memref<128x512xf32, #tpu.memory_space<vmem>>, vector<128x512xf32>
    %cst_173 = arith.constant dense<0.000000e+00> : vector<1x512xf32>
    %453 = tpu.matmul %414, %452, %cst_173 {dimension_numbers = #tpu.dot_dimension_numbers<[1], [0], [0], [1], [0, 0, 1, 1], [], []>} : vector<1x128xf32>, vector<128x512xf32>, vector<1x512xf32> -> vector<1x512xf32>
    %454 = arith.addf %453, %8 : vector<1x512xf32>
    %455 = arith.addf %451, %454 : vector<1x512xf32>
    %456 = vector.extract_strided_slice %455 {offsets = [0, 0], sizes = [1, 128], strides = [1, 1]} : vector<1x512xf32> to vector<1x128xf32>
    %cst_174 = arith.constant 5.000000e-01 : f32
    %457 = vector.broadcast %cst_174 : f32 to vector<1x128xf32>
    %458 = arith.mulf %457, %456 : vector<1x128xf32>
    %459 = math.tanh %458 : vector<1x128xf32>
    %cst_175 = arith.constant 5.000000e-01 : f32
    %460 = vector.broadcast %cst_175 : f32 to vector<1x128xf32>
    %461 = arith.mulf %460, %459 : vector<1x128xf32>
    %cst_176 = arith.constant 5.000000e-01 : f32
    %462 = vector.broadcast %cst_176 : f32 to vector<1x128xf32>
    %463 = arith.addf %461, %462 : vector<1x128xf32>
    %464 = vector.extract_strided_slice %455 {offsets = [0, 128], sizes = [1, 128], strides = [1, 1]} : vector<1x512xf32> to vector<1x128xf32>
    %cst_177 = arith.constant 5.000000e-01 : f32
    %465 = vector.broadcast %cst_177 : f32 to vector<1x128xf32>
    %466 = arith.mulf %465, %464 : vector<1x128xf32>
    %467 = math.tanh %466 : vector<1x128xf32>
    %cst_178 = arith.constant 5.000000e-01 : f32
    %468 = vector.broadcast %cst_178 : f32 to vector<1x128xf32>
    %469 = arith.mulf %468, %467 : vector<1x128xf32>
    %cst_179 = arith.constant 5.000000e-01 : f32
    %470 = vector.broadcast %cst_179 : f32 to vector<1x128xf32>
    %471 = arith.addf %469, %470 : vector<1x128xf32>
    %472 = vector.extract_strided_slice %455 {offsets = [0, 256], sizes = [1, 128], strides = [1, 1]} : vector<1x512xf32> to vector<1x128xf32>
    %473 = math.tanh %472 : vector<1x128xf32>
    %474 = vector.extract_strided_slice %455 {offsets = [0, 384], sizes = [1, 128], strides = [1, 1]} : vector<1x512xf32> to vector<1x128xf32>
    %cst_180 = arith.constant 5.000000e-01 : f32
    %475 = vector.broadcast %cst_180 : f32 to vector<1x128xf32>
    %476 = arith.mulf %475, %474 : vector<1x128xf32>
    %477 = math.tanh %476 : vector<1x128xf32>
    %cst_181 = arith.constant 5.000000e-01 : f32
    %478 = vector.broadcast %cst_181 : f32 to vector<1x128xf32>
    %479 = arith.mulf %478, %477 : vector<1x128xf32>
    %cst_182 = arith.constant 5.000000e-01 : f32
    %480 = vector.broadcast %cst_182 : f32 to vector<1x128xf32>
    %481 = arith.addf %479, %480 : vector<1x128xf32>
    %482 = arith.mulf %471, %412 : vector<1x128xf32>
    %483 = arith.mulf %463, %473 : vector<1x128xf32>
    %484 = arith.addf %482, %483 : vector<1x128xf32>
    %485 = math.tanh %484 : vector<1x128xf32>
    %486 = arith.mulf %481, %485 : vector<1x128xf32>
    %487 = vector.extract_strided_slice %7 {offsets = [7, 0], sizes = [1, 512], strides = [1, 1]} : vector<8x512xf32> to vector<1x512xf32>
    %c0_183 = arith.constant 0 : index
    %c0_184 = arith.constant 0 : index
    %488 = vector.load %arg2[%c0_183, %c0_184] : memref<128x512xf32, #tpu.memory_space<vmem>>, vector<128x512xf32>
    %cst_185 = arith.constant dense<0.000000e+00> : vector<1x512xf32>
    %489 = tpu.matmul %449, %488, %cst_185 {dimension_numbers = #tpu.dot_dimension_numbers<[1], [0], [0], [1], [0, 0, 1, 1], [], []>} : vector<1x128xf32>, vector<128x512xf32>, vector<1x512xf32> -> vector<1x512xf32>
    %490 = arith.addf %487, %489 : vector<1x512xf32>
    %491 = vector.extract_strided_slice %490 {offsets = [0, 0], sizes = [1, 128], strides = [1, 1]} : vector<1x512xf32> to vector<1x128xf32>
    %cst_186 = arith.constant 5.000000e-01 : f32
    %492 = vector.broadcast %cst_186 : f32 to vector<1x128xf32>
    %493 = arith.mulf %492, %491 : vector<1x128xf32>
    %494 = math.tanh %493 : vector<1x128xf32>
    %cst_187 = arith.constant 5.000000e-01 : f32
    %495 = vector.broadcast %cst_187 : f32 to vector<1x128xf32>
    %496 = arith.mulf %495, %494 : vector<1x128xf32>
    %cst_188 = arith.constant 5.000000e-01 : f32
    %497 = vector.broadcast %cst_188 : f32 to vector<1x128xf32>
    %498 = arith.addf %496, %497 : vector<1x128xf32>
    %499 = vector.extract_strided_slice %490 {offsets = [0, 128], sizes = [1, 128], strides = [1, 1]} : vector<1x512xf32> to vector<1x128xf32>
    %cst_189 = arith.constant 5.000000e-01 : f32
    %500 = vector.broadcast %cst_189 : f32 to vector<1x128xf32>
    %501 = arith.mulf %500, %499 : vector<1x128xf32>
    %502 = math.tanh %501 : vector<1x128xf32>
    %cst_190 = arith.constant 5.000000e-01 : f32
    %503 = vector.broadcast %cst_190 : f32 to vector<1x128xf32>
    %504 = arith.mulf %503, %502 : vector<1x128xf32>
    %cst_191 = arith.constant 5.000000e-01 : f32
    %505 = vector.broadcast %cst_191 : f32 to vector<1x128xf32>
    %506 = arith.addf %504, %505 : vector<1x128xf32>
    %507 = vector.extract_strided_slice %490 {offsets = [0, 256], sizes = [1, 128], strides = [1, 1]} : vector<1x512xf32> to vector<1x128xf32>
    %508 = math.tanh %507 : vector<1x128xf32>
    %509 = vector.extract_strided_slice %490 {offsets = [0, 384], sizes = [1, 128], strides = [1, 1]} : vector<1x512xf32> to vector<1x128xf32>
    %cst_192 = arith.constant 5.000000e-01 : f32
    %510 = vector.broadcast %cst_192 : f32 to vector<1x128xf32>
    %511 = arith.mulf %510, %509 : vector<1x128xf32>
    %512 = math.tanh %511 : vector<1x128xf32>
    %cst_193 = arith.constant 5.000000e-01 : f32
    %513 = vector.broadcast %cst_193 : f32 to vector<1x128xf32>
    %514 = arith.mulf %513, %512 : vector<1x128xf32>
    %cst_194 = arith.constant 5.000000e-01 : f32
    %515 = vector.broadcast %cst_194 : f32 to vector<1x128xf32>
    %516 = arith.addf %514, %515 : vector<1x128xf32>
    %517 = arith.mulf %506, %447 : vector<1x128xf32>
    %518 = arith.mulf %498, %508 : vector<1x128xf32>
    %519 = arith.addf %517, %518 : vector<1x128xf32>
    %520 = math.tanh %519 : vector<1x128xf32>
    %521 = arith.mulf %516, %520 : vector<1x128xf32>
    %c0_195 = arith.constant 0 : index
    %c0_196 = arith.constant 0 : index
    %522 = vector.load %arg4[%c0_195, %c0_196] : memref<128x512xf32, #tpu.memory_space<vmem>>, vector<128x512xf32>
    %cst_197 = arith.constant dense<0.000000e+00> : vector<1x512xf32>
    %523 = tpu.matmul %521, %522, %cst_197 {dimension_numbers = #tpu.dot_dimension_numbers<[1], [0], [0], [1], [0, 0, 1, 1], [], []>} : vector<1x128xf32>, vector<128x512xf32>, vector<1x512xf32> -> vector<1x512xf32>
    %c0_198 = arith.constant 0 : index
    %c0_199 = arith.constant 0 : index
    %524 = vector.load %arg5[%c0_198, %c0_199] : memref<128x512xf32, #tpu.memory_space<vmem>>, vector<128x512xf32>
    %cst_200 = arith.constant dense<0.000000e+00> : vector<1x512xf32>
    %525 = tpu.matmul %486, %524, %cst_200 {dimension_numbers = #tpu.dot_dimension_numbers<[1], [0], [0], [1], [0, 0, 1, 1], [], []>} : vector<1x128xf32>, vector<128x512xf32>, vector<1x512xf32> -> vector<1x512xf32>
    %526 = arith.addf %525, %8 : vector<1x512xf32>
    %527 = arith.addf %523, %526 : vector<1x512xf32>
    %528 = vector.extract_strided_slice %527 {offsets = [0, 0], sizes = [1, 128], strides = [1, 1]} : vector<1x512xf32> to vector<1x128xf32>
    %cst_201 = arith.constant 5.000000e-01 : f32
    %529 = vector.broadcast %cst_201 : f32 to vector<1x128xf32>
    %530 = arith.mulf %529, %528 : vector<1x128xf32>
    %531 = math.tanh %530 : vector<1x128xf32>
    %cst_202 = arith.constant 5.000000e-01 : f32
    %532 = vector.broadcast %cst_202 : f32 to vector<1x128xf32>
    %533 = arith.mulf %532, %531 : vector<1x128xf32>
    %cst_203 = arith.constant 5.000000e-01 : f32
    %534 = vector.broadcast %cst_203 : f32 to vector<1x128xf32>
    %535 = arith.addf %533, %534 : vector<1x128xf32>
    %536 = vector.extract_strided_slice %527 {offsets = [0, 128], sizes = [1, 128], strides = [1, 1]} : vector<1x512xf32> to vector<1x128xf32>
    %cst_204 = arith.constant 5.000000e-01 : f32
    %537 = vector.broadcast %cst_204 : f32 to vector<1x128xf32>
    %538 = arith.mulf %537, %536 : vector<1x128xf32>
    %539 = math.tanh %538 : vector<1x128xf32>
    %cst_205 = arith.constant 5.000000e-01 : f32
    %540 = vector.broadcast %cst_205 : f32 to vector<1x128xf32>
    %541 = arith.mulf %540, %539 : vector<1x128xf32>
    %cst_206 = arith.constant 5.000000e-01 : f32
    %542 = vector.broadcast %cst_206 : f32 to vector<1x128xf32>
    %543 = arith.addf %541, %542 : vector<1x128xf32>
    %544 = vector.extract_strided_slice %527 {offsets = [0, 256], sizes = [1, 128], strides = [1, 1]} : vector<1x512xf32> to vector<1x128xf32>
    %545 = math.tanh %544 : vector<1x128xf32>
    %546 = vector.extract_strided_slice %527 {offsets = [0, 384], sizes = [1, 128], strides = [1, 1]} : vector<1x512xf32> to vector<1x128xf32>
    %cst_207 = arith.constant 5.000000e-01 : f32
    %547 = vector.broadcast %cst_207 : f32 to vector<1x128xf32>
    %548 = arith.mulf %547, %546 : vector<1x128xf32>
    %549 = math.tanh %548 : vector<1x128xf32>
    %cst_208 = arith.constant 5.000000e-01 : f32
    %550 = vector.broadcast %cst_208 : f32 to vector<1x128xf32>
    %551 = arith.mulf %550, %549 : vector<1x128xf32>
    %cst_209 = arith.constant 5.000000e-01 : f32
    %552 = vector.broadcast %cst_209 : f32 to vector<1x128xf32>
    %553 = arith.addf %551, %552 : vector<1x128xf32>
    %554 = arith.mulf %543, %484 : vector<1x128xf32>
    %555 = arith.mulf %535, %545 : vector<1x128xf32>
    %556 = arith.addf %554, %555 : vector<1x128xf32>
    %557 = math.tanh %556 : vector<1x128xf32>
    %558 = arith.mulf %553, %557 : vector<1x128xf32>
    %559 = vector.extract_strided_slice %558 {offsets = [0, 0], sizes = [1, 64], strides = [1, 1]} : vector<1x128xf32> to vector<1x64xf32>
    %c0_210 = arith.constant 0 : index
    %c0_211 = arith.constant 0 : index
    %560 = vector.load %arg7[%c0_210, %c0_211] : memref<1x64xf32, #tpu.memory_space<vmem>>, vector<1x64xf32>
    tpu.vector_store %arg7[%c0_210, %c0_211], %559 {strides = array<i32>} : memref<1x64xf32, #tpu.memory_space<vmem>>, vector<1x64xf32>,
    return
  }
}

</mosaic_0001>

<bundles_post_ra>
// kernel: forward.1
= control target key start
LH: loop header
LB: loop body
LE: loop exit
PB: predicated region body
PF: predicated region fallthrough
CT: control target
= control target key end

     0   :  { %12 = vsyncpa [#allocation3], 0  ;;  %s7686_s0 = inlined_call_operand.vmem [shape: f32[8,1], index: 0, kind: input, shape index: {}]   ;;  %s7687_s1 = inlined_call_operand.hbm [shape: f32[1,512], index: 1, kind: input, shape index: {}]   ;;  %s7688_s2 = inlined_call_operand.hbm [shape: f32[128,512], index: 2, kind: input, shape index: {}]   ;;  %s7689_s3 = inlined_call_operand.vmem [shape: f32[1,512], index: 3, kind: input, shape index: {}]   ;;  %s7690_s4 = inlined_call_operand.hbm [shape: f32[128,512], index: 4, kind: input, shape index: {}]   ;;  %s7691_s5 = inlined_call_operand.hbm [shape: f32[128,512], index: 5, kind: input, shape index: {}]   ;;  %s7692_s6 = inlined_call_operand.vmem [shape: f32[1,512], index: 6, kind: input, shape index: {}]   ;;  %s7693_s7 = inlined_call_operand.hbm [shape: f32[1,64], index: 7, kind: output, shape index: {}]  }
   0x1   :  { %13 = vsyncpa [#allocation6], 0 }
   0x2   :  { %14 = vsyncpa [#allocation9], 0 }
   0x3   :  { %15 = vsyncpa [#allocation4], 0  ;;  %s4774_s24 = smov [#allocation5]  }
   0x4   :  { %s33_s25 = sshll.u32 %s4774_s24, 4  ;;  %s34_s25 = int_to_ptr.vmem [resolvable:$true] %s33_s25 }
   0x5   :  { %s4674_s26 = scalar_lea.vmem %s34_s25, 8192  ;;  %p4679_p1 = scmp.lt.s32.totalorder %s34_s25, %s34_s25 }
   0x6   :  { %p4675_p0 = scmp.ne.s32.totalorder %s34_s25, %s4674_s26  ;;  %p4680_p2 = scmp.lt.s32.totalorder %s4674_s26, %s4674_s26 }
   0x8   :  { %p4681_p3 = por %p4680_p2, %p4679_p1 }
   0xa   :  { %p4682_p4 = pnand %p4681_p3, %p4675_p0 }
   0xc   :  { %4685 = shalt.err (!%p4682_p4)
}
   0xd   :  { %s4775_s27 = smov 512   ;;  %s4776_s28 = smov 32  }
   0xe   :  { %39 = dma.hbm_to_vmem [thread:$0]  %s7688_s2, 8192, %s34_s25, [#allocation6], %s4775_s27, %s4775_s27, %s4776_s28  }
   0xf   :  { %s4777_s8 = smov [#allocation2]   ;;  %s4778_s10 = smov [#allocation7]  }
  0x10   :  { %s24_s9 = sshll.u32 %s4777_s8, 4  ;;  %s47_s11 = sshll.u32 %s4778_s10, 4  ;;  %s25_s9 = int_to_ptr.vmem [resolvable:$true] %s24_s9  ;;  %s48_s11 = int_to_ptr.vmem [resolvable:$true] %s47_s11 }
  0x11   :  { %s4694_s12 = scalar_lea.vmem %s25_s9, 64  ;;  %p4699_p6 = scmp.lt.s32.totalorder %s25_s9, %s25_s9 }
  0x12   :  { %p4695_p5 = scmp.ne.s32.totalorder %s25_s9, %s4694_s12  ;;  %p4700_p7 = scmp.lt.s32.totalorder %s4694_s12, %s4694_s12 }
  0x14   :  { %p4701_p8 = por %p4700_p7, %p4699_p6 }
  0x16   :  { %p4702_p9 = pnand %p4701_p8, %p4695_p5 }
  0x18   :  { %4705 = shalt.err (!%p4702_p9)
}
  0x19   :  { %27 = dma.hbm_to_vmem [thread:$0]  %s7687_s1, 64, %s25_s9, [#allocation3]  }
  0x1a   :  { %s4714_s15 = scalar_lea.vmem %s48_s11, 8192  ;;  %p4719_p11 = scmp.lt.s32.totalorder %s48_s11, %s48_s11 }
  0x1b   :  { %p4715_p10 = scmp.ne.s32.totalorder %s48_s11, %s4714_s15  ;;  %p4720_p12 = scmp.lt.s32.totalorder %s4714_s15, %s4714_s15 }
  0x1d   :  { %p4721_p13 = por %p4720_p12, %p4719_p11 }
  0x1f   :  { %p4722_p0 = pnand %p4721_p13, %p4715_p10 }
  0x21   :  { %4725 = shalt.err (!%p4722_p0)
}
  0x22   :  { %53 = dma.hbm_to_vmem [thread:$0]  %s7690_s4, 8192, %s48_s11, [#allocation6], %s4775_s27, %s4775_s27, %s4776_s28  }
  0x23   :  { %s4779_s17 = smov [#allocation8]  }
  0x24   :  { %s59_s18 = sshll.u32 %s4779_s17, 4  ;;  %s60_s18 = int_to_ptr.vmem [resolvable:$true] %s59_s18 }
  0x25   :  { %s4734_s19 = scalar_lea.vmem %s60_s18, 8192  ;;  %p4739_p2 = scmp.lt.s32.totalorder %s60_s18, %s60_s18 }
  0x26   :  { %p4735_p1 = scmp.ne.s32.totalorder %s60_s18, %s4734_s19  ;;  %p4740_p3 = scmp.lt.s32.totalorder %s4734_s19, %s4734_s19 }
  0x28   :  { %p4741_p4 = por %p4740_p3, %p4739_p2 }
  0x2a   :  { %p4742_p5 = pnand %p4741_p4, %p4735_p1 }
  0x2c   :  { %4745 = shalt.err (!%p4742_p5)
}
  0x2d   :  { %65 = dma.hbm_to_vmem [thread:$0]  %s7691_s5, 8192, %s60_s18, [#allocation9], %s4775_s27, %s4775_s27, %s4776_s28  }
  0x2e   :  { %4766 = dma.done.wait [#allocation3], 64  }
  0x2f   :  { %4767 = vsyncadd [#allocation3], 4294967232 }
  0x30   :  { %4768 = dma.done.wait [#allocation6], 16384  }
  0x31   :  { %4769 = vsyncadd [#allocation6], 4294950912 }
  0x32   :  { %4770 = dma.done.wait [#allocation9], 8192  }
  0x33   :  { %4771 = vsyncadd [#allocation9], 4294959104  ;;  %v88_v0 = vlaneseq  ;;  %v4780_v1 = vmov 0   ;;  %v80_v4 = vld [vmem:[%s7686_s0] sm:$0xff]  ;;  %v7694_v7 = vmov 0.0   ;;  %v4868_v10 = vld [vmem:[#allocation7 + $0x1e8] sm:$0xff] }
  0x34   :  { %3933 = vset.pattern.permute.xlu0 %v4780_v1  ;;  %v4852_v5 = vld [vmem:[#allocation2] sm:$0xf]  ;;  %300 = vmatprep.mubr.f32.mxu0 %v7694_v7  ;;  %v4875_v13 = vld [vmem:[#allocation7 + $0x1e0] sm:$0xff]  ;;  %v4877_v14 = vld [vmem:[#allocation7 + $0x1f0] sm:$0xff]  ;;  %s4782_s0 = smov [#allocation10]   ;;  %vm3905_vm0 = vcmask 516096  }
  0x35   :  { %v4844_v2 = vshrl.u32 %v88_v0, 7  ;;  %v4857_v6 = vld [vmem:[%s7689_s3] sm:$0xf]  ;;  %370 = vmatprep.mubr.f32.mxu1 %v7694_v7  ;;  %84 = vperm.xlu0 %3933, %v80_v4   ;;  %v4879_v15 = vld [vmem:[#allocation7 + $0x1c8] sm:$0xff]  ;;  %v4888_v18 = vld [vmem:[#allocation7 + $0x1c0] sm:$0xff]  ;;  %s3913_s3 = sshll.u32 %s4782_s0, 4  ;;  %s3914_s3 = int_to_ptr.vmem [resolvable:$true] %s3913_s3 }
  0x36   :  { %v4866_v9 = vld [vmem:[%s7692_s6] sm:$0xf]  ;;  %236 = vmatprep.subr.mxu0 %v4868_v10  ;;  %v4890_v19 = vld [vmem:[#allocation7 + $0x1d0] sm:$0xff]  ;;  %v4894_v20 = vld [vmem:[#allocation7 + $0x1a8] sm:$0xff]  ;;  %s4746_s6 = scalar_lea.vmem %s3914_s3, 16  ;;  %s4750_s25 = scalar_lea.vmem %s3914_s3, 32 }
  0x37   :  { %v4847_v3 = vsub.s32 1, %v4844_v2  ;;  %v4870_v11 = vld [vmem:[#allocation7 + $0x1f8] sm:$0xff]  ;;  %237 = vmatpush1.msra.mxu0 %v4875_v13  ;;  %v4900_v22 = vld [vmem:[#allocation7 + $0x1a0] sm:$0xff]  ;;  %v4902_v23 = vld [vmem:[#allocation7 + $0x1b0] sm:$0xff]  ;;  %p4747_p6 = scmp.ne.s32.totalorder %s3914_s3, %s4746_s6  ;;  %p4751_p7 = scmp.lt.s32.totalorder %s3914_s3, %s3914_s3 }
  0x38   :  { %306 = vmatprep.subr.mxu1 %v4870_v11  ;;  %v4886_v17 = vld [vmem:[#allocation7 + $0x1d8] sm:$0xff]  ;;  %238 = vmatprep.subr.mxu0 %v4879_v15  ;;  %v4906_v24 = vld [vmem:[#allocation7 + $0x188] sm:$0xff]  ;;  %v4912_v26 = vld [vmem:[#allocation7 + $0x180] sm:$0xff]  ;;  %p4752_p8 = scmp.lt.s32.totalorder %s4750_s25, %s4746_s6 }
  0x39   :  { %v4883_v16 = vrot.slane %v4866_v9, %v4847_v3  ;;  %307 = vmatpush1.msra.mxu1 %v4877_v14  ;;  %v4896_v21 = vld [vmem:[#allocation7 + $0x1b8] sm:$0xff]  ;;  %239 = vmatpush1.msra.mxu0 %v4888_v18  ;;  %v4914_v27 = vld [vmem:[#allocation7 + $0x190] sm:$0xff]  ;;  %v4918_v28 = vld [vmem:[#allocation7 + $0x168] sm:$0xff] }
  0x3a   :  { %308 = vmatprep.subr.mxu1 %v4886_v17  ;;  %v4908_v25 = vld [vmem:[#allocation7 + $0x198] sm:$0xff]  ;;  %240 = vmatprep.subr.mxu0 %v4894_v20  ;;  %v4924_v30 = vld [vmem:[#allocation7 + $0x160] sm:$0xff]  ;;  %v4926_v31 = vld [vmem:[#allocation7 + $0x170] sm:$0xff]  ;;  %p4753_p9 = por %p4752_p8, %p4751_p7 }
  0x3b   :  { %8195 = vst [vmem:[#allocation15_spill] sm:$0xff] %v4883_v16  ;;  %309 = vmatpush1.msra.mxu1 %v4890_v19  ;;  %241 = vmatpush1.msra.mxu0 %v4900_v22  ;;  %v4920_v29 = vld [vmem:[#allocation7 + $0x178] sm:$0xff]  ;;  %v4930_v32 = vld [vmem:[#allocation7 + $0x148] sm:$0xff]  ;;  %v4936_v34 = vld [vmem:[#allocation7 + $0x140] sm:$0xff] }
  0x3c   :  { %310 = vmatprep.subr.mxu1 %v4896_v21  ;;  %242 = vmatprep.subr.mxu0 %v4906_v24  ;;  %v4932_v33 = vld [vmem:[#allocation7 + $0x158] sm:$0xff]  ;;  %v4938_v35 = vld [vmem:[#allocation7 + $0x150] sm:$0xff]  ;;  %v4942_v36 = vld [vmem:[#allocation7 + $0x128] sm:$0xff]  ;;  %p4754_p10 = pnand %p4753_p9, %p4747_p6 }
  0x3d   :  { %311 = vmatpush1.msra.mxu1 %v4902_v23  ;;  %243 = vmatpush1.msra.mxu0 %v4912_v26  ;;  %v4944_v37 = vld [vmem:[#allocation7 + $0x138] sm:$0xff]  ;;  %v4948_v38 = vld [vmem:[#allocation7 + $0x120] sm:$0xff]  ;;  %v4950_v39 = vld [vmem:[#allocation7 + $0x130] sm:$0xff] }
  0x3e   :  { %312 = vmatprep.subr.mxu1 %v4908_v25  ;;  %244 = vmatprep.subr.mxu0 %v4918_v28  ;;  %v4954_v40 = vld [vmem:[#allocation7 + $0x108] sm:$0xff]  ;;  %v4956_v41 = vld [vmem:[#allocation7 + $0x118] sm:$0xff]  ;;  %v4960_v42 = vld [vmem:[#allocation7 + $0x100] sm:$0xff] }
  0x3f   :  { %313 = vmatpush1.msra.mxu1 %v4914_v27  ;;  %245 = vmatpush1.msra.mxu0 %v4924_v30  ;;  %v4962_v43 = vld [vmem:[#allocation7 + $0x110] sm:$0xff]  ;;  %v4966_v44 = vld [vmem:[#allocation7 + $0xe8] sm:$0xff]  ;;  %v4968_v45 = vld [vmem:[#allocation7 + $0xf8] sm:$0xff] }
  0x40   :  { %314 = vmatprep.subr.mxu1 %v4920_v29  ;;  %246 = vmatprep.subr.mxu0 %v4930_v32  ;;  %v4972_v46 = vld [vmem:[#allocation7 + $0xe0] sm:$0xff]  ;;  %v4974_v47 = vld [vmem:[#allocation7 + $0xf0] sm:$0xff]  ;;  %v4978_v48 = vld [vmem:[#allocation7 + $0xc8] sm:$0xff] }
  0x41   :  { %315 = vmatpush1.msra.mxu1 %v4926_v31  ;;  %247 = vmatpush1.msra.mxu0 %v4936_v34  ;;  %v4980_v49 = vld [vmem:[#allocation7 + $0xd8] sm:$0xff]  ;;  %v4984_v50 = vld [vmem:[#allocation7 + $0xc0] sm:$0xff]  ;;  %v4986_v51 = vld [vmem:[#allocation7 + $0xd0] sm:$0xff] }
  0x42   :  { %316 = vmatprep.subr.mxu1 %v4932_v33  ;;  %248 = vmatprep.subr.mxu0 %v4942_v36  ;;  %v4990_v52 = vld [vmem:[#allocation7 + $0xa8] sm:$0xff]  ;;  %v4992_v53 = vld [vmem:[#allocation7 + $0xb8] sm:$0xff]  ;;  %v4996_v54 = vld [vmem:[#allocation7 + $0xa0] sm:$0xff] }
  0x43   :  { %317 = vmatpush1.msra.mxu1 %v4938_v35  ;;  %249 = vmatpush1.msra.mxu0 %v4948_v38  ;;  %8196 = vst [vmem:[#allocation16_spill] sm:$0xff] %v4996_v54  ;;  %v4998_v55 = vld [vmem:[#allocation7 + $0xb0] sm:$0xff]  ;;  %v5002_v56 = vld [vmem:[#allocation7 + $0x88] sm:$0xff]  ;;  %v5004_v57 = vld [vmem:[#allocation7 + $0x98] sm:$0xff] }
  0x44   :  { %318 = vmatprep.subr.mxu1 %v4944_v37  ;;  %250 = vmatprep.subr.mxu0 %v4954_v40  ;;  %8197 = vst [vmem:[#allocation17_spill] sm:$0xff] %v4998_v55  ;;  %8198 = vst [vmem:[#allocation18_spill] sm:$0xff] %v5002_v56  ;;  %v5008_v58 = vld [vmem:[#allocation7 + $0x80] sm:$0xff]  ;;  %v5010_v59 = vld [vmem:[#allocation7 + $0x90] sm:$0xff] }
  0x45   :  { %319 = vmatpush1.msra.mxu1 %v4950_v39  ;;  %251 = vmatpush1.msra.mxu0 %v4960_v42  ;;  %8199 = vst [vmem:[#allocation19_spill] sm:$0xff] %v5004_v57  ;;  %8200 = vst [vmem:[#allocation20_spill] sm:$0xff] %v5008_v58  ;;  %v5014_v60 = vld [vmem:[#allocation7 + $0x68] sm:$0xff]  ;;  %v5016_v61 = vld [vmem:[#allocation7 + $0x78] sm:$0xff] }
  0x46   :  { %320 = vmatprep.subr.mxu1 %v4956_v41  ;;  %252 = vmatprep.subr.mxu0 %v4966_v44  ;;  %8201 = vst [vmem:[#allocation21_spill] sm:$0xff] %v5010_v59  ;;  %8202 = vst [vmem:[#allocation22_spill] sm:$0xff] %v5014_v60  ;;  %v5020_v62 = vld [vmem:[#allocation7 + $0x60] sm:$0xff]  ;;  %v5022_v63 = vld [vmem:[#allocation7 + $0x70] sm:$0xff] }
  0x47   :  { %321 = vmatpush1.msra.mxu1 %v4962_v43  ;;  %253 = vmatpush1.msra.mxu0 %v4972_v46  ;;  %8203 = vst [vmem:[#allocation23_spill] sm:$0xff] %v5016_v61  ;;  %8204 = vst [vmem:[#allocation24_spill] sm:$0xff] %v5020_v62  ;;  %v5026_v0 = vld [vmem:[#allocation7 + $0x48] sm:$0xff]  ;;  %v5028_v1 = vld [vmem:[#allocation7 + $0x58] sm:$0xff] }
  0x48   :  { %322 = vmatprep.subr.mxu1 %v4968_v45  ;;  %254 = vmatprep.subr.mxu0 %v4978_v48  ;;  %8205 = vst [vmem:[#allocation25_spill] sm:$0xff] %v5022_v63  ;;  %8206 = vst [vmem:[#allocation26_spill] sm:$0xff] %v5026_v0  ;;  %v5032_v4 = vld [vmem:[#allocation7 + $0x40] sm:$0xff]  ;;  %v5034_v7 = vld [vmem:[#allocation7 + $0x50] sm:$0xff] }
  0x49   :  { %323 = vmatpush1.msra.mxu1 %v4974_v47  ;;  %255 = vmatpush1.msra.mxu0 %v4984_v50  ;;  %8207 = vst [vmem:[#allocation27_spill] sm:$0xff] %v5028_v1  ;;  %8208 = vst [vmem:[#allocation28_spill] sm:$0xff] %v5032_v4  ;;  %v5038_v12 = vld [vmem:[#allocation7 + $0x28] sm:$0xff]  ;;  %v5040_v8 = vld [vmem:[#allocation7 + $0x38] sm:$0xff] }
  0x4a   :  { %324 = vmatprep.subr.mxu1 %v4980_v49  ;;  %256 = vmatprep.subr.mxu0 %v4990_v52  ;;  %8209 = vst [vmem:[#allocation29_spill] sm:$0xff] %v5034_v7  ;;  %8210 = vst [vmem:[#allocation30_spill] sm:$0xff] %v5038_v12  ;;  %v5044_v16 = vld [vmem:[#allocation7 + $0x20] sm:$0xff] }
  0x4b   :  { %325 = vmatpush1.msra.mxu1 %v4986_v51  ;;  %257 = vmatpush1.msra.mxu0 %v4996_v54  ;;  %8211 = vst [vmem:[#allocation31_spill] sm:$0xff] %v5040_v8  ;;  %8212 = vst [vmem:[#allocation32_spill] sm:$0xff] %v5044_v16 }
  0x4c   :  { %326 = vmatprep.subr.mxu1 %v4992_v53  ;;  %258 = vmatprep.subr.mxu0 %v5002_v56 }
  0x4d   :  { %327 = vmatpush1.msra.mxu1 %v4998_v55  ;;  %259 = vmatpush1.msra.mxu0 %v5008_v58 }
  0x4e   :  { %328 = vmatprep.subr.mxu1 %v5004_v57  ;;  %260 = vmatprep.subr.mxu0 %v5014_v60  ;;  %v5046_v60 = vld [vmem:[#allocation7 + $0x30] sm:$0xff]  ;;  %v8221_v57 = vrot.slane %v4857_v6, %v4847_v3 }
  0x4f   :  { %329 = vmatpush1.msra.mxu1 %v5010_v59  ;;  %261 = vmatpush1.msra.mxu0 %v5020_v62  ;;  %8213 = vst [vmem:[#allocation33_spill] sm:$0xff] %v5046_v60  ;;  %v5052_v62 = vld [vmem:[#allocation7 + $0x18] sm:$0xff] }
  0x50   :  { %330 = vmatprep.subr.mxu1 %v5016_v61  ;;  %262 = vmatprep.subr.mxu0 %v5026_v0  ;;  %v5050_v61 = vld [vmem:[#allocation7 + $0x8] sm:$0xff]  ;;  %8215 = vst [vmem:[#allocation35_spill] sm:$0xff] %v5052_v62  ;;  %v5058_v0 = vld [vmem:[#allocation7 + $0x10] sm:$0xff] }
  0x51   :  { %331 = vmatpush1.msra.mxu1 %v5022_v63  ;;  %263 = vmatpush1.msra.mxu0 %v5032_v4  ;;  %8214 = vst [vmem:[#allocation34_spill] sm:$0xff] %v5050_v61  ;;  %v5056_v63 = vld [vmem:[#allocation7] sm:$0xff]  ;;  %8217 = vst [vmem:[#allocation37_spill] sm:$0xff] %v5058_v0  ;;  %v5064_v4 = vld [vmem:[#allocation5 + $0x1f8] sm:$0xff] }
  0x52   :  { %332 = vmatprep.subr.mxu1 %v5028_v1  ;;  %264 = vmatprep.subr.mxu0 %v5038_v12  ;;  %8216 = vst [vmem:[#allocation36_spill] sm:$0xff] %v5056_v63  ;;  %v5062_v1 = vld [vmem:[#allocation5 + $0x1e8] sm:$0xff]  ;;  %8219 = vst [vmem:[#allocation39_spill] sm:$0xff] %v5064_v4 }
  0x53   :  { %333 = vmatpush1.msra.mxu1 %v5034_v7  ;;  %265 = vmatpush1.msra.mxu0 %v5044_v16  ;;  %8218 = vst [vmem:[#allocation38_spill] sm:$0xff] %v5062_v1  ;;  %v5073_v16 = vsub.s32 0, %v4844_v2 }
  0x54   :  { %334 = vmatprep.subr.mxu1 %v5040_v8  ;;  %266 = vmatprep.subr.mxu0 %v5050_v61  ;;  %v5081_v61 = vsub.s32 3, %v4844_v2 }
  0x55   :  { %335 = vmatpush1.msra.mxu1 %v5046_v60  ;;  %267 = vmatpush1.msra.mxu0 %v5056_v63  ;;  %v5076_v60 = vsub.s32 2, %v4844_v2  ;;  %v91_v8 = vrot.slane %v4852_v5, %v5073_v16 }
  0x56   :  { %336 = vmatprep.subr.mxu1 %v5052_v62  ;;  %453 = vmatprep.subr.mxu0 %v5062_v1  ;;  %v117_v1 = vrot.slane %v4857_v6, %v5073_v16  ;;  %v8220_v62 = vrot.slane %v4852_v5, %v4847_v3  ;;  %v103_v7 = vrot.slane %v4852_v5, %v5081_v61 }
  0x57   :  { %337 = vmatpush1.msra.mxu1 %v5058_v0  ;;  %v99_v63 = vrot.slane %v4852_v5, %v5076_v60  ;;  %v125_v59 = vrot.slane %v4857_v6, %v5076_v60  ;;  %v129_v55 = vrot.slane %v4857_v6, %v5081_v61 }
  0x58   :  { %524 = vmatprep.subr.mxu1 %v5064_v4 }
  0xb0   :  { %v85_v0 = vpop.permute.xlu0 %84 }
  0xb1   :  { %v108_v4 = vmul.f32 %v91_v8, %v85_v0  ;;  %v109_v12 = vmul.f32 %v8220_v62, %v85_v0  ;;  %v110_v2 = vmul.f32 %v99_v63, %v85_v0  ;;  %v111_v62 = vmul.f32 %v103_v7, %v85_v0 }
  0xb3   :  { %v5094_v58 = vadd.f32 %v117_v1, %v108_v4  ;;  %v5099_v56 = vadd.f32 %v8221_v57, %v109_v12  ;;  %v5104_v54 = vadd.f32 %v125_v59, %v110_v2  ;;  %v5106_v5 = vadd.f32 %v129_v55, %v111_v62  ;;  %v5115_v55 = vld [vmem:[#allocation5 + $0x1e0] sm:$0xff]  ;;  %v5119_v62 = vld [vmem:[#allocation5 + $0x1c8] sm:$0xff] }
  0xb4   :  { %8223 = vst [vmem:[#allocation41_spill] sm:$0xff] %v5119_v62 }
  0xb5   :  { %v139_v8 = vmul.f32 0.5, %v5094_v58  ;;  %v144_v63 = vmul.f32 0.5, %v5106_v5 }
  0xb7   :  { %3934 = vtanh.f32 %v139_v8  ;;  %v5117_v8 = vld [vmem:[#allocation5 + $0x1f0] sm:$0xff] }
  0xb8   :  { %3936 = vtanh.f32 %v5104_v54  ;;  %8222 = vst [vmem:[#allocation40_spill] sm:$0xff] %v5117_v8 }
  0xb9   :  { %3938 = vtanh.f32 %v144_v63  ;;  %v5121_v63 = vld [vmem:[#allocation5 + $0x1d8] sm:$0xff] }
  0xba   :  { %8224 = vst [vmem:[#allocation42_spill] sm:$0xff] %v5121_v63 }
  0xc4   :  { %v3935_v1 = vpop.eup %3934 }
  0xc5   :  { %v141_v3 = vmul.f32 0.5, %v3935_v1  ;;  %v3937_v57 = vpop.eup %3936  ;;  %v5125_v1 = vld [vmem:[#allocation5 + $0x1c0] sm:$0xff] }
  0xc6   :  { %v3939_v6 = vpop.eup %3938  ;;  %8225 = vst [vmem:[#allocation43_spill] sm:$0xff] %v5125_v1 }
  0xc7   :  { %v142_v12 = vadd.f32 0.5, %v141_v3  ;;  %v146_v7 = vmul.f32 0.5, %v3939_v6  ;;  %v5127_v3 = vld [vmem:[#allocation5 + $0x1d0] sm:$0xff]  ;;  %v5137_v6 = vld [vmem:[#allocation5 + $0x1a0] sm:$0xff] }
  0xc8   :  { %8226 = vst [vmem:[#allocation44_spill] sm:$0xff] %v5127_v3  ;;  %8229 = vst [vmem:[#allocation47_spill] sm:$0xff] %v5137_v6 }
  0xc9   :  { %v5110_v4 = vmul.f32 %v3937_v57, %v142_v12  ;;  %v147_v59 = vadd.f32 0.5, %v146_v7  ;;  %v5131_v12 = vld [vmem:[#allocation5 + $0x1a8] sm:$0xff]  ;;  %v5133_v57 = vld [vmem:[#allocation5 + $0x1b8] sm:$0xff]  ;;  %v5139_v7 = vld [vmem:[#allocation5 + $0x1b0] sm:$0xff] }
  0xca   :  { %8227 = vst [vmem:[#allocation45_spill] sm:$0xff] %v5131_v12  ;;  %8228 = vst [vmem:[#allocation46_spill] sm:$0xff] %v5133_v57 }
  0xcb   :  { %3940 = vtanh.f32 %v5110_v4  ;;  %8230 = vst [vmem:[#allocation48_spill] sm:$0xff] %v5139_v7 }
  0xd8   :  { %v3941_v0 = vpop.eup %3940 }
  0xd9   :  { %v5113_v2 = vmul.f32 %v3941_v0, %v147_v59  ;;  %v5143_v59 = vld [vmem:[#allocation5 + $0x188] sm:$0xff]  ;;  %v5145_v0 = vld [vmem:[#allocation5 + $0x198] sm:$0xff] }
  0xda   :  { %8231 = vst [vmem:[#allocation49_spill] sm:$0xff] %v5143_v59  ;;  %8232 = vst [vmem:[#allocation50_spill] sm:$0xff] %v5145_v0 }
  0xdb   :  { %301 = vmatmul.mubr.f32.vlgmr.msra.gmra.mxu0 %v5113_v2  ;;  %371 = vmatmul.mubr.f32.vlgmr.msra.gmra.mxu1 %v5113_v2 }
  0xdc   :  { %454 = vmatpush1.msra.mxu0 %v5115_v55  ;;  %525 = vmatpush1.msra.mxu1 %v5117_v8  ;;  %v5149_v8 = vld [vmem:[#allocation5 + $0x180] sm:$0xff] }
  0xdd   :  { %455 = vmatprep.subr.mxu0 %v5119_v62  ;;  %526 = vmatprep.subr.mxu1 %v5121_v63  ;;  %8233 = vst [vmem:[#allocation51_spill] sm:$0xff] %v5149_v8  ;;  %v5151_v62 = vld [vmem:[#allocation5 + $0x190] sm:$0xff]  ;;  %v5155_v63 = vld [vmem:[#allocation5 + $0x168] sm:$0xff] }
  0xde   :  { %456 = vmatpush1.msra.mxu0 %v5125_v1  ;;  %527 = vmatpush1.msra.mxu1 %v5127_v3  ;;  %8234 = vst [vmem:[#allocation52_spill] sm:$0xff] %v5151_v62  ;;  %8235 = vst [vmem:[#allocation53_spill] sm:$0xff] %v5155_v63  ;;  %v5157_v1 = vld [vmem:[#allocation5 + $0x178] sm:$0xff]  ;;  %v5161_v3 = vld [vmem:[#allocation5 + $0x160] sm:$0xff] }
  0xdf   :  { %457 = vmatprep.subr.mxu0 %v5131_v12  ;;  %528 = vmatprep.subr.mxu1 %v5133_v57  ;;  %8236 = vst [vmem:[#allocation54_spill] sm:$0xff] %v5157_v1  ;;  %8237 = vst [vmem:[#allocation55_spill] sm:$0xff] %v5161_v3  ;;  %v5163_v12 = vld [vmem:[#allocation5 + $0x170] sm:$0xff]  ;;  %v5167_v57 = vld [vmem:[#allocation5 + $0x148] sm:$0xff] }
  0xe0   :  { %458 = vmatpush1.msra.mxu0 %v5137_v6  ;;  %529 = vmatpush1.msra.mxu1 %v5139_v7  ;;  %8238 = vst [vmem:[#allocation56_spill] sm:$0xff] %v5163_v12  ;;  %8239 = vst [vmem:[#allocation57_spill] sm:$0xff] %v5167_v57  ;;  %v5169_v6 = vld [vmem:[#allocation5 + $0x158] sm:$0xff]  ;;  %v5173_v7 = vld [vmem:[#allocation5 + $0x140] sm:$0xff] }
  0xe1   :  { %459 = vmatprep.subr.mxu0 %v5143_v59  ;;  %530 = vmatprep.subr.mxu1 %v5145_v0  ;;  %8240 = vst [vmem:[#allocation58_spill] sm:$0xff] %v5169_v6  ;;  %8241 = vst [vmem:[#allocation59_spill] sm:$0xff] %v5173_v7  ;;  %v5175_v59 = vld [vmem:[#allocation5 + $0x150] sm:$0xff]  ;;  %v5179_v0 = vld [vmem:[#allocation5 + $0x128] sm:$0xff] }
  0xe2   :  { %460 = vmatpush1.msra.mxu0 %v5149_v8  ;;  %531 = vmatpush1.msra.mxu1 %v5151_v62  ;;  %8242 = vst [vmem:[#allocation60_spill] sm:$0xff] %v5175_v59  ;;  %8243 = vst [vmem:[#allocation61_spill] sm:$0xff] %v5179_v0  ;;  %v5181_v8 = vld [vmem:[#allocation5 + $0x138] sm:$0xff]  ;;  %v5185_v62 = vld [vmem:[#allocation5 + $0x120] sm:$0xff] }
  0xe3   :  { %461 = vmatprep.subr.mxu0 %v5155_v63  ;;  %532 = vmatprep.subr.mxu1 %v5157_v1  ;;  %8244 = vst [vmem:[#allocation62_spill] sm:$0xff] %v5181_v8  ;;  %8245 = vst [vmem:[#allocation63_spill] sm:$0xff] %v5185_v62  ;;  %v5187_v63 = vld [vmem:[#allocation5 + $0x130] sm:$0xff]  ;;  %v5191_v1 = vld [vmem:[#allocation5 + $0x108] sm:$0xff] }
  0xe4   :  { %462 = vmatpush1.msra.mxu0 %v5161_v3  ;;  %533 = vmatpush1.msra.mxu1 %v5163_v12  ;;  %8246 = vst [vmem:[#allocation64_spill] sm:$0xff] %v5187_v63  ;;  %8247 = vst [vmem:[#allocation65_spill] sm:$0xff] %v5191_v1  ;;  %v5193_v3 = vld [vmem:[#allocation5 + $0x118] sm:$0xff]  ;;  %v5197_v12 = vld [vmem:[#allocation5 + $0x100] sm:$0xff] }
  0xe5   :  { %463 = vmatprep.subr.mxu0 %v5167_v57  ;;  %534 = vmatprep.subr.mxu1 %v5169_v6  ;;  %8248 = vst [vmem:[#allocation66_spill] sm:$0xff] %v5193_v3  ;;  %8249 = vst [vmem:[#allocation67_spill] sm:$0xff] %v5197_v12  ;;  %v5199_v57 = vld [vmem:[#allocation5 + $0x110] sm:$0xff]  ;;  %v5203_v6 = vld [vmem:[#allocation5 + $0xe8] sm:$0xff] }
  0xe6   :  { %464 = vmatpush1.msra.mxu0 %v5173_v7  ;;  %535 = vmatpush1.msra.mxu1 %v5175_v59  ;;  %8250 = vst [vmem:[#allocation68_spill] sm:$0xff] %v5199_v57  ;;  %8251 = vst [vmem:[#allocation69_spill] sm:$0xff] %v5203_v6  ;;  %v5205_v7 = vld [vmem:[#allocation5 + $0xf8] sm:$0xff]  ;;  %v5209_v59 = vld [vmem:[#allocation5 + $0xe0] sm:$0xff] }
  0xe7   :  { %465 = vmatprep.subr.mxu0 %v5179_v0  ;;  %536 = vmatprep.subr.mxu1 %v5181_v8  ;;  %8252 = vst [vmem:[#allocation70_spill] sm:$0xff] %v5205_v7  ;;  %8253 = vst [vmem:[#allocation71_spill] sm:$0xff] %v5209_v59  ;;  %v5211_v0 = vld [vmem:[#allocation5 + $0xf0] sm:$0xff]  ;;  %v5215_v8 = vld [vmem:[#allocation5 + $0xc8] sm:$0xff] }
  0xe8   :  { %466 = vmatpush1.msra.mxu0 %v5185_v62  ;;  %537 = vmatpush1.msra.mxu1 %v5187_v63  ;;  %8254 = vst [vmem:[#allocation72_spill] sm:$0xff] %v5211_v0  ;;  %8255 = vst [vmem:[#allocation73_spill] sm:$0xff] %v5215_v8  ;;  %v5217_v62 = vld [vmem:[#allocation5 + $0xd8] sm:$0xff]  ;;  %v5221_v63 = vld [vmem:[#allocation5 + $0xc0] sm:$0xff] }
  0xe9   :  { %467 = vmatprep.subr.mxu0 %v5191_v1  ;;  %538 = vmatprep.subr.mxu1 %v5193_v3  ;;  %8256 = vst [vmem:[#allocation74_spill] sm:$0xff] %v5217_v62  ;;  %8257 = vst [vmem:[#allocation75_spill] sm:$0xff] %v5221_v63  ;;  %v5223_v1 = vld [vmem:[#allocation5 + $0xd0] sm:$0xff]  ;;  %v5227_v3 = vld [vmem:[#allocation5 + $0xa8] sm:$0xff] }
  0xea   :  { %468 = vmatpush1.msra.mxu0 %v5197_v12  ;;  %539 = vmatpush1.msra.mxu1 %v5199_v57  ;;  %8258 = vst [vmem:[#allocation76_spill] sm:$0xff] %v5223_v1  ;;  %8259 = vst [vmem:[#allocation77_spill] sm:$0xff] %v5227_v3  ;;  %v5229_v12 = vld [vmem:[#allocation5 + $0xb8] sm:$0xff]  ;;  %v5233_v57 = vld [vmem:[#allocation5 + $0xa0] sm:$0xff] }
  0xeb   :  { %469 = vmatprep.subr.mxu0 %v5203_v6  ;;  %540 = vmatprep.subr.mxu1 %v5205_v7  ;;  %8260 = vst [vmem:[#allocation78_spill] sm:$0xff] %v5229_v12  ;;  %8261 = vst [vmem:[#allocation79_spill] sm:$0xff] %v5233_v57  ;;  %v5235_v6 = vld [vmem:[#allocation5 + $0xb0] sm:$0xff]  ;;  %v5239_v7 = vld [vmem:[#allocation5 + $0x88] sm:$0xff] }
  0xec   :  { %470 = vmatpush1.msra.mxu0 %v5209_v59  ;;  %541 = vmatpush1.msra.mxu1 %v5211_v0  ;;  %8262 = vst [vmem:[#allocation80_spill] sm:$0xff] %v5235_v6  ;;  %8263 = vst [vmem:[#allocation81_spill] sm:$0xff] %v5239_v7  ;;  %v5241_v59 = vld [vmem:[#allocation5 + $0x98] sm:$0xff]  ;;  %v5245_v0 = vld [vmem:[#allocation5 + $0x80] sm:$0xff] }
  0xed   :  { %471 = vmatprep.subr.mxu0 %v5215_v8  ;;  %542 = vmatprep.subr.mxu1 %v5217_v62  ;;  %8264 = vst [vmem:[#allocation82_spill] sm:$0xff] %v5241_v59  ;;  %8265 = vst [vmem:[#allocation83_spill] sm:$0xff] %v5245_v0  ;;  %v5247_v8 = vld [vmem:[#allocation5 + $0x90] sm:$0xff]  ;;  %v5251_v62 = vld [vmem:[#allocation5 + $0x68] sm:$0xff] }
  0xee   :  { %472 = vmatpush1.msra.mxu0 %v5221_v63  ;;  %543 = vmatpush1.msra.mxu1 %v5223_v1  ;;  %8266 = vst [vmem:[#allocation84_spill] sm:$0xff] %v5247_v8  ;;  %8267 = vst [vmem:[#allocation85_spill] sm:$0xff] %v5251_v62  ;;  %v5253_v63 = vld [vmem:[#allocation5 + $0x78] sm:$0xff]  ;;  %v5257_v1 = vld [vmem:[#allocation5 + $0x60] sm:$0xff] }
  0xef   :  { %473 = vmatprep.subr.mxu0 %v5227_v3  ;;  %544 = vmatprep.subr.mxu1 %v5229_v12  ;;  %8268 = vst [vmem:[#allocation86_spill] sm:$0xff] %v5253_v63  ;;  %8269 = vst [vmem:[#allocation87_spill] sm:$0xff] %v5257_v1  ;;  %v5259_v3 = vld [vmem:[#allocation5 + $0x70] sm:$0xff]  ;;  %v5263_v12 = vld [vmem:[#allocation5 + $0x48] sm:$0xff] }
  0xf0   :  { %474 = vmatpush1.msra.mxu0 %v5233_v57  ;;  %545 = vmatpush1.msra.mxu1 %v5235_v6  ;;  %8270 = vst [vmem:[#allocation88_spill] sm:$0xff] %v5259_v3  ;;  %8271 = vst [vmem:[#allocation89_spill] sm:$0xff] %v5263_v12  ;;  %v5265_v57 = vld [vmem:[#allocation5 + $0x58] sm:$0xff]  ;;  %v5269_v6 = vld [vmem:[#allocation5 + $0x40] sm:$0xff] }
  0xf1   :  { %475 = vmatprep.subr.mxu0 %v5239_v7  ;;  %546 = vmatprep.subr.mxu1 %v5241_v59  ;;  %8272 = vst [vmem:[#allocation90_spill] sm:$0xff] %v5265_v57  ;;  %8273 = vst [vmem:[#allocation91_spill] sm:$0xff] %v5269_v6  ;;  %v5271_v7 = vld [vmem:[#allocation5 + $0x50] sm:$0xff]  ;;  %v5275_v59 = vld [vmem:[#allocation5 + $0x28] sm:$0xff] }
  0xf2   :  { %476 = vmatpush1.msra.mxu0 %v5245_v0  ;;  %547 = vmatpush1.msra.mxu1 %v5247_v8  ;;  %8274 = vst [vmem:[#allocation92_spill] sm:$0xff] %v5271_v7  ;;  %8275 = vst [vmem:[#allocation93_spill] sm:$0xff] %v5275_v59  ;;  %v5277_v0 = vld [vmem:[#allocation5 + $0x38] sm:$0xff]  ;;  %v5281_v8 = vld [vmem:[#allocation5 + $0x20] sm:$0xff] }
  0xf3   :  { %477 = vmatprep.subr.mxu0 %v5251_v62  ;;  %548 = vmatprep.subr.mxu1 %v5253_v63  ;;  %8276 = vst [vmem:[#allocation94_spill] sm:$0xff] %v5277_v0  ;;  %8277 = vst [vmem:[#allocation95_spill] sm:$0xff] %v5281_v8  ;;  %v5283_v62 = vld [vmem:[#allocation5 + $0x30] sm:$0xff]  ;;  %v5287_v63 = vld [vmem:[#allocation5 + $0x8] sm:$0xff] }
  0xf4   :  { %478 = vmatpush1.msra.mxu0 %v5257_v1  ;;  %549 = vmatpush1.msra.mxu1 %v5259_v3  ;;  %8278 = vst [vmem:[#allocation96_spill] sm:$0xff] %v5283_v62  ;;  %8279 = vst [vmem:[#allocation97_spill] sm:$0xff] %v5287_v63  ;;  %v5289_v1 = vld [vmem:[#allocation5 + $0x18] sm:$0xff]  ;;  %v5293_v3 = vld [vmem:[#allocation5] sm:$0xff] }
  0xf5   :  { %479 = vmatprep.subr.mxu0 %v5263_v12  ;;  %550 = vmatprep.subr.mxu1 %v5265_v57  ;;  %8280 = vst [vmem:[#allocation98_spill] sm:$0xff] %v5289_v1  ;;  %8281 = vst [vmem:[#allocation99_spill] sm:$0xff] %v5293_v3  ;;  %v5297_v57 = vld [vmem:[#allocation5 + $0x10] sm:$0xff] }
  0xf6   :  { %480 = vmatpush1.msra.mxu0 %v5269_v6  ;;  %551 = vmatpush1.msra.mxu1 %v5271_v7  ;;  %8282 = vst [vmem:[#allocation100_spill] sm:$0xff] %v5297_v57  ;;  %v8283_v7 = vmov 0.0   ;;  %v5427_v6 = vld [vmem:[#allocation8 + $0xb8] sm:$0xff] }
  0xf7   :  { %481 = vmatprep.subr.mxu0 %v5275_v59  ;;  %552 = vmatprep.subr.mxu1 %v5277_v0  ;;  %v5411_v0 = vld [vmem:[#allocation8 + $0xf0] sm:$0xff]  ;;  %v5419_v59 = vld [vmem:[#allocation8 + $0xc0] sm:$0xff]  ;;  %8325 = vst [vmem:[#allocation142_spill] sm:$0xff] %v5427_v6 }
  0xf8   :  { %482 = vmatpush1.msra.mxu0 %v5281_v8  ;;  %553 = vmatpush1.msra.mxu1 %v5283_v62  ;;  %v5309_v62 = vld [vmem:[#allocation8 + $0x1e8] sm:$0xff]  ;;  %v5327_v8 = vld [vmem:[#allocation8 + $0x1c0] sm:$0xff]  ;;  %8319 = vst [vmem:[#allocation136_spill] sm:$0xff] %v5411_v0  ;;  %8322 = vst [vmem:[#allocation139_spill] sm:$0xff] %v5419_v59 }
  0xf9   :  { %483 = vmatprep.subr.mxu0 %v5287_v63  ;;  %554 = vmatprep.subr.mxu1 %v5289_v1  ;;  %8284 = vst [vmem:[#allocation101_spill] sm:$0xff] %v5309_v62  ;;  %v5311_v63 = vld [vmem:[#allocation8 + $0x1f8] sm:$0xff]  ;;  %8290 = vst [vmem:[#allocation107_spill] sm:$0xff] %v5327_v8 }
  0xfa   :  { %484 = vmatpush1.msra.mxu0 %v5293_v3  ;;  %517 = vmatprep.mubr.f32.mxu0 %v8283_v7  ;;  %8285 = vst [vmem:[#allocation102_spill] sm:$0xff] %v5311_v63  ;;  %v5315_v3 = vld [vmem:[#allocation8 + $0x1e0] sm:$0xff]  ;;  %v5323_v1 = vld [vmem:[#allocation8 + $0x1d8] sm:$0xff] }
  0xfb   :  { %555 = vmatpush1.msra.mxu1 %v5297_v57  ;;  %588 = vmatprep.mubr.f32.mxu1 %v8283_v7  ;;  %8286 = vst [vmem:[#allocation103_spill] sm:$0xff] %v5315_v3  ;;  %v5317_v57 = vld [vmem:[#allocation8 + $0x1f0] sm:$0xff]  ;;  %8289 = vst [vmem:[#allocation106_spill] sm:$0xff] %v5323_v1 }
  0xfc   :  { %518 = vmatmul.mubr.f32.vlgmr.msra.gmra.mxu0 %v5113_v2  ;;  %589 = vmatmul.mubr.f32.vlgmr.msra.gmra.mxu1 %v5113_v2  ;;  %8287 = vst [vmem:[#allocation104_spill] sm:$0xff] %v5317_v57  ;;  %v5321_v2 = vld [vmem:[#allocation8 + $0x1c8] sm:$0xff] }
  0xfd   :  { %760 = vmatprep.mubr.f32.mxu0 %v8283_v7  ;;  %831 = vmatprep.mubr.f32.mxu1 %v8283_v7  ;;  %8288 = vst [vmem:[#allocation105_spill] sm:$0xff] %v5321_v2 }
  0xfe   :  { %696 = vmatprep.subr.mxu0 %v5309_v62  ;;  %767 = vmatprep.subr.mxu1 %v5311_v63  ;;  %v5329_v62 = vld [vmem:[#allocation8 + $0x1d0] sm:$0xff]  ;;  %v5333_v63 = vld [vmem:[#allocation8 + $0x1a8] sm:$0xff] }
  0xff   :  { %697 = vmatpush1.msra.mxu0 %v5315_v3  ;;  %768 = vmatpush1.msra.mxu1 %v5317_v57  ;;  %8291 = vst [vmem:[#allocation108_spill] sm:$0xff] %v5329_v62  ;;  %8292 = vst [vmem:[#allocation109_spill] sm:$0xff] %v5333_v63  ;;  %v5335_v3 = vld [vmem:[#allocation8 + $0x1b8] sm:$0xff]  ;;  %v5339_v57 = vld [vmem:[#allocation8 + $0x1a0] sm:$0xff] }
 0x100   :  { %698 = vmatprep.subr.mxu0 %v5321_v2  ;;  %769 = vmatprep.subr.mxu1 %v5323_v1  ;;  %8293 = vst [vmem:[#allocation110_spill] sm:$0xff] %v5335_v3  ;;  %8294 = vst [vmem:[#allocation111_spill] sm:$0xff] %v5339_v57  ;;  %v5341_v2 = vld [vmem:[#allocation8 + $0x1b0] sm:$0xff]  ;;  %v5345_v1 = vld [vmem:[#allocation8 + $0x188] sm:$0xff] }
 0x101   :  { %699 = vmatpush1.msra.mxu0 %v5327_v8  ;;  %770 = vmatpush1.msra.mxu1 %v5329_v62  ;;  %8295 = vst [vmem:[#allocation112_spill] sm:$0xff] %v5341_v2  ;;  %8296 = vst [vmem:[#allocation113_spill] sm:$0xff] %v5345_v1  ;;  %v5347_v8 = vld [vmem:[#allocation8 + $0x198] sm:$0xff]  ;;  %v5351_v62 = vld [vmem:[#allocation8 + $0x180] sm:$0xff] }
 0x102   :  { %700 = vmatprep.subr.mxu0 %v5333_v63  ;;  %771 = vmatprep.subr.mxu1 %v5335_v3  ;;  %8297 = vst [vmem:[#allocation114_spill] sm:$0xff] %v5347_v8  ;;  %8298 = vst [vmem:[#allocation115_spill] sm:$0xff] %v5351_v62  ;;  %v5353_v63 = vld [vmem:[#allocation8 + $0x190] sm:$0xff]  ;;  %v5357_v3 = vld [vmem:[#allocation8 + $0x168] sm:$0xff] }
 0x103   :  { %701 = vmatpush1.msra.mxu0 %v5339_v57  ;;  %772 = vmatpush1.msra.mxu1 %v5341_v2  ;;  %8299 = vst [vmem:[#allocation116_spill] sm:$0xff] %v5353_v63  ;;  %8300 = vst [vmem:[#allocation117_spill] sm:$0xff] %v5357_v3  ;;  %v5359_v57 = vld [vmem:[#allocation8 + $0x178] sm:$0xff]  ;;  %v5363_v2 = vld [vmem:[#allocation8 + $0x160] sm:$0xff] }
 0x104   :  { %702 = vmatprep.subr.mxu0 %v5345_v1  ;;  %773 = vmatprep.subr.mxu1 %v5347_v8  ;;  %8301 = vst [vmem:[#allocation118_spill] sm:$0xff] %v5359_v57  ;;  %8302 = vst [vmem:[#allocation119_spill] sm:$0xff] %v5363_v2  ;;  %v5365_v1 = vld [vmem:[#allocation8 + $0x170] sm:$0xff]  ;;  %v5369_v8 = vld [vmem:[#allocation8 + $0x148] sm:$0xff] }
 0x105   :  { %703 = vmatpush1.msra.mxu0 %v5351_v62  ;;  %774 = vmatpush1.msra.mxu1 %v5353_v63  ;;  %8303 = vst [vmem:[#allocation120_spill] sm:$0xff] %v5365_v1  ;;  %8304 = vst [vmem:[#allocation121_spill] sm:$0xff] %v5369_v8  ;;  %v5371_v62 = vld [vmem:[#allocation8 + $0x158] sm:$0xff]  ;;  %v5375_v63 = vld [vmem:[#allocation8 + $0x140] sm:$0xff] }
 0x106   :  { %704 = vmatprep.subr.mxu0 %v5357_v3  ;;  %775 = vmatprep.subr.mxu1 %v5359_v57  ;;  %8305 = vst [vmem:[#allocation122_spill] sm:$0xff] %v5371_v62  ;;  %8306 = vst [vmem:[#allocation123_spill] sm:$0xff] %v5375_v63  ;;  %v5377_v3 = vld [vmem:[#allocation8 + $0x150] sm:$0xff]  ;;  %v5381_v57 = vld [vmem:[#allocation8 + $0x128] sm:$0xff] }
 0x107   :  { %705 = vmatpush1.msra.mxu0 %v5363_v2  ;;  %776 = vmatpush1.msra.mxu1 %v5365_v1  ;;  %8307 = vst [vmem:[#allocation124_spill] sm:$0xff] %v5377_v3  ;;  %8308 = vst [vmem:[#allocation125_spill] sm:$0xff] %v5381_v57  ;;  %v5383_v2 = vld [vmem:[#allocation8 + $0x138] sm:$0xff]  ;;  %v5387_v1 = vld [vmem:[#allocation8 + $0x120] sm:$0xff] }
 0x108   :  { %706 = vmatprep.subr.mxu0 %v5369_v8  ;;  %777 = vmatprep.subr.mxu1 %v5371_v62  ;;  %8309 = vst [vmem:[#allocation126_spill] sm:$0xff] %v5383_v2  ;;  %8310 = vst [vmem:[#allocation127_spill] sm:$0xff] %v5387_v1  ;;  %v5389_v8 = vld [vmem:[#allocation8 + $0x130] sm:$0xff]  ;;  %v5393_v62 = vld [vmem:[#allocation8 + $0x108] sm:$0xff] }
 0x109   :  { %707 = vmatpush1.msra.mxu0 %v5375_v63  ;;  %778 = vmatpush1.msra.mxu1 %v5377_v3  ;;  %8311 = vst [vmem:[#allocation128_spill] sm:$0xff] %v5389_v8  ;;  %8312 = vst [vmem:[#allocation129_spill] sm:$0xff] %v5393_v62  ;;  %v5395_v63 = vld [vmem:[#allocation8 + $0x118] sm:$0xff]  ;;  %v5399_v3 = vld [vmem:[#allocation8 + $0x100] sm:$0xff] }
 0x10a   :  { %708 = vmatprep.subr.mxu0 %v5381_v57  ;;  %779 = vmatprep.subr.mxu1 %v5383_v2  ;;  %8313 = vst [vmem:[#allocation130_spill] sm:$0xff] %v5395_v63  ;;  %8314 = vst [vmem:[#allocation131_spill] sm:$0xff] %v5399_v3  ;;  %v5401_v57 = vld [vmem:[#allocation8 + $0x110] sm:$0xff]  ;;  %v5403_v2 = vld [vmem:[#allocation8 + $0xe8] sm:$0xff] }
 0x10b   :  { %709 = vmatpush1.msra.mxu0 %v5387_v1  ;;  %780 = vmatpush1.msra.mxu1 %v5389_v8  ;;  %8315 = vst [vmem:[#allocation132_spill] sm:$0xff] %v5401_v57  ;;  %8316 = vst [vmem:[#allocation133_spill] sm:$0xff] %v5403_v2  ;;  %v5407_v1 = vld [vmem:[#allocation8 + $0xf8] sm:$0xff]  ;;  %v5409_v8 = vld [vmem:[#allocation8 + $0xe0] sm:$0xff] }
 0x10c   :  { %710 = vmatprep.subr.mxu0 %v5393_v62  ;;  %781 = vmatprep.subr.mxu1 %v5395_v63  ;;  %8317 = vst [vmem:[#allocation134_spill] sm:$0xff] %v5407_v1  ;;  %8318 = vst [vmem:[#allocation135_spill] sm:$0xff] %v5409_v8  ;;  %v5415_v63 = vld [vmem:[#allocation8 + $0xc8] sm:$0xff]  ;;  %v5417_v62 = vld [vmem:[#allocation8 + $0xd8] sm:$0xff] }
 0x10d   :  { %711 = vmatpush1.msra.mxu0 %v5399_v3  ;;  %782 = vmatpush1.msra.mxu1 %v5401_v57  ;;  %8320 = vst [vmem:[#allocation137_spill] sm:$0xff] %v5415_v63  ;;  %8321 = vst [vmem:[#allocation138_spill] sm:$0xff] %v5417_v62  ;;  %v5423_v57 = vld [vmem:[#allocation8 + $0xd0] sm:$0xff]  ;;  %v5425_v3 = vld [vmem:[#allocation8 + $0xa8] sm:$0xff] }
 0x10e   :  { %712 = vmatprep.subr.mxu0 %v5403_v2  ;;  %783 = vmatprep.subr.mxu1 %v5407_v1  ;;  %8323 = vst [vmem:[#allocation140_spill] sm:$0xff] %v5423_v57  ;;  %8324 = vst [vmem:[#allocation141_spill] sm:$0xff] %v5425_v3  ;;  %v5431_v1 = vld [vmem:[#allocation8 + $0xa0] sm:$0xff]  ;;  %v5433_v2 = vld [vmem:[#allocation8 + $0xb0] sm:$0xff] }
 0x10f   :  { %713 = vmatpush1.msra.mxu0 %v5409_v8  ;;  %784 = vmatpush1.msra.mxu1 %v5411_v0  ;;  %8326 = vst [vmem:[#allocation143_spill] sm:$0xff] %v5431_v1  ;;  %8327 = vst [vmem:[#allocation144_spill] sm:$0xff] %v5433_v2  ;;  %v5441_v0 = vld [vmem:[#allocation8 + $0x88] sm:$0xff] }
 0x110   :  { %714 = vmatprep.subr.mxu0 %v5415_v63  ;;  %785 = vmatprep.subr.mxu1 %v5417_v62  ;;  %8328 = vst [vmem:[#allocation145_spill] sm:$0xff] %v5441_v0  ;;  %v5443_v63 = vld [vmem:[#allocation8 + $0x98] sm:$0xff]  ;;  %v5447_v62 = vld [vmem:[#allocation8 + $0x80] sm:$0xff] }
 0x111   :  { %715 = vmatpush1.msra.mxu0 %v5419_v59  ;;  %786 = vmatpush1.msra.mxu1 %v5423_v57  ;;  %8329 = vst [vmem:[#allocation146_spill] sm:$0xff] %v5443_v63  ;;  %8330 = vst [vmem:[#allocation147_spill] sm:$0xff] %v5447_v62  ;;  %v5449_v59 = vld [vmem:[#allocation8 + $0x90] sm:$0xff] }
 0x112   :  { %716 = vmatprep.subr.mxu0 %v5425_v3  ;;  %787 = vmatprep.subr.mxu1 %v5427_v6  ;;  %8331 = vst [vmem:[#allocation148_spill] sm:$0xff] %v5449_v59  ;;  %v5453_v6 = vld [vmem:[#allocation8 + $0x68] sm:$0xff] }
 0x113   :  { %717 = vmatpush1.msra.mxu0 %v5431_v1  ;;  %788 = vmatpush1.msra.mxu1 %v5433_v2  ;;  %8332 = vst [vmem:[#allocation149_spill] sm:$0xff] %v5453_v6  ;;  %v5455_v1 = vld [vmem:[#allocation8 + $0x78] sm:$0xff]  ;;  %v5459_v2 = vld [vmem:[#allocation8 + $0x60] sm:$0xff] }
 0x114   :  { %718 = vmatprep.subr.mxu0 %v5441_v0  ;;  %789 = vmatprep.subr.mxu1 %v5443_v63  ;;  %8333 = vst [vmem:[#allocation150_spill] sm:$0xff] %v5455_v1  ;;  %8334 = vst [vmem:[#allocation151_spill] sm:$0xff] %v5459_v2  ;;  %v5461_v0 = vld [vmem:[#allocation8 + $0x70] sm:$0xff]  ;;  %v5465_v63 = vld [vmem:[#allocation8 + $0x48] sm:$0xff] }
 0x115   :  { %719 = vmatpush1.msra.mxu0 %v5447_v62  ;;  %790 = vmatpush1.msra.mxu1 %v5449_v59  ;;  %8335 = vst [vmem:[#allocation152_spill] sm:$0xff] %v5461_v0  ;;  %8336 = vst [vmem:[#allocation153_spill] sm:$0xff] %v5465_v63  ;;  %v5467_v62 = vld [vmem:[#allocation8 + $0x58] sm:$0xff]  ;;  %v5471_v59 = vld [vmem:[#allocation8 + $0x40] sm:$0xff] }
 0x116   :  { %720 = vmatprep.subr.mxu0 %v5453_v6  ;;  %791 = vmatprep.subr.mxu1 %v5455_v1  ;;  %8337 = vst [vmem:[#allocation154_spill] sm:$0xff] %v5467_v62  ;;  %8338 = vst [vmem:[#allocation155_spill] sm:$0xff] %v5471_v59  ;;  %v5473_v6 = vld [vmem:[#allocation8 + $0x50] sm:$0xff]  ;;  %v5477_v1 = vld [vmem:[#allocation8 + $0x28] sm:$0xff] }
 0x117   :  { %721 = vmatpush1.msra.mxu0 %v5459_v2  ;;  %792 = vmatpush1.msra.mxu1 %v5461_v0  ;;  %8339 = vst [vmem:[#allocation156_spill] sm:$0xff] %v5473_v6  ;;  %8340 = vst [vmem:[#allocation157_spill] sm:$0xff] %v5477_v1  ;;  %v5479_v2 = vld [vmem:[#allocation8 + $0x38] sm:$0xff]  ;;  %v5483_v0 = vld [vmem:[#allocation8 + $0x20] sm:$0xff] }
 0x118   :  { %722 = vmatprep.subr.mxu0 %v5465_v63  ;;  %793 = vmatprep.subr.mxu1 %v5467_v62  ;;  %8341 = vst [vmem:[#allocation158_spill] sm:$0xff] %v5479_v2  ;;  %8342 = vst [vmem:[#allocation159_spill] sm:$0xff] %v5483_v0  ;;  %v5485_v63 = vld [vmem:[#allocation8 + $0x30] sm:$0xff]  ;;  %v5489_v62 = vld [vmem:[#allocation8 + $0x8] sm:$0xff] }
 0x119   :  { %723 = vmatpush1.msra.mxu0 %v5471_v59  ;;  %794 = vmatpush1.msra.mxu1 %v5473_v6  ;;  %8343 = vst [vmem:[#allocation160_spill] sm:$0xff] %v5485_v63  ;;  %8344 = vst [vmem:[#allocation161_spill] sm:$0xff] %v5489_v62  ;;  %v5491_v59 = vld [vmem:[#allocation8 + $0x18] sm:$0xff]  ;;  %v5495_v6 = vld [vmem:[#allocation8] sm:$0xff] }
 0x11a   :  { %724 = vmatprep.subr.mxu0 %v5477_v1  ;;  %795 = vmatprep.subr.mxu1 %v5479_v2  ;;  %8345 = vst [vmem:[#allocation162_spill] sm:$0xff] %v5491_v59  ;;  %8346 = vst [vmem:[#allocation163_spill] sm:$0xff] %v5495_v6  ;;  %v5497_v1 = vld [vmem:[#allocation8 + $0x10] sm:$0xff] }
 0x11b   :  { %725 = vmatpush1.msra.mxu0 %v5483_v0  ;;  %796 = vmatpush1.msra.mxu1 %v5485_v63  ;;  %8347 = vst [vmem:[#allocation164_spill] sm:$0xff] %v5497_v1  ;;  %v5505_v63 = vrot.slane %v4866_v9, %v5073_v16 }
 0x11c   :  { %726 = vmatprep.subr.mxu0 %v5489_v62  ;;  %797 = vmatprep.subr.mxu1 %v5491_v59  ;;  %v5509_v59 = vrot.slane %v4866_v9, %v5076_v60 }
 0x11d   :  { %727 = vmatpush1.msra.mxu0 %v5495_v6  ;;  %798 = vmatpush1.msra.mxu1 %v5497_v1  ;;  %8348 = vst [vmem:[#allocation165_spill] sm:$0xff] %v5505_v63  ;;  %v5514_v1 = vrot.slane %v4866_v9, %v5081_v61 }
 0x11e   :  { %841 = vmatprep.subr.mxu0 %v4868_v10  ;;  %912 = vmatprep.subr.mxu1 %v4870_v11  ;;  %8349 = vst [vmem:[#allocation166_spill] sm:$0xff] %v5509_v59 }
 0x11f   :  { %8350 = vst [vmem:[#allocation167_spill] sm:$0xff] %v5514_v1 }
 0x19b   :  { %v302_v0 = vpop.f32.mrf.mxu0  ;;  %v372_v2 = vpop.f32.mrf.mxu1 }
 0x19c   :  { %v303_v62 = vadd.f32 %v302_v0, %v5505_v63  ;;  %v373_v10 = vadd.f32 %v372_v2, %v5509_v59 }
 0x19d   :  { %v304_v3 = vpop.f32.mrf.mxu0  ;;  %v374_v11 = vpop.f32.mrf.mxu1 }
 0x19e   :  { %v377_v6 = vmul.f32 0.5, %v303_v62  ;;  %v375_v16 = vadd.f32 %v374_v11, %v5514_v1 }
 0x1a0   :  { %3942 = vtanh.f32 %v377_v6  ;;  %v382_v57 = vmul.f32 0.5, %v375_v16 }
 0x1a1   :  { %3944 = vtanh.f32 %v373_v10 }
 0x1a2   :  { %3946 = vtanh.f32 %v382_v57 }
 0x1ad   :  { %v3943_v60 = vpop.eup %3942 }
 0x1ae   :  { %v379_v8 = vmul.f32 0.5, %v3943_v60  ;;  %v3945_v0 = vpop.eup %3944 }
 0x1af   :  { %v3947_v62 = vpop.eup %3946 }
 0x1b0   :  { %v380_v12 = vadd.f32 0.5, %v379_v8  ;;  %v384_v9 = vmul.f32 0.5, %v3947_v62 }
 0x1b2   :  { %v5518_v63 = vmul.f32 %v3945_v0, %v380_v12  ;;  %v385_v11 = vadd.f32 0.5, %v384_v9 }
 0x1b4   :  { %3948 = vtanh.f32 %v5518_v63 }
 0x1bc   :  { %v519_v61 = vpop.f32.mrf.mxu0  ;;  %v590_v6 = vpop.f32.mrf.mxu1 }
 0x1bd   :  { %v599_v3 = vrot.slane %v519_v61, 7  ;;  %v601_v1 = vrot.slane %v590_v6, 7  ;;  %v8375_v61 = vld [vmem:[#allocation40_spill] sm:$0xff]  ;;  %v8377_v6 = vld [vmem:[#allocation42_spill] sm:$0xff] }
 0x1be   :  { %v521_v2 = vpop.f32.mrf.mxu0  ;;  %v592_v0 = vpop.f32.mrf.mxu1 }
 0x1bf   :  { %v607_v10 = vadd.f32 %v599_v3, %v5094_v58  ;;  %v600_v59 = vrot.slane %v521_v2, 7  ;;  %v609_v62 = vadd.f32 %v601_v1, %v5104_v54  ;;  %v602_v9 = vrot.slane %v592_v0, 7  ;;  %v8376_v3 = vld [vmem:[#allocation41_spill] sm:$0xff]  ;;  %v8378_v2 = vld [vmem:[#allocation43_spill] sm:$0xff]  ;;  %v8387_v0 = vld [vmem:[#allocation52_spill] sm:$0xff] }
 0x1c1   :  { %v3949_v16 = vpop.eup %3948  ;;  %v611_v57 = vmul.f32 0.5, %v607_v10  ;;  %v608_v8 = vadd.f32 %v600_v59, %v5099_v56  ;;  %v8379_v10 = vld [vmem:[#allocation44_spill] sm:$0xff] }
 0x1c2   :  { %v388_v60 = vmul.f32 %v3949_v16, %v385_v11  ;;  %v8380_v11 = vld [vmem:[#allocation45_spill] sm:$0xff]  ;;  %v8381_v16 = vld [vmem:[#allocation46_spill] sm:$0xff] }
 0x1c3   :  { %3950 = vtanh.f32 %v611_v57  ;;  %v615_v12 = vmul.f32 0.5, %v608_v8  ;;  %v8382_v57 = vld [vmem:[#allocation47_spill] sm:$0xff]  ;;  %v8383_v8 = vld [vmem:[#allocation48_spill] sm:$0xff] }
 0x1c4   :  { %761 = vmatmul.mubr.f32.vlgmr.msra.gmra.mxu0 %v388_v60  ;;  %832 = vmatmul.mubr.f32.vlgmr.msra.gmra.mxu1 %v388_v60  ;;  %v8384_v60 = vld [vmem:[#allocation49_spill] sm:$0xff] }
 0x1c5   :  { %3952 = vtanh.f32 %v615_v12  ;;  %842 = vmatpush1.msra.mxu0 %v4875_v13  ;;  %913 = vmatpush1.msra.mxu1 %v4877_v14  ;;  %v610_v13 = vadd.f32 %v602_v9, %v5106_v5  ;;  %v8386_v12 = vld [vmem:[#allocation51_spill] sm:$0xff]  ;;  %v8389_v9 = vld [vmem:[#allocation54_spill] sm:$0xff] }
 0x1c6   :  { %843 = vmatprep.subr.mxu0 %v4879_v15  ;;  %914 = vmatprep.subr.mxu1 %v4886_v17  ;;  %3954 = vtanh.f32 %v609_v62  ;;  %v8388_v62 = vld [vmem:[#allocation53_spill] sm:$0xff] }
 0x1c7   :  { %844 = vmatpush1.msra.mxu0 %v4888_v18  ;;  %915 = vmatpush1.msra.mxu1 %v4890_v19  ;;  %v620_v14 = vmul.f32 0.5, %v610_v13  ;;  %v8390_v13 = vld [vmem:[#allocation55_spill] sm:$0xff] }
 0x1c8   :  { %845 = vmatprep.subr.mxu0 %v4894_v20  ;;  %916 = vmatprep.subr.mxu1 %v4896_v21 }
 0x1c9   :  { %846 = vmatpush1.msra.mxu0 %v4900_v22  ;;  %917 = vmatpush1.msra.mxu1 %v4902_v23  ;;  %3956 = vtanh.f32 %v620_v14  ;;  %v625_v22 = vrot.slane %v5110_v4, 7  ;;  %v8391_v14 = vld [vmem:[#allocation56_spill] sm:$0xff] }
 0x1ca   :  { %847 = vmatprep.subr.mxu0 %v4906_v24  ;;  %918 = vmatprep.subr.mxu1 %v4908_v25 }
 0x1cb   :  { %848 = vmatpush1.msra.mxu0 %v4912_v26  ;;  %919 = vmatpush1.msra.mxu1 %v4914_v27  ;;  %v8351_v27 = vld [vmem:[#allocation16_spill] sm:$0xff] }
 0x1cc   :  { %849 = vmatprep.subr.mxu0 %v4918_v28  ;;  %920 = vmatprep.subr.mxu1 %v4920_v29  ;;  %v8352_v28 = vld [vmem:[#allocation17_spill] sm:$0xff]  ;;  %v8353_v29 = vld [vmem:[#allocation18_spill] sm:$0xff] }
 0x1cd   :  { %850 = vmatpush1.msra.mxu0 %v4924_v30  ;;  %921 = vmatpush1.msra.mxu1 %v4926_v31  ;;  %v8354_v30 = vld [vmem:[#allocation19_spill] sm:$0xff]  ;;  %v8355_v31 = vld [vmem:[#allocation20_spill] sm:$0xff] }
 0x1ce   :  { %851 = vmatprep.subr.mxu0 %v4930_v32  ;;  %922 = vmatprep.subr.mxu1 %v4932_v33  ;;  %v8356_v32 = vld [vmem:[#allocation21_spill] sm:$0xff]  ;;  %v8357_v33 = vld [vmem:[#allocation22_spill] sm:$0xff] }
 0x1cf   :  { %852 = vmatpush1.msra.mxu0 %v4936_v34  ;;  %923 = vmatpush1.msra.mxu1 %v4938_v35  ;;  %v8358_v34 = vld [vmem:[#allocation23_spill] sm:$0xff]  ;;  %v8359_v35 = vld [vmem:[#allocation24_spill] sm:$0xff] }
 0x1d0   :  { %v3951_v15 = vpop.eup %3950  ;;  %853 = vmatprep.subr.mxu0 %v4942_v36  ;;  %924 = vmatprep.subr.mxu1 %v4944_v37  ;;  %v8360_v36 = vld [vmem:[#allocation25_spill] sm:$0xff]  ;;  %v8361_v37 = vld [vmem:[#allocation26_spill] sm:$0xff] }
 0x1d1   :  { %v613_v17 = vmul.f32 0.5, %v3951_v15  ;;  %854 = vmatpush1.msra.mxu0 %v4948_v38  ;;  %925 = vmatpush1.msra.mxu1 %v4950_v39  ;;  %v8362_v38 = vld [vmem:[#allocation27_spill] sm:$0xff]  ;;  %v8363_v39 = vld [vmem:[#allocation28_spill] sm:$0xff]  ;;  %v8392_v15 = vld [vmem:[#allocation57_spill] sm:$0xff] }
 0x1d2   :  { %v3953_v18 = vpop.eup %3952  ;;  %855 = vmatprep.subr.mxu0 %v4954_v40  ;;  %926 = vmatprep.subr.mxu1 %v4956_v41  ;;  %v8364_v40 = vld [vmem:[#allocation29_spill] sm:$0xff] }
 0x1d3   :  { %v614_v19 = vadd.f32 0.5, %v613_v17  ;;  %v617_v20 = vmul.f32 0.5, %v3953_v18  ;;  %856 = vmatpush1.msra.mxu0 %v4960_v42  ;;  %927 = vmatpush1.msra.mxu1 %v4962_v43  ;;  %v3955_v23 = vpop.eup %3954  ;;  %v8365_v42 = vld [vmem:[#allocation30_spill] sm:$0xff]  ;;  %v8366_v43 = vld [vmem:[#allocation31_spill] sm:$0xff] }
 0x1d4   :  { %857 = vmatprep.subr.mxu0 %v4966_v44  ;;  %928 = vmatprep.subr.mxu1 %v4968_v45  ;;  %v8367_v44 = vld [vmem:[#allocation32_spill] sm:$0xff]  ;;  %v8368_v45 = vld [vmem:[#allocation33_spill] sm:$0xff]  ;;  %v8393_v17 = vld [vmem:[#allocation58_spill] sm:$0xff] }
 0x1d5   :  { %v618_v21 = vadd.f32 0.5, %v617_v20  ;;  %858 = vmatpush1.msra.mxu0 %v4972_v46  ;;  %929 = vmatpush1.msra.mxu1 %v4974_v47  ;;  %v628_v25 = vmul.f32 %v3955_v23, %v614_v19  ;;  %v8369_v46 = vld [vmem:[#allocation34_spill] sm:$0xff]  ;;  %v8370_v47 = vld [vmem:[#allocation35_spill] sm:$0xff]  ;;  %v8395_v19 = vld [vmem:[#allocation60_spill] sm:$0xff] }
 0x1d6   :  { %859 = vmatprep.subr.mxu0 %v4978_v48  ;;  %930 = vmatprep.subr.mxu1 %v4980_v49  ;;  %v3957_v41 = vpop.eup %3956  ;;  %v8371_v49 = vld [vmem:[#allocation36_spill] sm:$0xff]  ;;  %v8394_v18 = vld [vmem:[#allocation59_spill] sm:$0xff]  ;;  %v8396_v20 = vld [vmem:[#allocation61_spill] sm:$0xff] }
 0x1d7   :  { %v627_v24 = vmul.f32 %v625_v22, %v618_v21  ;;  %860 = vmatpush1.msra.mxu0 %v4984_v50  ;;  %931 = vmatpush1.msra.mxu1 %v4986_v51  ;;  %v622_v48 = vmul.f32 0.5, %v3957_v41  ;;  %v8372_v50 = vld [vmem:[#allocation37_spill] sm:$0xff]  ;;  %v8373_v51 = vld [vmem:[#allocation38_spill] sm:$0xff]  ;;  %v8398_v22 = vld [vmem:[#allocation63_spill] sm:$0xff] }
 0x1d8   :  { %861 = vmatprep.subr.mxu0 %v4990_v52  ;;  %932 = vmatprep.subr.mxu1 %v4992_v53  ;;  %v8374_v52 = vld [vmem:[#allocation39_spill] sm:$0xff]  ;;  %v8397_v21 = vld [vmem:[#allocation62_spill] sm:$0xff]  ;;  %v8399_v23 = vld [vmem:[#allocation64_spill] sm:$0xff] }
 0x1d9   :  { %v5566_v26 = vadd.f32 %v628_v25, %v627_v24  ;;  %862 = vmatpush1.msra.mxu0 %v8351_v27  ;;  %933 = vmatpush1.msra.mxu1 %v8352_v28  ;;  %v623_v53 = vadd.f32 0.5, %v622_v48  ;;  %v8400_v24 = vld [vmem:[#allocation65_spill] sm:$0xff]  ;;  %v8401_v25 = vld [vmem:[#allocation66_spill] sm:$0xff]  ;;  %v8402_v27 = vld [vmem:[#allocation67_spill] sm:$0xff] }
 0x1da   :  { %863 = vmatprep.subr.mxu0 %v8353_v29  ;;  %934 = vmatprep.subr.mxu1 %v8354_v30  ;;  %v8403_v28 = vld [vmem:[#allocation68_spill] sm:$0xff]  ;;  %v8404_v29 = vld [vmem:[#allocation69_spill] sm:$0xff]  ;;  %v8405_v30 = vld [vmem:[#allocation70_spill] sm:$0xff] }
 0x1db   :  { %3958 = vtanh.f32 %v5566_v26  ;;  %864 = vmatpush1.msra.mxu0 %v8355_v31  ;;  %935 = vmatpush1.msra.mxu1 %v8356_v32  ;;  %v8406_v31 = vld [vmem:[#allocation71_spill] sm:$0xff]  ;;  %v8407_v32 = vld [vmem:[#allocation72_spill] sm:$0xff]  ;;  %v8416_v41 = vld [vmem:[#allocation81_spill] sm:$0xff] }
 0x1dc   :  { %865 = vmatprep.subr.mxu0 %v8357_v33  ;;  %936 = vmatprep.subr.mxu1 %v8358_v34  ;;  %v8408_v33 = vld [vmem:[#allocation73_spill] sm:$0xff]  ;;  %v8409_v34 = vld [vmem:[#allocation74_spill] sm:$0xff]  ;;  %v8423_v48 = vld [vmem:[#allocation88_spill] sm:$0xff] }
 0x1dd   :  { %866 = vmatpush1.msra.mxu0 %v8359_v35  ;;  %937 = vmatpush1.msra.mxu1 %v8360_v36  ;;  %v8410_v35 = vld [vmem:[#allocation75_spill] sm:$0xff]  ;;  %v8411_v36 = vld [vmem:[#allocation76_spill] sm:$0xff] }
 0x1de   :  { %867 = vmatprep.subr.mxu0 %v8361_v37  ;;  %938 = vmatprep.subr.mxu1 %v8362_v38  ;;  %v8412_v37 = vld [vmem:[#allocation77_spill] sm:$0xff]  ;;  %v8413_v38 = vld [vmem:[#allocation78_spill] sm:$0xff] }
 0x1df   :  { %868 = vmatpush1.msra.mxu0 %v8363_v39  ;;  %939 = vmatpush1.msra.mxu1 %v8364_v40  ;;  %v8414_v39 = vld [vmem:[#allocation79_spill] sm:$0xff]  ;;  %v8415_v40 = vld [vmem:[#allocation80_spill] sm:$0xff] }
 0x1e0   :  { %869 = vmatprep.subr.mxu0 %v8365_v42  ;;  %940 = vmatprep.subr.mxu1 %v8366_v43  ;;  %v8417_v42 = vld [vmem:[#allocation82_spill] sm:$0xff]  ;;  %v8418_v43 = vld [vmem:[#allocation83_spill] sm:$0xff] }
 0x1e1   :  { %870 = vmatpush1.msra.mxu0 %v8367_v44  ;;  %941 = vmatpush1.msra.mxu1 %v8368_v45  ;;  %v8419_v44 = vld [vmem:[#allocation84_spill] sm:$0xff]  ;;  %v8420_v45 = vld [vmem:[#allocation85_spill] sm:$0xff] }
 0x1e2   :  { %871 = vmatprep.subr.mxu0 %v8369_v46  ;;  %942 = vmatprep.subr.mxu1 %v8370_v47  ;;  %v8421_v46 = vld [vmem:[#allocation86_spill] sm:$0xff]  ;;  %v8422_v47 = vld [vmem:[#allocation87_spill] sm:$0xff] }
 0x1e3   :  { %872 = vmatpush1.msra.mxu0 %v8371_v49  ;;  %943 = vmatpush1.msra.mxu1 %v8372_v50  ;;  %v8424_v49 = vld [vmem:[#allocation89_spill] sm:$0xff]  ;;  %v8425_v50 = vld [vmem:[#allocation90_spill] sm:$0xff] }
 0x1e4   :  { %905 = vmatprep.mubr.f32.mxu0 %v8283_v7  ;;  %976 = vmatprep.mubr.f32.mxu1 %v8283_v7 }
 0x1e5   :  { %1001 = vmatprep.subr.mxu0 %v8373_v51  ;;  %1072 = vmatprep.subr.mxu1 %v8374_v52  ;;  %v8426_v51 = vld [vmem:[#allocation91_spill] sm:$0xff]  ;;  %v8427_v52 = vld [vmem:[#allocation92_spill] sm:$0xff] }
 0x1e8   :  { %v3959_v4 = vpop.eup %3958 }
 0x1e9   :  { %v631_v1 = vmul.f32 %v3959_v4, %v623_v53  ;;  %v8428_v53 = vld [vmem:[#allocation93_spill] sm:$0xff]  ;;  %v8429_v4 = vld [vmem:[#allocation94_spill] sm:$0xff] }
 0x1eb   :  { %v5595_v59 = vrot.slane %v631_v1, 1  ;;  %v8430_v1 = vld [vmem:[#allocation95_spill] sm:$0xff] }
 0x1ed   :  { %906 = vmatmul.mubr.f32.vlgmr.msra.gmra.mxu0 %v5595_v59  ;;  %977 = vmatmul.mubr.f32.vlgmr.msra.gmra.mxu1 %v5595_v59 }
 0x1ee   :  { %1002 = vmatpush1.msra.mxu0 %v5115_v55  ;;  %1073 = vmatpush1.msra.mxu1 %v8375_v61  ;;  %v8385_v55 = vld [vmem:[#allocation50_spill] sm:$0xff]  ;;  %v8431_v61 = vld [vmem:[#allocation96_spill] sm:$0xff] }
 0x1ef   :  { %1003 = vmatprep.subr.mxu0 %v8376_v3  ;;  %1074 = vmatprep.subr.mxu1 %v8377_v6  ;;  %v8432_v3 = vld [vmem:[#allocation97_spill] sm:$0xff]  ;;  %v8433_v6 = vld [vmem:[#allocation98_spill] sm:$0xff] }
 0x1f0   :  { %1004 = vmatpush1.msra.mxu0 %v8378_v2  ;;  %1075 = vmatpush1.msra.mxu1 %v8379_v10  ;;  %v8434_v2 = vld [vmem:[#allocation99_spill] sm:$0xff]  ;;  %v8435_v10 = vld [vmem:[#allocation100_spill] sm:$0xff] }
 0x1f1   :  { %1005 = vmatprep.subr.mxu0 %v8380_v11  ;;  %1076 = vmatprep.subr.mxu1 %v8381_v16  ;;  %v8436_v11 = vld [vmem:[#allocation101_spill] sm:$0xff]  ;;  %v8437_v16 = vld [vmem:[#allocation102_spill] sm:$0xff] }
 0x1f2   :  { %1006 = vmatpush1.msra.mxu0 %v8382_v57  ;;  %1077 = vmatpush1.msra.mxu1 %v8383_v8  ;;  %v8438_v57 = vld [vmem:[#allocation103_spill] sm:$0xff]  ;;  %v8439_v8 = vld [vmem:[#allocation104_spill] sm:$0xff] }
 0x1f3   :  { %1007 = vmatprep.subr.mxu0 %v8384_v60  ;;  %1078 = vmatprep.subr.mxu1 %v8385_v55  ;;  %v8440_v60 = vld [vmem:[#allocation105_spill] sm:$0xff]  ;;  %v8441_v55 = vld [vmem:[#allocation106_spill] sm:$0xff] }
 0x1f4   :  { %1008 = vmatpush1.msra.mxu0 %v8386_v12  ;;  %1079 = vmatpush1.msra.mxu1 %v8387_v0  ;;  %v8442_v12 = vld [vmem:[#allocation107_spill] sm:$0xff]  ;;  %v8443_v0 = vld [vmem:[#allocation108_spill] sm:$0xff] }
 0x1f5   :  { %1009 = vmatprep.subr.mxu0 %v8388_v62  ;;  %1080 = vmatprep.subr.mxu1 %v8389_v9  ;;  %v8444_v62 = vld [vmem:[#allocation109_spill] sm:$0xff]  ;;  %v8445_v9 = vld [vmem:[#allocation110_spill] sm:$0xff] }
 0x1f6   :  { %1010 = vmatpush1.msra.mxu0 %v8390_v13  ;;  %1081 = vmatpush1.msra.mxu1 %v8391_v14  ;;  %v8447_v13 = vld [vmem:[#allocation112_spill] sm:$0xff]  ;;  %v8448_v14 = vld [vmem:[#allocation113_spill] sm:$0xff] }
 0x1f7   :  { %1011 = vmatprep.subr.mxu0 %v8392_v15  ;;  %1082 = vmatprep.subr.mxu1 %v8393_v17  ;;  %v8449_v15 = vld [vmem:[#allocation114_spill] sm:$0xff]  ;;  %v8450_v17 = vld [vmem:[#allocation115_spill] sm:$0xff] }
 0x1f8   :  { %1012 = vmatpush1.msra.mxu0 %v8394_v18  ;;  %1083 = vmatpush1.msra.mxu1 %v8395_v19  ;;  %v8451_v18 = vld [vmem:[#allocation116_spill] sm:$0xff]  ;;  %v8452_v19 = vld [vmem:[#allocation117_spill] sm:$0xff] }
 0x1f9   :  { %1013 = vmatprep.subr.mxu0 %v8396_v20  ;;  %1084 = vmatprep.subr.mxu1 %v8397_v21  ;;  %v8453_v20 = vld [vmem:[#allocation118_spill] sm:$0xff]  ;;  %v8454_v21 = vld [vmem:[#allocation119_spill] sm:$0xff] }
 0x1fa   :  { %1014 = vmatpush1.msra.mxu0 %v8398_v22  ;;  %1085 = vmatpush1.msra.mxu1 %v8399_v23  ;;  %v8455_v22 = vld [vmem:[#allocation120_spill] sm:$0xff]  ;;  %v8456_v23 = vld [vmem:[#allocation121_spill] sm:$0xff] }
 0x1fb   :  { %1015 = vmatprep.subr.mxu0 %v8400_v24  ;;  %1086 = vmatprep.subr.mxu1 %v8401_v25  ;;  %v8457_v24 = vld [vmem:[#allocation122_spill] sm:$0xff]  ;;  %v8458_v25 = vld [vmem:[#allocation123_spill] sm:$0xff] }
 0x1fc   :  { %1016 = vmatpush1.msra.mxu0 %v8402_v27  ;;  %1087 = vmatpush1.msra.mxu1 %v8403_v28  ;;  %v8459_v27 = vld [vmem:[#allocation124_spill] sm:$0xff]  ;;  %v8460_v28 = vld [vmem:[#allocation125_spill] sm:$0xff] }
 0x1fd   :  { %1017 = vmatprep.subr.mxu0 %v8404_v29  ;;  %1088 = vmatprep.subr.mxu1 %v8405_v30  ;;  %v8461_v29 = vld [vmem:[#allocation126_spill] sm:$0xff]  ;;  %v8462_v30 = vld [vmem:[#allocation127_spill] sm:$0xff] }
 0x1fe   :  { %1018 = vmatpush1.msra.mxu0 %v8406_v31  ;;  %1089 = vmatpush1.msra.mxu1 %v8407_v32  ;;  %v8463_v31 = vld [vmem:[#allocation128_spill] sm:$0xff]  ;;  %v8464_v32 = vld [vmem:[#allocation129_spill] sm:$0xff] }
 0x1ff   :  { %1019 = vmatprep.subr.mxu0 %v8408_v33  ;;  %1090 = vmatprep.subr.mxu1 %v8409_v34  ;;  %v8465_v33 = vld [vmem:[#allocation130_spill] sm:$0xff]  ;;  %v8466_v34 = vld [vmem:[#allocation131_spill] sm:$0xff] }
 0x200   :  { %1020 = vmatpush1.msra.mxu0 %v8410_v35  ;;  %1091 = vmatpush1.msra.mxu1 %v8411_v36  ;;  %v8467_v35 = vld [vmem:[#allocation132_spill] sm:$0xff]  ;;  %v8468_v36 = vld [vmem:[#allocation133_spill] sm:$0xff] }
 0x201   :  { %1021 = vmatprep.subr.mxu0 %v8412_v37  ;;  %1092 = vmatprep.subr.mxu1 %v8413_v38  ;;  %v8469_v37 = vld [vmem:[#allocation134_spill] sm:$0xff]  ;;  %v8470_v38 = vld [vmem:[#allocation135_spill] sm:$0xff] }
 0x202   :  { %1022 = vmatpush1.msra.mxu0 %v8414_v39  ;;  %1093 = vmatpush1.msra.mxu1 %v8415_v40  ;;  %v8471_v39 = vld [vmem:[#allocation136_spill] sm:$0xff]  ;;  %v8472_v40 = vld [vmem:[#allocation137_spill] sm:$0xff] }
 0x203   :  { %1023 = vmatprep.subr.mxu0 %v8416_v41  ;;  %1094 = vmatprep.subr.mxu1 %v8417_v42  ;;  %v8473_v41 = vld [vmem:[#allocation138_spill] sm:$0xff]  ;;  %v8474_v42 = vld [vmem:[#allocation139_spill] sm:$0xff] }
 0x204   :  { %1024 = vmatpush1.msra.mxu0 %v8418_v43  ;;  %1095 = vmatpush1.msra.mxu1 %v8419_v44  ;;  %v8475_v43 = vld [vmem:[#allocation140_spill] sm:$0xff]  ;;  %v8476_v44 = vld [vmem:[#allocation141_spill] sm:$0xff] }
 0x205   :  { %1025 = vmatprep.subr.mxu0 %v8420_v45  ;;  %1096 = vmatprep.subr.mxu1 %v8421_v46  ;;  %v8477_v45 = vld [vmem:[#allocation142_spill] sm:$0xff]  ;;  %v8478_v46 = vld [vmem:[#allocation143_spill] sm:$0xff] }
 0x206   :  { %1026 = vmatpush1.msra.mxu0 %v8422_v47  ;;  %1097 = vmatpush1.msra.mxu1 %v8423_v48  ;;  %v8479_v47 = vld [vmem:[#allocation144_spill] sm:$0xff]  ;;  %v8480_v48 = vld [vmem:[#allocation145_spill] sm:$0xff] }
 0x207   :  { %1027 = vmatprep.subr.mxu0 %v8424_v49  ;;  %1098 = vmatprep.subr.mxu1 %v8425_v50  ;;  %v8481_v49 = vld [vmem:[#allocation146_spill] sm:$0xff]  ;;  %v8482_v50 = vld [vmem:[#allocation147_spill] sm:$0xff] }
 0x208   :  { %1028 = vmatpush1.msra.mxu0 %v8426_v51  ;;  %1099 = vmatpush1.msra.mxu1 %v8427_v52  ;;  %v8483_v51 = vld [vmem:[#allocation148_spill] sm:$0xff]  ;;  %v8484_v52 = vld [vmem:[#allocation149_spill] sm:$0xff] }
 0x209   :  { %1029 = vmatprep.subr.mxu0 %v8428_v53  ;;  %1100 = vmatprep.subr.mxu1 %v8429_v4  ;;  %v8485_v53 = vld [vmem:[#allocation150_spill] sm:$0xff]  ;;  %v8486_v4 = vld [vmem:[#allocation151_spill] sm:$0xff] }
 0x20a   :  { %1030 = vmatpush1.msra.mxu0 %v8430_v1  ;;  %1101 = vmatpush1.msra.mxu1 %v8431_v61  ;;  %v8487_v1 = vld [vmem:[#allocation152_spill] sm:$0xff]  ;;  %v8488_v61 = vld [vmem:[#allocation153_spill] sm:$0xff] }
 0x20b   :  { %1031 = vmatprep.subr.mxu0 %v8432_v3  ;;  %1102 = vmatprep.subr.mxu1 %v8433_v6  ;;  %v8489_v3 = vld [vmem:[#allocation154_spill] sm:$0xff]  ;;  %v8490_v6 = vld [vmem:[#allocation155_spill] sm:$0xff] }
 0x20c   :  { %1032 = vmatpush1.msra.mxu0 %v8434_v2  ;;  %1065 = vmatprep.mubr.f32.mxu0 %v8283_v7  ;;  %v8491_v2 = vld [vmem:[#allocation156_spill] sm:$0xff] }
 0x20d   :  { %1103 = vmatpush1.msra.mxu1 %v8435_v10  ;;  %1136 = vmatprep.mubr.f32.mxu1 %v8283_v7  ;;  %v8492_v10 = vld [vmem:[#allocation157_spill] sm:$0xff] }
 0x20e   :  { %1066 = vmatmul.mubr.f32.vlgmr.msra.gmra.mxu0 %v5595_v59  ;;  %1137 = vmatmul.mubr.f32.vlgmr.msra.gmra.mxu1 %v5595_v59  ;;  %v8446_v59 = vld [vmem:[#allocation111_spill] sm:$0xff] }
 0x20f   :  { %1180 = vmatprep.subr.mxu0 %v8436_v11  ;;  %1251 = vmatprep.subr.mxu1 %v8437_v16  ;;  %v8493_v11 = vld [vmem:[#allocation158_spill] sm:$0xff]  ;;  %v8494_v16 = vld [vmem:[#allocation159_spill] sm:$0xff] }
 0x210   :  { %1181 = vmatpush1.msra.mxu0 %v8438_v57  ;;  %1252 = vmatpush1.msra.mxu1 %v8439_v8  ;;  %v8495_v57 = vld [vmem:[#allocation160_spill] sm:$0xff]  ;;  %v8496_v8 = vld [vmem:[#allocation161_spill] sm:$0xff] }
 0x211   :  { %1182 = vmatprep.subr.mxu0 %v8440_v60  ;;  %1253 = vmatprep.subr.mxu1 %v8441_v55  ;;  %v8497_v60 = vld [vmem:[#allocation162_spill] sm:$0xff]  ;;  %v8498_v55 = vld [vmem:[#allocation163_spill] sm:$0xff] }
 0x212   :  { %1183 = vmatpush1.msra.mxu0 %v8442_v12  ;;  %1254 = vmatpush1.msra.mxu1 %v8443_v0  ;;  %v8499_v12 = vld [vmem:[#allocation164_spill] sm:$0xff] }
 0x213   :  { %1184 = vmatprep.subr.mxu0 %v8444_v62  ;;  %1255 = vmatprep.subr.mxu1 %v8445_v9  ;;  %v5731_v0 = vld [vmem:[#allocation7 + $0x1e8] sm:$0xff]  ;;  %v5734_v62 = vld [vmem:[#allocation7 + $0x1f8] sm:$0xff] }
 0x214   :  { %1185 = vmatpush1.msra.mxu0 %v8446_v59  ;;  %1256 = vmatpush1.msra.mxu1 %v8447_v13 }
 0x215   :  { %1186 = vmatprep.subr.mxu0 %v8448_v14  ;;  %1257 = vmatprep.subr.mxu1 %v8449_v15  ;;  %v8500_v14 = vld [vmem:[#allocation165_spill] sm:$0xff] }
 0x216   :  { %1187 = vmatpush1.msra.mxu0 %v8450_v17  ;;  %1258 = vmatpush1.msra.mxu1 %v8451_v18  ;;  %v8501_v18 = vld [vmem:[#allocation15_spill] sm:$0xff] }
 0x217   :  { %1188 = vmatprep.subr.mxu0 %v8452_v19  ;;  %1259 = vmatprep.subr.mxu1 %v8453_v20 }
 0x218   :  { %1189 = vmatpush1.msra.mxu0 %v8454_v21  ;;  %1260 = vmatpush1.msra.mxu1 %v8455_v22 }
 0x219   :  { %1190 = vmatprep.subr.mxu0 %v8456_v23  ;;  %1261 = vmatprep.subr.mxu1 %v8457_v24 }
 0x21a   :  { %1191 = vmatpush1.msra.mxu0 %v8458_v25  ;;  %1262 = vmatpush1.msra.mxu1 %v8459_v27  ;;  %v8502_v27 = vld [vmem:[#allocation166_spill] sm:$0xff] }
 0x21b   :  { %1192 = vmatprep.subr.mxu0 %v8460_v28  ;;  %1263 = vmatprep.subr.mxu1 %v8461_v29 }
 0x21c   :  { %1193 = vmatpush1.msra.mxu0 %v8462_v30  ;;  %1264 = vmatpush1.msra.mxu1 %v8463_v31 }
 0x21d   :  { %1194 = vmatprep.subr.mxu0 %v8464_v32  ;;  %1265 = vmatprep.subr.mxu1 %v8465_v33  ;;  %v8503_v32 = vld [vmem:[#allocation167_spill] sm:$0xff] }
 0x21e   :  { %1195 = vmatpush1.msra.mxu0 %v8466_v34  ;;  %1266 = vmatpush1.msra.mxu1 %v8467_v35 }
 0x21f   :  { %1196 = vmatprep.subr.mxu0 %v8468_v36  ;;  %1267 = vmatprep.subr.mxu1 %v8469_v37 }
 0x220   :  { %1197 = vmatpush1.msra.mxu0 %v8470_v38  ;;  %1268 = vmatpush1.msra.mxu1 %v8471_v39 }
 0x221   :  { %1198 = vmatprep.subr.mxu0 %v8472_v40  ;;  %1269 = vmatprep.subr.mxu1 %v8473_v41 }
 0x222   :  { %1199 = vmatpush1.msra.mxu0 %v8474_v42  ;;  %1270 = vmatpush1.msra.mxu1 %v8475_v43 }
 0x223   :  { %1200 = vmatprep.subr.mxu0 %v8476_v44  ;;  %1271 = vmatprep.subr.mxu1 %v8477_v45 }
 0x224   :  { %1201 = vmatpush1.msra.mxu0 %v8478_v46  ;;  %1272 = vmatpush1.msra.mxu1 %v8479_v47 }
 0x225   :  { %1202 = vmatprep.subr.mxu0 %v8480_v48  ;;  %1273 = vmatprep.subr.mxu1 %v8481_v49 }
 0x226   :  { %1203 = vmatpush1.msra.mxu0 %v8482_v50  ;;  %1274 = vmatpush1.msra.mxu1 %v8483_v51 }
 0x227   :  { %1204 = vmatprep.subr.mxu0 %v8484_v52  ;;  %1275 = vmatprep.subr.mxu1 %v8485_v53 }
 0x228   :  { %1205 = vmatpush1.msra.mxu0 %v8486_v4  ;;  %1276 = vmatpush1.msra.mxu1 %v8487_v1 }
 0x229   :  { %1206 = vmatprep.subr.mxu0 %v8488_v61  ;;  %1277 = vmatprep.subr.mxu1 %v8489_v3 }
 0x22a   :  { %1207 = vmatpush1.msra.mxu0 %v8490_v6  ;;  %1278 = vmatpush1.msra.mxu1 %v8491_v2 }
 0x22b   :  { %1208 = vmatprep.subr.mxu0 %v8492_v10  ;;  %1279 = vmatprep.subr.mxu1 %v8493_v11 }
 0x22c   :  { %1209 = vmatpush1.msra.mxu0 %v8494_v16  ;;  %1280 = vmatpush1.msra.mxu1 %v8495_v57  ;;  %v5748_v57 = vld [vmem:[#allocation7 + $0x1e0] sm:$0xff] }
 0x22d   :  { %1210 = vmatprep.subr.mxu0 %v8496_v8  ;;  %1281 = vmatprep.subr.mxu1 %v8497_v60  ;;  %v5751_v8 = vld [vmem:[#allocation7 + $0x1f0] sm:$0xff]  ;;  %v5754_v60 = vld [vmem:[#allocation7 + $0x1c8] sm:$0xff] }
 0x22e   :  { %1211 = vmatpush1.msra.mxu0 %v8498_v55  ;;  %1244 = vmatprep.mubr.f32.mxu0 %v8283_v7  ;;  %v5757_v55 = vld [vmem:[#allocation7 + $0x1d8] sm:$0xff] }
 0x22f   :  { %1282 = vmatpush1.msra.mxu1 %v8499_v12  ;;  %1315 = vmatprep.mubr.f32.mxu1 %v8283_v7 }
 0x230   :  { %1325 = vmatprep.subr.mxu0 %v5731_v0  ;;  %1396 = vmatprep.subr.mxu1 %v5734_v62 }
 0x284   :  { %v762_v9 = vpop.f32.mrf.mxu0  ;;  %v833_v59 = vpop.f32.mrf.mxu1 }
 0x285   :  { %v763_v15 = vadd.f32 %v762_v9, %v8500_v14  ;;  %v834_v28 = vadd.f32 %v833_v59, %v8502_v27  ;;  %v5761_v9 = vld [vmem:[#allocation7 + $0x1c0] sm:$0xff]  ;;  %v5764_v59 = vld [vmem:[#allocation7 + $0x1d0] sm:$0xff] }
 0x286   :  { %v764_v13 = vpop.f32.mrf.mxu0  ;;  %v835_v21 = vpop.f32.mrf.mxu1 }
 0x287   :  { %v765_v19 = vadd.f32 %v764_v13, %v8501_v18  ;;  %v836_v33 = vadd.f32 %v835_v21, %v8503_v32  ;;  %v5767_v13 = vld [vmem:[#allocation7 + $0x1a8] sm:$0xff]  ;;  %v5782_v21 = vld [vmem:[#allocation7 + $0x198] sm:$0xff] }
 0x2ad   :  { %v907_v17 = vpop.f32.mrf.mxu0  ;;  %v978_v25 = vpop.f32.mrf.mxu1 }
 0x2ae   :  { %v908_v20 = vadd.f32 %v907_v17, %v763_v15  ;;  %v979_v30 = vadd.f32 %v978_v25, %v834_v28  ;;  %v5770_v15 = vld [vmem:[#allocation7 + $0x1b8] sm:$0xff]  ;;  %v5773_v17 = vld [vmem:[#allocation7 + $0x1a0] sm:$0xff]  ;;  %v5791_v28 = vld [vmem:[#allocation7 + $0x168] sm:$0xff] }
 0x2af   :  { %v909_v22 = vpop.f32.mrf.mxu0  ;;  %v980_v31 = vpop.f32.mrf.mxu1 }
 0x2b0   :  { %v983_v23 = vmul.f32 0.5, %v908_v20  ;;  %v910_v24 = vadd.f32 %v909_v22, %v765_v19  ;;  %v981_v34 = vadd.f32 %v980_v31, %v836_v33  ;;  %v5776_v19 = vld [vmem:[#allocation7 + $0x1b0] sm:$0xff]  ;;  %v5779_v20 = vld [vmem:[#allocation7 + $0x188] sm:$0xff]  ;;  %v5797_v31 = vld [vmem:[#allocation7 + $0x160] sm:$0xff] }
 0x2b1   :  { %v5800_v33 = vld [vmem:[#allocation7 + $0x170] sm:$0xff] }
 0x2b2   :  { %3960 = vtanh.f32 %v983_v23  ;;  %v987_v29 = vmul.f32 0.5, %v910_v24  ;;  %v992_v35 = vmul.f32 0.5, %v981_v34  ;;  %v5785_v23 = vld [vmem:[#allocation7 + $0x180] sm:$0xff]  ;;  %v5788_v24 = vld [vmem:[#allocation7 + $0x190] sm:$0xff] }
 0x2b4   :  { %3962 = vtanh.f32 %v987_v29  ;;  %v5794_v29 = vld [vmem:[#allocation7 + $0x178] sm:$0xff] }
 0x2b5   :  { %3964 = vtanh.f32 %v979_v30 }
 0x2b6   :  { %3966 = vtanh.f32 %v992_v35  ;;  %v5803_v35 = vld [vmem:[#allocation7 + $0x148] sm:$0xff] }
 0x2bf   :  { %v3961_v36 = vpop.eup %3960 }
 0x2c0   :  { %v985_v37 = vmul.f32 0.5, %v3961_v36  ;;  %v5806_v36 = vld [vmem:[#allocation7 + $0x158] sm:$0xff] }
 0x2c1   :  { %v3963_v38 = vpop.eup %3962 }
 0x2c2   :  { %v986_v39 = vadd.f32 0.5, %v985_v37  ;;  %v989_v40 = vmul.f32 0.5, %v3963_v38  ;;  %v3965_v42 = vpop.eup %3964 }
 0x2c3   :  { %v3967_v47 = vpop.eup %3966 }
 0x2c4   :  { %v990_v41 = vadd.f32 0.5, %v989_v40  ;;  %v997_v44 = vmul.f32 %v3965_v42, %v986_v39  ;;  %v994_v53 = vmul.f32 0.5, %v3967_v47  ;;  %v5809_v39 = vld [vmem:[#allocation7 + $0x140] sm:$0xff]  ;;  %v5812_v40 = vld [vmem:[#allocation7 + $0x150] sm:$0xff]  ;;  %v5818_v42 = vld [vmem:[#allocation7 + $0x138] sm:$0xff] }
 0x2c5   :  { %v5825_v47 = vld [vmem:[#allocation7 + $0x130] sm:$0xff] }
 0x2c6   :  { %v996_v43 = vmul.f32 %v990_v41, %v5518_v63  ;;  %v995_v3 = vadd.f32 0.5, %v994_v53  ;;  %v5815_v41 = vld [vmem:[#allocation7 + $0x128] sm:$0xff]  ;;  %v5837_v53 = vld [vmem:[#allocation7 + $0x110] sm:$0xff] }
 0x2c8   :  { %v5742_v45 = vadd.f32 %v997_v44, %v996_v43  ;;  %v1173_v44 = vrot.slane %v5566_v26, 7  ;;  %v5834_v26 = vld [vmem:[#allocation7 + $0x100] sm:$0xff] }
 0x2ca   :  { %3968 = vtanh.f32 %v5742_v45 }
 0x2ce   :  { %v1067_v46 = vpop.f32.mrf.mxu0  ;;  %v1138_v49 = vpop.f32.mrf.mxu1 }
 0x2cf   :  { %v1147_v48 = vrot.slane %v1067_v46, 6  ;;  %v1149_v1 = vrot.slane %v1138_v49, 6  ;;  %v5822_v46 = vld [vmem:[#allocation7 + $0x120] sm:$0xff]  ;;  %v5828_v49 = vld [vmem:[#allocation7 + $0x108] sm:$0xff] }
 0x2d0   :  { %v1069_v50 = vpop.f32.mrf.mxu0  ;;  %v1140_v6 = vpop.f32.mrf.mxu1 }
 0x2d1   :  { %v1155_v51 = vadd.f32 %v1147_v48, %v5094_v58  ;;  %v1148_v52 = vrot.slane %v1069_v50, 6  ;;  %v1157_v10 = vadd.f32 %v1149_v1, %v5104_v54  ;;  %v1150_v16 = vrot.slane %v1140_v6, 6  ;;  %v5831_v50 = vld [vmem:[#allocation7 + $0x118] sm:$0xff]  ;;  %v5854_v6 = vld [vmem:[#allocation7 + $0xc8] sm:$0xff] }
 0x2d2   :  { %v5843_v1 = vld [vmem:[#allocation7 + $0xf8] sm:$0xff] }
 0x2d3   :  { %v1159_v4 = vmul.f32 0.5, %v1155_v51  ;;  %v1156_v61 = vadd.f32 %v1148_v52, %v5099_v56  ;;  %v1158_v12 = vadd.f32 %v1150_v16, %v5106_v5  ;;  %v5867_v16 = vld [vmem:[#allocation7 + $0xa8] sm:$0xff] }
 0x2d4   :  { %8506 = vst [vmem:[#allocation18_spill] sm:$0xff] %v5867_v16 }
 0x2d5   :  { %3970 = vtanh.f32 %v1159_v4  ;;  %v1163_v63 = vmul.f32 0.5, %v1156_v61  ;;  %v1168_v22 = vmul.f32 0.5, %v1158_v12  ;;  %v5840_v4 = vld [vmem:[#allocation7 + $0xe8] sm:$0xff]  ;;  %v5870_v12 = vld [vmem:[#allocation7 + $0xb8] sm:$0xff] }
 0x2d6   :  { %8507 = vst [vmem:[#allocation19_spill] sm:$0xff] %v5870_v12 }
 0x2d7   :  { %v3969_v2 = vpop.eup %3968  ;;  %3972 = vtanh.f32 %v1163_v63  ;;  %v5848_v63 = vld [vmem:[#allocation7 + $0xe0] sm:$0xff] }
 0x2d8   :  { %v1000_v11 = vmul.f32 %v3969_v2, %v995_v3  ;;  %3974 = vtanh.f32 %v1157_v10  ;;  %v5851_v3 = vld [vmem:[#allocation7 + $0xf0] sm:$0xff]  ;;  %v5857_v2 = vld [vmem:[#allocation7 + $0xd8] sm:$0xff]  ;;  %v5861_v10 = vld [vmem:[#allocation7 + $0xc0] sm:$0xff] }
 0x2d9   :  { %3976 = vtanh.f32 %v1168_v22  ;;  %8504 = vst [vmem:[#allocation16_spill] sm:$0xff] %v5861_v10  ;;  %v5873_v22 = vld [vmem:[#allocation7 + $0xa0] sm:$0xff] }
 0x2da   :  { %1245 = vmatmul.mubr.f32.vlgmr.msra.gmra.mxu0 %v1000_v11  ;;  %1316 = vmatmul.mubr.f32.vlgmr.msra.gmra.mxu1 %v1000_v11  ;;  %v5864_v11 = vld [vmem:[#allocation7 + $0xd0] sm:$0xff]  ;;  %8508 = vst [vmem:[#allocation20_spill] sm:$0xff] %v5873_v22 }
 0x2db   :  { %1326 = vmatpush1.msra.mxu0 %v5748_v57  ;;  %1397 = vmatpush1.msra.mxu1 %v5751_v8  ;;  %8505 = vst [vmem:[#allocation17_spill] sm:$0xff] %v5864_v11 }
 0x2dc   :  { %1327 = vmatprep.subr.mxu0 %v5754_v60  ;;  %1398 = vmatprep.subr.mxu1 %v5757_v55 }
 0x2dd   :  { %1328 = vmatpush1.msra.mxu0 %v5761_v9  ;;  %1399 = vmatpush1.msra.mxu1 %v5764_v59 }
 0x2de   :  { %1329 = vmatprep.subr.mxu0 %v5767_v13  ;;  %1400 = vmatprep.subr.mxu1 %v5770_v15 }
 0x2df   :  { %1330 = vmatpush1.msra.mxu0 %v5773_v17  ;;  %1401 = vmatpush1.msra.mxu1 %v5776_v19 }
 0x2e0   :  { %1331 = vmatprep.subr.mxu0 %v5779_v20  ;;  %1402 = vmatprep.subr.mxu1 %v5782_v21 }
 0x2e1   :  { %1332 = vmatpush1.msra.mxu0 %v5785_v23  ;;  %1403 = vmatpush1.msra.mxu1 %v5788_v24 }
 0x2e2   :  { %v3971_v25 = vpop.eup %3970  ;;  %1333 = vmatprep.subr.mxu0 %v5791_v28  ;;  %1404 = vmatprep.subr.mxu1 %v5794_v29 }
 0x2e3   :  { %v1161_v30 = vmul.f32 0.5, %v3971_v25  ;;  %1334 = vmatpush1.msra.mxu0 %v5797_v31  ;;  %1405 = vmatpush1.msra.mxu1 %v5800_v33  ;;  %v5876_v25 = vld [vmem:[#allocation7 + $0xb0] sm:$0xff] }
 0x2e4   :  { %v3973_v34 = vpop.eup %3972  ;;  %1335 = vmatprep.subr.mxu0 %v5803_v35  ;;  %1406 = vmatprep.subr.mxu1 %v5806_v36  ;;  %8509 = vst [vmem:[#allocation21_spill] sm:$0xff] %v5876_v25 }
 0x2e5   :  { %v1162_v37 = vadd.f32 0.5, %v1161_v30  ;;  %v1165_v38 = vmul.f32 0.5, %v3973_v34  ;;  %1336 = vmatpush1.msra.mxu0 %v5809_v39  ;;  %1407 = vmatpush1.msra.mxu1 %v5812_v40  ;;  %v3975_v48 = vpop.eup %3974  ;;  %v5879_v30 = vld [vmem:[#allocation7 + $0x88] sm:$0xff]  ;;  %v5882_v34 = vld [vmem:[#allocation7 + $0x98] sm:$0xff] }
 0x2e6   :  { %1337 = vmatprep.subr.mxu0 %v5815_v41  ;;  %1408 = vmatprep.subr.mxu1 %v5818_v42  ;;  %8510 = vst [vmem:[#allocation22_spill] sm:$0xff] %v5879_v30  ;;  %8511 = vst [vmem:[#allocation23_spill] sm:$0xff] %v5882_v34 }
 0x2e7   :  { %v1166_v43 = vadd.f32 0.5, %v1165_v38  ;;  %1338 = vmatpush1.msra.mxu0 %v5822_v46  ;;  %1409 = vmatpush1.msra.mxu1 %v5825_v47  ;;  %v1176_v52 = vmul.f32 %v3975_v48, %v1162_v37  ;;  %v5885_v37 = vld [vmem:[#allocation7 + $0x80] sm:$0xff]  ;;  %v5888_v38 = vld [vmem:[#allocation7 + $0x90] sm:$0xff]  ;;  %v5894_v48 = vld [vmem:[#allocation7 + $0x78] sm:$0xff] }
 0x2e8   :  { %1339 = vmatprep.subr.mxu0 %v5828_v49  ;;  %1410 = vmatprep.subr.mxu1 %v5831_v50  ;;  %8512 = vst [vmem:[#allocation24_spill] sm:$0xff] %v5885_v37  ;;  %8513 = vst [vmem:[#allocation25_spill] sm:$0xff] %v5888_v38 }
 0x2e9   :  { %v1175_v51 = vmul.f32 %v1173_v44, %v1166_v43  ;;  %1340 = vmatpush1.msra.mxu0 %v5834_v26  ;;  %1411 = vmatpush1.msra.mxu1 %v5837_v53  ;;  %v3977_v43 = vpop.eup %3976  ;;  %v5891_v44 = vld [vmem:[#allocation7 + $0x68] sm:$0xff]  ;;  %8515 = vst [vmem:[#allocation27_spill] sm:$0xff] %v5894_v48 }
 0x2ea   :  { %1341 = vmatprep.subr.mxu0 %v5840_v4  ;;  %1412 = vmatprep.subr.mxu1 %v5843_v1  ;;  %8514 = vst [vmem:[#allocation26_spill] sm:$0xff] %v5891_v44 }
 0x2eb   :  { %v5846_v61 = vadd.f32 %v1176_v52, %v1175_v51  ;;  %1342 = vmatpush1.msra.mxu0 %v5848_v63  ;;  %1413 = vmatpush1.msra.mxu1 %v5851_v3  ;;  %v5897_v51 = vld [vmem:[#allocation7 + $0x60] sm:$0xff]  ;;  %v5900_v52 = vld [vmem:[#allocation7 + $0x70] sm:$0xff] }
 0x2ec   :  { %1343 = vmatprep.subr.mxu0 %v5854_v6  ;;  %1414 = vmatprep.subr.mxu1 %v5857_v2  ;;  %8516 = vst [vmem:[#allocation28_spill] sm:$0xff] %v5897_v51  ;;  %8517 = vst [vmem:[#allocation29_spill] sm:$0xff] %v5900_v52 }
 0x2ed   :  { %3978 = vtanh.f32 %v5846_v61  ;;  %1344 = vmatpush1.msra.mxu0 %v5861_v10  ;;  %1415 = vmatpush1.msra.mxu1 %v5864_v11 }
 0x2ee   :  { %1345 = vmatprep.subr.mxu0 %v5867_v16  ;;  %1416 = vmatprep.subr.mxu1 %v5870_v12 }
 0x2ef   :  { %1346 = vmatpush1.msra.mxu0 %v5873_v22  ;;  %1417 = vmatpush1.msra.mxu1 %v5876_v25 }
 0x2f0   :  { %1347 = vmatprep.subr.mxu0 %v5879_v30  ;;  %1418 = vmatprep.subr.mxu1 %v5882_v34  ;;  %v5909_v34 = vld [vmem:[#allocation7 + $0x40] sm:$0xff] }
 0x2f1   :  { %1348 = vmatpush1.msra.mxu0 %v5885_v37  ;;  %1419 = vmatpush1.msra.mxu1 %v5888_v38  ;;  %v5903_v37 = vld [vmem:[#allocation7 + $0x48] sm:$0xff]  ;;  %v5906_v38 = vld [vmem:[#allocation7 + $0x58] sm:$0xff]  ;;  %8520 = vst [vmem:[#allocation32_spill] sm:$0xff] %v5909_v34 }
 0x2f2   :  { %1349 = vmatprep.subr.mxu0 %v5891_v44  ;;  %1420 = vmatprep.subr.mxu1 %v5894_v48  ;;  %8518 = vst [vmem:[#allocation30_spill] sm:$0xff] %v5903_v37  ;;  %8519 = vst [vmem:[#allocation31_spill] sm:$0xff] %v5906_v38  ;;  %v1170_v44 = vmul.f32 0.5, %v3977_v43  ;;  %v5912_v48 = vld [vmem:[#allocation7 + $0x50] sm:$0xff] }
 0x2f3   :  { %1350 = vmatpush1.msra.mxu0 %v5897_v51  ;;  %1421 = vmatpush1.msra.mxu1 %v5900_v52  ;;  %8521 = vst [vmem:[#allocation33_spill] sm:$0xff] %v5912_v48  ;;  %v5915_v51 = vld [vmem:[#allocation7 + $0x28] sm:$0xff]  ;;  %v5918_v52 = vld [vmem:[#allocation7 + $0x38] sm:$0xff]  ;;  %v5924_v43 = vld [vmem:[#allocation7 + $0x30] sm:$0xff] }
 0x2f4   :  { %1351 = vmatprep.subr.mxu0 %v5903_v37  ;;  %1422 = vmatprep.subr.mxu1 %v5906_v38  ;;  %8522 = vst [vmem:[#allocation34_spill] sm:$0xff] %v5915_v51  ;;  %8523 = vst [vmem:[#allocation35_spill] sm:$0xff] %v5918_v52  ;;  %v5921_v37 = vld [vmem:[#allocation7 + $0x20] sm:$0xff] }
 0x2f5   :  { %1352 = vmatpush1.msra.mxu0 %v5909_v34  ;;  %1423 = vmatpush1.msra.mxu1 %v5912_v48  ;;  %8524 = vst [vmem:[#allocation36_spill] sm:$0xff] %v5921_v37  ;;  %8525 = vst [vmem:[#allocation37_spill] sm:$0xff] %v5924_v43  ;;  %v5927_v34 = vld [vmem:[#allocation7 + $0x8] sm:$0xff]  ;;  %v5930_v48 = vld [vmem:[#allocation7 + $0x18] sm:$0xff] }
 0x2f6   :  { %1353 = vmatprep.subr.mxu0 %v5915_v51  ;;  %1424 = vmatprep.subr.mxu1 %v5918_v52  ;;  %8526 = vst [vmem:[#allocation38_spill] sm:$0xff] %v5927_v34  ;;  %8527 = vst [vmem:[#allocation39_spill] sm:$0xff] %v5930_v48  ;;  %v1171_v51 = vadd.f32 0.5, %v1170_v44  ;;  %v5933_v38 = vld [vmem:[#allocation7] sm:$0xff]  ;;  %v5936_v52 = vld [vmem:[#allocation7 + $0x10] sm:$0xff] }
 0x2f7   :  { %1354 = vmatpush1.msra.mxu0 %v5921_v37  ;;  %1425 = vmatpush1.msra.mxu1 %v5924_v43  ;;  %8528 = vst [vmem:[#allocation40_spill] sm:$0xff] %v5933_v38  ;;  %8529 = vst [vmem:[#allocation41_spill] sm:$0xff] %v5936_v52  ;;  %v5941_v43 = vld [vmem:[#allocation5 + $0x1e8] sm:$0xff] }
 0x2f8   :  { %1355 = vmatprep.subr.mxu0 %v5927_v34  ;;  %1426 = vmatprep.subr.mxu1 %v5930_v48  ;;  %8530 = vst [vmem:[#allocation42_spill] sm:$0xff] %v5941_v43  ;;  %v5944_v34 = vld [vmem:[#allocation5 + $0x1f8] sm:$0xff] }
 0x2f9   :  { %1356 = vmatpush1.msra.mxu0 %v5933_v38  ;;  %1427 = vmatpush1.msra.mxu1 %v5936_v52  ;;  %8531 = vst [vmem:[#allocation43_spill] sm:$0xff] %v5944_v34  ;;  %v5951_v52 = vld [vmem:[#allocation5 + $0x1e0] sm:$0xff]  ;;  %v5954_v38 = vld [vmem:[#allocation5 + $0x1f0] sm:$0xff] }
 0x2fa   :  { %v3979_v37 = vpop.eup %3978  ;;  %1389 = vmatprep.mubr.f32.mxu0 %v8283_v7  ;;  %1460 = vmatprep.mubr.f32.mxu1 %v8283_v7  ;;  %8532 = vst [vmem:[#allocation44_spill] sm:$0xff] %v5951_v52  ;;  %8533 = vst [vmem:[#allocation45_spill] sm:$0xff] %v5954_v38 }
 0x2fb   :  { %1485 = vmatprep.subr.mxu0 %v5941_v43  ;;  %1556 = vmatprep.subr.mxu1 %v5944_v34  ;;  %v1179_v44 = vmul.f32 %v3979_v37, %v1171_v51  ;;  %v5957_v43 = vld [vmem:[#allocation5 + $0x1c8] sm:$0xff]  ;;  %v5960_v34 = vld [vmem:[#allocation5 + $0x1d8] sm:$0xff]  ;;  %v5963_v37 = vld [vmem:[#allocation5 + $0x1c0] sm:$0xff] }
 0x2fc   :  { %8534 = vst [vmem:[#allocation46_spill] sm:$0xff] %v5957_v43  ;;  %8535 = vst [vmem:[#allocation47_spill] sm:$0xff] %v5960_v34  ;;  %v5966_v51 = vld [vmem:[#allocation5 + $0x1d0] sm:$0xff] }
 0x2fd   :  { %v5947_v48 = vrot.slane %v1179_v44, 2  ;;  %8536 = vst [vmem:[#allocation48_spill] sm:$0xff] %v5963_v37  ;;  %8537 = vst [vmem:[#allocation49_spill] sm:$0xff] %v5966_v51  ;;  %v5969_v44 = vld [vmem:[#allocation5 + $0x1a8] sm:$0xff] }
 0x2fe   :  { %8538 = vst [vmem:[#allocation50_spill] sm:$0xff] %v5969_v44 }
 0x2ff   :  { %1390 = vmatmul.mubr.f32.vlgmr.msra.gmra.mxu0 %v5947_v48  ;;  %1461 = vmatmul.mubr.f32.vlgmr.msra.gmra.mxu1 %v5947_v48 }
 0x300   :  { %1486 = vmatpush1.msra.mxu0 %v5951_v52  ;;  %1557 = vmatpush1.msra.mxu1 %v5954_v38  ;;  %v5972_v38 = vld [vmem:[#allocation5 + $0x1b8] sm:$0xff] }
 0x301   :  { %1487 = vmatprep.subr.mxu0 %v5957_v43  ;;  %1558 = vmatprep.subr.mxu1 %v5960_v34  ;;  %8539 = vst [vmem:[#allocation51_spill] sm:$0xff] %v5972_v38  ;;  %v5975_v43 = vld [vmem:[#allocation5 + $0x1a0] sm:$0xff]  ;;  %v5978_v34 = vld [vmem:[#allocation5 + $0x1b0] sm:$0xff] }
 0x302   :  { %1488 = vmatpush1.msra.mxu0 %v5963_v37  ;;  %1559 = vmatpush1.msra.mxu1 %v5966_v51  ;;  %8540 = vst [vmem:[#allocation52_spill] sm:$0xff] %v5975_v43  ;;  %8541 = vst [vmem:[#allocation53_spill] sm:$0xff] %v5978_v34  ;;  %v5981_v37 = vld [vmem:[#allocation5 + $0x188] sm:$0xff]  ;;  %v5984_v51 = vld [vmem:[#allocation5 + $0x198] sm:$0xff] }
 0x303   :  { %1489 = vmatprep.subr.mxu0 %v5969_v44  ;;  %1560 = vmatprep.subr.mxu1 %v5972_v38  ;;  %8542 = vst [vmem:[#allocation54_spill] sm:$0xff] %v5981_v37  ;;  %8543 = vst [vmem:[#allocation55_spill] sm:$0xff] %v5984_v51  ;;  %v5987_v44 = vld [vmem:[#allocation5 + $0x180] sm:$0xff]  ;;  %v5990_v38 = vld [vmem:[#allocation5 + $0x190] sm:$0xff] }
 0x304   :  { %1490 = vmatpush1.msra.mxu0 %v5975_v43  ;;  %1561 = vmatpush1.msra.mxu1 %v5978_v34  ;;  %8544 = vst [vmem:[#allocation56_spill] sm:$0xff] %v5987_v44  ;;  %8545 = vst [vmem:[#allocation57_spill] sm:$0xff] %v5990_v38  ;;  %v5993_v43 = vld [vmem:[#allocation5 + $0x168] sm:$0xff]  ;;  %v5996_v34 = vld [vmem:[#allocation5 + $0x178] sm:$0xff] }
 0x305   :  { %1491 = vmatprep.subr.mxu0 %v5981_v37  ;;  %1562 = vmatprep.subr.mxu1 %v5984_v51  ;;  %8546 = vst [vmem:[#allocation58_spill] sm:$0xff] %v5993_v43  ;;  %8547 = vst [vmem:[#allocation59_spill] sm:$0xff] %v5996_v34  ;;  %v5999_v37 = vld [vmem:[#allocation5 + $0x160] sm:$0xff]  ;;  %v6002_v51 = vld [vmem:[#allocation5 + $0x170] sm:$0xff] }
 0x306   :  { %1492 = vmatpush1.msra.mxu0 %v5987_v44  ;;  %1563 = vmatpush1.msra.mxu1 %v5990_v38  ;;  %8548 = vst [vmem:[#allocation60_spill] sm:$0xff] %v5999_v37  ;;  %8549 = vst [vmem:[#allocation61_spill] sm:$0xff] %v6002_v51  ;;  %v6005_v44 = vld [vmem:[#allocation5 + $0x148] sm:$0xff]  ;;  %v6008_v38 = vld [vmem:[#allocation5 + $0x158] sm:$0xff] }
 0x307   :  { %1493 = vmatprep.subr.mxu0 %v5993_v43  ;;  %1564 = vmatprep.subr.mxu1 %v5996_v34  ;;  %8550 = vst [vmem:[#allocation62_spill] sm:$0xff] %v6005_v44  ;;  %8551 = vst [vmem:[#allocation63_spill] sm:$0xff] %v6008_v38  ;;  %v6011_v43 = vld [vmem:[#allocation5 + $0x140] sm:$0xff]  ;;  %v6014_v34 = vld [vmem:[#allocation5 + $0x150] sm:$0xff] }
 0x308   :  { %1494 = vmatpush1.msra.mxu0 %v5999_v37  ;;  %1565 = vmatpush1.msra.mxu1 %v6002_v51  ;;  %8552 = vst [vmem:[#allocation64_spill] sm:$0xff] %v6011_v43  ;;  %8553 = vst [vmem:[#allocation65_spill] sm:$0xff] %v6014_v34  ;;  %v6017_v37 = vld [vmem:[#allocation5 + $0x128] sm:$0xff]  ;;  %v6020_v51 = vld [vmem:[#allocation5 + $0x138] sm:$0xff] }
 0x309   :  { %1495 = vmatprep.subr.mxu0 %v6005_v44  ;;  %1566 = vmatprep.subr.mxu1 %v6008_v38  ;;  %8554 = vst [vmem:[#allocation66_spill] sm:$0xff] %v6017_v37  ;;  %8555 = vst [vmem:[#allocation67_spill] sm:$0xff] %v6020_v51  ;;  %v6023_v44 = vld [vmem:[#allocation5 + $0x120] sm:$0xff]  ;;  %v6026_v38 = vld [vmem:[#allocation5 + $0x130] sm:$0xff] }
 0x30a   :  { %1496 = vmatpush1.msra.mxu0 %v6011_v43  ;;  %1567 = vmatpush1.msra.mxu1 %v6014_v34  ;;  %8556 = vst [vmem:[#allocation68_spill] sm:$0xff] %v6023_v44  ;;  %8557 = vst [vmem:[#allocation69_spill] sm:$0xff] %v6026_v38  ;;  %v6029_v43 = vld [vmem:[#allocation5 + $0x108] sm:$0xff]  ;;  %v6032_v34 = vld [vmem:[#allocation5 + $0x118] sm:$0xff] }
 0x30b   :  { %1497 = vmatprep.subr.mxu0 %v6017_v37  ;;  %1568 = vmatprep.subr.mxu1 %v6020_v51  ;;  %8558 = vst [vmem:[#allocation70_spill] sm:$0xff] %v6029_v43  ;;  %8559 = vst [vmem:[#allocation71_spill] sm:$0xff] %v6032_v34  ;;  %v6035_v37 = vld [vmem:[#allocation5 + $0x100] sm:$0xff]  ;;  %v6038_v51 = vld [vmem:[#allocation5 + $0x110] sm:$0xff] }
 0x30c   :  { %1498 = vmatpush1.msra.mxu0 %v6023_v44  ;;  %1569 = vmatpush1.msra.mxu1 %v6026_v38  ;;  %8560 = vst [vmem:[#allocation72_spill] sm:$0xff] %v6035_v37  ;;  %8561 = vst [vmem:[#allocation73_spill] sm:$0xff] %v6038_v51  ;;  %v6041_v44 = vld [vmem:[#allocation5 + $0xe8] sm:$0xff]  ;;  %v6044_v38 = vld [vmem:[#allocation5 + $0xf8] sm:$0xff] }
 0x30d   :  { %1499 = vmatprep.subr.mxu0 %v6029_v43  ;;  %1570 = vmatprep.subr.mxu1 %v6032_v34  ;;  %8562 = vst [vmem:[#allocation74_spill] sm:$0xff] %v6041_v44  ;;  %8563 = vst [vmem:[#allocation75_spill] sm:$0xff] %v6044_v38  ;;  %v6047_v43 = vld [vmem:[#allocation5 + $0xe0] sm:$0xff]  ;;  %v6050_v34 = vld [vmem:[#allocation5 + $0xf0] sm:$0xff] }
 0x30e   :  { %1500 = vmatpush1.msra.mxu0 %v6035_v37  ;;  %1571 = vmatpush1.msra.mxu1 %v6038_v51  ;;  %8564 = vst [vmem:[#allocation76_spill] sm:$0xff] %v6047_v43  ;;  %8565 = vst [vmem:[#allocation77_spill] sm:$0xff] %v6050_v34  ;;  %v6053_v37 = vld [vmem:[#allocation5 + $0xc8] sm:$0xff]  ;;  %v6056_v51 = vld [vmem:[#allocation5 + $0xd8] sm:$0xff] }
 0x30f   :  { %1501 = vmatprep.subr.mxu0 %v6041_v44  ;;  %1572 = vmatprep.subr.mxu1 %v6044_v38  ;;  %8566 = vst [vmem:[#allocation78_spill] sm:$0xff] %v6053_v37  ;;  %8567 = vst [vmem:[#allocation79_spill] sm:$0xff] %v6056_v51  ;;  %v6059_v44 = vld [vmem:[#allocation5 + $0xc0] sm:$0xff]  ;;  %v6062_v38 = vld [vmem:[#allocation5 + $0xd0] sm:$0xff] }
 0x310   :  { %1502 = vmatpush1.msra.mxu0 %v6047_v43  ;;  %1573 = vmatpush1.msra.mxu1 %v6050_v34  ;;  %8568 = vst [vmem:[#allocation80_spill] sm:$0xff] %v6059_v44  ;;  %8569 = vst [vmem:[#allocation81_spill] sm:$0xff] %v6062_v38  ;;  %v6065_v43 = vld [vmem:[#allocation5 + $0xa8] sm:$0xff]  ;;  %v6068_v34 = vld [vmem:[#allocation5 + $0xb8] sm:$0xff] }
 0x311   :  { %1503 = vmatprep.subr.mxu0 %v6053_v37  ;;  %1574 = vmatprep.subr.mxu1 %v6056_v51  ;;  %8570 = vst [vmem:[#allocation82_spill] sm:$0xff] %v6065_v43  ;;  %8571 = vst [vmem:[#allocation83_spill] sm:$0xff] %v6068_v34  ;;  %v6071_v37 = vld [vmem:[#allocation5 + $0xa0] sm:$0xff]  ;;  %v6074_v51 = vld [vmem:[#allocation5 + $0xb0] sm:$0xff] }
 0x312   :  { %1504 = vmatpush1.msra.mxu0 %v6059_v44  ;;  %1575 = vmatpush1.msra.mxu1 %v6062_v38  ;;  %8572 = vst [vmem:[#allocation84_spill] sm:$0xff] %v6071_v37  ;;  %8573 = vst [vmem:[#allocation85_spill] sm:$0xff] %v6074_v51  ;;  %v6077_v44 = vld [vmem:[#allocation5 + $0x88] sm:$0xff]  ;;  %v6080_v38 = vld [vmem:[#allocation5 + $0x98] sm:$0xff] }
 0x313   :  { %1505 = vmatprep.subr.mxu0 %v6065_v43  ;;  %1576 = vmatprep.subr.mxu1 %v6068_v34  ;;  %8574 = vst [vmem:[#allocation86_spill] sm:$0xff] %v6077_v44  ;;  %8575 = vst [vmem:[#allocation87_spill] sm:$0xff] %v6080_v38  ;;  %v6083_v43 = vld [vmem:[#allocation5 + $0x80] sm:$0xff]  ;;  %v6086_v34 = vld [vmem:[#allocation5 + $0x90] sm:$0xff] }
 0x314   :  { %1506 = vmatpush1.msra.mxu0 %v6071_v37  ;;  %1577 = vmatpush1.msra.mxu1 %v6074_v51  ;;  %8576 = vst [vmem:[#allocation88_spill] sm:$0xff] %v6083_v43  ;;  %8577 = vst [vmem:[#allocation89_spill] sm:$0xff] %v6086_v34  ;;  %v6089_v37 = vld [vmem:[#allocation5 + $0x68] sm:$0xff]  ;;  %v6092_v51 = vld [vmem:[#allocation5 + $0x78] sm:$0xff] }
 0x315   :  { %1507 = vmatprep.subr.mxu0 %v6077_v44  ;;  %1578 = vmatprep.subr.mxu1 %v6080_v38  ;;  %8578 = vst [vmem:[#allocation90_spill] sm:$0xff] %v6089_v37  ;;  %8579 = vst [vmem:[#allocation91_spill] sm:$0xff] %v6092_v51  ;;  %v6095_v44 = vld [vmem:[#allocation5 + $0x60] sm:$0xff]  ;;  %v6098_v38 = vld [vmem:[#allocation5 + $0x70] sm:$0xff] }
 0x316   :  { %1508 = vmatpush1.msra.mxu0 %v6083_v43  ;;  %1579 = vmatpush1.msra.mxu1 %v6086_v34  ;;  %8580 = vst [vmem:[#allocation92_spill] sm:$0xff] %v6095_v44  ;;  %8581 = vst [vmem:[#allocation93_spill] sm:$0xff] %v6098_v38  ;;  %v6101_v43 = vld [vmem:[#allocation5 + $0x48] sm:$0xff]  ;;  %v6104_v34 = vld [vmem:[#allocation5 + $0x58] sm:$0xff] }
 0x317   :  { %1509 = vmatprep.subr.mxu0 %v6089_v37  ;;  %1580 = vmatprep.subr.mxu1 %v6092_v51  ;;  %8582 = vst [vmem:[#allocation94_spill] sm:$0xff] %v6101_v43  ;;  %8583 = vst [vmem:[#allocation95_spill] sm:$0xff] %v6104_v34  ;;  %v6107_v37 = vld [vmem:[#allocation5 + $0x40] sm:$0xff]  ;;  %v6110_v51 = vld [vmem:[#allocation5 + $0x50] sm:$0xff] }
 0x318   :  { %1510 = vmatpush1.msra.mxu0 %v6095_v44  ;;  %1581 = vmatpush1.msra.mxu1 %v6098_v38  ;;  %8584 = vst [vmem:[#allocation96_spill] sm:$0xff] %v6107_v37  ;;  %8585 = vst [vmem:[#allocation97_spill] sm:$0xff] %v6110_v51  ;;  %v6113_v44 = vld [vmem:[#allocation5 + $0x28] sm:$0xff]  ;;  %v6116_v38 = vld [vmem:[#allocation5 + $0x38] sm:$0xff] }
 0x319   :  { %1511 = vmatprep.subr.mxu0 %v6101_v43  ;;  %1582 = vmatprep.subr.mxu1 %v6104_v34  ;;  %8586 = vst [vmem:[#allocation98_spill] sm:$0xff] %v6113_v44  ;;  %8587 = vst [vmem:[#allocation99_spill] sm:$0xff] %v6116_v38  ;;  %v6119_v43 = vld [vmem:[#allocation5 + $0x20] sm:$0xff]  ;;  %v6122_v34 = vld [vmem:[#allocation5 + $0x30] sm:$0xff] }
 0x31a   :  { %1512 = vmatpush1.msra.mxu0 %v6107_v37  ;;  %1583 = vmatpush1.msra.mxu1 %v6110_v51  ;;  %8588 = vst [vmem:[#allocation100_spill] sm:$0xff] %v6119_v43  ;;  %8589 = vst [vmem:[#allocation101_spill] sm:$0xff] %v6122_v34  ;;  %v6125_v37 = vld [vmem:[#allocation5 + $0x8] sm:$0xff]  ;;  %v6128_v51 = vld [vmem:[#allocation5 + $0x18] sm:$0xff] }
 0x31b   :  { %1513 = vmatprep.subr.mxu0 %v6113_v44  ;;  %1584 = vmatprep.subr.mxu1 %v6116_v38  ;;  %8590 = vst [vmem:[#allocation102_spill] sm:$0xff] %v6125_v37  ;;  %8591 = vst [vmem:[#allocation103_spill] sm:$0xff] %v6128_v51  ;;  %v6131_v44 = vld [vmem:[#allocation5] sm:$0xff]  ;;  %v6135_v38 = vld [vmem:[#allocation5 + $0x10] sm:$0xff] }
 0x31c   :  { %1514 = vmatpush1.msra.mxu0 %v6119_v43  ;;  %1585 = vmatpush1.msra.mxu1 %v6122_v34  ;;  %8592 = vst [vmem:[#allocation104_spill] sm:$0xff] %v6131_v44  ;;  %8593 = vst [vmem:[#allocation105_spill] sm:$0xff] %v6135_v38  ;;  %v6150_v34 = vld [vmem:[#allocation8 + $0x1f0] sm:$0xff] }
 0x31d   :  { %1515 = vmatprep.subr.mxu0 %v6125_v37  ;;  %1586 = vmatprep.subr.mxu1 %v6128_v51  ;;  %v6141_v37 = vld [vmem:[#allocation8 + $0x1e8] sm:$0xff]  ;;  %v6144_v51 = vld [vmem:[#allocation8 + $0x1f8] sm:$0xff]  ;;  %8597 = vst [vmem:[#allocation109_spill] sm:$0xff] %v6150_v34 }
 0x31e   :  { %1516 = vmatpush1.msra.mxu0 %v6131_v44  ;;  %1549 = vmatprep.mubr.f32.mxu0 %v8283_v7  ;;  %8594 = vst [vmem:[#allocation106_spill] sm:$0xff] %v6141_v37  ;;  %8595 = vst [vmem:[#allocation107_spill] sm:$0xff] %v6144_v51  ;;  %v6147_v44 = vld [vmem:[#allocation8 + $0x1e0] sm:$0xff] }
 0x31f   :  { %1587 = vmatpush1.msra.mxu1 %v6135_v38  ;;  %1620 = vmatprep.mubr.f32.mxu1 %v8283_v7  ;;  %8596 = vst [vmem:[#allocation108_spill] sm:$0xff] %v6147_v44  ;;  %v6153_v38 = vld [vmem:[#allocation8 + $0x1c8] sm:$0xff] }
 0x320   :  { %1550 = vmatmul.mubr.f32.vlgmr.msra.gmra.mxu0 %v5947_v48  ;;  %1621 = vmatmul.mubr.f32.vlgmr.msra.gmra.mxu1 %v5947_v48  ;;  %8598 = vst [vmem:[#allocation110_spill] sm:$0xff] %v6153_v38  ;;  %v6156_v48 = vld [vmem:[#allocation8 + $0x1d8] sm:$0xff] }
 0x321   :  { %1664 = vmatprep.subr.mxu0 %v6141_v37  ;;  %1735 = vmatprep.subr.mxu1 %v6144_v51  ;;  %8599 = vst [vmem:[#allocation111_spill] sm:$0xff] %v6156_v48  ;;  %v6159_v37 = vld [vmem:[#allocation8 + $0x1c0] sm:$0xff]  ;;  %v6162_v51 = vld [vmem:[#allocation8 + $0x1d0] sm:$0xff] }
 0x322   :  { %1665 = vmatpush1.msra.mxu0 %v6147_v44  ;;  %1736 = vmatpush1.msra.mxu1 %v6150_v34  ;;  %8600 = vst [vmem:[#allocation112_spill] sm:$0xff] %v6159_v37  ;;  %8601 = vst [vmem:[#allocation113_spill] sm:$0xff] %v6162_v51  ;;  %v6165_v44 = vld [vmem:[#allocation8 + $0x1a8] sm:$0xff]  ;;  %v6168_v34 = vld [vmem:[#allocation8 + $0x1b8] sm:$0xff] }
 0x323   :  { %1666 = vmatprep.subr.mxu0 %v6153_v38  ;;  %1737 = vmatprep.subr.mxu1 %v6156_v48  ;;  %8602 = vst [vmem:[#allocation114_spill] sm:$0xff] %v6165_v44  ;;  %8603 = vst [vmem:[#allocation115_spill] sm:$0xff] %v6168_v34  ;;  %v6171_v38 = vld [vmem:[#allocation8 + $0x1a0] sm:$0xff]  ;;  %v6174_v48 = vld [vmem:[#allocation8 + $0x1b0] sm:$0xff] }
 0x324   :  { %1667 = vmatpush1.msra.mxu0 %v6159_v37  ;;  %1738 = vmatpush1.msra.mxu1 %v6162_v51  ;;  %8604 = vst [vmem:[#allocation116_spill] sm:$0xff] %v6171_v38  ;;  %8605 = vst [vmem:[#allocation117_spill] sm:$0xff] %v6174_v48  ;;  %v6177_v37 = vld [vmem:[#allocation8 + $0x188] sm:$0xff]  ;;  %v6180_v51 = vld [vmem:[#allocation8 + $0x198] sm:$0xff] }
 0x325   :  { %1668 = vmatprep.subr.mxu0 %v6165_v44  ;;  %1739 = vmatprep.subr.mxu1 %v6168_v34  ;;  %8606 = vst [vmem:[#allocation118_spill] sm:$0xff] %v6177_v37  ;;  %8607 = vst [vmem:[#allocation119_spill] sm:$0xff] %v6180_v51  ;;  %v6183_v44 = vld [vmem:[#allocation8 + $0x180] sm:$0xff]  ;;  %v6186_v34 = vld [vmem:[#allocation8 + $0x190] sm:$0xff] }
 0x326   :  { %1669 = vmatpush1.msra.mxu0 %v6171_v38  ;;  %1740 = vmatpush1.msra.mxu1 %v6174_v48  ;;  %8608 = vst [vmem:[#allocation120_spill] sm:$0xff] %v6183_v44  ;;  %8609 = vst [vmem:[#allocation121_spill] sm:$0xff] %v6186_v34  ;;  %v6189_v38 = vld [vmem:[#allocation8 + $0x168] sm:$0xff]  ;;  %v6192_v48 = vld [vmem:[#allocation8 + $0x178] sm:$0xff] }
 0x327   :  { %1670 = vmatprep.subr.mxu0 %v6177_v37  ;;  %1741 = vmatprep.subr.mxu1 %v6180_v51  ;;  %8610 = vst [vmem:[#allocation122_spill] sm:$0xff] %v6189_v38  ;;  %8611 = vst [vmem:[#allocation123_spill] sm:$0xff] %v6192_v48  ;;  %v6195_v37 = vld [vmem:[#allocation8 + $0x160] sm:$0xff]  ;;  %v6198_v51 = vld [vmem:[#allocation8 + $0x170] sm:$0xff] }
 0x328   :  { %1671 = vmatpush1.msra.mxu0 %v6183_v44  ;;  %1742 = vmatpush1.msra.mxu1 %v6186_v34  ;;  %8612 = vst [vmem:[#allocation124_spill] sm:$0xff] %v6195_v37  ;;  %8613 = vst [vmem:[#allocation125_spill] sm:$0xff] %v6198_v51  ;;  %v6201_v44 = vld [vmem:[#allocation8 + $0x148] sm:$0xff]  ;;  %v6204_v34 = vld [vmem:[#allocation8 + $0x158] sm:$0xff] }
 0x329   :  { %1672 = vmatprep.subr.mxu0 %v6189_v38  ;;  %1743 = vmatprep.subr.mxu1 %v6192_v48  ;;  %8614 = vst [vmem:[#allocation126_spill] sm:$0xff] %v6201_v44  ;;  %8615 = vst [vmem:[#allocation127_spill] sm:$0xff] %v6204_v34  ;;  %v6207_v38 = vld [vmem:[#allocation8 + $0x140] sm:$0xff]  ;;  %v6210_v48 = vld [vmem:[#allocation8 + $0x150] sm:$0xff] }
 0x32a   :  { %1673 = vmatpush1.msra.mxu0 %v6195_v37  ;;  %1744 = vmatpush1.msra.mxu1 %v6198_v51  ;;  %8616 = vst [vmem:[#allocation128_spill] sm:$0xff] %v6207_v38  ;;  %8617 = vst [vmem:[#allocation129_spill] sm:$0xff] %v6210_v48  ;;  %v6213_v37 = vld [vmem:[#allocation8 + $0x128] sm:$0xff]  ;;  %v6216_v51 = vld [vmem:[#allocation8 + $0x138] sm:$0xff] }
 0x32b   :  { %1674 = vmatprep.subr.mxu0 %v6201_v44  ;;  %1745 = vmatprep.subr.mxu1 %v6204_v34  ;;  %8618 = vst [vmem:[#allocation130_spill] sm:$0xff] %v6213_v37  ;;  %8619 = vst [vmem:[#allocation131_spill] sm:$0xff] %v6216_v51  ;;  %v6219_v44 = vld [vmem:[#allocation8 + $0x120] sm:$0xff]  ;;  %v6222_v34 = vld [vmem:[#allocation8 + $0x130] sm:$0xff] }
 0x32c   :  { %1675 = vmatpush1.msra.mxu0 %v6207_v38  ;;  %1746 = vmatpush1.msra.mxu1 %v6210_v48  ;;  %8620 = vst [vmem:[#allocation132_spill] sm:$0xff] %v6219_v44  ;;  %8621 = vst [vmem:[#allocation133_spill] sm:$0xff] %v6222_v34  ;;  %v6225_v38 = vld [vmem:[#allocation8 + $0x108] sm:$0xff]  ;;  %v6228_v48 = vld [vmem:[#allocation8 + $0x118] sm:$0xff] }
 0x32d   :  { %1676 = vmatprep.subr.mxu0 %v6213_v37  ;;  %1747 = vmatprep.subr.mxu1 %v6216_v51  ;;  %8622 = vst [vmem:[#allocation134_spill] sm:$0xff] %v6225_v38  ;;  %8623 = vst [vmem:[#allocation135_spill] sm:$0xff] %v6228_v48  ;;  %v6231_v37 = vld [vmem:[#allocation8 + $0x100] sm:$0xff]  ;;  %v6234_v51 = vld [vmem:[#allocation8 + $0x110] sm:$0xff] }
 0x32e   :  { %1677 = vmatpush1.msra.mxu0 %v6219_v44  ;;  %1748 = vmatpush1.msra.mxu1 %v6222_v34  ;;  %8624 = vst [vmem:[#allocation136_spill] sm:$0xff] %v6231_v37  ;;  %8625 = vst [vmem:[#allocation137_spill] sm:$0xff] %v6234_v51  ;;  %v6237_v44 = vld [vmem:[#allocation8 + $0xe8] sm:$0xff]  ;;  %v6240_v34 = vld [vmem:[#allocation8 + $0xf8] sm:$0xff] }
 0x32f   :  { %1678 = vmatprep.subr.mxu0 %v6225_v38  ;;  %1749 = vmatprep.subr.mxu1 %v6228_v48  ;;  %8626 = vst [vmem:[#allocation138_spill] sm:$0xff] %v6237_v44  ;;  %8627 = vst [vmem:[#allocation139_spill] sm:$0xff] %v6240_v34  ;;  %v6243_v38 = vld [vmem:[#allocation8 + $0xe0] sm:$0xff]  ;;  %v6246_v48 = vld [vmem:[#allocation8 + $0xf0] sm:$0xff] }
 0x330   :  { %1679 = vmatpush1.msra.mxu0 %v6231_v37  ;;  %1750 = vmatpush1.msra.mxu1 %v6234_v51  ;;  %8628 = vst [vmem:[#allocation140_spill] sm:$0xff] %v6243_v38  ;;  %8629 = vst [vmem:[#allocation141_spill] sm:$0xff] %v6246_v48  ;;  %v6249_v37 = vld [vmem:[#allocation8 + $0xc8] sm:$0xff]  ;;  %v6252_v51 = vld [vmem:[#allocation8 + $0xd8] sm:$0xff] }
 0x331   :  { %1680 = vmatprep.subr.mxu0 %v6237_v44  ;;  %1751 = vmatprep.subr.mxu1 %v6240_v34  ;;  %8630 = vst [vmem:[#allocation142_spill] sm:$0xff] %v6249_v37  ;;  %8631 = vst [vmem:[#allocation143_spill] sm:$0xff] %v6252_v51  ;;  %v6255_v44 = vld [vmem:[#allocation8 + $0xc0] sm:$0xff]  ;;  %v6258_v34 = vld [vmem:[#allocation8 + $0xd0] sm:$0xff] }
 0x332   :  { %1681 = vmatpush1.msra.mxu0 %v6243_v38  ;;  %1752 = vmatpush1.msra.mxu1 %v6246_v48  ;;  %8632 = vst [vmem:[#allocation144_spill] sm:$0xff] %v6255_v44  ;;  %8633 = vst [vmem:[#allocation145_spill] sm:$0xff] %v6258_v34  ;;  %v6261_v38 = vld [vmem:[#allocation8 + $0xa8] sm:$0xff]  ;;  %v6264_v48 = vld [vmem:[#allocation8 + $0xb8] sm:$0xff] }
 0x333   :  { %1682 = vmatprep.subr.mxu0 %v6249_v37  ;;  %1753 = vmatprep.subr.mxu1 %v6252_v51  ;;  %8634 = vst [vmem:[#allocation146_spill] sm:$0xff] %v6261_v38  ;;  %8635 = vst [vmem:[#allocation147_spill] sm:$0xff] %v6264_v48  ;;  %v6267_v37 = vld [vmem:[#allocation8 + $0xa0] sm:$0xff]  ;;  %v6270_v51 = vld [vmem:[#allocation8 + $0xb0] sm:$0xff] }
 0x334   :  { %1683 = vmatpush1.msra.mxu0 %v6255_v44  ;;  %1754 = vmatpush1.msra.mxu1 %v6258_v34  ;;  %8636 = vst [vmem:[#allocation148_spill] sm:$0xff] %v6267_v37  ;;  %8637 = vst [vmem:[#allocation149_spill] sm:$0xff] %v6270_v51  ;;  %v6273_v44 = vld [vmem:[#allocation8 + $0x88] sm:$0xff]  ;;  %v6276_v34 = vld [vmem:[#allocation8 + $0x98] sm:$0xff] }
 0x335   :  { %1684 = vmatprep.subr.mxu0 %v6261_v38  ;;  %1755 = vmatprep.subr.mxu1 %v6264_v48  ;;  %8638 = vst [vmem:[#allocation150_spill] sm:$0xff] %v6273_v44  ;;  %8639 = vst [vmem:[#allocation151_spill] sm:$0xff] %v6276_v34  ;;  %v6279_v38 = vld [vmem:[#allocation8 + $0x80] sm:$0xff]  ;;  %v6282_v48 = vld [vmem:[#allocation8 + $0x90] sm:$0xff] }
 0x336   :  { %1685 = vmatpush1.msra.mxu0 %v6267_v37  ;;  %1756 = vmatpush1.msra.mxu1 %v6270_v51  ;;  %8640 = vst [vmem:[#allocation152_spill] sm:$0xff] %v6279_v38  ;;  %8641 = vst [vmem:[#allocation153_spill] sm:$0xff] %v6282_v48  ;;  %v6285_v37 = vld [vmem:[#allocation8 + $0x68] sm:$0xff]  ;;  %v6288_v51 = vld [vmem:[#allocation8 + $0x78] sm:$0xff] }
 0x337   :  { %1686 = vmatprep.subr.mxu0 %v6273_v44  ;;  %1757 = vmatprep.subr.mxu1 %v6276_v34  ;;  %8642 = vst [vmem:[#allocation154_spill] sm:$0xff] %v6285_v37  ;;  %8643 = vst [vmem:[#allocation155_spill] sm:$0xff] %v6288_v51  ;;  %v6291_v44 = vld [vmem:[#allocation8 + $0x60] sm:$0xff]  ;;  %v6294_v34 = vld [vmem:[#allocation8 + $0x70] sm:$0xff] }
 0x338   :  { %1687 = vmatpush1.msra.mxu0 %v6279_v38  ;;  %1758 = vmatpush1.msra.mxu1 %v6282_v48  ;;  %8644 = vst [vmem:[#allocation156_spill] sm:$0xff] %v6291_v44  ;;  %8645 = vst [vmem:[#allocation157_spill] sm:$0xff] %v6294_v34  ;;  %v6297_v38 = vld [vmem:[#allocation8 + $0x48] sm:$0xff]  ;;  %v6300_v48 = vld [vmem:[#allocation8 + $0x58] sm:$0xff] }
 0x339   :  { %1688 = vmatprep.subr.mxu0 %v6285_v37  ;;  %1759 = vmatprep.subr.mxu1 %v6288_v51  ;;  %8646 = vst [vmem:[#allocation158_spill] sm:$0xff] %v6297_v38  ;;  %8647 = vst [vmem:[#allocation159_spill] sm:$0xff] %v6300_v48  ;;  %v6303_v37 = vld [vmem:[#allocation8 + $0x40] sm:$0xff]  ;;  %v6306_v51 = vld [vmem:[#allocation8 + $0x50] sm:$0xff] }
 0x33a   :  { %1689 = vmatpush1.msra.mxu0 %v6291_v44  ;;  %1760 = vmatpush1.msra.mxu1 %v6294_v34  ;;  %8648 = vst [vmem:[#allocation160_spill] sm:$0xff] %v6303_v37  ;;  %8649 = vst [vmem:[#allocation161_spill] sm:$0xff] %v6306_v51  ;;  %v6309_v44 = vld [vmem:[#allocation8 + $0x28] sm:$0xff]  ;;  %v6312_v34 = vld [vmem:[#allocation8 + $0x38] sm:$0xff] }
 0x33b   :  { %1690 = vmatprep.subr.mxu0 %v6297_v38  ;;  %1761 = vmatprep.subr.mxu1 %v6300_v48  ;;  %8650 = vst [vmem:[#allocation162_spill] sm:$0xff] %v6309_v44  ;;  %8651 = vst [vmem:[#allocation163_spill] sm:$0xff] %v6312_v34  ;;  %v6315_v38 = vld [vmem:[#allocation8 + $0x20] sm:$0xff]  ;;  %v6318_v48 = vld [vmem:[#allocation8 + $0x30] sm:$0xff] }
 0x33c   :  { %1691 = vmatpush1.msra.mxu0 %v6303_v37  ;;  %1762 = vmatpush1.msra.mxu1 %v6306_v51  ;;  %8652 = vst [vmem:[#allocation164_spill] sm:$0xff] %v6315_v38  ;;  %8653 = vst [vmem:[#allocation166_spill] sm:$0xff] %v6318_v48  ;;  %v6321_v37 = vld [vmem:[#allocation8 + $0x8] sm:$0xff]  ;;  %v6324_v51 = vld [vmem:[#allocation8 + $0x18] sm:$0xff] }
 0x33d   :  { %1692 = vmatprep.subr.mxu0 %v6309_v44  ;;  %1763 = vmatprep.subr.mxu1 %v6312_v34  ;;  %8654 = vst [vmem:[#allocation167_spill] sm:$0xff] %v6321_v37  ;;  %8655 = vst [vmem:[#allocation168_spill] sm:$0xff] %v6324_v51  ;;  %v6327_v44 = vld [vmem:[#allocation8] sm:$0xff]  ;;  %v6331_v34 = vld [vmem:[#allocation8 + $0x10] sm:$0xff] }
 0x33e   :  { %1693 = vmatpush1.msra.mxu0 %v6315_v38  ;;  %1764 = vmatpush1.msra.mxu1 %v6318_v48  ;;  %8656 = vst [vmem:[#allocation169_spill] sm:$0xff] %v6327_v44  ;;  %8657 = vst [vmem:[#allocation170_spill] sm:$0xff] %v6331_v34 }
 0x33f   :  { %1694 = vmatprep.subr.mxu0 %v6321_v37  ;;  %1765 = vmatprep.subr.mxu1 %v6324_v51 }
 0x340   :  { %1695 = vmatpush1.msra.mxu0 %v6327_v44  ;;  %1728 = vmatprep.mubr.f32.mxu0 %v8283_v7 }
 0x341   :  { %1766 = vmatpush1.msra.mxu1 %v6331_v34  ;;  %1799 = vmatprep.mubr.f32.mxu1 %v8283_v7 }
 0x342   :  { %1809 = vmatprep.subr.mxu0 %v5731_v0  ;;  %1880 = vmatprep.subr.mxu1 %v5734_v62 }
 0x39a   :  { %v1246_v37 = vpop.f32.mrf.mxu0  ;;  %v1317_v48 = vpop.f32.mrf.mxu1 }
 0x39b   :  { %v1247_v51 = vadd.f32 %v1246_v37, %v8500_v14  ;;  %v1318_v7 = vadd.f32 %v1317_v48, %v8502_v27 }
 0x39c   :  { %v1248_v38 = vpop.f32.mrf.mxu0  ;;  %v1319_v30 = vpop.f32.mrf.mxu1 }
 0x39d   :  { %v1249_v44 = vadd.f32 %v1248_v38, %v8501_v18  ;;  %v1320_v11 = vadd.f32 %v1319_v30, %v8503_v32 }
 0x3bf   :  { %v1391_v43 = vpop.f32.mrf.mxu0  ;;  %v1462_v34 = vpop.f32.mrf.mxu1 }
 0x3c0   :  { %v1392_v52 = vadd.f32 %v1391_v43, %v1247_v51  ;;  %v1463_v16 = vadd.f32 %v1462_v34, %v1318_v7 }
 0x3c1   :  { %v1393_v25 = vpop.f32.mrf.mxu0  ;;  %v1464_v62 = vpop.f32.mrf.mxu1 }
 0x3c2   :  { %v1467_v22 = vmul.f32 0.5, %v1392_v52  ;;  %v1394_v12 = vadd.f32 %v1393_v25, %v1249_v44  ;;  %v1465_v37 = vadd.f32 %v1464_v62, %v1320_v11 }
 0x3c4   :  { %3980 = vtanh.f32 %v1467_v22  ;;  %v1471_v0 = vmul.f32 0.5, %v1394_v12  ;;  %v1476_v14 = vmul.f32 0.5, %v1465_v37 }
 0x3c6   :  { %3982 = vtanh.f32 %v1471_v0 }
 0x3c7   :  { %3984 = vtanh.f32 %v1463_v16 }
 0x3c8   :  { %3986 = vtanh.f32 %v1476_v14 }
 0x3d1   :  { %v3981_v10 = vpop.eup %3980 }
 0x3d2   :  { %v1469_v38 = vmul.f32 0.5, %v3981_v10 }
 0x3d3   :  { %v3983_v43 = vpop.eup %3982 }
 0x3d4   :  { %v1470_v51 = vadd.f32 0.5, %v1469_v38  ;;  %v1473_v18 = vmul.f32 0.5, %v3983_v43  ;;  %v3985_v52 = vpop.eup %3984 }
 0x3d5   :  { %v3987_v30 = vpop.eup %3986 }
 0x3d6   :  { %v1474_v25 = vadd.f32 0.5, %v1473_v18  ;;  %v1481_v22 = vmul.f32 %v3985_v52, %v1470_v51  ;;  %v1478_v0 = vmul.f32 0.5, %v3987_v30  ;;  %v8682_v30 = vld [vmem:[#allocation40_spill] sm:$0xff] }
 0x3d8   :  { %v1480_v44 = vmul.f32 %v1474_v25, %v5742_v45  ;;  %v1479_v37 = vadd.f32 0.5, %v1478_v0 }
 0x3da   :  { %v6342_v12 = vadd.f32 %v1481_v22, %v1480_v44  ;;  %v8681_v22 = vld [vmem:[#allocation39_spill] sm:$0xff] }
 0x3dc   :  { %3988 = vtanh.f32 %v6342_v12 }
 0x3e0   :  { %v1551_v7 = vpop.f32.mrf.mxu0  ;;  %v1622_v11 = vpop.f32.mrf.mxu1 }
 0x3e1   :  { %v1631_v16 = vrot.slane %v1551_v7, 5  ;;  %v1633_v14 = vrot.slane %v1622_v11, 5 }
 0x3e2   :  { %v1553_v34 = vpop.f32.mrf.mxu0  ;;  %v1624_v38 = vpop.f32.mrf.mxu1 }
 0x3e3   :  { %v1639_v10 = vadd.f32 %v1631_v16, %v5094_v58  ;;  %v1632_v48 = vrot.slane %v1553_v34, 5  ;;  %v1641_v51 = vadd.f32 %v1633_v14, %v5104_v54  ;;  %v1634_v52 = vrot.slane %v1624_v38, 5  ;;  %v8683_v16 = vld [vmem:[#allocation41_spill] sm:$0xff]  ;;  %v8687_v14 = vld [vmem:[#allocation44_spill] sm:$0xff] }
 0x3e4   :  { %v8684_v34 = vmov 0.0   ;;  %v8691_v38 = vld [vmem:[#allocation48_spill] sm:$0xff] }
 0x3e5   :  { %v1643_v62 = vmul.f32 0.5, %v1639_v10  ;;  %v1640_v18 = vadd.f32 %v1632_v48, %v5099_v56  ;;  %v1642_v44 = vadd.f32 %v1634_v52, %v5106_v5  ;;  %v8685_v10 = vld [vmem:[#allocation42_spill] sm:$0xff]  ;;  %v8686_v48 = vld [vmem:[#allocation43_spill] sm:$0xff]  ;;  %v8695_v52 = vld [vmem:[#allocation52_spill] sm:$0xff] }
 0x3e7   :  { %3990 = vtanh.f32 %v1643_v62  ;;  %v1647_v45 = vmul.f32 0.5, %v1640_v18  ;;  %v8688_v18 = vld [vmem:[#allocation45_spill] sm:$0xff] }
 0x3e9   :  { %v3989_v43 = vpop.eup %3988  ;;  %3992 = vtanh.f32 %v1647_v45  ;;  %v8689_v45 = vld [vmem:[#allocation46_spill] sm:$0xff] }
 0x3ea   :  { %v1484_v25 = vmul.f32 %v3989_v43, %v1479_v37  ;;  %3994 = vtanh.f32 %v1641_v51  ;;  %v8690_v37 = vld [vmem:[#allocation47_spill] sm:$0xff]  ;;  %v8692_v43 = vld [vmem:[#allocation49_spill] sm:$0xff]  ;;  %v8693_v51 = vld [vmem:[#allocation50_spill] sm:$0xff] }
 0x3ec   :  { %1729 = vmatmul.mubr.f32.vlgmr.msra.gmra.mxu0 %v1484_v25  ;;  %1800 = vmatmul.mubr.f32.vlgmr.msra.gmra.mxu1 %v1484_v25  ;;  %v8694_v25 = vld [vmem:[#allocation51_spill] sm:$0xff] }
 0x3ed   :  { %1810 = vmatpush1.msra.mxu0 %v5748_v57  ;;  %1881 = vmatpush1.msra.mxu1 %v5751_v8  ;;  %v1652_v57 = vmul.f32 0.5, %v1642_v44  ;;  %v8696_v44 = vld [vmem:[#allocation53_spill] sm:$0xff] }
 0x3ee   :  { %1811 = vmatprep.subr.mxu0 %v5754_v60  ;;  %1882 = vmatprep.subr.mxu1 %v5757_v55 }
 0x3ef   :  { %1812 = vmatpush1.msra.mxu0 %v5761_v9  ;;  %1883 = vmatpush1.msra.mxu1 %v5764_v59  ;;  %3996 = vtanh.f32 %v1652_v57  ;;  %v8697_v57 = vld [vmem:[#allocation54_spill] sm:$0xff] }
 0x3f0   :  { %1813 = vmatprep.subr.mxu0 %v5767_v13  ;;  %1884 = vmatprep.subr.mxu1 %v5770_v15  ;;  %v1657_v15 = vrot.slane %v5846_v61, 7  ;;  %v8676_v61 = vld [vmem:[#allocation34_spill] sm:$0xff] }
 0x3f1   :  { %1814 = vmatpush1.msra.mxu0 %v5773_v17  ;;  %1885 = vmatpush1.msra.mxu1 %v5776_v19 }
 0x3f2   :  { %1815 = vmatprep.subr.mxu0 %v5779_v20  ;;  %1886 = vmatprep.subr.mxu1 %v5782_v21 }
 0x3f3   :  { %1816 = vmatpush1.msra.mxu0 %v5785_v23  ;;  %1887 = vmatpush1.msra.mxu1 %v5788_v24  ;;  %v8658_v23 = vld [vmem:[#allocation16_spill] sm:$0xff]  ;;  %v8659_v24 = vld [vmem:[#allocation17_spill] sm:$0xff] }
 0x3f4   :  { %v3991_v8 = vpop.eup %3990  ;;  %1817 = vmatprep.subr.mxu0 %v5791_v28  ;;  %1888 = vmatprep.subr.mxu1 %v5794_v29  ;;  %v8660_v28 = vld [vmem:[#allocation18_spill] sm:$0xff]  ;;  %v8661_v29 = vld [vmem:[#allocation19_spill] sm:$0xff] }
 0x3f5   :  { %v1645_v60 = vmul.f32 0.5, %v3991_v8  ;;  %1818 = vmatpush1.msra.mxu0 %v5797_v31  ;;  %1889 = vmatpush1.msra.mxu1 %v5800_v33  ;;  %v8662_v31 = vld [vmem:[#allocation20_spill] sm:$0xff]  ;;  %v8663_v33 = vld [vmem:[#allocation21_spill] sm:$0xff]  ;;  %v8698_v8 = vld [vmem:[#allocation55_spill] sm:$0xff] }
 0x3f6   :  { %v3993_v55 = vpop.eup %3992  ;;  %1819 = vmatprep.subr.mxu0 %v5803_v35  ;;  %1890 = vmatprep.subr.mxu1 %v5806_v36  ;;  %v8664_v35 = vld [vmem:[#allocation22_spill] sm:$0xff]  ;;  %v8665_v36 = vld [vmem:[#allocation23_spill] sm:$0xff] }
 0x3f7   :  { %v1646_v9 = vadd.f32 0.5, %v1645_v60  ;;  %v1649_v59 = vmul.f32 0.5, %v3993_v55  ;;  %1820 = vmatpush1.msra.mxu0 %v5809_v39  ;;  %1891 = vmatpush1.msra.mxu1 %v5812_v40  ;;  %v3995_v17 = vpop.eup %3994  ;;  %v8666_v39 = vld [vmem:[#allocation24_spill] sm:$0xff]  ;;  %v8667_v40 = vld [vmem:[#allocation25_spill] sm:$0xff] }
 0x3f8   :  { %1821 = vmatprep.subr.mxu0 %v5815_v41  ;;  %1892 = vmatprep.subr.mxu1 %v5818_v42  ;;  %v8668_v42 = vld [vmem:[#allocation26_spill] sm:$0xff]  ;;  %v8699_v60 = vld [vmem:[#allocation56_spill] sm:$0xff]  ;;  %v8700_v55 = vld [vmem:[#allocation57_spill] sm:$0xff] }
 0x3f9   :  { %v1650_v13 = vadd.f32 0.5, %v1649_v59  ;;  %1822 = vmatpush1.msra.mxu0 %v5822_v46  ;;  %1893 = vmatpush1.msra.mxu1 %v5825_v47  ;;  %v1660_v20 = vmul.f32 %v3995_v17, %v1646_v9  ;;  %v8669_v46 = vld [vmem:[#allocation27_spill] sm:$0xff]  ;;  %v8670_v47 = vld [vmem:[#allocation28_spill] sm:$0xff]  ;;  %v8701_v9 = vld [vmem:[#allocation58_spill] sm:$0xff] }
 0x3fa   :  { %1823 = vmatprep.subr.mxu0 %v5828_v49  ;;  %1894 = vmatprep.subr.mxu1 %v5831_v50  ;;  %v8671_v49 = vld [vmem:[#allocation29_spill] sm:$0xff]  ;;  %v8672_v50 = vld [vmem:[#allocation30_spill] sm:$0xff]  ;;  %v8702_v59 = vld [vmem:[#allocation59_spill] sm:$0xff] }
 0x3fb   :  { %v1659_v19 = vmul.f32 %v1657_v15, %v1650_v13  ;;  %1824 = vmatpush1.msra.mxu0 %v5834_v26  ;;  %1895 = vmatpush1.msra.mxu1 %v5837_v53  ;;  %v8673_v26 = vld [vmem:[#allocation31_spill] sm:$0xff]  ;;  %v8703_v13 = vld [vmem:[#allocation60_spill] sm:$0xff]  ;;  %v8704_v15 = vld [vmem:[#allocation61_spill] sm:$0xff] }
 0x3fc   :  { %1825 = vmatprep.subr.mxu0 %v5840_v4  ;;  %1896 = vmatprep.subr.mxu1 %v5843_v1  ;;  %v3997_v41 = vpop.eup %3996  ;;  %v8674_v4 = vld [vmem:[#allocation32_spill] sm:$0xff]  ;;  %v8675_v1 = vld [vmem:[#allocation33_spill] sm:$0xff]  ;;  %v8705_v17 = vld [vmem:[#allocation62_spill] sm:$0xff] }
 0x3fd   :  { %v6382_v21 = vadd.f32 %v1660_v20, %v1659_v19  ;;  %1826 = vmatpush1.msra.mxu0 %v5848_v63  ;;  %1897 = vmatpush1.msra.mxu1 %v5851_v3  ;;  %v1654_v53 = vmul.f32 0.5, %v3997_v41  ;;  %v8677_v63 = vld [vmem:[#allocation35_spill] sm:$0xff]  ;;  %v8678_v3 = vld [vmem:[#allocation36_spill] sm:$0xff] }
 0x3fe   :  { %1827 = vmatprep.subr.mxu0 %v5854_v6  ;;  %1898 = vmatprep.subr.mxu1 %v5857_v2  ;;  %v8679_v6 = vld [vmem:[#allocation37_spill] sm:$0xff]  ;;  %v8680_v2 = vld [vmem:[#allocation38_spill] sm:$0xff]  ;;  %v8706_v19 = vld [vmem:[#allocation63_spill] sm:$0xff] }
 0x3ff   :  { %3998 = vtanh.f32 %v6382_v21  ;;  %1828 = vmatpush1.msra.mxu0 %v8658_v23  ;;  %1899 = vmatpush1.msra.mxu1 %v8659_v24  ;;  %v1655_v7 = vadd.f32 0.5, %v1654_v53  ;;  %v8707_v20 = vld [vmem:[#allocation64_spill] sm:$0xff]  ;;  %v8708_v23 = vld [vmem:[#allocation65_spill] sm:$0xff]  ;;  %v8709_v24 = vld [vmem:[#allocation66_spill] sm:$0xff] }
 0x400   :  { %1829 = vmatprep.subr.mxu0 %v8660_v28  ;;  %1900 = vmatprep.subr.mxu1 %v8661_v29  ;;  %v8710_v28 = vld [vmem:[#allocation67_spill] sm:$0xff]  ;;  %v8711_v29 = vld [vmem:[#allocation68_spill] sm:$0xff]  ;;  %v8725_v53 = vld [vmem:[#allocation82_spill] sm:$0xff] }
 0x401   :  { %1830 = vmatpush1.msra.mxu0 %v8662_v31  ;;  %1901 = vmatpush1.msra.mxu1 %v8663_v33  ;;  %v8712_v31 = vld [vmem:[#allocation69_spill] sm:$0xff]  ;;  %v8713_v33 = vld [vmem:[#allocation70_spill] sm:$0xff]  ;;  %v8718_v41 = vld [vmem:[#allocation75_spill] sm:$0xff] }
 0x402   :  { %1831 = vmatprep.subr.mxu0 %v8664_v35  ;;  %1902 = vmatprep.subr.mxu1 %v8665_v36  ;;  %v8714_v35 = vld [vmem:[#allocation71_spill] sm:$0xff]  ;;  %v8715_v36 = vld [vmem:[#allocation72_spill] sm:$0xff] }
 0x403   :  { %1832 = vmatpush1.msra.mxu0 %v8666_v39  ;;  %1903 = vmatpush1.msra.mxu1 %v8667_v40  ;;  %v8716_v39 = vld [vmem:[#allocation73_spill] sm:$0xff]  ;;  %v8717_v40 = vld [vmem:[#allocation74_spill] sm:$0xff] }
 0x404   :  { %1833 = vmatprep.subr.mxu0 %v8668_v42  ;;  %1904 = vmatprep.subr.mxu1 %v8669_v46  ;;  %v8719_v42 = vld [vmem:[#allocation76_spill] sm:$0xff]  ;;  %v8720_v46 = vld [vmem:[#allocation77_spill] sm:$0xff] }
 0x405   :  { %1834 = vmatpush1.msra.mxu0 %v8670_v47  ;;  %1905 = vmatpush1.msra.mxu1 %v8671_v49  ;;  %v8721_v47 = vld [vmem:[#allocation78_spill] sm:$0xff]  ;;  %v8722_v49 = vld [vmem:[#allocation79_spill] sm:$0xff] }
 0x406   :  { %1835 = vmatprep.subr.mxu0 %v8672_v50  ;;  %1906 = vmatprep.subr.mxu1 %v8673_v26  ;;  %v8723_v50 = vld [vmem:[#allocation80_spill] sm:$0xff]  ;;  %v8724_v26 = vld [vmem:[#allocation81_spill] sm:$0xff] }
 0x407   :  { %1836 = vmatpush1.msra.mxu0 %v8674_v4  ;;  %1907 = vmatpush1.msra.mxu1 %v8675_v1  ;;  %v8726_v4 = vld [vmem:[#allocation83_spill] sm:$0xff]  ;;  %v8727_v1 = vld [vmem:[#allocation84_spill] sm:$0xff] }
 0x408   :  { %1837 = vmatprep.subr.mxu0 %v8676_v61  ;;  %1908 = vmatprep.subr.mxu1 %v8677_v63  ;;  %v8728_v61 = vld [vmem:[#allocation85_spill] sm:$0xff]  ;;  %v8729_v63 = vld [vmem:[#allocation86_spill] sm:$0xff] }
 0x409   :  { %1838 = vmatpush1.msra.mxu0 %v8678_v3  ;;  %1909 = vmatpush1.msra.mxu1 %v8679_v6  ;;  %v8730_v3 = vld [vmem:[#allocation87_spill] sm:$0xff]  ;;  %v8731_v6 = vld [vmem:[#allocation88_spill] sm:$0xff] }
 0x40a   :  { %1839 = vmatprep.subr.mxu0 %v8680_v2  ;;  %1910 = vmatprep.subr.mxu1 %v8681_v22  ;;  %v8732_v2 = vld [vmem:[#allocation89_spill] sm:$0xff]  ;;  %v8733_v22 = vld [vmem:[#allocation90_spill] sm:$0xff] }
 0x40b   :  { %1840 = vmatpush1.msra.mxu0 %v8682_v30  ;;  %1911 = vmatpush1.msra.mxu1 %v8683_v16  ;;  %v8735_v30 = vld [vmem:[#allocation92_spill] sm:$0xff]  ;;  %v8736_v16 = vld [vmem:[#allocation93_spill] sm:$0xff] }
 0x40c   :  { %v3999_v11 = vpop.eup %3998  ;;  %1873 = vmatprep.mubr.f32.mxu0 %v8684_v34  ;;  %1944 = vmatprep.mubr.f32.mxu1 %v8684_v34 }
 0x40d   :  { %1969 = vmatprep.subr.mxu0 %v8685_v10  ;;  %2040 = vmatprep.subr.mxu1 %v8686_v48  ;;  %v1663_v0 = vmul.f32 %v3999_v11, %v1655_v7  ;;  %v8734_v7 = vld [vmem:[#allocation91_spill] sm:$0xff]  ;;  %v8737_v11 = vld [vmem:[#allocation94_spill] sm:$0xff]  ;;  %v8739_v48 = vld [vmem:[#allocation96_spill] sm:$0xff] }
 0x40e   :  { %v8738_v10 = vld [vmem:[#allocation95_spill] sm:$0xff] }
 0x40f   :  { %v6419_v62 = vrot.slane %v1663_v0, 3  ;;  %v8740_v0 = vld [vmem:[#allocation97_spill] sm:$0xff] }
 0x411   :  { %1874 = vmatmul.mubr.f32.vlgmr.msra.gmra.mxu0 %v6419_v62  ;;  %1945 = vmatmul.mubr.f32.vlgmr.msra.gmra.mxu1 %v6419_v62 }
 0x412   :  { %1970 = vmatpush1.msra.mxu0 %v8687_v14  ;;  %2041 = vmatpush1.msra.mxu1 %v8688_v18  ;;  %v8741_v14 = vld [vmem:[#allocation98_spill] sm:$0xff]  ;;  %v8742_v18 = vld [vmem:[#allocation99_spill] sm:$0xff] }
 0x413   :  { %1971 = vmatprep.subr.mxu0 %v8689_v45  ;;  %2042 = vmatprep.subr.mxu1 %v8690_v37  ;;  %v8743_v45 = vld [vmem:[#allocation100_spill] sm:$0xff]  ;;  %v8744_v37 = vld [vmem:[#allocation101_spill] sm:$0xff] }
 0x414   :  { %1972 = vmatpush1.msra.mxu0 %v8691_v38  ;;  %2043 = vmatpush1.msra.mxu1 %v8692_v43  ;;  %v8745_v38 = vld [vmem:[#allocation102_spill] sm:$0xff]  ;;  %v8746_v43 = vld [vmem:[#allocation103_spill] sm:$0xff] }
 0x415   :  { %1973 = vmatprep.subr.mxu0 %v8693_v51  ;;  %2044 = vmatprep.subr.mxu1 %v8694_v25  ;;  %v8747_v51 = vld [vmem:[#allocation104_spill] sm:$0xff]  ;;  %v8748_v25 = vld [vmem:[#allocation105_spill] sm:$0xff] }
 0x416   :  { %1974 = vmatpush1.msra.mxu0 %v8695_v52  ;;  %2045 = vmatpush1.msra.mxu1 %v8696_v44  ;;  %v8749_v52 = vld [vmem:[#allocation106_spill] sm:$0xff]  ;;  %v8750_v44 = vld [vmem:[#allocation107_spill] sm:$0xff] }
 0x417   :  { %1975 = vmatprep.subr.mxu0 %v8697_v57  ;;  %2046 = vmatprep.subr.mxu1 %v8698_v8  ;;  %v8751_v57 = vld [vmem:[#allocation108_spill] sm:$0xff]  ;;  %v8752_v8 = vld [vmem:[#allocation109_spill] sm:$0xff] }
 0x418   :  { %1976 = vmatpush1.msra.mxu0 %v8699_v60  ;;  %2047 = vmatpush1.msra.mxu1 %v8700_v55  ;;  %v8753_v60 = vld [vmem:[#allocation110_spill] sm:$0xff]  ;;  %v8754_v55 = vld [vmem:[#allocation111_spill] sm:$0xff] }
 0x419   :  { %1977 = vmatprep.subr.mxu0 %v8701_v9  ;;  %2048 = vmatprep.subr.mxu1 %v8702_v59  ;;  %v8755_v9 = vld [vmem:[#allocation112_spill] sm:$0xff]  ;;  %v8756_v59 = vld [vmem:[#allocation113_spill] sm:$0xff] }
 0x41a   :  { %1978 = vmatpush1.msra.mxu0 %v8703_v13  ;;  %2049 = vmatpush1.msra.mxu1 %v8704_v15  ;;  %v8757_v13 = vld [vmem:[#allocation114_spill] sm:$0xff]  ;;  %v8758_v15 = vld [vmem:[#allocation115_spill] sm:$0xff] }
 0x41b   :  { %1979 = vmatprep.subr.mxu0 %v8705_v17  ;;  %2050 = vmatprep.subr.mxu1 %v8706_v19  ;;  %v8760_v17 = vld [vmem:[#allocation117_spill] sm:$0xff]  ;;  %v8761_v19 = vld [vmem:[#allocation118_spill] sm:$0xff] }
 0x41c   :  { %1980 = vmatpush1.msra.mxu0 %v8707_v20  ;;  %2051 = vmatpush1.msra.mxu1 %v8708_v23  ;;  %v8762_v20 = vld [vmem:[#allocation119_spill] sm:$0xff]  ;;  %v8763_v23 = vld [vmem:[#allocation120_spill] sm:$0xff] }
 0x41d   :  { %1981 = vmatprep.subr.mxu0 %v8709_v24  ;;  %2052 = vmatprep.subr.mxu1 %v8710_v28  ;;  %v8764_v24 = vld [vmem:[#allocation121_spill] sm:$0xff]  ;;  %v8765_v28 = vld [vmem:[#allocation122_spill] sm:$0xff] }
 0x41e   :  { %1982 = vmatpush1.msra.mxu0 %v8711_v29  ;;  %2053 = vmatpush1.msra.mxu1 %v8712_v31  ;;  %v8766_v29 = vld [vmem:[#allocation123_spill] sm:$0xff]  ;;  %v8767_v31 = vld [vmem:[#allocation124_spill] sm:$0xff] }
 0x41f   :  { %1983 = vmatprep.subr.mxu0 %v8713_v33  ;;  %2054 = vmatprep.subr.mxu1 %v8714_v35  ;;  %v8768_v33 = vld [vmem:[#allocation125_spill] sm:$0xff]  ;;  %v8769_v35 = vld [vmem:[#allocation126_spill] sm:$0xff] }
 0x420   :  { %1984 = vmatpush1.msra.mxu0 %v8715_v36  ;;  %2055 = vmatpush1.msra.mxu1 %v8716_v39  ;;  %v8770_v36 = vld [vmem:[#allocation127_spill] sm:$0xff]  ;;  %v8771_v39 = vld [vmem:[#allocation128_spill] sm:$0xff] }
 0x421   :  { %1985 = vmatprep.subr.mxu0 %v8717_v40  ;;  %2056 = vmatprep.subr.mxu1 %v8718_v41  ;;  %v8772_v40 = vld [vmem:[#allocation129_spill] sm:$0xff]  ;;  %v8773_v41 = vld [vmem:[#allocation130_spill] sm:$0xff] }
 0x422   :  { %1986 = vmatpush1.msra.mxu0 %v8719_v42  ;;  %2057 = vmatpush1.msra.mxu1 %v8720_v46  ;;  %v8774_v42 = vld [vmem:[#allocation131_spill] sm:$0xff]  ;;  %v8775_v46 = vld [vmem:[#allocation132_spill] sm:$0xff] }
 0x423   :  { %1987 = vmatprep.subr.mxu0 %v8721_v47  ;;  %2058 = vmatprep.subr.mxu1 %v8722_v49  ;;  %v8776_v47 = vld [vmem:[#allocation133_spill] sm:$0xff]  ;;  %v8777_v49 = vld [vmem:[#allocation134_spill] sm:$0xff] }
 0x424   :  { %1988 = vmatpush1.msra.mxu0 %v8723_v50  ;;  %2059 = vmatpush1.msra.mxu1 %v8724_v26  ;;  %v8778_v50 = vld [vmem:[#allocation135_spill] sm:$0xff]  ;;  %v8779_v26 = vld [vmem:[#allocation136_spill] sm:$0xff] }
 0x425   :  { %1989 = vmatprep.subr.mxu0 %v8725_v53  ;;  %2060 = vmatprep.subr.mxu1 %v8726_v4  ;;  %v8780_v53 = vld [vmem:[#allocation137_spill] sm:$0xff]  ;;  %v8781_v4 = vld [vmem:[#allocation138_spill] sm:$0xff] }
 0x426   :  { %1990 = vmatpush1.msra.mxu0 %v8727_v1  ;;  %2061 = vmatpush1.msra.mxu1 %v8728_v61  ;;  %v8782_v1 = vld [vmem:[#allocation139_spill] sm:$0xff]  ;;  %v8783_v61 = vld [vmem:[#allocation140_spill] sm:$0xff] }
 0x427   :  { %1991 = vmatprep.subr.mxu0 %v8729_v63  ;;  %2062 = vmatprep.subr.mxu1 %v8730_v3  ;;  %v8784_v63 = vld [vmem:[#allocation141_spill] sm:$0xff]  ;;  %v8785_v3 = vld [vmem:[#allocation142_spill] sm:$0xff] }
 0x428   :  { %1992 = vmatpush1.msra.mxu0 %v8731_v6  ;;  %2063 = vmatpush1.msra.mxu1 %v8732_v2  ;;  %v8786_v6 = vld [vmem:[#allocation143_spill] sm:$0xff]  ;;  %v8787_v2 = vld [vmem:[#allocation144_spill] sm:$0xff] }
 0x429   :  { %1993 = vmatprep.subr.mxu0 %v8733_v22  ;;  %2064 = vmatprep.subr.mxu1 %v8734_v7  ;;  %v8788_v22 = vld [vmem:[#allocation145_spill] sm:$0xff]  ;;  %v8789_v7 = vld [vmem:[#allocation146_spill] sm:$0xff] }
 0x42a   :  { %1994 = vmatpush1.msra.mxu0 %v8735_v30  ;;  %2065 = vmatpush1.msra.mxu1 %v8736_v16  ;;  %v8790_v30 = vld [vmem:[#allocation147_spill] sm:$0xff]  ;;  %v8791_v16 = vld [vmem:[#allocation148_spill] sm:$0xff] }
 0x42b   :  { %1995 = vmatprep.subr.mxu0 %v8737_v11  ;;  %2066 = vmatprep.subr.mxu1 %v8738_v10  ;;  %v8792_v11 = vld [vmem:[#allocation149_spill] sm:$0xff]  ;;  %v8793_v10 = vld [vmem:[#allocation150_spill] sm:$0xff] }
 0x42c   :  { %1996 = vmatpush1.msra.mxu0 %v8739_v48  ;;  %2067 = vmatpush1.msra.mxu1 %v8740_v0  ;;  %v8794_v48 = vld [vmem:[#allocation151_spill] sm:$0xff]  ;;  %v8795_v0 = vld [vmem:[#allocation152_spill] sm:$0xff] }
 0x42d   :  { %1997 = vmatprep.subr.mxu0 %v8741_v14  ;;  %2068 = vmatprep.subr.mxu1 %v8742_v18  ;;  %v8796_v14 = vld [vmem:[#allocation153_spill] sm:$0xff]  ;;  %v8797_v18 = vld [vmem:[#allocation154_spill] sm:$0xff] }
 0x42e   :  { %1998 = vmatpush1.msra.mxu0 %v8743_v45  ;;  %2069 = vmatpush1.msra.mxu1 %v8744_v37  ;;  %v8798_v45 = vld [vmem:[#allocation155_spill] sm:$0xff]  ;;  %v8799_v37 = vld [vmem:[#allocation156_spill] sm:$0xff] }
 0x42f   :  { %1999 = vmatprep.subr.mxu0 %v8745_v38  ;;  %2070 = vmatprep.subr.mxu1 %v8746_v43  ;;  %v8800_v38 = vld [vmem:[#allocation157_spill] sm:$0xff]  ;;  %v8801_v43 = vld [vmem:[#allocation158_spill] sm:$0xff] }
 0x430   :  { %2000 = vmatpush1.msra.mxu0 %v8747_v51  ;;  %2033 = vmatprep.mubr.f32.mxu0 %v8684_v34  ;;  %v8802_v51 = vld [vmem:[#allocation159_spill] sm:$0xff] }
 0x431   :  { %2071 = vmatpush1.msra.mxu1 %v8748_v25  ;;  %2104 = vmatprep.mubr.f32.mxu1 %v8684_v34  ;;  %v8803_v25 = vld [vmem:[#allocation160_spill] sm:$0xff] }
 0x432   :  { %2034 = vmatmul.mubr.f32.vlgmr.msra.gmra.mxu0 %v6419_v62  ;;  %2105 = vmatmul.mubr.f32.vlgmr.msra.gmra.mxu1 %v6419_v62  ;;  %v8759_v62 = vld [vmem:[#allocation116_spill] sm:$0xff] }
 0x433   :  { %2148 = vmatprep.subr.mxu0 %v8749_v52  ;;  %2219 = vmatprep.subr.mxu1 %v8750_v44  ;;  %v8804_v52 = vld [vmem:[#allocation161_spill] sm:$0xff]  ;;  %v8805_v44 = vld [vmem:[#allocation162_spill] sm:$0xff] }
 0x434   :  { %2149 = vmatpush1.msra.mxu0 %v8751_v57  ;;  %2220 = vmatpush1.msra.mxu1 %v8752_v8  ;;  %v8806_v57 = vld [vmem:[#allocation163_spill] sm:$0xff]  ;;  %v8807_v8 = vld [vmem:[#allocation164_spill] sm:$0xff] }
 0x435   :  { %2150 = vmatprep.subr.mxu0 %v8753_v60  ;;  %2221 = vmatprep.subr.mxu1 %v8754_v55  ;;  %v8808_v60 = vld [vmem:[#allocation166_spill] sm:$0xff]  ;;  %v8809_v55 = vld [vmem:[#allocation167_spill] sm:$0xff] }
 0x436   :  { %2151 = vmatpush1.msra.mxu0 %v8755_v9  ;;  %2222 = vmatpush1.msra.mxu1 %v8756_v59  ;;  %v8810_v9 = vld [vmem:[#allocation168_spill] sm:$0xff]  ;;  %v8811_v59 = vld [vmem:[#allocation169_spill] sm:$0xff] }
 0x437   :  { %2152 = vmatprep.subr.mxu0 %v8757_v13  ;;  %2223 = vmatprep.subr.mxu1 %v8758_v15  ;;  %v8812_v13 = vld [vmem:[#allocation170_spill] sm:$0xff]  ;;  %v6555_v15 = vld [vmem:[#allocation7 + $0x1e8] sm:$0xff] }
 0x438   :  { %2153 = vmatpush1.msra.mxu0 %v8759_v62  ;;  %2224 = vmatpush1.msra.mxu1 %v8760_v17  ;;  %v6558_v62 = vld [vmem:[#allocation7 + $0x1f8] sm:$0xff] }
 0x439   :  { %2154 = vmatprep.subr.mxu0 %v8761_v19  ;;  %2225 = vmatprep.subr.mxu1 %v8762_v20 }
 0x43a   :  { %2155 = vmatpush1.msra.mxu0 %v8763_v23  ;;  %2226 = vmatpush1.msra.mxu1 %v8764_v24  ;;  %v8813_v23 = vld [vmem:[#allocation165_spill] sm:$0xff] }
 0x43b   :  { %2156 = vmatprep.subr.mxu0 %v8765_v28  ;;  %2227 = vmatprep.subr.mxu1 %v8766_v29  ;;  %v8814_v29 = vld [vmem:[#allocation15_spill] sm:$0xff] }
 0x43c   :  { %2157 = vmatpush1.msra.mxu0 %v8767_v31  ;;  %2228 = vmatpush1.msra.mxu1 %v8768_v33 }
 0x43d   :  { %2158 = vmatprep.subr.mxu0 %v8769_v35  ;;  %2229 = vmatprep.subr.mxu1 %v8770_v36 }
 0x43e   :  { %2159 = vmatpush1.msra.mxu0 %v8771_v39  ;;  %2230 = vmatpush1.msra.mxu1 %v8772_v40 }
 0x43f   :  { %2160 = vmatprep.subr.mxu0 %v8773_v41  ;;  %2231 = vmatprep.subr.mxu1 %v8774_v42 }
 0x440   :  { %2161 = vmatpush1.msra.mxu0 %v8775_v46  ;;  %2232 = vmatpush1.msra.mxu1 %v8776_v47 }
 0x441   :  { %2162 = vmatprep.subr.mxu0 %v8777_v49  ;;  %2233 = vmatprep.subr.mxu1 %v8778_v50 }
 0x442   :  { %2163 = vmatpush1.msra.mxu0 %v8779_v26  ;;  %2234 = vmatpush1.msra.mxu1 %v8780_v53 }
 0x443   :  { %2164 = vmatprep.subr.mxu0 %v8781_v4  ;;  %2235 = vmatprep.subr.mxu1 %v8782_v1 }
 0x444   :  { %2165 = vmatpush1.msra.mxu0 %v8783_v61  ;;  %2236 = vmatpush1.msra.mxu1 %v8784_v63 }
 0x445   :  { %2166 = vmatprep.subr.mxu0 %v8785_v3  ;;  %2237 = vmatprep.subr.mxu1 %v8786_v6 }
 0x446   :  { %2167 = vmatpush1.msra.mxu0 %v8787_v2  ;;  %2238 = vmatpush1.msra.mxu1 %v8788_v22 }
 0x447   :  { %2168 = vmatprep.subr.mxu0 %v8789_v7  ;;  %2239 = vmatprep.subr.mxu1 %v8790_v30 }
 0x448   :  { %2169 = vmatpush1.msra.mxu0 %v8791_v16  ;;  %2240 = vmatpush1.msra.mxu1 %v8792_v11 }
 0x449   :  { %2170 = vmatprep.subr.mxu0 %v8793_v10  ;;  %2241 = vmatprep.subr.mxu1 %v8794_v48 }
 0x44a   :  { %2171 = vmatpush1.msra.mxu0 %v8795_v0  ;;  %2242 = vmatpush1.msra.mxu1 %v8796_v14 }
 0x44b   :  { %2172 = vmatprep.subr.mxu0 %v8797_v18  ;;  %2243 = vmatprep.subr.mxu1 %v8798_v45 }
 0x44c   :  { %2173 = vmatpush1.msra.mxu0 %v8799_v37  ;;  %2244 = vmatpush1.msra.mxu1 %v8800_v38 }
 0x44d   :  { %2174 = vmatprep.subr.mxu0 %v8801_v43  ;;  %2245 = vmatprep.subr.mxu1 %v8802_v51 }
 0x44e   :  { %2175 = vmatpush1.msra.mxu0 %v8803_v25  ;;  %2246 = vmatpush1.msra.mxu1 %v8804_v52 }
 0x44f   :  { %2176 = vmatprep.subr.mxu0 %v8805_v44  ;;  %2247 = vmatprep.subr.mxu1 %v8806_v57 }
 0x450   :  { %2177 = vmatpush1.msra.mxu0 %v8807_v8  ;;  %2248 = vmatpush1.msra.mxu1 %v8808_v60  ;;  %v6572_v60 = vld [vmem:[#allocation7 + $0x1e0] sm:$0xff] }
 0x451   :  { %2178 = vmatprep.subr.mxu0 %v8809_v55  ;;  %2249 = vmatprep.subr.mxu1 %v8810_v9  ;;  %v6575_v55 = vld [vmem:[#allocation7 + $0x1f0] sm:$0xff]  ;;  %v6578_v9 = vld [vmem:[#allocation7 + $0x1c8] sm:$0xff] }
 0x452   :  { %2179 = vmatpush1.msra.mxu0 %v8811_v59  ;;  %2212 = vmatprep.mubr.f32.mxu0 %v8684_v34  ;;  %v6581_v59 = vld [vmem:[#allocation7 + $0x1d8] sm:$0xff] }
 0x453   :  { %2250 = vmatpush1.msra.mxu1 %v8812_v13  ;;  %2283 = vmatprep.mubr.f32.mxu1 %v8684_v34 }
 0x454   :  { %2293 = vmatprep.subr.mxu0 %v6555_v15  ;;  %2364 = vmatprep.subr.mxu1 %v6558_v62 }
 0x4ac   :  { %v1730_v17 = vpop.f32.mrf.mxu0  ;;  %v1801_v19 = vpop.f32.mrf.mxu1 }
 0x4ad   :  { %v1731_v24 = vadd.f32 %v1730_v17, %v8813_v23  ;;  %v1802_v42 = vadd.f32 %v1801_v19, %v8502_v27  ;;  %v6585_v17 = vld [vmem:[#allocation7 + $0x1c0] sm:$0xff]  ;;  %v6588_v19 = vld [vmem:[#allocation7 + $0x1d0] sm:$0xff] }
 0x4ae   :  { %v1732_v20 = vpop.f32.mrf.mxu0  ;;  %v1803_v35 = vpop.f32.mrf.mxu1 }
 0x4af   :  { %v1733_v31 = vadd.f32 %v1732_v20, %v8814_v29  ;;  %v1804_v50 = vadd.f32 %v1803_v35, %v8503_v32  ;;  %v6591_v20 = vld [vmem:[#allocation7 + $0x1a8] sm:$0xff]  ;;  %v6606_v35 = vld [vmem:[#allocation7 + $0x198] sm:$0xff] }
 0x4d1   :  { %v1875_v28 = vpop.f32.mrf.mxu0  ;;  %v1946_v41 = vpop.f32.mrf.mxu1 }
 0x4d2   :  { %v1876_v33 = vadd.f32 %v1875_v28, %v1731_v24  ;;  %v1947_v47 = vadd.f32 %v1946_v41, %v1802_v42  ;;  %v6594_v24 = vld [vmem:[#allocation7 + $0x1b8] sm:$0xff]  ;;  %v6597_v28 = vld [vmem:[#allocation7 + $0x1a0] sm:$0xff]  ;;  %v6615_v42 = vld [vmem:[#allocation7 + $0x168] sm:$0xff] }
 0x4d3   :  { %v1877_v36 = vpop.f32.mrf.mxu0  ;;  %v1948_v49 = vpop.f32.mrf.mxu1 }
 0x4d4   :  { %v1951_v39 = vmul.f32 0.5, %v1876_v33  ;;  %v1878_v40 = vadd.f32 %v1877_v36, %v1733_v31  ;;  %v1949_v26 = vadd.f32 %v1948_v49, %v1804_v50  ;;  %v6600_v31 = vld [vmem:[#allocation7 + $0x1b0] sm:$0xff]  ;;  %v6603_v33 = vld [vmem:[#allocation7 + $0x188] sm:$0xff]  ;;  %v6621_v49 = vld [vmem:[#allocation7 + $0x160] sm:$0xff] }
 0x4d5   :  { %v6624_v50 = vld [vmem:[#allocation7 + $0x170] sm:$0xff] }
 0x4d6   :  { %4000 = vtanh.f32 %v1951_v39  ;;  %v1955_v46 = vmul.f32 0.5, %v1878_v40  ;;  %v1960_v53 = vmul.f32 0.5, %v1949_v26  ;;  %v6609_v39 = vld [vmem:[#allocation7 + $0x180] sm:$0xff]  ;;  %v6612_v40 = vld [vmem:[#allocation7 + $0x190] sm:$0xff] }
 0x4d8   :  { %4002 = vtanh.f32 %v1955_v46  ;;  %v6618_v46 = vld [vmem:[#allocation7 + $0x178] sm:$0xff] }
 0x4d9   :  { %4004 = vtanh.f32 %v1947_v47 }
 0x4da   :  { %4006 = vtanh.f32 %v1960_v53  ;;  %v6627_v53 = vld [vmem:[#allocation7 + $0x148] sm:$0xff] }
 0x4e3   :  { %v4001_v4 = vpop.eup %4000 }
 0x4e4   :  { %v1953_v1 = vmul.f32 0.5, %v4001_v4  ;;  %v6630_v4 = vld [vmem:[#allocation7 + $0x158] sm:$0xff] }
 0x4e5   :  { %v4003_v61 = vpop.eup %4002 }
 0x4e6   :  { %v1954_v63 = vadd.f32 0.5, %v1953_v1  ;;  %v1957_v3 = vmul.f32 0.5, %v4003_v61  ;;  %v4005_v2 = vpop.eup %4004 }
 0x4e7   :  { %v4007_v11 = vpop.eup %4006 }
 0x4e8   :  { %v1958_v6 = vadd.f32 0.5, %v1957_v3  ;;  %v1965_v7 = vmul.f32 %v4005_v2, %v1954_v63  ;;  %v1962_v45 = vmul.f32 0.5, %v4007_v11  ;;  %v6633_v63 = vld [vmem:[#allocation7 + $0x140] sm:$0xff]  ;;  %v6636_v3 = vld [vmem:[#allocation7 + $0x150] sm:$0xff]  ;;  %v6642_v2 = vld [vmem:[#allocation7 + $0x138] sm:$0xff] }
 0x4e9   :  { %v6649_v11 = vld [vmem:[#allocation7 + $0x130] sm:$0xff] }
 0x4ea   :  { %v1964_v22 = vmul.f32 %v1958_v6, %v6342_v12  ;;  %v1963_v51 = vadd.f32 0.5, %v1962_v45  ;;  %v6639_v6 = vld [vmem:[#allocation7 + $0x128] sm:$0xff]  ;;  %v6661_v45 = vld [vmem:[#allocation7 + $0x110] sm:$0xff] }
 0x4ec   :  { %v6566_v30 = vadd.f32 %v1965_v7, %v1964_v22  ;;  %v2141_v7 = vrot.slane %v6382_v21, 7  ;;  %v6658_v21 = vld [vmem:[#allocation7 + $0x100] sm:$0xff] }
 0x4ee   :  { %4008 = vtanh.f32 %v6566_v30 }
 0x4f2   :  { %v2035_v16 = vpop.f32.mrf.mxu0  ;;  %v2106_v48 = vpop.f32.mrf.mxu1 }
 0x4f3   :  { %v2115_v10 = vrot.slane %v2035_v16, 4  ;;  %v2117_v38 = vrot.slane %v2106_v48, 4  ;;  %v6646_v16 = vld [vmem:[#allocation7 + $0x120] sm:$0xff]  ;;  %v6652_v48 = vld [vmem:[#allocation7 + $0x108] sm:$0xff] }
 0x4f4   :  { %v2037_v0 = vpop.f32.mrf.mxu0  ;;  %v2108_v25 = vpop.f32.mrf.mxu1 }
 0x4f5   :  { %v2123_v14 = vadd.f32 %v2115_v10, %v5094_v58  ;;  %v2116_v18 = vrot.slane %v2037_v0, 4  ;;  %v2125_v44 = vadd.f32 %v2117_v38, %v5104_v54  ;;  %v2118_v8 = vrot.slane %v2108_v25, 4  ;;  %v6655_v0 = vld [vmem:[#allocation7 + $0x118] sm:$0xff]  ;;  %v6678_v25 = vld [vmem:[#allocation7 + $0xc8] sm:$0xff] }
 0x4f6   :  { %v6667_v38 = vld [vmem:[#allocation7 + $0xf8] sm:$0xff] }
 0x4f7   :  { %v2127_v37 = vmul.f32 0.5, %v2123_v14  ;;  %v2124_v43 = vadd.f32 %v2116_v18, %v5099_v56  ;;  %v2126_v13 = vadd.f32 %v2118_v8, %v5106_v5  ;;  %v6691_v8 = vld [vmem:[#allocation7 + $0xa8] sm:$0xff] }
 0x4f8   :  { %8817 = vst [vmem:[#allocation18_spill] sm:$0xff] %v6691_v8 }
 0x4f9   :  { %4010 = vtanh.f32 %v2127_v37  ;;  %v2131_v12 = vmul.f32 0.5, %v2124_v43  ;;  %v2136_v36 = vmul.f32 0.5, %v2126_v13  ;;  %v6664_v37 = vld [vmem:[#allocation7 + $0xe8] sm:$0xff]  ;;  %v6694_v13 = vld [vmem:[#allocation7 + $0xb8] sm:$0xff] }
 0x4fa   :  { %8818 = vst [vmem:[#allocation19_spill] sm:$0xff] %v6694_v13 }
 0x4fb   :  { %v4009_v52 = vpop.eup %4008  ;;  %4012 = vtanh.f32 %v2131_v12  ;;  %v6672_v12 = vld [vmem:[#allocation7 + $0xe0] sm:$0xff] }
 0x4fc   :  { %v1968_v57 = vmul.f32 %v4009_v52, %v1963_v51  ;;  %4014 = vtanh.f32 %v2125_v44  ;;  %v6675_v51 = vld [vmem:[#allocation7 + $0xf0] sm:$0xff]  ;;  %v6681_v52 = vld [vmem:[#allocation7 + $0xd8] sm:$0xff]  ;;  %v6685_v44 = vld [vmem:[#allocation7 + $0xc0] sm:$0xff] }
 0x4fd   :  { %4016 = vtanh.f32 %v2136_v36  ;;  %8815 = vst [vmem:[#allocation16_spill] sm:$0xff] %v6685_v44  ;;  %v6697_v36 = vld [vmem:[#allocation7 + $0xa0] sm:$0xff] }
 0x4fe   :  { %2213 = vmatmul.mubr.f32.vlgmr.msra.gmra.mxu0 %v1968_v57  ;;  %2284 = vmatmul.mubr.f32.vlgmr.msra.gmra.mxu1 %v1968_v57  ;;  %v6688_v57 = vld [vmem:[#allocation7 + $0xd0] sm:$0xff]  ;;  %8819 = vst [vmem:[#allocation20_spill] sm:$0xff] %v6697_v36 }
 0x4ff   :  { %2294 = vmatpush1.msra.mxu0 %v6572_v60  ;;  %2365 = vmatpush1.msra.mxu1 %v6575_v55  ;;  %8816 = vst [vmem:[#allocation17_spill] sm:$0xff] %v6688_v57 }
 0x500   :  { %2295 = vmatprep.subr.mxu0 %v6578_v9  ;;  %2366 = vmatprep.subr.mxu1 %v6581_v59 }
 0x501   :  { %2296 = vmatpush1.msra.mxu0 %v6585_v17  ;;  %2367 = vmatpush1.msra.mxu1 %v6588_v19 }
 0x502   :  { %2297 = vmatprep.subr.mxu0 %v6591_v20  ;;  %2368 = vmatprep.subr.mxu1 %v6594_v24 }
 0x503   :  { %2298 = vmatpush1.msra.mxu0 %v6597_v28  ;;  %2369 = vmatpush1.msra.mxu1 %v6600_v31 }
 0x504   :  { %2299 = vmatprep.subr.mxu0 %v6603_v33  ;;  %2370 = vmatprep.subr.mxu1 %v6606_v35 }
 0x505   :  { %2300 = vmatpush1.msra.mxu0 %v6609_v39  ;;  %2371 = vmatpush1.msra.mxu1 %v6612_v40 }
 0x506   :  { %v4011_v41 = vpop.eup %4010  ;;  %2301 = vmatprep.subr.mxu0 %v6615_v42  ;;  %2372 = vmatprep.subr.mxu1 %v6618_v46 }
 0x507   :  { %v2129_v47 = vmul.f32 0.5, %v4011_v41  ;;  %2302 = vmatpush1.msra.mxu0 %v6621_v49  ;;  %2373 = vmatpush1.msra.mxu1 %v6624_v50  ;;  %v6700_v41 = vld [vmem:[#allocation7 + $0xb0] sm:$0xff] }
 0x508   :  { %v4013_v26 = vpop.eup %4012  ;;  %2303 = vmatprep.subr.mxu0 %v6627_v53  ;;  %2374 = vmatprep.subr.mxu1 %v6630_v4  ;;  %8820 = vst [vmem:[#allocation21_spill] sm:$0xff] %v6700_v41 }
 0x509   :  { %v2130_v1 = vadd.f32 0.5, %v2129_v47  ;;  %v2133_v61 = vmul.f32 0.5, %v4013_v26  ;;  %2304 = vmatpush1.msra.mxu0 %v6633_v63  ;;  %2375 = vmatpush1.msra.mxu1 %v6636_v3  ;;  %v4015_v10 = vpop.eup %4014  ;;  %v6703_v47 = vld [vmem:[#allocation7 + $0x88] sm:$0xff]  ;;  %v6706_v26 = vld [vmem:[#allocation7 + $0x98] sm:$0xff] }
 0x50a   :  { %2305 = vmatprep.subr.mxu0 %v6639_v6  ;;  %2376 = vmatprep.subr.mxu1 %v6642_v2  ;;  %8821 = vst [vmem:[#allocation22_spill] sm:$0xff] %v6703_v47  ;;  %8822 = vst [vmem:[#allocation23_spill] sm:$0xff] %v6706_v26 }
 0x50b   :  { %v2134_v22 = vadd.f32 0.5, %v2133_v61  ;;  %2306 = vmatpush1.msra.mxu0 %v6646_v16  ;;  %2377 = vmatpush1.msra.mxu1 %v6649_v11  ;;  %v2144_v18 = vmul.f32 %v4015_v10, %v2130_v1  ;;  %v6709_v1 = vld [vmem:[#allocation7 + $0x80] sm:$0xff]  ;;  %v6712_v61 = vld [vmem:[#allocation7 + $0x90] sm:$0xff]  ;;  %v6718_v10 = vld [vmem:[#allocation7 + $0x78] sm:$0xff] }
 0x50c   :  { %2307 = vmatprep.subr.mxu0 %v6652_v48  ;;  %2378 = vmatprep.subr.mxu1 %v6655_v0  ;;  %8823 = vst [vmem:[#allocation24_spill] sm:$0xff] %v6709_v1  ;;  %8824 = vst [vmem:[#allocation25_spill] sm:$0xff] %v6712_v61 }
 0x50d   :  { %v2143_v14 = vmul.f32 %v2141_v7, %v2134_v22  ;;  %2308 = vmatpush1.msra.mxu0 %v6658_v21  ;;  %2379 = vmatpush1.msra.mxu1 %v6661_v45  ;;  %v4017_v22 = vpop.eup %4016  ;;  %v6715_v7 = vld [vmem:[#allocation7 + $0x68] sm:$0xff]  ;;  %8826 = vst [vmem:[#allocation27_spill] sm:$0xff] %v6718_v10 }
 0x50e   :  { %2309 = vmatprep.subr.mxu0 %v6664_v37  ;;  %2380 = vmatprep.subr.mxu1 %v6667_v38  ;;  %8825 = vst [vmem:[#allocation26_spill] sm:$0xff] %v6715_v7 }
 0x50f   :  { %v6670_v43 = vadd.f32 %v2144_v18, %v2143_v14  ;;  %2310 = vmatpush1.msra.mxu0 %v6672_v12  ;;  %2381 = vmatpush1.msra.mxu1 %v6675_v51  ;;  %v6721_v14 = vld [vmem:[#allocation7 + $0x60] sm:$0xff]  ;;  %v6724_v18 = vld [vmem:[#allocation7 + $0x70] sm:$0xff] }
 0x510   :  { %2311 = vmatprep.subr.mxu0 %v6678_v25  ;;  %2382 = vmatprep.subr.mxu1 %v6681_v52  ;;  %8827 = vst [vmem:[#allocation28_spill] sm:$0xff] %v6721_v14  ;;  %8828 = vst [vmem:[#allocation29_spill] sm:$0xff] %v6724_v18 }
 0x511   :  { %4018 = vtanh.f32 %v6670_v43  ;;  %2312 = vmatpush1.msra.mxu0 %v6685_v44  ;;  %2383 = vmatpush1.msra.mxu1 %v6688_v57 }
 0x512   :  { %2313 = vmatprep.subr.mxu0 %v6691_v8  ;;  %2384 = vmatprep.subr.mxu1 %v6694_v13 }
 0x513   :  { %2314 = vmatpush1.msra.mxu0 %v6697_v36  ;;  %2385 = vmatpush1.msra.mxu1 %v6700_v41 }
 0x514   :  { %2315 = vmatprep.subr.mxu0 %v6703_v47  ;;  %2386 = vmatprep.subr.mxu1 %v6706_v26  ;;  %v6733_v26 = vld [vmem:[#allocation7 + $0x40] sm:$0xff] }
 0x515   :  { %2316 = vmatpush1.msra.mxu0 %v6709_v1  ;;  %2387 = vmatpush1.msra.mxu1 %v6712_v61  ;;  %v6727_v1 = vld [vmem:[#allocation7 + $0x48] sm:$0xff]  ;;  %v6730_v61 = vld [vmem:[#allocation7 + $0x58] sm:$0xff]  ;;  %8831 = vst [vmem:[#allocation32_spill] sm:$0xff] %v6733_v26 }
 0x516   :  { %2317 = vmatprep.subr.mxu0 %v6715_v7  ;;  %2388 = vmatprep.subr.mxu1 %v6718_v10  ;;  %8829 = vst [vmem:[#allocation30_spill] sm:$0xff] %v6727_v1  ;;  %8830 = vst [vmem:[#allocation31_spill] sm:$0xff] %v6730_v61  ;;  %v2138_v7 = vmul.f32 0.5, %v4017_v22  ;;  %v6736_v10 = vld [vmem:[#allocation7 + $0x50] sm:$0xff] }
 0x517   :  { %2318 = vmatpush1.msra.mxu0 %v6721_v14  ;;  %2389 = vmatpush1.msra.mxu1 %v6724_v18  ;;  %8832 = vst [vmem:[#allocation33_spill] sm:$0xff] %v6736_v10  ;;  %v6739_v14 = vld [vmem:[#allocation7 + $0x28] sm:$0xff]  ;;  %v6742_v18 = vld [vmem:[#allocation7 + $0x38] sm:$0xff]  ;;  %v6748_v22 = vld [vmem:[#allocation7 + $0x30] sm:$0xff] }
 0x518   :  { %2319 = vmatprep.subr.mxu0 %v6727_v1  ;;  %2390 = vmatprep.subr.mxu1 %v6730_v61  ;;  %8833 = vst [vmem:[#allocation34_spill] sm:$0xff] %v6739_v14  ;;  %8834 = vst [vmem:[#allocation35_spill] sm:$0xff] %v6742_v18  ;;  %v6745_v1 = vld [vmem:[#allocation7 + $0x20] sm:$0xff] }
 0x519   :  { %2320 = vmatpush1.msra.mxu0 %v6733_v26  ;;  %2391 = vmatpush1.msra.mxu1 %v6736_v10  ;;  %8835 = vst [vmem:[#allocation36_spill] sm:$0xff] %v6745_v1  ;;  %8836 = vst [vmem:[#allocation37_spill] sm:$0xff] %v6748_v22  ;;  %v6751_v26 = vld [vmem:[#allocation7 + $0x8] sm:$0xff]  ;;  %v6754_v10 = vld [vmem:[#allocation7 + $0x18] sm:$0xff] }
 0x51a   :  { %2321 = vmatprep.subr.mxu0 %v6739_v14  ;;  %2392 = vmatprep.subr.mxu1 %v6742_v18  ;;  %8837 = vst [vmem:[#allocation38_spill] sm:$0xff] %v6751_v26  ;;  %8838 = vst [vmem:[#allocation39_spill] sm:$0xff] %v6754_v10  ;;  %v2139_v14 = vadd.f32 0.5, %v2138_v7  ;;  %v6757_v61 = vld [vmem:[#allocation7] sm:$0xff]  ;;  %v6760_v18 = vld [vmem:[#allocation7 + $0x10] sm:$0xff] }
 0x51b   :  { %2322 = vmatpush1.msra.mxu0 %v6745_v1  ;;  %2393 = vmatpush1.msra.mxu1 %v6748_v22  ;;  %8839 = vst [vmem:[#allocation40_spill] sm:$0xff] %v6757_v61  ;;  %8840 = vst [vmem:[#allocation41_spill] sm:$0xff] %v6760_v18  ;;  %v6765_v22 = vld [vmem:[#allocation5 + $0x1e8] sm:$0xff] }
 0x51c   :  { %2323 = vmatprep.subr.mxu0 %v6751_v26  ;;  %2394 = vmatprep.subr.mxu1 %v6754_v10  ;;  %8841 = vst [vmem:[#allocation42_spill] sm:$0xff] %v6765_v22  ;;  %v6768_v26 = vld [vmem:[#allocation5 + $0x1f8] sm:$0xff] }
 0x51d   :  { %2324 = vmatpush1.msra.mxu0 %v6757_v61  ;;  %2395 = vmatpush1.msra.mxu1 %v6760_v18  ;;  %8842 = vst [vmem:[#allocation43_spill] sm:$0xff] %v6768_v26  ;;  %v6775_v18 = vld [vmem:[#allocation5 + $0x1e0] sm:$0xff]  ;;  %v6778_v61 = vld [vmem:[#allocation5 + $0x1f0] sm:$0xff] }
 0x51e   :  { %v4019_v1 = vpop.eup %4018  ;;  %2357 = vmatprep.mubr.f32.mxu0 %v8684_v34  ;;  %2428 = vmatprep.mubr.f32.mxu1 %v8684_v34  ;;  %8843 = vst [vmem:[#allocation44_spill] sm:$0xff] %v6775_v18  ;;  %8844 = vst [vmem:[#allocation45_spill] sm:$0xff] %v6778_v61 }
 0x51f   :  { %2453 = vmatprep.subr.mxu0 %v6765_v22  ;;  %2524 = vmatprep.subr.mxu1 %v6768_v26  ;;  %v2147_v7 = vmul.f32 %v4019_v1, %v2139_v14  ;;  %v6781_v22 = vld [vmem:[#allocation5 + $0x1c8] sm:$0xff]  ;;  %v6784_v26 = vld [vmem:[#allocation5 + $0x1d8] sm:$0xff]  ;;  %v6787_v1 = vld [vmem:[#allocation5 + $0x1c0] sm:$0xff] }
 0x520   :  { %8845 = vst [vmem:[#allocation46_spill] sm:$0xff] %v6781_v22  ;;  %8846 = vst [vmem:[#allocation47_spill] sm:$0xff] %v6784_v26  ;;  %v6790_v14 = vld [vmem:[#allocation5 + $0x1d0] sm:$0xff] }
 0x521   :  { %v6771_v10 = vrot.slane %v2147_v7, 4  ;;  %8847 = vst [vmem:[#allocation48_spill] sm:$0xff] %v6787_v1  ;;  %8848 = vst [vmem:[#allocation49_spill] sm:$0xff] %v6790_v14  ;;  %v6793_v7 = vld [vmem:[#allocation5 + $0x1a8] sm:$0xff] }
 0x522   :  { %8849 = vst [vmem:[#allocation50_spill] sm:$0xff] %v6793_v7 }
 0x523   :  { %2358 = vmatmul.mubr.f32.vlgmr.msra.gmra.mxu0 %v6771_v10  ;;  %2429 = vmatmul.mubr.f32.vlgmr.msra.gmra.mxu1 %v6771_v10 }
 0x524   :  { %2454 = vmatpush1.msra.mxu0 %v6775_v18  ;;  %2525 = vmatpush1.msra.mxu1 %v6778_v61  ;;  %v6796_v61 = vld [vmem:[#allocation5 + $0x1b8] sm:$0xff] }
 0x525   :  { %2455 = vmatprep.subr.mxu0 %v6781_v22  ;;  %2526 = vmatprep.subr.mxu1 %v6784_v26  ;;  %8850 = vst [vmem:[#allocation51_spill] sm:$0xff] %v6796_v61  ;;  %v6799_v22 = vld [vmem:[#allocation5 + $0x1a0] sm:$0xff]  ;;  %v6802_v26 = vld [vmem:[#allocation5 + $0x1b0] sm:$0xff] }
 0x526   :  { %2456 = vmatpush1.msra.mxu0 %v6787_v1  ;;  %2527 = vmatpush1.msra.mxu1 %v6790_v14  ;;  %8851 = vst [vmem:[#allocation52_spill] sm:$0xff] %v6799_v22  ;;  %8852 = vst [vmem:[#allocation53_spill] sm:$0xff] %v6802_v26  ;;  %v6805_v1 = vld [vmem:[#allocation5 + $0x188] sm:$0xff]  ;;  %v6808_v14 = vld [vmem:[#allocation5 + $0x198] sm:$0xff] }
 0x527   :  { %2457 = vmatprep.subr.mxu0 %v6793_v7  ;;  %2528 = vmatprep.subr.mxu1 %v6796_v61  ;;  %8853 = vst [vmem:[#allocation54_spill] sm:$0xff] %v6805_v1  ;;  %8854 = vst [vmem:[#allocation55_spill] sm:$0xff] %v6808_v14  ;;  %v6811_v7 = vld [vmem:[#allocation5 + $0x180] sm:$0xff]  ;;  %v6814_v61 = vld [vmem:[#allocation5 + $0x190] sm:$0xff] }
 0x528   :  { %2458 = vmatpush1.msra.mxu0 %v6799_v22  ;;  %2529 = vmatpush1.msra.mxu1 %v6802_v26  ;;  %8855 = vst [vmem:[#allocation56_spill] sm:$0xff] %v6811_v7  ;;  %8856 = vst [vmem:[#allocation57_spill] sm:$0xff] %v6814_v61  ;;  %v6817_v22 = vld [vmem:[#allocation5 + $0x168] sm:$0xff]  ;;  %v6820_v26 = vld [vmem:[#allocation5 + $0x178] sm:$0xff] }
 0x529   :  { %2459 = vmatprep.subr.mxu0 %v6805_v1  ;;  %2530 = vmatprep.subr.mxu1 %v6808_v14  ;;  %8857 = vst [vmem:[#allocation58_spill] sm:$0xff] %v6817_v22  ;;  %8858 = vst [vmem:[#allocation59_spill] sm:$0xff] %v6820_v26  ;;  %v6823_v1 = vld [vmem:[#allocation5 + $0x160] sm:$0xff]  ;;  %v6826_v14 = vld [vmem:[#allocation5 + $0x170] sm:$0xff] }
 0x52a   :  { %2460 = vmatpush1.msra.mxu0 %v6811_v7  ;;  %2531 = vmatpush1.msra.mxu1 %v6814_v61  ;;  %8859 = vst [vmem:[#allocation60_spill] sm:$0xff] %v6823_v1  ;;  %8860 = vst [vmem:[#allocation61_spill] sm:$0xff] %v6826_v14  ;;  %v6829_v7 = vld [vmem:[#allocation5 + $0x148] sm:$0xff]  ;;  %v6832_v61 = vld [vmem:[#allocation5 + $0x158] sm:$0xff] }
 0x52b   :  { %2461 = vmatprep.subr.mxu0 %v6817_v22  ;;  %2532 = vmatprep.subr.mxu1 %v6820_v26  ;;  %8861 = vst [vmem:[#allocation62_spill] sm:$0xff] %v6829_v7  ;;  %8862 = vst [vmem:[#allocation63_spill] sm:$0xff] %v6832_v61  ;;  %v6835_v22 = vld [vmem:[#allocation5 + $0x140] sm:$0xff]  ;;  %v6838_v26 = vld [vmem:[#allocation5 + $0x150] sm:$0xff] }
 0x52c   :  { %2462 = vmatpush1.msra.mxu0 %v6823_v1  ;;  %2533 = vmatpush1.msra.mxu1 %v6826_v14  ;;  %8863 = vst [vmem:[#allocation64_spill] sm:$0xff] %v6835_v22  ;;  %8864 = vst [vmem:[#allocation65_spill] sm:$0xff] %v6838_v26  ;;  %v6841_v1 = vld [vmem:[#allocation5 + $0x128] sm:$0xff]  ;;  %v6844_v14 = vld [vmem:[#allocation5 + $0x138] sm:$0xff] }
 0x52d   :  { %2463 = vmatprep.subr.mxu0 %v6829_v7  ;;  %2534 = vmatprep.subr.mxu1 %v6832_v61  ;;  %8865 = vst [vmem:[#allocation66_spill] sm:$0xff] %v6841_v1  ;;  %8866 = vst [vmem:[#allocation67_spill] sm:$0xff] %v6844_v14  ;;  %v6847_v7 = vld [vmem:[#allocation5 + $0x120] sm:$0xff]  ;;  %v6850_v61 = vld [vmem:[#allocation5 + $0x130] sm:$0xff] }
 0x52e   :  { %2464 = vmatpush1.msra.mxu0 %v6835_v22  ;;  %2535 = vmatpush1.msra.mxu1 %v6838_v26  ;;  %8867 = vst [vmem:[#allocation68_spill] sm:$0xff] %v6847_v7  ;;  %8868 = vst [vmem:[#allocation69_spill] sm:$0xff] %v6850_v61  ;;  %v6853_v22 = vld [vmem:[#allocation5 + $0x108] sm:$0xff]  ;;  %v6856_v26 = vld [vmem:[#allocation5 + $0x118] sm:$0xff] }
 0x52f   :  { %2465 = vmatprep.subr.mxu0 %v6841_v1  ;;  %2536 = vmatprep.subr.mxu1 %v6844_v14  ;;  %8869 = vst [vmem:[#allocation70_spill] sm:$0xff] %v6853_v22  ;;  %8870 = vst [vmem:[#allocation71_spill] sm:$0xff] %v6856_v26  ;;  %v6859_v1 = vld [vmem:[#allocation5 + $0x100] sm:$0xff]  ;;  %v6862_v14 = vld [vmem:[#allocation5 + $0x110] sm:$0xff] }
 0x530   :  { %2466 = vmatpush1.msra.mxu0 %v6847_v7  ;;  %2537 = vmatpush1.msra.mxu1 %v6850_v61  ;;  %8871 = vst [vmem:[#allocation72_spill] sm:$0xff] %v6859_v1  ;;  %8872 = vst [vmem:[#allocation73_spill] sm:$0xff] %v6862_v14  ;;  %v6865_v7 = vld [vmem:[#allocation5 + $0xe8] sm:$0xff]  ;;  %v6868_v61 = vld [vmem:[#allocation5 + $0xf8] sm:$0xff] }
 0x531   :  { %2467 = vmatprep.subr.mxu0 %v6853_v22  ;;  %2538 = vmatprep.subr.mxu1 %v6856_v26  ;;  %8873 = vst [vmem:[#allocation74_spill] sm:$0xff] %v6865_v7  ;;  %8874 = vst [vmem:[#allocation75_spill] sm:$0xff] %v6868_v61  ;;  %v6871_v22 = vld [vmem:[#allocation5 + $0xe0] sm:$0xff]  ;;  %v6874_v26 = vld [vmem:[#allocation5 + $0xf0] sm:$0xff] }
 0x532   :  { %2468 = vmatpush1.msra.mxu0 %v6859_v1  ;;  %2539 = vmatpush1.msra.mxu1 %v6862_v14  ;;  %8875 = vst [vmem:[#allocation76_spill] sm:$0xff] %v6871_v22  ;;  %8876 = vst [vmem:[#allocation77_spill] sm:$0xff] %v6874_v26  ;;  %v6877_v1 = vld [vmem:[#allocation5 + $0xc8] sm:$0xff]  ;;  %v6880_v14 = vld [vmem:[#allocation5 + $0xd8] sm:$0xff] }
 0x533   :  { %2469 = vmatprep.subr.mxu0 %v6865_v7  ;;  %2540 = vmatprep.subr.mxu1 %v6868_v61  ;;  %8877 = vst [vmem:[#allocation78_spill] sm:$0xff] %v6877_v1  ;;  %8878 = vst [vmem:[#allocation79_spill] sm:$0xff] %v6880_v14  ;;  %v6883_v7 = vld [vmem:[#allocation5 + $0xc0] sm:$0xff]  ;;  %v6886_v61 = vld [vmem:[#allocation5 + $0xd0] sm:$0xff] }
 0x534   :  { %2470 = vmatpush1.msra.mxu0 %v6871_v22  ;;  %2541 = vmatpush1.msra.mxu1 %v6874_v26  ;;  %8879 = vst [vmem:[#allocation80_spill] sm:$0xff] %v6883_v7  ;;  %8880 = vst [vmem:[#allocation81_spill] sm:$0xff] %v6886_v61  ;;  %v6889_v22 = vld [vmem:[#allocation5 + $0xa8] sm:$0xff]  ;;  %v6892_v26 = vld [vmem:[#allocation5 + $0xb8] sm:$0xff] }
 0x535   :  { %2471 = vmatprep.subr.mxu0 %v6877_v1  ;;  %2542 = vmatprep.subr.mxu1 %v6880_v14  ;;  %8881 = vst [vmem:[#allocation82_spill] sm:$0xff] %v6889_v22  ;;  %8882 = vst [vmem:[#allocation83_spill] sm:$0xff] %v6892_v26  ;;  %v6895_v1 = vld [vmem:[#allocation5 + $0xa0] sm:$0xff]  ;;  %v6898_v14 = vld [vmem:[#allocation5 + $0xb0] sm:$0xff] }
 0x536   :  { %2472 = vmatpush1.msra.mxu0 %v6883_v7  ;;  %2543 = vmatpush1.msra.mxu1 %v6886_v61  ;;  %8883 = vst [vmem:[#allocation84_spill] sm:$0xff] %v6895_v1  ;;  %8884 = vst [vmem:[#allocation85_spill] sm:$0xff] %v6898_v14  ;;  %v6901_v7 = vld [vmem:[#allocation5 + $0x88] sm:$0xff]  ;;  %v6904_v61 = vld [vmem:[#allocation5 + $0x98] sm:$0xff] }
 0x537   :  { %2473 = vmatprep.subr.mxu0 %v6889_v22  ;;  %2544 = vmatprep.subr.mxu1 %v6892_v26  ;;  %8885 = vst [vmem:[#allocation86_spill] sm:$0xff] %v6901_v7  ;;  %8886 = vst [vmem:[#allocation87_spill] sm:$0xff] %v6904_v61  ;;  %v6907_v22 = vld [vmem:[#allocation5 + $0x80] sm:$0xff]  ;;  %v6910_v26 = vld [vmem:[#allocation5 + $0x90] sm:$0xff] }
 0x538   :  { %2474 = vmatpush1.msra.mxu0 %v6895_v1  ;;  %2545 = vmatpush1.msra.mxu1 %v6898_v14  ;;  %8887 = vst [vmem:[#allocation88_spill] sm:$0xff] %v6907_v22  ;;  %8888 = vst [vmem:[#allocation89_spill] sm:$0xff] %v6910_v26  ;;  %v6913_v1 = vld [vmem:[#allocation5 + $0x68] sm:$0xff]  ;;  %v6916_v14 = vld [vmem:[#allocation5 + $0x78] sm:$0xff] }
 0x539   :  { %2475 = vmatprep.subr.mxu0 %v6901_v7  ;;  %2546 = vmatprep.subr.mxu1 %v6904_v61  ;;  %8889 = vst [vmem:[#allocation90_spill] sm:$0xff] %v6913_v1  ;;  %8890 = vst [vmem:[#allocation91_spill] sm:$0xff] %v6916_v14  ;;  %v6919_v7 = vld [vmem:[#allocation5 + $0x60] sm:$0xff]  ;;  %v6922_v61 = vld [vmem:[#allocation5 + $0x70] sm:$0xff] }
 0x53a   :  { %2476 = vmatpush1.msra.mxu0 %v6907_v22  ;;  %2547 = vmatpush1.msra.mxu1 %v6910_v26  ;;  %8891 = vst [vmem:[#allocation92_spill] sm:$0xff] %v6919_v7  ;;  %8892 = vst [vmem:[#allocation93_spill] sm:$0xff] %v6922_v61  ;;  %v6925_v22 = vld [vmem:[#allocation5 + $0x48] sm:$0xff]  ;;  %v6928_v26 = vld [vmem:[#allocation5 + $0x58] sm:$0xff] }
 0x53b   :  { %2477 = vmatprep.subr.mxu0 %v6913_v1  ;;  %2548 = vmatprep.subr.mxu1 %v6916_v14  ;;  %8893 = vst [vmem:[#allocation94_spill] sm:$0xff] %v6925_v22  ;;  %8894 = vst [vmem:[#allocation95_spill] sm:$0xff] %v6928_v26  ;;  %v6931_v1 = vld [vmem:[#allocation5 + $0x40] sm:$0xff]  ;;  %v6934_v14 = vld [vmem:[#allocation5 + $0x50] sm:$0xff] }
 0x53c   :  { %2478 = vmatpush1.msra.mxu0 %v6919_v7  ;;  %2549 = vmatpush1.msra.mxu1 %v6922_v61  ;;  %8895 = vst [vmem:[#allocation96_spill] sm:$0xff] %v6931_v1  ;;  %8896 = vst [vmem:[#allocation97_spill] sm:$0xff] %v6934_v14  ;;  %v6937_v7 = vld [vmem:[#allocation5 + $0x28] sm:$0xff]  ;;  %v6940_v61 = vld [vmem:[#allocation5 + $0x38] sm:$0xff] }
 0x53d   :  { %2479 = vmatprep.subr.mxu0 %v6925_v22  ;;  %2550 = vmatprep.subr.mxu1 %v6928_v26  ;;  %8897 = vst [vmem:[#allocation98_spill] sm:$0xff] %v6937_v7  ;;  %8898 = vst [vmem:[#allocation99_spill] sm:$0xff] %v6940_v61  ;;  %v6943_v22 = vld [vmem:[#allocation5 + $0x20] sm:$0xff]  ;;  %v6946_v26 = vld [vmem:[#allocation5 + $0x30] sm:$0xff] }
 0x53e   :  { %2480 = vmatpush1.msra.mxu0 %v6931_v1  ;;  %2551 = vmatpush1.msra.mxu1 %v6934_v14  ;;  %8899 = vst [vmem:[#allocation100_spill] sm:$0xff] %v6943_v22  ;;  %8900 = vst [vmem:[#allocation101_spill] sm:$0xff] %v6946_v26  ;;  %v6949_v1 = vld [vmem:[#allocation5 + $0x8] sm:$0xff]  ;;  %v6952_v14 = vld [vmem:[#allocation5 + $0x18] sm:$0xff] }
 0x53f   :  { %2481 = vmatprep.subr.mxu0 %v6937_v7  ;;  %2552 = vmatprep.subr.mxu1 %v6940_v61  ;;  %8901 = vst [vmem:[#allocation102_spill] sm:$0xff] %v6949_v1  ;;  %8902 = vst [vmem:[#allocation103_spill] sm:$0xff] %v6952_v14  ;;  %v6955_v7 = vld [vmem:[#allocation5] sm:$0xff]  ;;  %v6959_v61 = vld [vmem:[#allocation5 + $0x10] sm:$0xff] }
 0x540   :  { %2482 = vmatpush1.msra.mxu0 %v6943_v22  ;;  %2553 = vmatpush1.msra.mxu1 %v6946_v26  ;;  %8903 = vst [vmem:[#allocation104_spill] sm:$0xff] %v6955_v7  ;;  %8904 = vst [vmem:[#allocation105_spill] sm:$0xff] %v6959_v61  ;;  %v6974_v26 = vld [vmem:[#allocation8 + $0x1f0] sm:$0xff] }
 0x541   :  { %2483 = vmatprep.subr.mxu0 %v6949_v1  ;;  %2554 = vmatprep.subr.mxu1 %v6952_v14  ;;  %v6965_v1 = vld [vmem:[#allocation8 + $0x1e8] sm:$0xff]  ;;  %v6968_v14 = vld [vmem:[#allocation8 + $0x1f8] sm:$0xff]  ;;  %8908 = vst [vmem:[#allocation109_spill] sm:$0xff] %v6974_v26 }
 0x542   :  { %2484 = vmatpush1.msra.mxu0 %v6955_v7  ;;  %2517 = vmatprep.mubr.f32.mxu0 %v8684_v34  ;;  %8905 = vst [vmem:[#allocation106_spill] sm:$0xff] %v6965_v1  ;;  %8906 = vst [vmem:[#allocation107_spill] sm:$0xff] %v6968_v14  ;;  %v6971_v7 = vld [vmem:[#allocation8 + $0x1e0] sm:$0xff] }
 0x543   :  { %2555 = vmatpush1.msra.mxu1 %v6959_v61  ;;  %2588 = vmatprep.mubr.f32.mxu1 %v8684_v34  ;;  %8907 = vst [vmem:[#allocation108_spill] sm:$0xff] %v6971_v7  ;;  %v6977_v61 = vld [vmem:[#allocation8 + $0x1c8] sm:$0xff] }
 0x544   :  { %2518 = vmatmul.mubr.f32.vlgmr.msra.gmra.mxu0 %v6771_v10  ;;  %2589 = vmatmul.mubr.f32.vlgmr.msra.gmra.mxu1 %v6771_v10  ;;  %8909 = vst [vmem:[#allocation110_spill] sm:$0xff] %v6977_v61  ;;  %v6980_v10 = vld [vmem:[#allocation8 + $0x1d8] sm:$0xff] }
 0x545   :  { %2632 = vmatprep.subr.mxu0 %v6965_v1  ;;  %2703 = vmatprep.subr.mxu1 %v6968_v14  ;;  %8910 = vst [vmem:[#allocation111_spill] sm:$0xff] %v6980_v10  ;;  %v6983_v1 = vld [vmem:[#allocation8 + $0x1c0] sm:$0xff]  ;;  %v6986_v14 = vld [vmem:[#allocation8 + $0x1d0] sm:$0xff] }
 0x546   :  { %2633 = vmatpush1.msra.mxu0 %v6971_v7  ;;  %2704 = vmatpush1.msra.mxu1 %v6974_v26  ;;  %8911 = vst [vmem:[#allocation112_spill] sm:$0xff] %v6983_v1  ;;  %8912 = vst [vmem:[#allocation113_spill] sm:$0xff] %v6986_v14  ;;  %v6989_v7 = vld [vmem:[#allocation8 + $0x1a8] sm:$0xff]  ;;  %v6992_v26 = vld [vmem:[#allocation8 + $0x1b8] sm:$0xff] }
 0x547   :  { %2634 = vmatprep.subr.mxu0 %v6977_v61  ;;  %2705 = vmatprep.subr.mxu1 %v6980_v10  ;;  %8913 = vst [vmem:[#allocation114_spill] sm:$0xff] %v6989_v7  ;;  %8914 = vst [vmem:[#allocation115_spill] sm:$0xff] %v6992_v26  ;;  %v6995_v61 = vld [vmem:[#allocation8 + $0x1a0] sm:$0xff]  ;;  %v6998_v10 = vld [vmem:[#allocation8 + $0x1b0] sm:$0xff] }
 0x548   :  { %2635 = vmatpush1.msra.mxu0 %v6983_v1  ;;  %2706 = vmatpush1.msra.mxu1 %v6986_v14  ;;  %8915 = vst [vmem:[#allocation116_spill] sm:$0xff] %v6995_v61  ;;  %8916 = vst [vmem:[#allocation117_spill] sm:$0xff] %v6998_v10  ;;  %v7001_v1 = vld [vmem:[#allocation8 + $0x188] sm:$0xff]  ;;  %v7004_v14 = vld [vmem:[#allocation8 + $0x198] sm:$0xff] }
 0x549   :  { %2636 = vmatprep.subr.mxu0 %v6989_v7  ;;  %2707 = vmatprep.subr.mxu1 %v6992_v26  ;;  %8917 = vst [vmem:[#allocation118_spill] sm:$0xff] %v7001_v1  ;;  %8918 = vst [vmem:[#allocation119_spill] sm:$0xff] %v7004_v14  ;;  %v7007_v7 = vld [vmem:[#allocation8 + $0x180] sm:$0xff]  ;;  %v7010_v26 = vld [vmem:[#allocation8 + $0x190] sm:$0xff] }
 0x54a   :  { %2637 = vmatpush1.msra.mxu0 %v6995_v61  ;;  %2708 = vmatpush1.msra.mxu1 %v6998_v10  ;;  %8919 = vst [vmem:[#allocation120_spill] sm:$0xff] %v7007_v7  ;;  %8920 = vst [vmem:[#allocation121_spill] sm:$0xff] %v7010_v26  ;;  %v7013_v61 = vld [vmem:[#allocation8 + $0x168] sm:$0xff]  ;;  %v7016_v10 = vld [vmem:[#allocation8 + $0x178] sm:$0xff] }
 0x54b   :  { %2638 = vmatprep.subr.mxu0 %v7001_v1  ;;  %2709 = vmatprep.subr.mxu1 %v7004_v14  ;;  %8921 = vst [vmem:[#allocation122_spill] sm:$0xff] %v7013_v61  ;;  %8922 = vst [vmem:[#allocation123_spill] sm:$0xff] %v7016_v10  ;;  %v7019_v1 = vld [vmem:[#allocation8 + $0x160] sm:$0xff]  ;;  %v7022_v14 = vld [vmem:[#allocation8 + $0x170] sm:$0xff] }
 0x54c   :  { %2639 = vmatpush1.msra.mxu0 %v7007_v7  ;;  %2710 = vmatpush1.msra.mxu1 %v7010_v26  ;;  %8923 = vst [vmem:[#allocation124_spill] sm:$0xff] %v7019_v1  ;;  %8924 = vst [vmem:[#allocation125_spill] sm:$0xff] %v7022_v14  ;;  %v7025_v7 = vld [vmem:[#allocation8 + $0x148] sm:$0xff]  ;;  %v7028_v26 = vld [vmem:[#allocation8 + $0x158] sm:$0xff] }
 0x54d   :  { %2640 = vmatprep.subr.mxu0 %v7013_v61  ;;  %2711 = vmatprep.subr.mxu1 %v7016_v10  ;;  %8925 = vst [vmem:[#allocation126_spill] sm:$0xff] %v7025_v7  ;;  %8926 = vst [vmem:[#allocation127_spill] sm:$0xff] %v7028_v26  ;;  %v7031_v61 = vld [vmem:[#allocation8 + $0x140] sm:$0xff]  ;;  %v7034_v10 = vld [vmem:[#allocation8 + $0x150] sm:$0xff] }
 0x54e   :  { %2641 = vmatpush1.msra.mxu0 %v7019_v1  ;;  %2712 = vmatpush1.msra.mxu1 %v7022_v14  ;;  %8927 = vst [vmem:[#allocation128_spill] sm:$0xff] %v7031_v61  ;;  %8928 = vst [vmem:[#allocation129_spill] sm:$0xff] %v7034_v10  ;;  %v7037_v1 = vld [vmem:[#allocation8 + $0x128] sm:$0xff]  ;;  %v7040_v14 = vld [vmem:[#allocation8 + $0x138] sm:$0xff] }
 0x54f   :  { %2642 = vmatprep.subr.mxu0 %v7025_v7  ;;  %2713 = vmatprep.subr.mxu1 %v7028_v26  ;;  %8929 = vst [vmem:[#allocation130_spill] sm:$0xff] %v7037_v1  ;;  %8930 = vst [vmem:[#allocation131_spill] sm:$0xff] %v7040_v14  ;;  %v7043_v7 = vld [vmem:[#allocation8 + $0x120] sm:$0xff]  ;;  %v7046_v26 = vld [vmem:[#allocation8 + $0x130] sm:$0xff] }
 0x550   :  { %2643 = vmatpush1.msra.mxu0 %v7031_v61  ;;  %2714 = vmatpush1.msra.mxu1 %v7034_v10  ;;  %8931 = vst [vmem:[#allocation132_spill] sm:$0xff] %v7043_v7  ;;  %8932 = vst [vmem:[#allocation133_spill] sm:$0xff] %v7046_v26  ;;  %v7049_v61 = vld [vmem:[#allocation8 + $0x108] sm:$0xff]  ;;  %v7052_v10 = vld [vmem:[#allocation8 + $0x118] sm:$0xff] }
 0x551   :  { %2644 = vmatprep.subr.mxu0 %v7037_v1  ;;  %2715 = vmatprep.subr.mxu1 %v7040_v14  ;;  %8933 = vst [vmem:[#allocation134_spill] sm:$0xff] %v7049_v61  ;;  %8934 = vst [vmem:[#allocation135_spill] sm:$0xff] %v7052_v10  ;;  %v7055_v1 = vld [vmem:[#allocation8 + $0x100] sm:$0xff]  ;;  %v7058_v14 = vld [vmem:[#allocation8 + $0x110] sm:$0xff] }
 0x552   :  { %2645 = vmatpush1.msra.mxu0 %v7043_v7  ;;  %2716 = vmatpush1.msra.mxu1 %v7046_v26  ;;  %8935 = vst [vmem:[#allocation136_spill] sm:$0xff] %v7055_v1  ;;  %8936 = vst [vmem:[#allocation137_spill] sm:$0xff] %v7058_v14  ;;  %v7061_v7 = vld [vmem:[#allocation8 + $0xe8] sm:$0xff]  ;;  %v7064_v26 = vld [vmem:[#allocation8 + $0xf8] sm:$0xff] }
 0x553   :  { %2646 = vmatprep.subr.mxu0 %v7049_v61  ;;  %2717 = vmatprep.subr.mxu1 %v7052_v10  ;;  %8937 = vst [vmem:[#allocation138_spill] sm:$0xff] %v7061_v7  ;;  %8938 = vst [vmem:[#allocation139_spill] sm:$0xff] %v7064_v26  ;;  %v7067_v61 = vld [vmem:[#allocation8 + $0xe0] sm:$0xff]  ;;  %v7070_v10 = vld [vmem:[#allocation8 + $0xf0] sm:$0xff] }
 0x554   :  { %2647 = vmatpush1.msra.mxu0 %v7055_v1  ;;  %2718 = vmatpush1.msra.mxu1 %v7058_v14  ;;  %8939 = vst [vmem:[#allocation140_spill] sm:$0xff] %v7067_v61  ;;  %8940 = vst [vmem:[#allocation141_spill] sm:$0xff] %v7070_v10  ;;  %v7073_v1 = vld [vmem:[#allocation8 + $0xc8] sm:$0xff]  ;;  %v7076_v14 = vld [vmem:[#allocation8 + $0xd8] sm:$0xff] }
 0x555   :  { %2648 = vmatprep.subr.mxu0 %v7061_v7  ;;  %2719 = vmatprep.subr.mxu1 %v7064_v26  ;;  %8941 = vst [vmem:[#allocation142_spill] sm:$0xff] %v7073_v1  ;;  %8942 = vst [vmem:[#allocation143_spill] sm:$0xff] %v7076_v14  ;;  %v7079_v7 = vld [vmem:[#allocation8 + $0xc0] sm:$0xff]  ;;  %v7082_v26 = vld [vmem:[#allocation8 + $0xd0] sm:$0xff] }
 0x556   :  { %2649 = vmatpush1.msra.mxu0 %v7067_v61  ;;  %2720 = vmatpush1.msra.mxu1 %v7070_v10  ;;  %8943 = vst [vmem:[#allocation144_spill] sm:$0xff] %v7079_v7  ;;  %8944 = vst [vmem:[#allocation145_spill] sm:$0xff] %v7082_v26  ;;  %v7085_v61 = vld [vmem:[#allocation8 + $0xa8] sm:$0xff]  ;;  %v7088_v10 = vld [vmem:[#allocation8 + $0xb8] sm:$0xff] }
 0x557   :  { %2650 = vmatprep.subr.mxu0 %v7073_v1  ;;  %2721 = vmatprep.subr.mxu1 %v7076_v14  ;;  %8945 = vst [vmem:[#allocation146_spill] sm:$0xff] %v7085_v61  ;;  %8946 = vst [vmem:[#allocation147_spill] sm:$0xff] %v7088_v10  ;;  %v7091_v1 = vld [vmem:[#allocation8 + $0xa0] sm:$0xff]  ;;  %v7094_v14 = vld [vmem:[#allocation8 + $0xb0] sm:$0xff] }
 0x558   :  { %2651 = vmatpush1.msra.mxu0 %v7079_v7  ;;  %2722 = vmatpush1.msra.mxu1 %v7082_v26  ;;  %8947 = vst [vmem:[#allocation148_spill] sm:$0xff] %v7091_v1  ;;  %8948 = vst [vmem:[#allocation149_spill] sm:$0xff] %v7094_v14  ;;  %v7097_v7 = vld [vmem:[#allocation8 + $0x88] sm:$0xff]  ;;  %v7100_v26 = vld [vmem:[#allocation8 + $0x98] sm:$0xff] }
 0x559   :  { %2652 = vmatprep.subr.mxu0 %v7085_v61  ;;  %2723 = vmatprep.subr.mxu1 %v7088_v10  ;;  %8949 = vst [vmem:[#allocation150_spill] sm:$0xff] %v7097_v7  ;;  %8950 = vst [vmem:[#allocation151_spill] sm:$0xff] %v7100_v26  ;;  %v7103_v61 = vld [vmem:[#allocation8 + $0x80] sm:$0xff]  ;;  %v7106_v10 = vld [vmem:[#allocation8 + $0x90] sm:$0xff] }
 0x55a   :  { %2653 = vmatpush1.msra.mxu0 %v7091_v1  ;;  %2724 = vmatpush1.msra.mxu1 %v7094_v14  ;;  %8951 = vst [vmem:[#allocation152_spill] sm:$0xff] %v7103_v61  ;;  %8952 = vst [vmem:[#allocation153_spill] sm:$0xff] %v7106_v10  ;;  %v7109_v1 = vld [vmem:[#allocation8 + $0x68] sm:$0xff]  ;;  %v7112_v14 = vld [vmem:[#allocation8 + $0x78] sm:$0xff] }
 0x55b   :  { %2654 = vmatprep.subr.mxu0 %v7097_v7  ;;  %2725 = vmatprep.subr.mxu1 %v7100_v26  ;;  %8953 = vst [vmem:[#allocation154_spill] sm:$0xff] %v7109_v1  ;;  %8954 = vst [vmem:[#allocation155_spill] sm:$0xff] %v7112_v14  ;;  %v7115_v7 = vld [vmem:[#allocation8 + $0x60] sm:$0xff]  ;;  %v7118_v26 = vld [vmem:[#allocation8 + $0x70] sm:$0xff] }
 0x55c   :  { %2655 = vmatpush1.msra.mxu0 %v7103_v61  ;;  %2726 = vmatpush1.msra.mxu1 %v7106_v10  ;;  %8955 = vst [vmem:[#allocation156_spill] sm:$0xff] %v7115_v7  ;;  %8956 = vst [vmem:[#allocation157_spill] sm:$0xff] %v7118_v26  ;;  %v7121_v61 = vld [vmem:[#allocation8 + $0x48] sm:$0xff]  ;;  %v7124_v10 = vld [vmem:[#allocation8 + $0x58] sm:$0xff] }
 0x55d   :  { %2656 = vmatprep.subr.mxu0 %v7109_v1  ;;  %2727 = vmatprep.subr.mxu1 %v7112_v14  ;;  %8957 = vst [vmem:[#allocation158_spill] sm:$0xff] %v7121_v61  ;;  %8958 = vst [vmem:[#allocation159_spill] sm:$0xff] %v7124_v10  ;;  %v7127_v1 = vld [vmem:[#allocation8 + $0x40] sm:$0xff]  ;;  %v7130_v14 = vld [vmem:[#allocation8 + $0x50] sm:$0xff] }
 0x55e   :  { %2657 = vmatpush1.msra.mxu0 %v7115_v7  ;;  %2728 = vmatpush1.msra.mxu1 %v7118_v26  ;;  %8959 = vst [vmem:[#allocation160_spill] sm:$0xff] %v7127_v1  ;;  %8960 = vst [vmem:[#allocation161_spill] sm:$0xff] %v7130_v14  ;;  %v7133_v7 = vld [vmem:[#allocation8 + $0x28] sm:$0xff]  ;;  %v7136_v26 = vld [vmem:[#allocation8 + $0x38] sm:$0xff] }
 0x55f   :  { %2658 = vmatprep.subr.mxu0 %v7121_v61  ;;  %2729 = vmatprep.subr.mxu1 %v7124_v10  ;;  %8961 = vst [vmem:[#allocation162_spill] sm:$0xff] %v7133_v7  ;;  %8962 = vst [vmem:[#allocation163_spill] sm:$0xff] %v7136_v26  ;;  %v7139_v61 = vld [vmem:[#allocation8 + $0x20] sm:$0xff]  ;;  %v7142_v10 = vld [vmem:[#allocation8 + $0x30] sm:$0xff] }
 0x560   :  { %2659 = vmatpush1.msra.mxu0 %v7127_v1  ;;  %2730 = vmatpush1.msra.mxu1 %v7130_v14  ;;  %8963 = vst [vmem:[#allocation164_spill] sm:$0xff] %v7139_v61  ;;  %8964 = vst [vmem:[#allocation166_spill] sm:$0xff] %v7142_v10  ;;  %v7145_v1 = vld [vmem:[#allocation8 + $0x8] sm:$0xff]  ;;  %v7148_v14 = vld [vmem:[#allocation8 + $0x18] sm:$0xff] }
 0x561   :  { %2660 = vmatprep.subr.mxu0 %v7133_v7  ;;  %2731 = vmatprep.subr.mxu1 %v7136_v26  ;;  %8965 = vst [vmem:[#allocation167_spill] sm:$0xff] %v7145_v1  ;;  %8966 = vst [vmem:[#allocation168_spill] sm:$0xff] %v7148_v14  ;;  %v7151_v7 = vld [vmem:[#allocation8] sm:$0xff]  ;;  %v7155_v26 = vld [vmem:[#allocation8 + $0x10] sm:$0xff] }
 0x562   :  { %2661 = vmatpush1.msra.mxu0 %v7139_v61  ;;  %2732 = vmatpush1.msra.mxu1 %v7142_v10  ;;  %8967 = vst [vmem:[#allocation169_spill] sm:$0xff] %v7151_v7  ;;  %8968 = vst [vmem:[#allocation170_spill] sm:$0xff] %v7155_v26 }
 0x563   :  { %2662 = vmatprep.subr.mxu0 %v7145_v1  ;;  %2733 = vmatprep.subr.mxu1 %v7148_v14 }
 0x564   :  { %2663 = vmatpush1.msra.mxu0 %v7151_v7  ;;  %2696 = vmatprep.mubr.f32.mxu0 %v8684_v34 }
 0x565   :  { %2734 = vmatpush1.msra.mxu1 %v7155_v26  ;;  %2767 = vmatprep.mubr.f32.mxu1 %v8684_v34 }
 0x566   :  { %2777 = vmatprep.subr.mxu0 %v6555_v15  ;;  %2848 = vmatprep.subr.mxu1 %v6558_v62 }
 0x5be   :  { %v2214_v1 = vpop.f32.mrf.mxu0  ;;  %v2285_v10 = vpop.f32.mrf.mxu1 }
 0x5bf   :  { %v2215_v14 = vadd.f32 %v2214_v1, %v8813_v23  ;;  %v2286_v34 = vadd.f32 %v2285_v10, %v8502_v27 }
 0x5c0   :  { %v2216_v61 = vpop.f32.mrf.mxu0  ;;  %v2287_v47 = vpop.f32.mrf.mxu1 }
 0x5c1   :  { %v2217_v7 = vadd.f32 %v2216_v61, %v8814_v29  ;;  %v2288_v57 = vadd.f32 %v2287_v47, %v8503_v32 }
 0x5e3   :  { %v2359_v22 = vpop.f32.mrf.mxu0  ;;  %v2430_v26 = vpop.f32.mrf.mxu1 }
 0x5e4   :  { %v2360_v18 = vadd.f32 %v2359_v22, %v2215_v14  ;;  %v2431_v8 = vadd.f32 %v2430_v26, %v2286_v34 }
 0x5e5   :  { %v2361_v41 = vpop.f32.mrf.mxu0  ;;  %v2432_v62 = vpop.f32.mrf.mxu1 }
 0x5e6   :  { %v2435_v36 = vmul.f32 0.5, %v2360_v18  ;;  %v2362_v13 = vadd.f32 %v2361_v41, %v2217_v7  ;;  %v2433_v1 = vadd.f32 %v2432_v62, %v2288_v57 }
 0x5e8   :  { %4020 = vtanh.f32 %v2435_v36  ;;  %v2439_v15 = vmul.f32 0.5, %v2362_v13  ;;  %v2444_v23 = vmul.f32 0.5, %v2433_v1 }
 0x5ea   :  { %4022 = vtanh.f32 %v2439_v15 }
 0x5eb   :  { %4024 = vtanh.f32 %v2431_v8 }
 0x5ec   :  { %4026 = vtanh.f32 %v2444_v23 }
 0x5f5   :  { %v4021_v44 = vpop.eup %4020 }
 0x5f6   :  { %v2437_v61 = vmul.f32 0.5, %v4021_v44 }
 0x5f7   :  { %v4023_v22 = vpop.eup %4022 }
 0x5f8   :  { %v2438_v14 = vadd.f32 0.5, %v2437_v61  ;;  %v2441_v29 = vmul.f32 0.5, %v4023_v22  ;;  %v4025_v18 = vpop.eup %4024 }
 0x5f9   :  { %v4027_v47 = vpop.eup %4026 }
 0x5fa   :  { %v2442_v41 = vadd.f32 0.5, %v2441_v29  ;;  %v2449_v36 = vmul.f32 %v4025_v18, %v2438_v14  ;;  %v2446_v15 = vmul.f32 0.5, %v4027_v47  ;;  %v8993_v47 = vld [vmem:[#allocation40_spill] sm:$0xff] }
 0x5fc   :  { %v2448_v7 = vmul.f32 %v2442_v41, %v6566_v30  ;;  %v2447_v1 = vadd.f32 0.5, %v2446_v15 }
 0x5fe   :  { %v7166_v13 = vadd.f32 %v2449_v36, %v2448_v7  ;;  %v8992_v36 = vld [vmem:[#allocation39_spill] sm:$0xff] }
 0x600   :  { %4028 = vtanh.f32 %v7166_v13 }
 0x604   :  { %v2519_v34 = vpop.f32.mrf.mxu0  ;;  %v2590_v57 = vpop.f32.mrf.mxu1 }
 0x605   :  { %v2599_v8 = vrot.slane %v2519_v34, 3  ;;  %v2601_v23 = vrot.slane %v2590_v57, 3 }
 0x606   :  { %v2521_v26 = vpop.f32.mrf.mxu0  ;;  %v2592_v61 = vpop.f32.mrf.mxu1 }
 0x607   :  { %v2607_v44 = vadd.f32 %v2599_v8, %v5094_v58  ;;  %v2600_v10 = vrot.slane %v2521_v26, 3  ;;  %v2609_v14 = vadd.f32 %v2601_v23, %v5104_v54  ;;  %v2602_v18 = vrot.slane %v2592_v61, 3  ;;  %v8994_v8 = vld [vmem:[#allocation41_spill] sm:$0xff]  ;;  %v8998_v23 = vld [vmem:[#allocation44_spill] sm:$0xff] }
 0x608   :  { %v8995_v26 = vmov 0.0   ;;  %v9002_v61 = vld [vmem:[#allocation48_spill] sm:$0xff] }
 0x609   :  { %v2611_v62 = vmul.f32 0.5, %v2607_v44  ;;  %v2608_v29 = vadd.f32 %v2600_v10, %v5099_v56  ;;  %v2610_v7 = vadd.f32 %v2602_v18, %v5106_v5  ;;  %v8996_v44 = vld [vmem:[#allocation42_spill] sm:$0xff]  ;;  %v8997_v10 = vld [vmem:[#allocation43_spill] sm:$0xff]  ;;  %v9006_v18 = vld [vmem:[#allocation52_spill] sm:$0xff] }
 0x60b   :  { %4030 = vtanh.f32 %v2611_v62  ;;  %v2615_v30 = vmul.f32 0.5, %v2608_v29  ;;  %v8999_v29 = vld [vmem:[#allocation45_spill] sm:$0xff] }
 0x60d   :  { %v4029_v22 = vpop.eup %4028  ;;  %4032 = vtanh.f32 %v2615_v30  ;;  %v9000_v30 = vld [vmem:[#allocation46_spill] sm:$0xff] }
 0x60e   :  { %v2452_v41 = vmul.f32 %v4029_v22, %v2447_v1  ;;  %4034 = vtanh.f32 %v2609_v14  ;;  %v9001_v1 = vld [vmem:[#allocation47_spill] sm:$0xff]  ;;  %v9003_v22 = vld [vmem:[#allocation49_spill] sm:$0xff]  ;;  %v9004_v14 = vld [vmem:[#allocation50_spill] sm:$0xff] }
 0x610   :  { %2697 = vmatmul.mubr.f32.vlgmr.msra.gmra.mxu0 %v2452_v41  ;;  %2768 = vmatmul.mubr.f32.vlgmr.msra.gmra.mxu1 %v2452_v41  ;;  %v9005_v41 = vld [vmem:[#allocation51_spill] sm:$0xff] }
 0x611   :  { %2778 = vmatpush1.msra.mxu0 %v6572_v60  ;;  %2849 = vmatpush1.msra.mxu1 %v6575_v55  ;;  %v2620_v60 = vmul.f32 0.5, %v2610_v7  ;;  %v9007_v7 = vld [vmem:[#allocation53_spill] sm:$0xff] }
 0x612   :  { %2779 = vmatprep.subr.mxu0 %v6578_v9  ;;  %2850 = vmatprep.subr.mxu1 %v6581_v59 }
 0x613   :  { %2780 = vmatpush1.msra.mxu0 %v6585_v17  ;;  %2851 = vmatpush1.msra.mxu1 %v6588_v19  ;;  %4036 = vtanh.f32 %v2620_v60  ;;  %v9008_v60 = vld [vmem:[#allocation54_spill] sm:$0xff] }
 0x614   :  { %2781 = vmatprep.subr.mxu0 %v6591_v20  ;;  %2852 = vmatprep.subr.mxu1 %v6594_v24  ;;  %v2625_v24 = vrot.slane %v6670_v43, 7  ;;  %v8987_v43 = vld [vmem:[#allocation34_spill] sm:$0xff] }
 0x615   :  { %2782 = vmatpush1.msra.mxu0 %v6597_v28  ;;  %2853 = vmatpush1.msra.mxu1 %v6600_v31 }
 0x616   :  { %2783 = vmatprep.subr.mxu0 %v6603_v33  ;;  %2854 = vmatprep.subr.mxu1 %v6606_v35 }
 0x617   :  { %2784 = vmatpush1.msra.mxu0 %v6609_v39  ;;  %2855 = vmatpush1.msra.mxu1 %v6612_v40  ;;  %v8969_v39 = vld [vmem:[#allocation16_spill] sm:$0xff]  ;;  %v8970_v40 = vld [vmem:[#allocation17_spill] sm:$0xff] }
 0x618   :  { %v4031_v55 = vpop.eup %4030  ;;  %2785 = vmatprep.subr.mxu0 %v6615_v42  ;;  %2856 = vmatprep.subr.mxu1 %v6618_v46  ;;  %v8971_v42 = vld [vmem:[#allocation18_spill] sm:$0xff]  ;;  %v8972_v46 = vld [vmem:[#allocation19_spill] sm:$0xff] }
 0x619   :  { %v2613_v9 = vmul.f32 0.5, %v4031_v55  ;;  %2786 = vmatpush1.msra.mxu0 %v6621_v49  ;;  %2857 = vmatpush1.msra.mxu1 %v6624_v50  ;;  %v8973_v49 = vld [vmem:[#allocation20_spill] sm:$0xff]  ;;  %v8974_v50 = vld [vmem:[#allocation21_spill] sm:$0xff]  ;;  %v9009_v55 = vld [vmem:[#allocation55_spill] sm:$0xff] }
 0x61a   :  { %v4033_v59 = vpop.eup %4032  ;;  %2787 = vmatprep.subr.mxu0 %v6627_v53  ;;  %2858 = vmatprep.subr.mxu1 %v6630_v4  ;;  %v8975_v53 = vld [vmem:[#allocation22_spill] sm:$0xff]  ;;  %v8976_v4 = vld [vmem:[#allocation23_spill] sm:$0xff] }
 0x61b   :  { %v2614_v17 = vadd.f32 0.5, %v2613_v9  ;;  %v2617_v19 = vmul.f32 0.5, %v4033_v59  ;;  %2788 = vmatpush1.msra.mxu0 %v6633_v63  ;;  %2859 = vmatpush1.msra.mxu1 %v6636_v3  ;;  %v4035_v28 = vpop.eup %4034  ;;  %v8977_v63 = vld [vmem:[#allocation24_spill] sm:$0xff]  ;;  %v8978_v3 = vld [vmem:[#allocation25_spill] sm:$0xff] }
 0x61c   :  { %2789 = vmatprep.subr.mxu0 %v6639_v6  ;;  %2860 = vmatprep.subr.mxu1 %v6642_v2  ;;  %v8979_v2 = vld [vmem:[#allocation26_spill] sm:$0xff]  ;;  %v9010_v9 = vld [vmem:[#allocation56_spill] sm:$0xff]  ;;  %v9011_v59 = vld [vmem:[#allocation57_spill] sm:$0xff] }
 0x61d   :  { %v2618_v20 = vadd.f32 0.5, %v2617_v19  ;;  %2790 = vmatpush1.msra.mxu0 %v6646_v16  ;;  %2861 = vmatpush1.msra.mxu1 %v6649_v11  ;;  %v2628_v33 = vmul.f32 %v4035_v28, %v2614_v17  ;;  %v8980_v16 = vld [vmem:[#allocation27_spill] sm:$0xff]  ;;  %v8981_v11 = vld [vmem:[#allocation28_spill] sm:$0xff]  ;;  %v9012_v17 = vld [vmem:[#allocation58_spill] sm:$0xff] }
 0x61e   :  { %2791 = vmatprep.subr.mxu0 %v6652_v48  ;;  %2862 = vmatprep.subr.mxu1 %v6655_v0  ;;  %v8982_v48 = vld [vmem:[#allocation29_spill] sm:$0xff]  ;;  %v8983_v0 = vld [vmem:[#allocation30_spill] sm:$0xff]  ;;  %v9013_v19 = vld [vmem:[#allocation59_spill] sm:$0xff] }
 0x61f   :  { %v2627_v31 = vmul.f32 %v2625_v24, %v2618_v20  ;;  %2792 = vmatpush1.msra.mxu0 %v6658_v21  ;;  %2863 = vmatpush1.msra.mxu1 %v6661_v45  ;;  %v8984_v21 = vld [vmem:[#allocation31_spill] sm:$0xff]  ;;  %v9014_v20 = vld [vmem:[#allocation60_spill] sm:$0xff]  ;;  %v9015_v24 = vld [vmem:[#allocation61_spill] sm:$0xff] }
 0x620   :  { %2793 = vmatprep.subr.mxu0 %v6664_v37  ;;  %2864 = vmatprep.subr.mxu1 %v6667_v38  ;;  %v4037_v6 = vpop.eup %4036  ;;  %v8985_v37 = vld [vmem:[#allocation32_spill] sm:$0xff]  ;;  %v8986_v38 = vld [vmem:[#allocation33_spill] sm:$0xff]  ;;  %v9016_v28 = vld [vmem:[#allocation62_spill] sm:$0xff] }
 0x621   :  { %v7206_v35 = vadd.f32 %v2628_v33, %v2627_v31  ;;  %2794 = vmatpush1.msra.mxu0 %v6672_v12  ;;  %2865 = vmatpush1.msra.mxu1 %v6675_v51  ;;  %v2622_v45 = vmul.f32 0.5, %v4037_v6  ;;  %v8988_v12 = vld [vmem:[#allocation35_spill] sm:$0xff]  ;;  %v8989_v51 = vld [vmem:[#allocation36_spill] sm:$0xff] }
 0x622   :  { %2795 = vmatprep.subr.mxu0 %v6678_v25  ;;  %2866 = vmatprep.subr.mxu1 %v6681_v52  ;;  %v8990_v25 = vld [vmem:[#allocation37_spill] sm:$0xff]  ;;  %v8991_v52 = vld [vmem:[#allocation38_spill] sm:$0xff]  ;;  %v9017_v31 = vld [vmem:[#allocation63_spill] sm:$0xff] }
 0x623   :  { %4038 = vtanh.f32 %v7206_v35  ;;  %2796 = vmatpush1.msra.mxu0 %v8969_v39  ;;  %2867 = vmatpush1.msra.mxu1 %v8970_v40  ;;  %v2623_v34 = vadd.f32 0.5, %v2622_v45  ;;  %v9018_v33 = vld [vmem:[#allocation64_spill] sm:$0xff]  ;;  %v9019_v39 = vld [vmem:[#allocation65_spill] sm:$0xff]  ;;  %v9020_v40 = vld [vmem:[#allocation66_spill] sm:$0xff] }
 0x624   :  { %2797 = vmatprep.subr.mxu0 %v8971_v42  ;;  %2868 = vmatprep.subr.mxu1 %v8972_v46  ;;  %v9021_v42 = vld [vmem:[#allocation67_spill] sm:$0xff]  ;;  %v9022_v46 = vld [vmem:[#allocation68_spill] sm:$0xff]  ;;  %v9036_v45 = vld [vmem:[#allocation82_spill] sm:$0xff] }
 0x625   :  { %2798 = vmatpush1.msra.mxu0 %v8973_v49  ;;  %2869 = vmatpush1.msra.mxu1 %v8974_v50  ;;  %v9023_v49 = vld [vmem:[#allocation69_spill] sm:$0xff]  ;;  %v9024_v50 = vld [vmem:[#allocation70_spill] sm:$0xff]  ;;  %v9029_v6 = vld [vmem:[#allocation75_spill] sm:$0xff] }
 0x626   :  { %2799 = vmatprep.subr.mxu0 %v8975_v53  ;;  %2870 = vmatprep.subr.mxu1 %v8976_v4  ;;  %v9025_v53 = vld [vmem:[#allocation71_spill] sm:$0xff]  ;;  %v9026_v4 = vld [vmem:[#allocation72_spill] sm:$0xff] }
 0x627   :  { %2800 = vmatpush1.msra.mxu0 %v8977_v63  ;;  %2871 = vmatpush1.msra.mxu1 %v8978_v3  ;;  %v9027_v63 = vld [vmem:[#allocation73_spill] sm:$0xff]  ;;  %v9028_v3 = vld [vmem:[#allocation74_spill] sm:$0xff] }
 0x628   :  { %2801 = vmatprep.subr.mxu0 %v8979_v2  ;;  %2872 = vmatprep.subr.mxu1 %v8980_v16  ;;  %v9030_v2 = vld [vmem:[#allocation76_spill] sm:$0xff]  ;;  %v9031_v16 = vld [vmem:[#allocation77_spill] sm:$0xff] }
 0x629   :  { %2802 = vmatpush1.msra.mxu0 %v8981_v11  ;;  %2873 = vmatpush1.msra.mxu1 %v8982_v48  ;;  %v9032_v11 = vld [vmem:[#allocation78_spill] sm:$0xff]  ;;  %v9033_v48 = vld [vmem:[#allocation79_spill] sm:$0xff] }
 0x62a   :  { %2803 = vmatprep.subr.mxu0 %v8983_v0  ;;  %2874 = vmatprep.subr.mxu1 %v8984_v21  ;;  %v9034_v0 = vld [vmem:[#allocation80_spill] sm:$0xff]  ;;  %v9035_v21 = vld [vmem:[#allocation81_spill] sm:$0xff] }
 0x62b   :  { %2804 = vmatpush1.msra.mxu0 %v8985_v37  ;;  %2875 = vmatpush1.msra.mxu1 %v8986_v38  ;;  %v9037_v37 = vld [vmem:[#allocation83_spill] sm:$0xff]  ;;  %v9038_v38 = vld [vmem:[#allocation84_spill] sm:$0xff] }
 0x62c   :  { %2805 = vmatprep.subr.mxu0 %v8987_v43  ;;  %2876 = vmatprep.subr.mxu1 %v8988_v12  ;;  %v9039_v43 = vld [vmem:[#allocation85_spill] sm:$0xff]  ;;  %v9040_v12 = vld [vmem:[#allocation86_spill] sm:$0xff] }
 0x62d   :  { %2806 = vmatpush1.msra.mxu0 %v8989_v51  ;;  %2877 = vmatpush1.msra.mxu1 %v8990_v25  ;;  %v9041_v51 = vld [vmem:[#allocation87_spill] sm:$0xff]  ;;  %v9042_v25 = vld [vmem:[#allocation88_spill] sm:$0xff] }
 0x62e   :  { %2807 = vmatprep.subr.mxu0 %v8991_v52  ;;  %2878 = vmatprep.subr.mxu1 %v8992_v36  ;;  %v9043_v52 = vld [vmem:[#allocation89_spill] sm:$0xff]  ;;  %v9044_v36 = vld [vmem:[#allocation90_spill] sm:$0xff] }
 0x62f   :  { %2808 = vmatpush1.msra.mxu0 %v8993_v47  ;;  %2879 = vmatpush1.msra.mxu1 %v8994_v8  ;;  %v9046_v47 = vld [vmem:[#allocation92_spill] sm:$0xff]  ;;  %v9047_v8 = vld [vmem:[#allocation93_spill] sm:$0xff] }
 0x630   :  { %v4039_v57 = vpop.eup %4038  ;;  %2841 = vmatprep.mubr.f32.mxu0 %v8995_v26  ;;  %2912 = vmatprep.mubr.f32.mxu1 %v8995_v26 }
 0x631   :  { %2937 = vmatprep.subr.mxu0 %v8996_v44  ;;  %3008 = vmatprep.subr.mxu1 %v8997_v10  ;;  %v2631_v15 = vmul.f32 %v4039_v57, %v2623_v34  ;;  %v9045_v34 = vld [vmem:[#allocation91_spill] sm:$0xff]  ;;  %v9048_v57 = vld [vmem:[#allocation94_spill] sm:$0xff]  ;;  %v9050_v10 = vld [vmem:[#allocation96_spill] sm:$0xff] }
 0x632   :  { %v9049_v44 = vld [vmem:[#allocation95_spill] sm:$0xff] }
 0x633   :  { %v7243_v62 = vrot.slane %v2631_v15, 5  ;;  %v9051_v15 = vld [vmem:[#allocation97_spill] sm:$0xff] }
 0x635   :  { %2842 = vmatmul.mubr.f32.vlgmr.msra.gmra.mxu0 %v7243_v62  ;;  %2913 = vmatmul.mubr.f32.vlgmr.msra.gmra.mxu1 %v7243_v62 }
 0x636   :  { %2938 = vmatpush1.msra.mxu0 %v8998_v23  ;;  %3009 = vmatpush1.msra.mxu1 %v8999_v29  ;;  %v9052_v23 = vld [vmem:[#allocation98_spill] sm:$0xff]  ;;  %v9053_v29 = vld [vmem:[#allocation99_spill] sm:$0xff] }
 0x637   :  { %2939 = vmatprep.subr.mxu0 %v9000_v30  ;;  %3010 = vmatprep.subr.mxu1 %v9001_v1  ;;  %v9054_v30 = vld [vmem:[#allocation100_spill] sm:$0xff]  ;;  %v9055_v1 = vld [vmem:[#allocation101_spill] sm:$0xff] }
 0x638   :  { %2940 = vmatpush1.msra.mxu0 %v9002_v61  ;;  %3011 = vmatpush1.msra.mxu1 %v9003_v22  ;;  %v9056_v61 = vld [vmem:[#allocation102_spill] sm:$0xff]  ;;  %v9057_v22 = vld [vmem:[#allocation103_spill] sm:$0xff] }
 0x639   :  { %2941 = vmatprep.subr.mxu0 %v9004_v14  ;;  %3012 = vmatprep.subr.mxu1 %v9005_v41  ;;  %v9058_v14 = vld [vmem:[#allocation104_spill] sm:$0xff]  ;;  %v9059_v41 = vld [vmem:[#allocation105_spill] sm:$0xff] }
 0x63a   :  { %2942 = vmatpush1.msra.mxu0 %v9006_v18  ;;  %3013 = vmatpush1.msra.mxu1 %v9007_v7  ;;  %v9060_v18 = vld [vmem:[#allocation106_spill] sm:$0xff]  ;;  %v9061_v7 = vld [vmem:[#allocation107_spill] sm:$0xff] }
 0x63b   :  { %2943 = vmatprep.subr.mxu0 %v9008_v60  ;;  %3014 = vmatprep.subr.mxu1 %v9009_v55  ;;  %v9062_v60 = vld [vmem:[#allocation108_spill] sm:$0xff]  ;;  %v9063_v55 = vld [vmem:[#allocation109_spill] sm:$0xff] }
 0x63c   :  { %2944 = vmatpush1.msra.mxu0 %v9010_v9  ;;  %3015 = vmatpush1.msra.mxu1 %v9011_v59  ;;  %v9064_v9 = vld [vmem:[#allocation110_spill] sm:$0xff]  ;;  %v9065_v59 = vld [vmem:[#allocation111_spill] sm:$0xff] }
 0x63d   :  { %2945 = vmatprep.subr.mxu0 %v9012_v17  ;;  %3016 = vmatprep.subr.mxu1 %v9013_v19  ;;  %v9066_v17 = vld [vmem:[#allocation112_spill] sm:$0xff]  ;;  %v9067_v19 = vld [vmem:[#allocation113_spill] sm:$0xff] }
 0x63e   :  { %2946 = vmatpush1.msra.mxu0 %v9014_v20  ;;  %3017 = vmatpush1.msra.mxu1 %v9015_v24  ;;  %v9068_v20 = vld [vmem:[#allocation114_spill] sm:$0xff]  ;;  %v9069_v24 = vld [vmem:[#allocation115_spill] sm:$0xff] }
 0x63f   :  { %2947 = vmatprep.subr.mxu0 %v9016_v28  ;;  %3018 = vmatprep.subr.mxu1 %v9017_v31  ;;  %v9071_v28 = vld [vmem:[#allocation117_spill] sm:$0xff]  ;;  %v9072_v31 = vld [vmem:[#allocation118_spill] sm:$0xff] }
 0x640   :  { %2948 = vmatpush1.msra.mxu0 %v9018_v33  ;;  %3019 = vmatpush1.msra.mxu1 %v9019_v39  ;;  %v9073_v33 = vld [vmem:[#allocation119_spill] sm:$0xff]  ;;  %v9074_v39 = vld [vmem:[#allocation120_spill] sm:$0xff] }
 0x641   :  { %2949 = vmatprep.subr.mxu0 %v9020_v40  ;;  %3020 = vmatprep.subr.mxu1 %v9021_v42  ;;  %v9075_v40 = vld [vmem:[#allocation121_spill] sm:$0xff]  ;;  %v9076_v42 = vld [vmem:[#allocation122_spill] sm:$0xff] }
 0x642   :  { %2950 = vmatpush1.msra.mxu0 %v9022_v46  ;;  %3021 = vmatpush1.msra.mxu1 %v9023_v49  ;;  %v9077_v46 = vld [vmem:[#allocation123_spill] sm:$0xff]  ;;  %v9078_v49 = vld [vmem:[#allocation124_spill] sm:$0xff] }
 0x643   :  { %2951 = vmatprep.subr.mxu0 %v9024_v50  ;;  %3022 = vmatprep.subr.mxu1 %v9025_v53  ;;  %v9079_v50 = vld [vmem:[#allocation125_spill] sm:$0xff]  ;;  %v9080_v53 = vld [vmem:[#allocation126_spill] sm:$0xff] }
 0x644   :  { %2952 = vmatpush1.msra.mxu0 %v9026_v4  ;;  %3023 = vmatpush1.msra.mxu1 %v9027_v63  ;;  %v9081_v4 = vld [vmem:[#allocation127_spill] sm:$0xff]  ;;  %v9082_v63 = vld [vmem:[#allocation128_spill] sm:$0xff] }
 0x645   :  { %2953 = vmatprep.subr.mxu0 %v9028_v3  ;;  %3024 = vmatprep.subr.mxu1 %v9029_v6  ;;  %v9083_v3 = vld [vmem:[#allocation129_spill] sm:$0xff]  ;;  %v9084_v6 = vld [vmem:[#allocation130_spill] sm:$0xff] }
 0x646   :  { %2954 = vmatpush1.msra.mxu0 %v9030_v2  ;;  %3025 = vmatpush1.msra.mxu1 %v9031_v16  ;;  %v9085_v2 = vld [vmem:[#allocation131_spill] sm:$0xff]  ;;  %v9086_v16 = vld [vmem:[#allocation132_spill] sm:$0xff] }
 0x647   :  { %2955 = vmatprep.subr.mxu0 %v9032_v11  ;;  %3026 = vmatprep.subr.mxu1 %v9033_v48  ;;  %v9087_v11 = vld [vmem:[#allocation133_spill] sm:$0xff]  ;;  %v9088_v48 = vld [vmem:[#allocation134_spill] sm:$0xff] }
 0x648   :  { %2956 = vmatpush1.msra.mxu0 %v9034_v0  ;;  %3027 = vmatpush1.msra.mxu1 %v9035_v21  ;;  %v9089_v0 = vld [vmem:[#allocation135_spill] sm:$0xff]  ;;  %v9090_v21 = vld [vmem:[#allocation136_spill] sm:$0xff] }
 0x649   :  { %2957 = vmatprep.subr.mxu0 %v9036_v45  ;;  %3028 = vmatprep.subr.mxu1 %v9037_v37  ;;  %v9091_v45 = vld [vmem:[#allocation137_spill] sm:$0xff]  ;;  %v9092_v37 = vld [vmem:[#allocation138_spill] sm:$0xff] }
 0x64a   :  { %2958 = vmatpush1.msra.mxu0 %v9038_v38  ;;  %3029 = vmatpush1.msra.mxu1 %v9039_v43  ;;  %v9093_v38 = vld [vmem:[#allocation139_spill] sm:$0xff]  ;;  %v9094_v43 = vld [vmem:[#allocation140_spill] sm:$0xff] }
 0x64b   :  { %2959 = vmatprep.subr.mxu0 %v9040_v12  ;;  %3030 = vmatprep.subr.mxu1 %v9041_v51  ;;  %v9095_v12 = vld [vmem:[#allocation141_spill] sm:$0xff]  ;;  %v9096_v51 = vld [vmem:[#allocation142_spill] sm:$0xff] }
 0x64c   :  { %2960 = vmatpush1.msra.mxu0 %v9042_v25  ;;  %3031 = vmatpush1.msra.mxu1 %v9043_v52  ;;  %v9097_v25 = vld [vmem:[#allocation143_spill] sm:$0xff]  ;;  %v9098_v52 = vld [vmem:[#allocation144_spill] sm:$0xff] }
 0x64d   :  { %2961 = vmatprep.subr.mxu0 %v9044_v36  ;;  %3032 = vmatprep.subr.mxu1 %v9045_v34  ;;  %v9099_v36 = vld [vmem:[#allocation145_spill] sm:$0xff]  ;;  %v9100_v34 = vld [vmem:[#allocation146_spill] sm:$0xff] }
 0x64e   :  { %2962 = vmatpush1.msra.mxu0 %v9046_v47  ;;  %3033 = vmatpush1.msra.mxu1 %v9047_v8  ;;  %v9101_v47 = vld [vmem:[#allocation147_spill] sm:$0xff]  ;;  %v9102_v8 = vld [vmem:[#allocation148_spill] sm:$0xff] }
 0x64f   :  { %2963 = vmatprep.subr.mxu0 %v9048_v57  ;;  %3034 = vmatprep.subr.mxu1 %v9049_v44  ;;  %v9103_v57 = vld [vmem:[#allocation149_spill] sm:$0xff]  ;;  %v9104_v44 = vld [vmem:[#allocation150_spill] sm:$0xff] }
 0x650   :  { %2964 = vmatpush1.msra.mxu0 %v9050_v10  ;;  %3035 = vmatpush1.msra.mxu1 %v9051_v15  ;;  %v9105_v10 = vld [vmem:[#allocation151_spill] sm:$0xff]  ;;  %v9106_v15 = vld [vmem:[#allocation152_spill] sm:$0xff] }
 0x651   :  { %2965 = vmatprep.subr.mxu0 %v9052_v23  ;;  %3036 = vmatprep.subr.mxu1 %v9053_v29  ;;  %v9107_v23 = vld [vmem:[#allocation153_spill] sm:$0xff]  ;;  %v9108_v29 = vld [vmem:[#allocation154_spill] sm:$0xff] }
 0x652   :  { %2966 = vmatpush1.msra.mxu0 %v9054_v30  ;;  %3037 = vmatpush1.msra.mxu1 %v9055_v1  ;;  %v9109_v30 = vld [vmem:[#allocation155_spill] sm:$0xff]  ;;  %v9110_v1 = vld [vmem:[#allocation156_spill] sm:$0xff] }
 0x653   :  { %2967 = vmatprep.subr.mxu0 %v9056_v61  ;;  %3038 = vmatprep.subr.mxu1 %v9057_v22  ;;  %v9111_v61 = vld [vmem:[#allocation157_spill] sm:$0xff]  ;;  %v9112_v22 = vld [vmem:[#allocation158_spill] sm:$0xff] }
 0x654   :  { %2968 = vmatpush1.msra.mxu0 %v9058_v14  ;;  %3001 = vmatprep.mubr.f32.mxu0 %v8995_v26  ;;  %v9113_v14 = vld [vmem:[#allocation159_spill] sm:$0xff] }
 0x655   :  { %3039 = vmatpush1.msra.mxu1 %v9059_v41  ;;  %3072 = vmatprep.mubr.f32.mxu1 %v8995_v26  ;;  %v9114_v41 = vld [vmem:[#allocation160_spill] sm:$0xff] }
 0x656   :  { %3002 = vmatmul.mubr.f32.vlgmr.msra.gmra.mxu0 %v7243_v62  ;;  %3073 = vmatmul.mubr.f32.vlgmr.msra.gmra.mxu1 %v7243_v62  ;;  %v9070_v62 = vld [vmem:[#allocation116_spill] sm:$0xff] }
 0x657   :  { %3116 = vmatprep.subr.mxu0 %v9060_v18  ;;  %3187 = vmatprep.subr.mxu1 %v9061_v7  ;;  %v9115_v18 = vld [vmem:[#allocation161_spill] sm:$0xff]  ;;  %v9116_v7 = vld [vmem:[#allocation162_spill] sm:$0xff] }
 0x658   :  { %3117 = vmatpush1.msra.mxu0 %v9062_v60  ;;  %3188 = vmatpush1.msra.mxu1 %v9063_v55  ;;  %v9117_v60 = vld [vmem:[#allocation163_spill] sm:$0xff]  ;;  %v9118_v55 = vld [vmem:[#allocation164_spill] sm:$0xff] }
 0x659   :  { %3118 = vmatprep.subr.mxu0 %v9064_v9  ;;  %3189 = vmatprep.subr.mxu1 %v9065_v59  ;;  %v9119_v9 = vld [vmem:[#allocation166_spill] sm:$0xff]  ;;  %v9120_v59 = vld [vmem:[#allocation167_spill] sm:$0xff] }
 0x65a   :  { %3119 = vmatpush1.msra.mxu0 %v9066_v17  ;;  %3190 = vmatpush1.msra.mxu1 %v9067_v19  ;;  %v9121_v17 = vld [vmem:[#allocation168_spill] sm:$0xff]  ;;  %v9122_v19 = vld [vmem:[#allocation169_spill] sm:$0xff] }
 0x65b   :  { %3120 = vmatprep.subr.mxu0 %v9068_v20  ;;  %3191 = vmatprep.subr.mxu1 %v9069_v24  ;;  %v9123_v20 = vld [vmem:[#allocation170_spill] sm:$0xff]  ;;  %v7379_v24 = vld [vmem:[#allocation7 + $0x1e8] sm:$0xff] }
 0x65c   :  { %3121 = vmatpush1.msra.mxu0 %v9070_v62  ;;  %3192 = vmatpush1.msra.mxu1 %v9071_v28  ;;  %v7382_v62 = vld [vmem:[#allocation7 + $0x1f8] sm:$0xff] }
 0x65d   :  { %3122 = vmatprep.subr.mxu0 %v9072_v31  ;;  %3193 = vmatprep.subr.mxu1 %v9073_v33 }
 0x65e   :  { %3123 = vmatpush1.msra.mxu0 %v9074_v39  ;;  %3194 = vmatpush1.msra.mxu1 %v9075_v40  ;;  %v9124_v39 = vld [vmem:[#allocation165_spill] sm:$0xff] }
 0x65f   :  { %3124 = vmatprep.subr.mxu0 %v9076_v42  ;;  %3195 = vmatprep.subr.mxu1 %v9077_v46  ;;  %v9125_v46 = vld [vmem:[#allocation15_spill] sm:$0xff] }
 0x660   :  { %3125 = vmatpush1.msra.mxu0 %v9078_v49  ;;  %3196 = vmatpush1.msra.mxu1 %v9079_v50 }
 0x661   :  { %3126 = vmatprep.subr.mxu0 %v9080_v53  ;;  %3197 = vmatprep.subr.mxu1 %v9081_v4 }
 0x662   :  { %3127 = vmatpush1.msra.mxu0 %v9082_v63  ;;  %3198 = vmatpush1.msra.mxu1 %v9083_v3 }
 0x663   :  { %3128 = vmatprep.subr.mxu0 %v9084_v6  ;;  %3199 = vmatprep.subr.mxu1 %v9085_v2 }
 0x664   :  { %3129 = vmatpush1.msra.mxu0 %v9086_v16  ;;  %3200 = vmatpush1.msra.mxu1 %v9087_v11 }
 0x665   :  { %3130 = vmatprep.subr.mxu0 %v9088_v48  ;;  %3201 = vmatprep.subr.mxu1 %v9089_v0 }
 0x666   :  { %3131 = vmatpush1.msra.mxu0 %v9090_v21  ;;  %3202 = vmatpush1.msra.mxu1 %v9091_v45 }
 0x667   :  { %3132 = vmatprep.subr.mxu0 %v9092_v37  ;;  %3203 = vmatprep.subr.mxu1 %v9093_v38 }
 0x668   :  { %3133 = vmatpush1.msra.mxu0 %v9094_v43  ;;  %3204 = vmatpush1.msra.mxu1 %v9095_v12 }
 0x669   :  { %3134 = vmatprep.subr.mxu0 %v9096_v51  ;;  %3205 = vmatprep.subr.mxu1 %v9097_v25 }
 0x66a   :  { %3135 = vmatpush1.msra.mxu0 %v9098_v52  ;;  %3206 = vmatpush1.msra.mxu1 %v9099_v36 }
 0x66b   :  { %3136 = vmatprep.subr.mxu0 %v9100_v34  ;;  %3207 = vmatprep.subr.mxu1 %v9101_v47 }
 0x66c   :  { %3137 = vmatpush1.msra.mxu0 %v9102_v8  ;;  %3208 = vmatpush1.msra.mxu1 %v9103_v57 }
 0x66d   :  { %3138 = vmatprep.subr.mxu0 %v9104_v44  ;;  %3209 = vmatprep.subr.mxu1 %v9105_v10 }
 0x66e   :  { %3139 = vmatpush1.msra.mxu0 %v9106_v15  ;;  %3210 = vmatpush1.msra.mxu1 %v9107_v23 }
 0x66f   :  { %3140 = vmatprep.subr.mxu0 %v9108_v29  ;;  %3211 = vmatprep.subr.mxu1 %v9109_v30 }
 0x670   :  { %3141 = vmatpush1.msra.mxu0 %v9110_v1  ;;  %3212 = vmatpush1.msra.mxu1 %v9111_v61 }
 0x671   :  { %3142 = vmatprep.subr.mxu0 %v9112_v22  ;;  %3213 = vmatprep.subr.mxu1 %v9113_v14 }
 0x672   :  { %3143 = vmatpush1.msra.mxu0 %v9114_v41  ;;  %3214 = vmatpush1.msra.mxu1 %v9115_v18 }
 0x673   :  { %3144 = vmatprep.subr.mxu0 %v9116_v7  ;;  %3215 = vmatprep.subr.mxu1 %v9117_v60 }
 0x674   :  { %3145 = vmatpush1.msra.mxu0 %v9118_v55  ;;  %3216 = vmatpush1.msra.mxu1 %v9119_v9  ;;  %v7396_v9 = vld [vmem:[#allocation7 + $0x1e0] sm:$0xff] }
 0x675   :  { %3146 = vmatprep.subr.mxu0 %v9120_v59  ;;  %3217 = vmatprep.subr.mxu1 %v9121_v17  ;;  %v7399_v59 = vld [vmem:[#allocation7 + $0x1f0] sm:$0xff]  ;;  %v7402_v17 = vld [vmem:[#allocation7 + $0x1c8] sm:$0xff] }
 0x676   :  { %3147 = vmatpush1.msra.mxu0 %v9122_v19  ;;  %3180 = vmatprep.mubr.f32.mxu0 %v8995_v26  ;;  %v7405_v19 = vld [vmem:[#allocation7 + $0x1d8] sm:$0xff] }
 0x677   :  { %3218 = vmatpush1.msra.mxu1 %v9123_v20  ;;  %3251 = vmatprep.mubr.f32.mxu1 %v8995_v26 }
 0x678   :  { %3261 = vmatprep.subr.mxu0 %v7379_v24  ;;  %3332 = vmatprep.subr.mxu1 %v7382_v62 }
 0x6d0   :  { %v2698_v28 = vpop.f32.mrf.mxu0  ;;  %v2769_v31 = vpop.f32.mrf.mxu1 }
 0x6d1   :  { %v2699_v40 = vadd.f32 %v2698_v28, %v9124_v39  ;;  %v2770_v2 = vadd.f32 %v2769_v31, %v8502_v27  ;;  %v7409_v28 = vld [vmem:[#allocation7 + $0x1c0] sm:$0xff]  ;;  %v7412_v31 = vld [vmem:[#allocation7 + $0x1d0] sm:$0xff] }
 0x6d2   :  { %v2700_v33 = vpop.f32.mrf.mxu0  ;;  %v2771_v53 = vpop.f32.mrf.mxu1 }
 0x6d3   :  { %v2701_v49 = vadd.f32 %v2700_v33, %v9125_v46  ;;  %v2772_v0 = vadd.f32 %v2771_v53, %v8503_v32  ;;  %v7415_v33 = vld [vmem:[#allocation7 + $0x1a8] sm:$0xff]  ;;  %v7430_v53 = vld [vmem:[#allocation7 + $0x198] sm:$0xff] }
 0x6f5   :  { %v2843_v42 = vpop.f32.mrf.mxu0  ;;  %v2914_v6 = vpop.f32.mrf.mxu1 }
 0x6f6   :  { %v2844_v50 = vadd.f32 %v2843_v42, %v2699_v40  ;;  %v2915_v11 = vadd.f32 %v2914_v6, %v2770_v2  ;;  %v7418_v40 = vld [vmem:[#allocation7 + $0x1b8] sm:$0xff]  ;;  %v7421_v42 = vld [vmem:[#allocation7 + $0x1a0] sm:$0xff]  ;;  %v7439_v2 = vld [vmem:[#allocation7 + $0x168] sm:$0xff] }
 0x6f7   :  { %v2845_v4 = vpop.f32.mrf.mxu0  ;;  %v2916_v48 = vpop.f32.mrf.mxu1 }
 0x6f8   :  { %v2919_v63 = vmul.f32 0.5, %v2844_v50  ;;  %v2846_v3 = vadd.f32 %v2845_v4, %v2701_v49  ;;  %v2917_v21 = vadd.f32 %v2916_v48, %v2772_v0  ;;  %v7424_v49 = vld [vmem:[#allocation7 + $0x1b0] sm:$0xff]  ;;  %v7427_v50 = vld [vmem:[#allocation7 + $0x188] sm:$0xff]  ;;  %v7445_v48 = vld [vmem:[#allocation7 + $0x160] sm:$0xff] }
 0x6f9   :  { %v7448_v0 = vld [vmem:[#allocation7 + $0x170] sm:$0xff] }
 0x6fa   :  { %4040 = vtanh.f32 %v2919_v63  ;;  %v2923_v16 = vmul.f32 0.5, %v2846_v3  ;;  %v2928_v45 = vmul.f32 0.5, %v2917_v21  ;;  %v7433_v63 = vld [vmem:[#allocation7 + $0x180] sm:$0xff]  ;;  %v7436_v3 = vld [vmem:[#allocation7 + $0x190] sm:$0xff] }
 0x6fc   :  { %4042 = vtanh.f32 %v2923_v16  ;;  %v7442_v16 = vld [vmem:[#allocation7 + $0x178] sm:$0xff] }
 0x6fd   :  { %4044 = vtanh.f32 %v2915_v11 }
 0x6fe   :  { %4046 = vtanh.f32 %v2928_v45  ;;  %v7451_v45 = vld [vmem:[#allocation7 + $0x148] sm:$0xff] }
 0x707   :  { %v4041_v37 = vpop.eup %4040 }
 0x708   :  { %v2921_v38 = vmul.f32 0.5, %v4041_v37  ;;  %v7454_v37 = vld [vmem:[#allocation7 + $0x158] sm:$0xff] }
 0x709   :  { %v4043_v43 = vpop.eup %4042 }
 0x70a   :  { %v2922_v12 = vadd.f32 0.5, %v2921_v38  ;;  %v2925_v51 = vmul.f32 0.5, %v4043_v43  ;;  %v4045_v52 = vpop.eup %4044 }
 0x70b   :  { %v4047_v57 = vpop.eup %4046 }
 0x70c   :  { %v2926_v25 = vadd.f32 0.5, %v2925_v51  ;;  %v2933_v34 = vmul.f32 %v4045_v52, %v2922_v12  ;;  %v2930_v30 = vmul.f32 0.5, %v4047_v57  ;;  %v7457_v12 = vld [vmem:[#allocation7 + $0x140] sm:$0xff]  ;;  %v7460_v51 = vld [vmem:[#allocation7 + $0x150] sm:$0xff]  ;;  %v7466_v52 = vld [vmem:[#allocation7 + $0x138] sm:$0xff] }
 0x70d   :  { %v7473_v57 = vld [vmem:[#allocation7 + $0x130] sm:$0xff] }
 0x70e   :  { %v2932_v36 = vmul.f32 %v2926_v25, %v7166_v13  ;;  %v2931_v14 = vadd.f32 0.5, %v2930_v30  ;;  %v7463_v25 = vld [vmem:[#allocation7 + $0x128] sm:$0xff]  ;;  %v7485_v30 = vld [vmem:[#allocation7 + $0x110] sm:$0xff] }
 0x710   :  { %v7390_v47 = vadd.f32 %v2933_v34, %v2932_v36  ;;  %v3109_v34 = vrot.slane %v7206_v35, 7  ;;  %v7482_v35 = vld [vmem:[#allocation7 + $0x100] sm:$0xff] }
 0x712   :  { %4048 = vtanh.f32 %v7390_v47 }
 0x716   :  { %v3003_v8 = vpop.f32.mrf.mxu0  ;;  %v3074_v10 = vpop.f32.mrf.mxu1 }
 0x717   :  { %v3083_v44 = vrot.slane %v3003_v8, 2  ;;  %v3085_v61 = vrot.slane %v3074_v10, 2  ;;  %v7470_v8 = vld [vmem:[#allocation7 + $0x120] sm:$0xff]  ;;  %v7476_v10 = vld [vmem:[#allocation7 + $0x108] sm:$0xff] }
 0x718   :  { %v3005_v15 = vpop.f32.mrf.mxu0  ;;  %v3076_v41 = vpop.f32.mrf.mxu1 }
 0x719   :  { %v3091_v23 = vadd.f32 %v3083_v44, %v5094_v58  ;;  %v3084_v29 = vrot.slane %v3005_v15, 2  ;;  %v3093_v7 = vadd.f32 %v3085_v61, %v5104_v54  ;;  %v3086_v55 = vrot.slane %v3076_v41, 2  ;;  %v7479_v15 = vld [vmem:[#allocation7 + $0x118] sm:$0xff]  ;;  %v7502_v41 = vld [vmem:[#allocation7 + $0xc8] sm:$0xff] }
 0x71a   :  { %v7491_v61 = vld [vmem:[#allocation7 + $0xf8] sm:$0xff] }
 0x71b   :  { %v3095_v1 = vmul.f32 0.5, %v3091_v23  ;;  %v3092_v22 = vadd.f32 %v3084_v29, %v5099_v56  ;;  %v3094_v20 = vadd.f32 %v3086_v55, %v5106_v5  ;;  %v7515_v55 = vld [vmem:[#allocation7 + $0xa8] sm:$0xff] }
 0x71c   :  { %9128 = vst [vmem:[#allocation18_spill] sm:$0xff] %v7515_v55 }
 0x71d   :  { %4050 = vtanh.f32 %v3095_v1  ;;  %v3099_v13 = vmul.f32 0.5, %v3092_v22  ;;  %v3104_v4 = vmul.f32 0.5, %v3094_v20  ;;  %v7488_v1 = vld [vmem:[#allocation7 + $0xe8] sm:$0xff]  ;;  %v7518_v20 = vld [vmem:[#allocation7 + $0xb8] sm:$0xff] }
 0x71e   :  { %9129 = vst [vmem:[#allocation19_spill] sm:$0xff] %v7518_v20 }
 0x71f   :  { %v4049_v18 = vpop.eup %4048  ;;  %4052 = vtanh.f32 %v3099_v13  ;;  %v7496_v13 = vld [vmem:[#allocation7 + $0xe0] sm:$0xff] }
 0x720   :  { %v2936_v60 = vmul.f32 %v4049_v18, %v2931_v14  ;;  %4054 = vtanh.f32 %v3093_v7  ;;  %v7499_v14 = vld [vmem:[#allocation7 + $0xf0] sm:$0xff]  ;;  %v7505_v18 = vld [vmem:[#allocation7 + $0xd8] sm:$0xff]  ;;  %v7509_v7 = vld [vmem:[#allocation7 + $0xc0] sm:$0xff] }
 0x721   :  { %4056 = vtanh.f32 %v3104_v4  ;;  %9126 = vst [vmem:[#allocation16_spill] sm:$0xff] %v7509_v7  ;;  %v7521_v4 = vld [vmem:[#allocation7 + $0xa0] sm:$0xff] }
 0x722   :  { %3181 = vmatmul.mubr.f32.vlgmr.msra.gmra.mxu0 %v2936_v60  ;;  %3252 = vmatmul.mubr.f32.vlgmr.msra.gmra.mxu1 %v2936_v60  ;;  %v7512_v60 = vld [vmem:[#allocation7 + $0xd0] sm:$0xff]  ;;  %9130 = vst [vmem:[#allocation20_spill] sm:$0xff] %v7521_v4 }
 0x723   :  { %3262 = vmatpush1.msra.mxu0 %v7396_v9  ;;  %3333 = vmatpush1.msra.mxu1 %v7399_v59  ;;  %9127 = vst [vmem:[#allocation17_spill] sm:$0xff] %v7512_v60 }
 0x724   :  { %3263 = vmatprep.subr.mxu0 %v7402_v17  ;;  %3334 = vmatprep.subr.mxu1 %v7405_v19 }
 0x725   :  { %3264 = vmatpush1.msra.mxu0 %v7409_v28  ;;  %3335 = vmatpush1.msra.mxu1 %v7412_v31 }
 0x726   :  { %3265 = vmatprep.subr.mxu0 %v7415_v33  ;;  %3336 = vmatprep.subr.mxu1 %v7418_v40 }
 0x727   :  { %3266 = vmatpush1.msra.mxu0 %v7421_v42  ;;  %3337 = vmatpush1.msra.mxu1 %v7424_v49 }
 0x728   :  { %3267 = vmatprep.subr.mxu0 %v7427_v50  ;;  %3338 = vmatprep.subr.mxu1 %v7430_v53 }
 0x729   :  { %3268 = vmatpush1.msra.mxu0 %v7433_v63  ;;  %3339 = vmatpush1.msra.mxu1 %v7436_v3 }
 0x72a   :  { %v4051_v6 = vpop.eup %4050  ;;  %3269 = vmatprep.subr.mxu0 %v7439_v2  ;;  %3340 = vmatprep.subr.mxu1 %v7442_v16 }
 0x72b   :  { %v3097_v11 = vmul.f32 0.5, %v4051_v6  ;;  %3270 = vmatpush1.msra.mxu0 %v7445_v48  ;;  %3341 = vmatpush1.msra.mxu1 %v7448_v0  ;;  %v7524_v6 = vld [vmem:[#allocation7 + $0xb0] sm:$0xff] }
 0x72c   :  { %v4053_v21 = vpop.eup %4052  ;;  %3271 = vmatprep.subr.mxu0 %v7451_v45  ;;  %3342 = vmatprep.subr.mxu1 %v7454_v37  ;;  %9131 = vst [vmem:[#allocation21_spill] sm:$0xff] %v7524_v6 }
 0x72d   :  { %v3098_v38 = vadd.f32 0.5, %v3097_v11  ;;  %v3101_v43 = vmul.f32 0.5, %v4053_v21  ;;  %3272 = vmatpush1.msra.mxu0 %v7457_v12  ;;  %3343 = vmatpush1.msra.mxu1 %v7460_v51  ;;  %v4055_v44 = vpop.eup %4054  ;;  %v7527_v11 = vld [vmem:[#allocation7 + $0x88] sm:$0xff]  ;;  %v7530_v21 = vld [vmem:[#allocation7 + $0x98] sm:$0xff] }
 0x72e   :  { %3273 = vmatprep.subr.mxu0 %v7463_v25  ;;  %3344 = vmatprep.subr.mxu1 %v7466_v52  ;;  %9132 = vst [vmem:[#allocation22_spill] sm:$0xff] %v7527_v11  ;;  %9133 = vst [vmem:[#allocation23_spill] sm:$0xff] %v7530_v21 }
 0x72f   :  { %v3102_v36 = vadd.f32 0.5, %v3101_v43  ;;  %3274 = vmatpush1.msra.mxu0 %v7470_v8  ;;  %3345 = vmatpush1.msra.mxu1 %v7473_v57  ;;  %v3112_v29 = vmul.f32 %v4055_v44, %v3098_v38  ;;  %v7533_v38 = vld [vmem:[#allocation7 + $0x80] sm:$0xff]  ;;  %v7536_v43 = vld [vmem:[#allocation7 + $0x90] sm:$0xff]  ;;  %v7542_v44 = vld [vmem:[#allocation7 + $0x78] sm:$0xff] }
 0x730   :  { %3275 = vmatprep.subr.mxu0 %v7476_v10  ;;  %3346 = vmatprep.subr.mxu1 %v7479_v15  ;;  %9134 = vst [vmem:[#allocation24_spill] sm:$0xff] %v7533_v38  ;;  %9135 = vst [vmem:[#allocation25_spill] sm:$0xff] %v7536_v43 }
 0x731   :  { %v3111_v23 = vmul.f32 %v3109_v34, %v3102_v36  ;;  %3276 = vmatpush1.msra.mxu0 %v7482_v35  ;;  %3347 = vmatpush1.msra.mxu1 %v7485_v30  ;;  %v4057_v36 = vpop.eup %4056  ;;  %v7539_v34 = vld [vmem:[#allocation7 + $0x68] sm:$0xff]  ;;  %9137 = vst [vmem:[#allocation27_spill] sm:$0xff] %v7542_v44 }
 0x732   :  { %3277 = vmatprep.subr.mxu0 %v7488_v1  ;;  %3348 = vmatprep.subr.mxu1 %v7491_v61  ;;  %9136 = vst [vmem:[#allocation26_spill] sm:$0xff] %v7539_v34 }
 0x733   :  { %v7494_v22 = vadd.f32 %v3112_v29, %v3111_v23  ;;  %3278 = vmatpush1.msra.mxu0 %v7496_v13  ;;  %3349 = vmatpush1.msra.mxu1 %v7499_v14  ;;  %v7545_v23 = vld [vmem:[#allocation7 + $0x60] sm:$0xff]  ;;  %v7548_v29 = vld [vmem:[#allocation7 + $0x70] sm:$0xff] }
 0x734   :  { %3279 = vmatprep.subr.mxu0 %v7502_v41  ;;  %3350 = vmatprep.subr.mxu1 %v7505_v18  ;;  %9138 = vst [vmem:[#allocation28_spill] sm:$0xff] %v7545_v23  ;;  %9139 = vst [vmem:[#allocation29_spill] sm:$0xff] %v7548_v29 }
 0x735   :  { %4058 = vtanh.f32 %v7494_v22  ;;  %3280 = vmatpush1.msra.mxu0 %v7509_v7  ;;  %3351 = vmatpush1.msra.mxu1 %v7512_v60 }
 0x736   :  { %3281 = vmatprep.subr.mxu0 %v7515_v55  ;;  %3352 = vmatprep.subr.mxu1 %v7518_v20  ;;  %v4550_v20 = vld [vmem:[#allocation5 + $0x188] sm:$0xff] }
 0x737   :  { %3282 = vmatpush1.msra.mxu0 %v7521_v4  ;;  %3353 = vmatpush1.msra.mxu1 %v7524_v6  ;;  %v4543_v6 = vld [vmem:[#allocation5 + $0x1d8] sm:$0xff]  ;;  %v4544_v4 = vld [vmem:[#allocation5 + $0x1c0] sm:$0xff] }
 0x738   :  { %3283 = vmatprep.subr.mxu0 %v7527_v11  ;;  %3354 = vmatprep.subr.mxu1 %v7530_v21  ;;  %v7557_v21 = vld [vmem:[#allocation7 + $0x40] sm:$0xff] }
 0x739   :  { %3284 = vmatpush1.msra.mxu0 %v7533_v38  ;;  %3355 = vmatpush1.msra.mxu1 %v7536_v43  ;;  %v7551_v38 = vld [vmem:[#allocation7 + $0x48] sm:$0xff]  ;;  %v7554_v43 = vld [vmem:[#allocation7 + $0x58] sm:$0xff]  ;;  %9142 = vst [vmem:[#allocation32_spill] sm:$0xff] %v7557_v21 }
 0x73a   :  { %3285 = vmatprep.subr.mxu0 %v7539_v34  ;;  %3356 = vmatprep.subr.mxu1 %v7542_v44  ;;  %9140 = vst [vmem:[#allocation30_spill] sm:$0xff] %v7551_v38  ;;  %9141 = vst [vmem:[#allocation31_spill] sm:$0xff] %v7554_v43  ;;  %v3106_v34 = vmul.f32 0.5, %v4057_v36  ;;  %v7560_v44 = vld [vmem:[#allocation7 + $0x50] sm:$0xff] }
 0x73b   :  { %3286 = vmatpush1.msra.mxu0 %v7545_v23  ;;  %3357 = vmatpush1.msra.mxu1 %v7548_v29  ;;  %9143 = vst [vmem:[#allocation33_spill] sm:$0xff] %v7560_v44  ;;  %v7563_v23 = vld [vmem:[#allocation7 + $0x28] sm:$0xff]  ;;  %v7566_v29 = vld [vmem:[#allocation7 + $0x38] sm:$0xff]  ;;  %v7572_v36 = vld [vmem:[#allocation7 + $0x30] sm:$0xff] }
 0x73c   :  { %3287 = vmatprep.subr.mxu0 %v7551_v38  ;;  %3358 = vmatprep.subr.mxu1 %v7554_v43  ;;  %9144 = vst [vmem:[#allocation34_spill] sm:$0xff] %v7563_v23  ;;  %9145 = vst [vmem:[#allocation35_spill] sm:$0xff] %v7566_v29  ;;  %v7569_v38 = vld [vmem:[#allocation7 + $0x20] sm:$0xff] }
 0x73d   :  { %3288 = vmatpush1.msra.mxu0 %v7557_v21  ;;  %3359 = vmatpush1.msra.mxu1 %v7560_v44  ;;  %9146 = vst [vmem:[#allocation36_spill] sm:$0xff] %v7569_v38  ;;  %9147 = vst [vmem:[#allocation37_spill] sm:$0xff] %v7572_v36  ;;  %v7575_v21 = vld [vmem:[#allocation7 + $0x8] sm:$0xff]  ;;  %v7578_v44 = vld [vmem:[#allocation7 + $0x18] sm:$0xff] }
 0x73e   :  { %3289 = vmatprep.subr.mxu0 %v7563_v23  ;;  %3360 = vmatprep.subr.mxu1 %v7566_v29  ;;  %9148 = vst [vmem:[#allocation38_spill] sm:$0xff] %v7575_v21  ;;  %9149 = vst [vmem:[#allocation39_spill] sm:$0xff] %v7578_v44  ;;  %v3107_v23 = vadd.f32 0.5, %v3106_v34  ;;  %v7581_v43 = vld [vmem:[#allocation7] sm:$0xff]  ;;  %v7584_v29 = vld [vmem:[#allocation7 + $0x10] sm:$0xff] }
 0x73f   :  { %3290 = vmatpush1.msra.mxu0 %v7569_v38  ;;  %3361 = vmatpush1.msra.mxu1 %v7572_v36  ;;  %9150 = vst [vmem:[#allocation40_spill] sm:$0xff] %v7581_v43  ;;  %9151 = vst [vmem:[#allocation41_spill] sm:$0xff] %v7584_v29  ;;  %v4538_v36 = vld [vmem:[#allocation5 + $0x1e8] sm:$0xff]  ;;  %v4540_v34 = vld [vmem:[#allocation5 + $0x1e0] sm:$0xff] }
 0x740   :  { %3291 = vmatprep.subr.mxu0 %v7575_v21  ;;  %3362 = vmatprep.subr.mxu1 %v7578_v44  ;;  %v4539_v21 = vld [vmem:[#allocation5 + $0x1f8] sm:$0xff] }
 0x741   :  { %3292 = vmatpush1.msra.mxu0 %v7581_v43  ;;  %3363 = vmatpush1.msra.mxu1 %v7584_v29  ;;  %v4541_v43 = vld [vmem:[#allocation5 + $0x1f0] sm:$0xff]  ;;  %v4542_v29 = vld [vmem:[#allocation5 + $0x1c8] sm:$0xff] }
 0x742   :  { %v4059_v38 = vpop.eup %4058  ;;  %3325 = vmatprep.mubr.f32.mxu0 %v8995_v26  ;;  %3396 = vmatprep.mubr.f32.mxu1 %v8995_v26 }
 0x743   :  { %3421 = vmatprep.subr.mxu0 %v4538_v36  ;;  %3492 = vmatprep.subr.mxu1 %v4539_v21  ;;  %v3115_v11 = vmul.f32 %v4059_v38, %v3107_v23  ;;  %v4545_v36 = vld [vmem:[#allocation5 + $0x1d0] sm:$0xff]  ;;  %v4546_v21 = vld [vmem:[#allocation5 + $0x1a8] sm:$0xff]  ;;  %v4548_v38 = vld [vmem:[#allocation5 + $0x1a0] sm:$0xff] }
 0x744   :  { %v4549_v23 = vld [vmem:[#allocation5 + $0x1b0] sm:$0xff] }
 0x745   :  { %v7589_v44 = vrot.slane %v3115_v11, 6  ;;  %v4547_v11 = vld [vmem:[#allocation5 + $0x1b8] sm:$0xff] }
 0x747   :  { %3326 = vmatmul.mubr.f32.vlgmr.msra.gmra.mxu0 %v7589_v44  ;;  %3397 = vmatmul.mubr.f32.vlgmr.msra.gmra.mxu1 %v7589_v44 }
 0x748   :  { %3422 = vmatpush1.msra.mxu0 %v4540_v34  ;;  %3493 = vmatpush1.msra.mxu1 %v4541_v43  ;;  %v4551_v34 = vld [vmem:[#allocation5 + $0x198] sm:$0xff]  ;;  %v4552_v43 = vld [vmem:[#allocation5 + $0x180] sm:$0xff] }
 0x749   :  { %3423 = vmatprep.subr.mxu0 %v4542_v29  ;;  %3494 = vmatprep.subr.mxu1 %v4543_v6  ;;  %v4553_v29 = vld [vmem:[#allocation5 + $0x190] sm:$0xff]  ;;  %v4554_v6 = vld [vmem:[#allocation5 + $0x168] sm:$0xff] }
 0x74a   :  { %3424 = vmatpush1.msra.mxu0 %v4544_v4  ;;  %3495 = vmatpush1.msra.mxu1 %v4545_v36  ;;  %v4555_v4 = vld [vmem:[#allocation5 + $0x178] sm:$0xff]  ;;  %v4556_v36 = vld [vmem:[#allocation5 + $0x160] sm:$0xff] }
 0x74b   :  { %3425 = vmatprep.subr.mxu0 %v4546_v21  ;;  %3496 = vmatprep.subr.mxu1 %v4547_v11  ;;  %v4557_v21 = vld [vmem:[#allocation5 + $0x170] sm:$0xff]  ;;  %v4558_v11 = vld [vmem:[#allocation5 + $0x148] sm:$0xff] }
 0x74c   :  { %3426 = vmatpush1.msra.mxu0 %v4548_v38  ;;  %3497 = vmatpush1.msra.mxu1 %v4549_v23  ;;  %v4559_v38 = vld [vmem:[#allocation5 + $0x158] sm:$0xff]  ;;  %v4560_v23 = vld [vmem:[#allocation5 + $0x140] sm:$0xff] }
 0x74d   :  { %3427 = vmatprep.subr.mxu0 %v4550_v20  ;;  %3498 = vmatprep.subr.mxu1 %v4551_v34  ;;  %v4561_v20 = vld [vmem:[#allocation5 + $0x150] sm:$0xff]  ;;  %v4562_v34 = vld [vmem:[#allocation5 + $0x128] sm:$0xff] }
 0x74e   :  { %3428 = vmatpush1.msra.mxu0 %v4552_v43  ;;  %3499 = vmatpush1.msra.mxu1 %v4553_v29  ;;  %v4563_v43 = vld [vmem:[#allocation5 + $0x138] sm:$0xff]  ;;  %v4564_v29 = vld [vmem:[#allocation5 + $0x120] sm:$0xff] }
 0x74f   :  { %3429 = vmatprep.subr.mxu0 %v4554_v6  ;;  %3500 = vmatprep.subr.mxu1 %v4555_v4  ;;  %v4565_v6 = vld [vmem:[#allocation5 + $0x130] sm:$0xff]  ;;  %v4566_v4 = vld [vmem:[#allocation5 + $0x108] sm:$0xff] }
 0x750   :  { %3430 = vmatpush1.msra.mxu0 %v4556_v36  ;;  %3501 = vmatpush1.msra.mxu1 %v4557_v21  ;;  %v4567_v36 = vld [vmem:[#allocation5 + $0x118] sm:$0xff]  ;;  %v4568_v21 = vld [vmem:[#allocation5 + $0x100] sm:$0xff] }
 0x751   :  { %3431 = vmatprep.subr.mxu0 %v4558_v11  ;;  %3502 = vmatprep.subr.mxu1 %v4559_v38  ;;  %v4569_v11 = vld [vmem:[#allocation5 + $0x110] sm:$0xff]  ;;  %v4570_v38 = vld [vmem:[#allocation5 + $0xe8] sm:$0xff] }
 0x752   :  { %3432 = vmatpush1.msra.mxu0 %v4560_v23  ;;  %3503 = vmatpush1.msra.mxu1 %v4561_v20  ;;  %v4571_v23 = vld [vmem:[#allocation5 + $0xf8] sm:$0xff]  ;;  %v4572_v20 = vld [vmem:[#allocation5 + $0xe0] sm:$0xff] }
 0x753   :  { %3433 = vmatprep.subr.mxu0 %v4562_v34  ;;  %3504 = vmatprep.subr.mxu1 %v4563_v43  ;;  %v4573_v34 = vld [vmem:[#allocation5 + $0xf0] sm:$0xff]  ;;  %v4574_v43 = vld [vmem:[#allocation5 + $0xc8] sm:$0xff] }
 0x754   :  { %3434 = vmatpush1.msra.mxu0 %v4564_v29  ;;  %3505 = vmatpush1.msra.mxu1 %v4565_v6  ;;  %v4575_v29 = vld [vmem:[#allocation5 + $0xd8] sm:$0xff]  ;;  %v4576_v6 = vld [vmem:[#allocation5 + $0xc0] sm:$0xff] }
 0x755   :  { %3435 = vmatprep.subr.mxu0 %v4566_v4  ;;  %3506 = vmatprep.subr.mxu1 %v4567_v36  ;;  %v4577_v4 = vld [vmem:[#allocation5 + $0xd0] sm:$0xff]  ;;  %v4578_v36 = vld [vmem:[#allocation5 + $0xa8] sm:$0xff] }
 0x756   :  { %3436 = vmatpush1.msra.mxu0 %v4568_v21  ;;  %3507 = vmatpush1.msra.mxu1 %v4569_v11  ;;  %v4579_v21 = vld [vmem:[#allocation5 + $0xb8] sm:$0xff]  ;;  %v4580_v11 = vld [vmem:[#allocation5 + $0xa0] sm:$0xff] }
 0x757   :  { %3437 = vmatprep.subr.mxu0 %v4570_v38  ;;  %3508 = vmatprep.subr.mxu1 %v4571_v23  ;;  %v4581_v38 = vld [vmem:[#allocation5 + $0xb0] sm:$0xff]  ;;  %v4582_v23 = vld [vmem:[#allocation5 + $0x88] sm:$0xff] }
 0x758   :  { %3438 = vmatpush1.msra.mxu0 %v4572_v20  ;;  %3509 = vmatpush1.msra.mxu1 %v4573_v34  ;;  %v4583_v20 = vld [vmem:[#allocation5 + $0x98] sm:$0xff]  ;;  %v4584_v34 = vld [vmem:[#allocation5 + $0x80] sm:$0xff] }
 0x759   :  { %3439 = vmatprep.subr.mxu0 %v4574_v43  ;;  %3510 = vmatprep.subr.mxu1 %v4575_v29  ;;  %v4585_v43 = vld [vmem:[#allocation5 + $0x90] sm:$0xff]  ;;  %v4586_v29 = vld [vmem:[#allocation5 + $0x68] sm:$0xff] }
 0x75a   :  { %3440 = vmatpush1.msra.mxu0 %v4576_v6  ;;  %3511 = vmatpush1.msra.mxu1 %v4577_v4  ;;  %v4587_v6 = vld [vmem:[#allocation5 + $0x78] sm:$0xff]  ;;  %v4588_v4 = vld [vmem:[#allocation5 + $0x60] sm:$0xff] }
 0x75b   :  { %3441 = vmatprep.subr.mxu0 %v4578_v36  ;;  %3512 = vmatprep.subr.mxu1 %v4579_v21  ;;  %v4589_v36 = vld [vmem:[#allocation5 + $0x70] sm:$0xff]  ;;  %v4590_v21 = vld [vmem:[#allocation5 + $0x48] sm:$0xff] }
 0x75c   :  { %3442 = vmatpush1.msra.mxu0 %v4580_v11  ;;  %3513 = vmatpush1.msra.mxu1 %v4581_v38  ;;  %v4591_v11 = vld [vmem:[#allocation5 + $0x58] sm:$0xff]  ;;  %v4592_v38 = vld [vmem:[#allocation5 + $0x40] sm:$0xff] }
 0x75d   :  { %3443 = vmatprep.subr.mxu0 %v4582_v23  ;;  %3514 = vmatprep.subr.mxu1 %v4583_v20  ;;  %v4593_v23 = vld [vmem:[#allocation5 + $0x50] sm:$0xff]  ;;  %v4594_v20 = vld [vmem:[#allocation5 + $0x28] sm:$0xff] }
 0x75e   :  { %3444 = vmatpush1.msra.mxu0 %v4584_v34  ;;  %3515 = vmatpush1.msra.mxu1 %v4585_v43  ;;  %v4595_v34 = vld [vmem:[#allocation5 + $0x38] sm:$0xff]  ;;  %v4596_v43 = vld [vmem:[#allocation5 + $0x20] sm:$0xff] }
 0x75f   :  { %3445 = vmatprep.subr.mxu0 %v4586_v29  ;;  %3516 = vmatprep.subr.mxu1 %v4587_v6  ;;  %v4597_v29 = vld [vmem:[#allocation5 + $0x30] sm:$0xff]  ;;  %v4598_v6 = vld [vmem:[#allocation5 + $0x8] sm:$0xff] }
 0x760   :  { %3446 = vmatpush1.msra.mxu0 %v4588_v4  ;;  %3517 = vmatpush1.msra.mxu1 %v4589_v36  ;;  %v4599_v4 = vld [vmem:[#allocation5 + $0x18] sm:$0xff]  ;;  %v4600_v36 = vld [vmem:[#allocation5] sm:$0xff] }
 0x761   :  { %3447 = vmatprep.subr.mxu0 %v4590_v21  ;;  %3518 = vmatprep.subr.mxu1 %v4591_v11  ;;  %v4601_v21 = vld [vmem:[#allocation5 + $0x10] sm:$0xff]  ;;  %v4602_v11 = vld [vmem:[#allocation8 + $0x1e8] sm:$0xff] }
 0x762   :  { %3448 = vmatpush1.msra.mxu0 %v4592_v38  ;;  %3519 = vmatpush1.msra.mxu1 %v4593_v23  ;;  %v4603_v38 = vld [vmem:[#allocation8 + $0x1f8] sm:$0xff]  ;;  %v4604_v23 = vld [vmem:[#allocation8 + $0x1e0] sm:$0xff] }
 0x763   :  { %3449 = vmatprep.subr.mxu0 %v4594_v20  ;;  %3520 = vmatprep.subr.mxu1 %v4595_v34  ;;  %v4605_v20 = vld [vmem:[#allocation8 + $0x1f0] sm:$0xff]  ;;  %v4606_v34 = vld [vmem:[#allocation8 + $0x1c8] sm:$0xff] }
 0x764   :  { %3450 = vmatpush1.msra.mxu0 %v4596_v43  ;;  %3521 = vmatpush1.msra.mxu1 %v4597_v29  ;;  %v4607_v43 = vld [vmem:[#allocation8 + $0x1d8] sm:$0xff]  ;;  %v4608_v29 = vld [vmem:[#allocation8 + $0x1c0] sm:$0xff] }
 0x765   :  { %3451 = vmatprep.subr.mxu0 %v4598_v6  ;;  %3522 = vmatprep.subr.mxu1 %v4599_v4  ;;  %v4609_v6 = vld [vmem:[#allocation8 + $0x1d0] sm:$0xff]  ;;  %v4610_v4 = vld [vmem:[#allocation8 + $0x1a8] sm:$0xff] }
 0x766   :  { %3452 = vmatpush1.msra.mxu0 %v4600_v36  ;;  %3485 = vmatprep.mubr.f32.mxu0 %v8995_v26  ;;  %v4611_v36 = vld [vmem:[#allocation8 + $0x1b8] sm:$0xff] }
 0x767   :  { %3523 = vmatpush1.msra.mxu1 %v4601_v21  ;;  %3556 = vmatprep.mubr.f32.mxu1 %v8995_v26  ;;  %v4613_v21 = vld [vmem:[#allocation8 + $0x1b0] sm:$0xff] }
 0x768   :  { %3486 = vmatmul.mubr.f32.vlgmr.msra.gmra.mxu0 %v7589_v44  ;;  %3557 = vmatmul.mubr.f32.vlgmr.msra.gmra.mxu1 %v7589_v44  ;;  %v4612_v44 = vld [vmem:[#allocation8 + $0x1a0] sm:$0xff] }
 0x769   :  { %3600 = vmatprep.subr.mxu0 %v4602_v11  ;;  %3671 = vmatprep.subr.mxu1 %v4603_v38  ;;  %v4614_v11 = vld [vmem:[#allocation8 + $0x188] sm:$0xff]  ;;  %v4615_v38 = vld [vmem:[#allocation8 + $0x198] sm:$0xff] }
 0x76a   :  { %3601 = vmatpush1.msra.mxu0 %v4604_v23  ;;  %3672 = vmatpush1.msra.mxu1 %v4605_v20  ;;  %v4616_v23 = vld [vmem:[#allocation8 + $0x180] sm:$0xff]  ;;  %v4617_v20 = vld [vmem:[#allocation8 + $0x190] sm:$0xff] }
 0x76b   :  { %3602 = vmatprep.subr.mxu0 %v4606_v34  ;;  %3673 = vmatprep.subr.mxu1 %v4607_v43  ;;  %v4618_v34 = vld [vmem:[#allocation8 + $0x168] sm:$0xff]  ;;  %v4619_v43 = vld [vmem:[#allocation8 + $0x178] sm:$0xff] }
 0x76c   :  { %3603 = vmatpush1.msra.mxu0 %v4608_v29  ;;  %3674 = vmatpush1.msra.mxu1 %v4609_v6  ;;  %v4620_v29 = vld [vmem:[#allocation8 + $0x160] sm:$0xff]  ;;  %v4621_v6 = vld [vmem:[#allocation8 + $0x170] sm:$0xff] }
 0x76d   :  { %3604 = vmatprep.subr.mxu0 %v4610_v4  ;;  %3675 = vmatprep.subr.mxu1 %v4611_v36  ;;  %v4622_v4 = vld [vmem:[#allocation8 + $0x148] sm:$0xff]  ;;  %v4623_v36 = vld [vmem:[#allocation8 + $0x158] sm:$0xff] }
 0x76e   :  { %3605 = vmatpush1.msra.mxu0 %v4612_v44  ;;  %3676 = vmatpush1.msra.mxu1 %v4613_v21  ;;  %v4624_v44 = vld [vmem:[#allocation8 + $0x140] sm:$0xff]  ;;  %v4625_v21 = vld [vmem:[#allocation8 + $0x150] sm:$0xff] }
 0x76f   :  { %3606 = vmatprep.subr.mxu0 %v4614_v11  ;;  %3677 = vmatprep.subr.mxu1 %v4615_v38  ;;  %v4626_v11 = vld [vmem:[#allocation8 + $0x128] sm:$0xff]  ;;  %v4627_v38 = vld [vmem:[#allocation8 + $0x138] sm:$0xff] }
 0x770   :  { %3607 = vmatpush1.msra.mxu0 %v4616_v23  ;;  %3678 = vmatpush1.msra.mxu1 %v4617_v20  ;;  %v4628_v23 = vld [vmem:[#allocation8 + $0x120] sm:$0xff]  ;;  %v4629_v20 = vld [vmem:[#allocation8 + $0x130] sm:$0xff] }
 0x771   :  { %3608 = vmatprep.subr.mxu0 %v4618_v34  ;;  %3679 = vmatprep.subr.mxu1 %v4619_v43  ;;  %v4630_v34 = vld [vmem:[#allocation8 + $0x108] sm:$0xff]  ;;  %v4631_v43 = vld [vmem:[#allocation8 + $0x118] sm:$0xff] }
 0x772   :  { %3609 = vmatpush1.msra.mxu0 %v4620_v29  ;;  %3680 = vmatpush1.msra.mxu1 %v4621_v6  ;;  %v4632_v29 = vld [vmem:[#allocation8 + $0x100] sm:$0xff]  ;;  %v4633_v6 = vld [vmem:[#allocation8 + $0x110] sm:$0xff] }
 0x773   :  { %3610 = vmatprep.subr.mxu0 %v4622_v4  ;;  %3681 = vmatprep.subr.mxu1 %v4623_v36  ;;  %v4634_v4 = vld [vmem:[#allocation8 + $0xe8] sm:$0xff]  ;;  %v4635_v36 = vld [vmem:[#allocation8 + $0xf8] sm:$0xff] }
 0x774   :  { %3611 = vmatpush1.msra.mxu0 %v4624_v44  ;;  %3682 = vmatpush1.msra.mxu1 %v4625_v21  ;;  %v4636_v44 = vld [vmem:[#allocation8 + $0xe0] sm:$0xff]  ;;  %v4637_v21 = vld [vmem:[#allocation8 + $0xf0] sm:$0xff] }
 0x775   :  { %3612 = vmatprep.subr.mxu0 %v4626_v11  ;;  %3683 = vmatprep.subr.mxu1 %v4627_v38  ;;  %v4638_v11 = vld [vmem:[#allocation8 + $0xc8] sm:$0xff]  ;;  %v4639_v38 = vld [vmem:[#allocation8 + $0xd8] sm:$0xff] }
 0x776   :  { %3613 = vmatpush1.msra.mxu0 %v4628_v23  ;;  %3684 = vmatpush1.msra.mxu1 %v4629_v20  ;;  %v4640_v23 = vld [vmem:[#allocation8 + $0xc0] sm:$0xff]  ;;  %v4641_v20 = vld [vmem:[#allocation8 + $0xd0] sm:$0xff] }
 0x777   :  { %3614 = vmatprep.subr.mxu0 %v4630_v34  ;;  %3685 = vmatprep.subr.mxu1 %v4631_v43  ;;  %v4642_v34 = vld [vmem:[#allocation8 + $0xa8] sm:$0xff]  ;;  %v4643_v43 = vld [vmem:[#allocation8 + $0xb8] sm:$0xff] }
 0x778   :  { %3615 = vmatpush1.msra.mxu0 %v4632_v29  ;;  %3686 = vmatpush1.msra.mxu1 %v4633_v6  ;;  %v4644_v29 = vld [vmem:[#allocation8 + $0xa0] sm:$0xff]  ;;  %v4645_v6 = vld [vmem:[#allocation8 + $0xb0] sm:$0xff] }
 0x779   :  { %3616 = vmatprep.subr.mxu0 %v4634_v4  ;;  %3687 = vmatprep.subr.mxu1 %v4635_v36  ;;  %v4646_v4 = vld [vmem:[#allocation8 + $0x88] sm:$0xff]  ;;  %v4647_v36 = vld [vmem:[#allocation8 + $0x98] sm:$0xff] }
 0x77a   :  { %3617 = vmatpush1.msra.mxu0 %v4636_v44  ;;  %3688 = vmatpush1.msra.mxu1 %v4637_v21  ;;  %v4648_v44 = vld [vmem:[#allocation8 + $0x80] sm:$0xff]  ;;  %v4649_v21 = vld [vmem:[#allocation8 + $0x90] sm:$0xff] }
 0x77b   :  { %3618 = vmatprep.subr.mxu0 %v4638_v11  ;;  %3689 = vmatprep.subr.mxu1 %v4639_v38  ;;  %v4650_v11 = vld [vmem:[#allocation8 + $0x68] sm:$0xff]  ;;  %v4651_v38 = vld [vmem:[#allocation8 + $0x78] sm:$0xff] }
 0x77c   :  { %3619 = vmatpush1.msra.mxu0 %v4640_v23  ;;  %3690 = vmatpush1.msra.mxu1 %v4641_v20  ;;  %v4652_v23 = vld [vmem:[#allocation8 + $0x60] sm:$0xff]  ;;  %v4653_v20 = vld [vmem:[#allocation8 + $0x70] sm:$0xff] }
 0x77d   :  { %3620 = vmatprep.subr.mxu0 %v4642_v34  ;;  %3691 = vmatprep.subr.mxu1 %v4643_v43  ;;  %v4654_v34 = vld [vmem:[#allocation8 + $0x48] sm:$0xff]  ;;  %v4655_v43 = vld [vmem:[#allocation8 + $0x58] sm:$0xff] }
 0x77e   :  { %3621 = vmatpush1.msra.mxu0 %v4644_v29  ;;  %3692 = vmatpush1.msra.mxu1 %v4645_v6  ;;  %v4656_v29 = vld [vmem:[#allocation8 + $0x40] sm:$0xff]  ;;  %v4657_v6 = vld [vmem:[#allocation8 + $0x50] sm:$0xff] }
 0x77f   :  { %3622 = vmatprep.subr.mxu0 %v4646_v4  ;;  %3693 = vmatprep.subr.mxu1 %v4647_v36  ;;  %v4658_v4 = vld [vmem:[#allocation8 + $0x28] sm:$0xff]  ;;  %v4659_v36 = vld [vmem:[#allocation8 + $0x38] sm:$0xff] }
 0x780   :  { %3623 = vmatpush1.msra.mxu0 %v4648_v44  ;;  %3694 = vmatpush1.msra.mxu1 %v4649_v21  ;;  %v4660_v44 = vld [vmem:[#allocation8 + $0x20] sm:$0xff]  ;;  %v4661_v21 = vld [vmem:[#allocation8 + $0x30] sm:$0xff] }
 0x781   :  { %3624 = vmatprep.subr.mxu0 %v4650_v11  ;;  %3695 = vmatprep.subr.mxu1 %v4651_v38  ;;  %v4662_v11 = vld [vmem:[#allocation8 + $0x8] sm:$0xff]  ;;  %v4663_v38 = vld [vmem:[#allocation8 + $0x18] sm:$0xff] }
 0x782   :  { %3625 = vmatpush1.msra.mxu0 %v4652_v23  ;;  %3696 = vmatpush1.msra.mxu1 %v4653_v20  ;;  %v4664_v23 = vld [vmem:[#allocation8] sm:$0xff]  ;;  %v4665_v20 = vld [vmem:[#allocation8 + $0x10] sm:$0xff] }
 0x783   :  { %3626 = vmatprep.subr.mxu0 %v4654_v34  ;;  %3697 = vmatprep.subr.mxu1 %v4655_v43 }
 0x784   :  { %3627 = vmatpush1.msra.mxu0 %v4656_v29  ;;  %3698 = vmatpush1.msra.mxu1 %v4657_v6 }
 0x785   :  { %3628 = vmatprep.subr.mxu0 %v4658_v4  ;;  %3699 = vmatprep.subr.mxu1 %v4659_v36 }
 0x786   :  { %3629 = vmatpush1.msra.mxu0 %v4660_v44  ;;  %3700 = vmatpush1.msra.mxu1 %v4661_v21 }
 0x787   :  { %3630 = vmatprep.subr.mxu0 %v4662_v11  ;;  %3701 = vmatprep.subr.mxu1 %v4663_v38 }
 0x788   :  { %3631 = vmatpush1.msra.mxu0 %v4664_v23  ;;  %3664 = vmatprep.mubr.f32.mxu0 %v8995_v26 }
 0x789   :  { %3702 = vmatpush1.msra.mxu1 %v4665_v20  ;;  %3735 = vmatprep.mubr.f32.mxu1 %v8995_v26 }
 0x78a   :  { %3745 = vmatprep.subr.mxu0 %v7379_v24  ;;  %3816 = vmatprep.subr.mxu1 %v7382_v62 }
 0x7e2   :  { %v3182_v34 = vpop.f32.mrf.mxu0  ;;  %v3253_v43 = vpop.f32.mrf.mxu1 }
 0x7e3   :  { %v3183_v6 = vadd.f32 %v3182_v34, %v9124_v39  ;;  %v3254_v26 = vadd.f32 %v3253_v43, %v8502_v27 }
 0x7e4   :  { %v3184_v29 = vpop.f32.mrf.mxu0  ;;  %v3255_v21 = vpop.f32.mrf.mxu1 }
 0x7e5   :  { %v3185_v36 = vadd.f32 %v3184_v29, %v9125_v46  ;;  %v3256_v60 = vadd.f32 %v3255_v21, %v8503_v32 }
 0x807   :  { %v3327_v4 = vpop.f32.mrf.mxu0  ;;  %v3398_v20 = vpop.f32.mrf.mxu1 }
 0x808   :  { %v3328_v44 = vadd.f32 %v3327_v4, %v3183_v6  ;;  %v3399_v55 = vadd.f32 %v3398_v20, %v3254_v26 }
 0x809   :  { %v3329_v11 = vpop.f32.mrf.mxu0  ;;  %v3400_v62 = vpop.f32.mrf.mxu1 }
 0x80a   :  { %v3403_v38 = vmul.f32 0.5, %v3328_v44  ;;  %v3330_v23 = vadd.f32 %v3329_v11, %v3185_v36  ;;  %v3401_v34 = vadd.f32 %v3400_v62, %v3256_v60 }
 0x80c   :  { %4060 = vtanh.f32 %v3403_v38  ;;  %v3407_v24 = vmul.f32 0.5, %v3330_v23  ;;  %v3412_v39 = vmul.f32 0.5, %v3401_v34 }
 0x80e   :  { %4062 = vtanh.f32 %v3407_v24 }
 0x80f   :  { %4064 = vtanh.f32 %v3399_v55 }
 0x810   :  { %4066 = vtanh.f32 %v3412_v39 }
 0x819   :  { %v4061_v7 = vpop.eup %4060 }
 0x81a   :  { %v3405_v29 = vmul.f32 0.5, %v4061_v7 }
 0x81b   :  { %v4063_v6 = vpop.eup %4062 }
 0x81c   :  { %v3406_v4 = vadd.f32 0.5, %v3405_v29  ;;  %v3409_v46 = vmul.f32 0.5, %v4063_v6  ;;  %v4065_v44 = vpop.eup %4064 }
 0x81d   :  { %v4067_v21 = vpop.eup %4066 }
 0x81e   :  { %v3410_v36 = vadd.f32 0.5, %v3409_v46  ;;  %v3417_v11 = vmul.f32 %v4065_v44, %v3406_v4  ;;  %v3414_v24 = vmul.f32 0.5, %v4067_v21 }
 0x820   :  { %v3416_v43 = vmul.f32 %v3410_v36, %v7390_v47  ;;  %v3415_v34 = vadd.f32 0.5, %v3414_v24 }
 0x822   :  { %v7606_v38 = vadd.f32 %v3417_v11, %v3416_v43  ;;  %v9177_v43 = vmov 0.0  }
 0x824   :  { %4068 = vtanh.f32 %v7606_v38 }
 0x828   :  { %v3487_v26 = vpop.f32.mrf.mxu0  ;;  %v3558_v60 = vpop.f32.mrf.mxu1 }
 0x829   :  { %v3567_v55 = vrot.slane %v3487_v26, 1  ;;  %v3569_v39 = vrot.slane %v3558_v60, 1  ;;  %v9178_v26 = vld [vmem:[#allocation41_spill] sm:$0xff] }
 0x82a   :  { %v3489_v23 = vpop.f32.mrf.mxu0  ;;  %v3560_v29 = vpop.f32.mrf.mxu1 }
 0x82b   :  { %v3575_v7 = vadd.f32 %v3567_v55, %v5094_v58  ;;  %v3568_v20 = vrot.slane %v3489_v23, 1  ;;  %v3577_v4 = vadd.f32 %v3569_v39, %v5104_v54  ;;  %v3570_v44 = vrot.slane %v3560_v29, 1  ;;  %v9180_v39 = vld [vmem:[#allocation15_spill] sm:$0xff] }
 0x82d   :  { %v3579_v62 = vmul.f32 0.5, %v3575_v7  ;;  %v3576_v46 = vadd.f32 %v3568_v20, %v5099_v56  ;;  %v3578_v56 = vadd.f32 %v3570_v44, %v5106_v5  ;;  %v9179_v20 = vld [vmem:[#allocation165_spill] sm:$0xff] }
 0x82f   :  { %4070 = vtanh.f32 %v3579_v62  ;;  %v3583_v47 = vmul.f32 0.5, %v3576_v46  ;;  %v3588_v54 = vmul.f32 0.5, %v3578_v56 }
 0x831   :  { %v4069_v6 = vpop.eup %4068  ;;  %4072 = vtanh.f32 %v3583_v47 }
 0x832   :  { %v3420_v36 = vmul.f32 %v4069_v6, %v3415_v34  ;;  %4074 = vtanh.f32 %v3577_v4 }
 0x833   :  { %4076 = vtanh.f32 %v3588_v54 }
 0x834   :  { %3665 = vmatmul.mubr.f32.vlgmr.msra.gmra.mxu0 %v3420_v36  ;;  %3736 = vmatmul.mubr.f32.vlgmr.msra.gmra.mxu1 %v3420_v36 }
 0x835   :  { %3746 = vmatpush1.msra.mxu0 %v7396_v9  ;;  %3817 = vmatpush1.msra.mxu1 %v7399_v59 }
 0x836   :  { %3747 = vmatprep.subr.mxu0 %v7402_v17  ;;  %3818 = vmatprep.subr.mxu1 %v7405_v19 }
 0x837   :  { %3748 = vmatpush1.msra.mxu0 %v7409_v28  ;;  %3819 = vmatpush1.msra.mxu1 %v7412_v31  ;;  %v3593_v28 = vrot.slane %v7494_v22, 7  ;;  %v9173_v22 = vld [vmem:[#allocation37_spill] sm:$0xff] }
 0x838   :  { %3749 = vmatprep.subr.mxu0 %v7415_v33  ;;  %3820 = vmatprep.subr.mxu1 %v7418_v40 }
 0x839   :  { %3750 = vmatpush1.msra.mxu0 %v7421_v42  ;;  %3821 = vmatpush1.msra.mxu1 %v7424_v49  ;;  %v9152_v49 = vld [vmem:[#allocation16_spill] sm:$0xff] }
 0x83a   :  { %3751 = vmatprep.subr.mxu0 %v7427_v50  ;;  %3822 = vmatprep.subr.mxu1 %v7430_v53  ;;  %v9153_v50 = vld [vmem:[#allocation17_spill] sm:$0xff]  ;;  %v9154_v53 = vld [vmem:[#allocation18_spill] sm:$0xff] }
 0x83b   :  { %3752 = vmatpush1.msra.mxu0 %v7433_v63  ;;  %3823 = vmatpush1.msra.mxu1 %v7436_v3  ;;  %v9155_v63 = vld [vmem:[#allocation19_spill] sm:$0xff]  ;;  %v9156_v3 = vld [vmem:[#allocation20_spill] sm:$0xff] }
 0x83c   :  { %v4071_v58 = vpop.eup %4070  ;;  %3753 = vmatprep.subr.mxu0 %v7439_v2  ;;  %3824 = vmatprep.subr.mxu1 %v7442_v16  ;;  %v9157_v2 = vld [vmem:[#allocation21_spill] sm:$0xff]  ;;  %v9158_v16 = vld [vmem:[#allocation22_spill] sm:$0xff] }
 0x83d   :  { %v3581_v5 = vmul.f32 0.5, %v4071_v58  ;;  %3754 = vmatpush1.msra.mxu0 %v7445_v48  ;;  %3825 = vmatpush1.msra.mxu1 %v7448_v0  ;;  %v9159_v48 = vld [vmem:[#allocation23_spill] sm:$0xff]  ;;  %v9160_v0 = vld [vmem:[#allocation24_spill] sm:$0xff] }
 0x83e   :  { %v4073_v9 = vpop.eup %4072  ;;  %3755 = vmatprep.subr.mxu0 %v7451_v45  ;;  %3826 = vmatprep.subr.mxu1 %v7454_v37  ;;  %v9161_v45 = vld [vmem:[#allocation25_spill] sm:$0xff] }
 0x83f   :  { %v3582_v59 = vadd.f32 0.5, %v3581_v5  ;;  %v3585_v17 = vmul.f32 0.5, %v4073_v9  ;;  %3756 = vmatpush1.msra.mxu0 %v7457_v12  ;;  %3827 = vmatpush1.msra.mxu1 %v7460_v51  ;;  %v4075_v31 = vpop.eup %4074  ;;  %v9162_v12 = vld [vmem:[#allocation26_spill] sm:$0xff]  ;;  %v9163_v51 = vld [vmem:[#allocation27_spill] sm:$0xff] }
 0x840   :  { %3757 = vmatprep.subr.mxu0 %v7463_v25  ;;  %3828 = vmatprep.subr.mxu1 %v7466_v52  ;;  %v4077_v37 = vpop.eup %4076  ;;  %v9164_v25 = vld [vmem:[#allocation28_spill] sm:$0xff]  ;;  %v9165_v52 = vld [vmem:[#allocation29_spill] sm:$0xff] }
 0x841   :  { %v3586_v19 = vadd.f32 0.5, %v3585_v17  ;;  %3758 = vmatpush1.msra.mxu0 %v7470_v8  ;;  %3829 = vmatpush1.msra.mxu1 %v7473_v57  ;;  %v3596_v40 = vmul.f32 %v4075_v31, %v3582_v59  ;;  %v9166_v8 = vld [vmem:[#allocation30_spill] sm:$0xff]  ;;  %v9167_v57 = vld [vmem:[#allocation31_spill] sm:$0xff] }
 0x842   :  { %3759 = vmatprep.subr.mxu0 %v7476_v10  ;;  %3830 = vmatprep.subr.mxu1 %v7479_v15  ;;  %v3590_v10 = vmul.f32 0.5, %v4077_v37  ;;  %v9168_v15 = vld [vmem:[#allocation32_spill] sm:$0xff] }
 0x843   :  { %v3595_v33 = vmul.f32 %v3593_v28, %v3586_v19  ;;  %3760 = vmatpush1.msra.mxu0 %v7482_v35  ;;  %3831 = vmatpush1.msra.mxu1 %v7485_v30  ;;  %v9169_v35 = vld [vmem:[#allocation33_spill] sm:$0xff]  ;;  %v9170_v30 = vld [vmem:[#allocation34_spill] sm:$0xff] }
 0x844   :  { %3761 = vmatprep.subr.mxu0 %v7488_v1  ;;  %3832 = vmatprep.subr.mxu1 %v7491_v61  ;;  %v9171_v1 = vld [vmem:[#allocation35_spill] sm:$0xff]  ;;  %v9172_v61 = vld [vmem:[#allocation36_spill] sm:$0xff] }
 0x845   :  { %v3597_v42 = vadd.f32 %v3596_v40, %v3595_v33  ;;  %3762 = vmatpush1.msra.mxu0 %v7496_v13  ;;  %3833 = vmatpush1.msra.mxu1 %v7499_v14  ;;  %v9174_v13 = vld [vmem:[#allocation38_spill] sm:$0xff]  ;;  %v9175_v14 = vld [vmem:[#allocation39_spill] sm:$0xff] }
 0x846   :  { %3763 = vmatprep.subr.mxu0 %v7502_v41  ;;  %3834 = vmatprep.subr.mxu1 %v7505_v18  ;;  %v3591_v41 = vadd.f32 0.5, %v3590_v10  ;;  %v9176_v18 = vld [vmem:[#allocation40_spill] sm:$0xff] }
 0x847   :  { %4078 = vtanh.f32 %v3597_v42  ;;  %3764 = vmatpush1.msra.mxu0 %v9152_v49  ;;  %3835 = vmatpush1.msra.mxu1 %v9153_v50 }
 0x848   :  { %3765 = vmatprep.subr.mxu0 %v9154_v53  ;;  %3836 = vmatprep.subr.mxu1 %v9155_v63 }
 0x849   :  { %3766 = vmatpush1.msra.mxu0 %v9156_v3  ;;  %3837 = vmatpush1.msra.mxu1 %v9157_v2 }
 0x84a   :  { %3767 = vmatprep.subr.mxu0 %v9158_v16  ;;  %3838 = vmatprep.subr.mxu1 %v9159_v48 }
 0x84b   :  { %3768 = vmatpush1.msra.mxu0 %v9160_v0  ;;  %3839 = vmatpush1.msra.mxu1 %v9161_v45 }
 0x84c   :  { %3769 = vmatprep.subr.mxu0 %v9162_v12  ;;  %3840 = vmatprep.subr.mxu1 %v9163_v51 }
 0x84d   :  { %3770 = vmatpush1.msra.mxu0 %v9164_v25  ;;  %3841 = vmatpush1.msra.mxu1 %v9165_v52 }
 0x84e   :  { %3771 = vmatprep.subr.mxu0 %v9166_v8  ;;  %3842 = vmatprep.subr.mxu1 %v9167_v57 }
 0x84f   :  { %3772 = vmatpush1.msra.mxu0 %v9168_v15  ;;  %3843 = vmatpush1.msra.mxu1 %v9169_v35 }
 0x850   :  { %3773 = vmatprep.subr.mxu0 %v9170_v30  ;;  %3844 = vmatprep.subr.mxu1 %v9171_v1 }
 0x851   :  { %3774 = vmatpush1.msra.mxu0 %v9172_v61  ;;  %3845 = vmatpush1.msra.mxu1 %v9173_v22 }
 0x852   :  { %3775 = vmatprep.subr.mxu0 %v9174_v13  ;;  %3846 = vmatprep.subr.mxu1 %v9175_v14 }
 0x853   :  { %3776 = vmatpush1.msra.mxu0 %v9176_v18  ;;  %3809 = vmatprep.mubr.f32.mxu0 %v9177_v43 }
 0x854   :  { %v4079_v11 = vpop.eup %4078  ;;  %3847 = vmatpush1.msra.mxu1 %v9178_v26  ;;  %3880 = vmatprep.mubr.f32.mxu1 %v9177_v43 }
 0x855   :  { %v3599_v21 = vmul.f32 %v4079_v11, %v3591_v41 }
 0x857   :  { %v3743_v55 = vrot.slane %v3599_v21, 7 }
 0x859   :  { %3810 = vmatmul.mubr.f32.vlgmr.msra.gmra.mxu0 %v3743_v55  ;;  %3881 = vmatmul.mubr.f32.vlgmr.msra.gmra.mxu1 %v3743_v55 }
 0x8f4   :  { %v3666_v60 = vpop.f32.mrf.mxu0  ;;  %v3737_v23 = vpop.f32.mrf.mxu1 }
 0x8f5   :  { %v3667_v24 = vadd.f32 %v3666_v60, %v9179_v20  ;;  %v3738_v44 = vadd.f32 %v3737_v23, %v8502_v27 }
 0x8f6   :  { %v3668_v7 = vpop.f32.mrf.mxu0  ;;  %v3739_v34 = vpop.f32.mrf.mxu1 }
 0x8f7   :  { %v3669_v46 = vadd.f32 %v3668_v7, %v9180_v39  ;;  %v3740_v5 = vadd.f32 %v3739_v34, %v8503_v32 }
 0x919   :  { %v3811_v62 = vpop.f32.mrf.mxu0  ;;  %v3882_v36 = vpop.f32.mrf.mxu1 }
 0x91a   :  { %v3812_v47 = vadd.f32 %v3811_v62, %v3667_v24  ;;  %v3883_v54 = vadd.f32 %v3882_v36, %v3738_v44 }
 0x91b   :  { %v3813_v29 = vpop.f32.mrf.mxu0  ;;  %v3884_v58 = vpop.f32.mrf.mxu1 }
 0x91c   :  { %v3887_v6 = vmul.f32 0.5, %v3812_v47  ;;  %v3814_v4 = vadd.f32 %v3813_v29, %v3669_v46  ;;  %v3885_v9 = vadd.f32 %v3884_v58, %v3740_v5 }
 0x91e   :  { %4080 = vtanh.f32 %v3887_v6  ;;  %v3891_v56 = vmul.f32 0.5, %v3814_v4  ;;  %v3896_v59 = vmul.f32 0.5, %v3885_v9 }
 0x920   :  { %4082 = vtanh.f32 %v3891_v56 }
 0x921   :  { %4084 = vtanh.f32 %v3883_v54 }
 0x922   :  { %4086 = vtanh.f32 %v3896_v59 }
 0x92b   :  { %v4081_v17 = vpop.eup %4080 }
 0x92c   :  { %v3889_v19 = vmul.f32 0.5, %v4081_v17 }
 0x92d   :  { %v4083_v28 = vpop.eup %4082 }
 0x92e   :  { %v3890_v31 = vadd.f32 0.5, %v3889_v19  ;;  %v3893_v33 = vmul.f32 0.5, %v4083_v28  ;;  %v4085_v42 = vpop.eup %4084 }
 0x92f   :  { %v4087_v53 = vpop.eup %4086 }
 0x930   :  { %v3894_v40 = vadd.f32 0.5, %v3893_v33  ;;  %v3901_v49 = vmul.f32 %v4085_v42, %v3890_v31  ;;  %v3898_v63 = vmul.f32 0.5, %v4087_v53 }
 0x932   :  { %v3900_v27 = vmul.f32 %v3894_v40, %v7606_v38  ;;  %v3899_v32 = vadd.f32 0.5, %v3898_v63 }
 0x934   :  { %v3902_v50 = vadd.f32 %v3901_v49, %v3900_v27 }
 0x936   :  { %4088 = vtanh.f32 %v3902_v50 }
 0x943   :  { %v4089_v3 = vpop.eup %4088 }
 0x944   :  { %v3904_v2 = vmul.f32 %v4089_v3, %v3899_v32 }
 0x946   :  { %3906 = vst.msk [vmem:[#allocation10] sm:$0x1] %vm3905_vm0, %v3904_v2 }
 0x947   :  { %4757 = shalt.err (!%p4754_p10)
}
 0x948   :  { %3916 = dma.vmem_to_hbm [thread:$0]  %s3914_s3, 16, %s7693_s7, [#allocation4]  }
 0x949   :  { %4772 = dma.done.wait [#allocation4], 16  }
 0x94a   :  { %4773 = vsyncadd [#allocation4], 4294967280 }
 0x94b   :  { %3920 = vsyncpa [#allocation3], 1 }
 0x94c   :  { %3921 = vsyncpa [#allocation6], 1 }
 0x94d   :  { %3922 = vsyncpa [#allocation9], 1 }
 0x94e   :  { %3923 = vsyncpa [#allocation4], 1 }

</bundles_post_ra>
